<compile_context>
chip_gen: v7x
topology: tpu7x:2x2x1
jax: 0.10.0
libtpu: 0.0.40
codegen_flags: <defaults>
</compile_context>

<pallas_src>
import jax
import jax.numpy as jnp
from jax.experimental import pallas as pl
from jax.experimental.pallas import tpu as pltpu

EPS = 1e-5    # PyTorch BatchNorm default
FPAD = 128    # padded feature width (lane-dense)


# ------------------------------ fused kernel -------------------------------- #

def _fused_kernel(p1_ref, w1_ref, s1_ref, w2_ref, s2_ref,
                  wd_ref, bd_ref, wr_ref, br_ref, o_ref, a_scr, flat_scr):
    """conv1+bn1+pool+relu -> conv2+bn2+pool+relu -> dense+relu -> regressor.

    p1_ref : (8, 8*8*S2*B, C*8) bf16  rows = w1*(8*S2*B) + w2*(S2*B) + s*B + b,
                                      dim0 = conv2 kernel offset k
    w1_ref : (C*8, FPAD)   bf16       BN-folded conv1 weight (zero-padded cols)
    s1_ref : (1, FPAD)     f32        BN-folded conv1 shift
    w2_ref : (8, FPAD, FPAD) bf16     BN-folded conv2 weight per kernel offset
    s2_ref : (1, FPAD)     f32        BN-folded conv2 shift
    wd_ref : (S2*FPAD, hidden) f32    dense weight, row = s*FPAD + channel
    bd_ref : (1, hidden)   f32
    wr_ref : (hidden, 1)   f32
    br_ref : (1, 1)        f32
    o_ref  : (B, 1)        f32
    a_scr  : (S2*B, FPAD)  f32 scratch  pooled stage-2 activations, rows (s, b)
    flat_scr:(B, S2*FPAD)  f32 scratch  lane-dense flatten feeding the dense dot
    """
    nb = o_ref.shape[0]                      # batch
    rows2 = p1_ref.shape[1] // 8             # conv2 rows per slab = 8*S2*B
    sb = rows2 // 8                          # pooled rows         = S2*B
    s2n = sb // nb                           # S2 pooled spatial positions
    fpad = w1_ref.shape[1]

    w1 = w1_ref[...]
    s1 = s1_ref[...]

    # Stage-2 conv accumulator over the 8 conv2 kernel offsets.
    z = jnp.zeros((rows2, fpad), jnp.float32)
    for k in range(8):
        # --- stage 1 for slab k: one long dot, max-pool folded into the epilogue.
        y = jnp.dot(p1_ref[k], w1, preferred_element_type=jnp.float32)  # (8*rows2, F)
        m = y[0:rows2]
        for w in range(1, 8):                # pool1 window: running max (aligned slices)
            m = jnp.maximum(m, y[w * rows2:(w + 1) * rows2])
        y1 = jnp.maximum(m + s1, 0.0).astype(jnp.bfloat16)              # (rows2, F)
        # --- stage 2 partial conv for kernel offset k.
        z = z + jnp.dot(y1, w2_ref[k], preferred_element_type=jnp.float32)

    # Stage-2 max-pool over the 8 pool-window offsets (tile-aligned row slices).
    p = z[0:sb]
    for w in range(1, 8):
        p = jnp.maximum(p, z[w * sb:(w + 1) * sb])
    a_scr[...] = jnp.maximum(p + s2_ref[...], 0.0)                      # (S2*B, F)

    # Lane-dense flatten: flat[b, s*FPAD + c] = a[(s, b), c]  (matches PyTorch view).
    for s in range(s2n):
        flat_scr[:, s * fpad:(s + 1) * fpad] = a_scr[s * nb:(s + 1) * nb, :]

    h = jnp.maximum(
        jnp.dot(flat_scr[...], wd_ref[...], preferred_element_type=jnp.float32)
        + bd_ref[...], 0.0)                                             # dense + ReLU
    o_ref[...] = (jnp.dot(h, wr_ref[...], preferred_element_type=jnp.float32)
                  + br_ref[...])                                        # regressor


# ------------------------------ host-side glue ------------------------------ #

def _full_spec(shape):
    return pl.BlockSpec(shape, lambda i: (0,) * len(shape))


def _extract_patches(x):
    """x: (B, C, D, H, W), D/H/W divisible by 16 -> (8, 8*8*S2*B, C*8) patches.

    dim0 = conv2 kernel offset (kd2, kh2, kw2)
    dim1 = pool1-window w1 | pool2-window w2 | pooled spatial s | batch b
    dim2 = stage-1 contraction (c, kd1, kh1, kw1)
    Per spatial dim: d = 16*sd + 8*wd2 + 4*kd2 + 2*wd1 + kd1.
    """
    B, C, D, H, W = x.shape
    assert D % 16 == 0 and H % 16 == 0 and W % 16 == 0
    SD, SH, SW = D // 16, H // 16, W // 16
    x = x.reshape(B * C, SD, 2, 2, 2, 2, SH, 2, 2, 2, 2, SW, 2, 2, 2, 2)
    #  axes: 0 bc | 1 sd 2 wd2 3 kd2 4 wd1 5 kd1 | 6 sh 7 wh2 8 kh2 9 wh1 10 kh1
    #        | 11 sw 12 ww2 13 kw2 14 ww1 15 kw1
    x = x.transpose(3, 8, 13, 4, 9, 14, 2, 7, 12, 1, 6, 11, 0, 5, 10, 15)
    #  -> (kd2, kh2, kw2, wd1, wh1, ww1, wd2, wh2, ww2, sd, sh, sw, bc, kd1, kh1, kw1)
    s2 = SD * SH * SW
    return x.reshape(8, 8 * 8 * s2 * B, C * 8), s2


def _fold_bn(w, b, gamma, beta, mean, var):
    scale = gamma / jnp.sqrt(var + EPS)
    shift = (b - mean) * scale + beta
    return scale, shift


def prepare_params(params, fpad=FPAD):
    """One-time host-side weight prep: BN folding, padding, kernel-ready layouts."""
    F1, C = params["conv1_w"].shape[:2]
    F2 = params["conv2_w"].shape[0]
    hidden, linear_in = params["dense_w"].shape
    S2 = linear_in // F2

    scale1, shift1 = _fold_bn(params["conv1_w"], params["conv1_b"], params["bn1_gamma"],
                              params["bn1_beta"], params["bn1_mean"], params["bn1_var"])
    w1k = (params["conv1_w"].reshape(F1, C, 8) * scale1[:, None, None]).transpose(1, 2, 0)
    w1 = jnp.zeros((C * 8, fpad), jnp.float32).at[:, :F1].set(w1k.reshape(C * 8, F1))
    s1 = jnp.zeros((1, fpad), jnp.float32).at[0, :F1].set(shift1)

    scale2, shift2 = _fold_bn(params["conv2_w"], params["conv2_b"], params["bn2_gamma"],
                              params["bn2_beta"], params["bn2_mean"], params["bn2_var"])
    w2k = (params["conv2_w"].reshape(F2, F1, 8) * scale2[:, None, None]).transpose(2, 1, 0)
    w2 = jnp.zeros((8, fpad, fpad), jnp.float32).at[:, :F1, :F2].set(w2k)
    s2 = jnp.zeros((1, fpad), jnp.float32).at[0, :F2].set(shift2)

    # dense weight remapped so row = pooled-spatial s * FPAD + channel c.
    wd = jnp.zeros((S2, fpad, hidden), jnp.float32).at[:, :F2, :].set(
        params["dense_w"].reshape(hidden, F2, S2).transpose(2, 1, 0)
    ).reshape(S2 * fpad, hidden)

    return {
        "w1": w1.astype(jnp.bfloat16), "s1": s1,
        "w2": w2.astype(jnp.bfloat16), "s2": s2,
        "wd": wd,
        "bd": params["dense_b"][None, :],
        "wr": params["reg_w"].T,
        "br": params["reg_b"][None, :],
    }


def tumor3dnet_forward(images, prep):
    """Eval-mode forward pass (Dropout3d/Dropout are identity in eval)."""
    fpad = prep["w1"].shape[1]
    B = images.shape[0]

    # Single remaining host-side op: bf16 cast (before!) + im2col transpose.
    p1, s2n = _extract_patches(images.astype(jnp.bfloat16))
    assert prep["wd"].shape[0] == s2n * fpad, "linear_in inconsistent with input shape"

    args = (p1, prep["w1"], prep["s1"], prep["w2"], prep["s2"],
            prep["wd"], prep["bd"], prep["wr"], prep["br"])
    out_dim = prep["wr"].shape[1]

    return pl.pallas_call(
        _fused_kernel,
        out_shape=jax.ShapeDtypeStruct((B, out_dim), jnp.float32),
        grid=(1,),
        in_specs=[_full_spec(a.shape) for a in args],
        out_specs=_full_spec((B, out_dim)),
        scratch_shapes=[pltpu.VMEM((s2n * B, fpad), jnp.float32),
                        pltpu.VMEM((B, s2n * fpad), jnp.float32)],
        compiler_params=pltpu.CompilerParams(dimension_semantics=("arbitrary",)),
    )(*args)


# ------------------------- pure-JAX reference (f32) ------------------------- #

def reference_forward(images, params):
    def block(x, w, b, gamma, beta, mean, var):
        y = jax.lax.conv_general_dilated(
            x, w, window_strides=(2, 2, 2), padding="VALID",
            dimension_numbers=("NCDHW", "OIDHW", "NCDHW"))
        y = y + b[None, :, None, None, None]
        scale = gamma / jnp.sqrt(var + EPS)
        shift = beta - mean * scale
        y = y * scale[None, :, None, None, None] + shift[None, :, None, None, None]
        y = jax.lax.reduce_window(y, -jnp.inf, jax.lax.max,
                                  (1, 1, 2, 2, 2), (1, 1, 2, 2, 2), "VALID")
        return jnp.maximum(y, 0.0)

    x = block(images, params["conv1_w"], params["conv1_b"], params["bn1_gamma"],
              params["bn1_beta"], params["bn1_mean"], params["bn1_var"])
    x = block(x, params["conv2_w"], params["conv2_b"], params["bn2_gamma"],
              params["bn2_beta"], params["bn2_mean"], params["bn2_var"])
    x = x.reshape(x.shape[0], -1)
    h = jnp.maximum(x @ params["dense_w"].T + params["dense_b"], 0.0)
    return h @ params["reg_w"].T + params["reg_b"]


# ------------------------------- parameters --------------------------------- #

def init_params(key, in_channels, conv1_filters, conv2_filters, linear_in, hidden):
    ks = jax.random.split(key, 12)
    f32 = jnp.float32
    p = {
        "conv1_w": 0.1 * jax.random.normal(ks[0], (conv1_filters, in_channels, 2, 2, 2), f32),
        "conv1_b": 0.1 * jax.random.normal(ks[1], (conv1_filters,), f32),
        "bn1_gamma": jax.random.uniform(ks[2], (conv1_filters,), f32, 0.5, 1.5),
        "bn1_beta": 0.1 * jax.random.normal(ks[3], (conv1_filters,), f32),
        "bn1_mean": 0.1 * jax.random.normal(ks[4], (conv1_filters,), f32),
        "bn1_var": jax.random.uniform(ks[5], (conv1_filters,), f32, 0.5, 1.5),
        "conv2_w": 0.1 * jax.random.normal(ks[6], (conv2_filters, conv1_filters, 2, 2, 2), f32),
        "conv2_b": 0.1 * jax.random.normal(ks[7], (conv2_filters,), f32),
        "bn2_gamma": jax.random.uniform(ks[8], (conv2_filters,), f32, 0.5, 1.5),
        "bn2_beta": 0.1 * jax.random.normal(ks[9], (conv2_filters,), f32),
        "bn2_mean": 0.1 * jax.random.normal(ks[10], (conv2_filters,), f32),
        "bn2_var": jax.random.uniform(ks[11], (conv2_filters,), f32, 0.5, 1.5),
    }
    k2 = jax.random.split(jax.random.fold_in(key, 1), 4)
    p["dense_w"] = 0.05 * jax.random.normal(k2[0], (hidden, linear_in), f32)   # PyTorch (out,in)
    p["dense_b"] = 0.05 * jax.random.normal(k2[1], (hidden,), f32)
    p["reg_w"] = 0.05 * jax.random.normal(k2[2], (1, hidden), f32)
    p["reg_b"] = 0.05 * jax.random.normal(k2[3], (1,), f32)
    return p


# ---------------------------------- main ------------------------------------ #

if __name__ == "__main__":
    # B=2, in_channels=4, spatial 32^3.
    # conv1: 32 -> 16, pool -> 8 ; conv2: 8 -> 4, pool -> 2 ; linear_in = 10*2^3 = 80.
    B, C, S = 2, 4, 32
    conv1_filters = conv2_filters = 10
    hidden = 128
    linear_in = conv2_filters * (S // 16) ** 3

    key = jax.random.PRNGKey(0)
    k_img, k_par = jax.random.split(key)
    images = jax.random.normal(k_img, (B, C, S, S, S), jnp.float32)
    params = init_params(k_par, C, conv1_filters, conv2_filters, linear_in, hidden)

    prep = prepare_params(params)                        # one-time weight prep
    out = jax.jit(tumor3dnet_forward)(images, prep)
    out = jax.block_until_ready(out)
    assert out.shape == (B, 1) and out.dtype == jnp.float32

    # Correctness check vs. float32 JAX reference (tolerance covers bf16 storage).
    ref = jax.jit(reference_forward)(images, params)
    ref = jax.block_until_ready(ref)
    assert jnp.allclose(out, ref, rtol=5e-2, atol=5e-2), (
        f"mismatch vs reference: max abs diff = {float(jnp.max(jnp.abs(out - ref)))}")

    print("KERNEL_OK")
</pallas_src>

<mosaic_0001>
module attributes {stable_mosaic.version = 11 : i64} {
  func.func @_fused_kernel(%arg0: i32, %arg1: memref<8x1024x32xbf16, #tpu.memory_space<vmem>>, %arg2: memref<32x128xbf16, #tpu.memory_space<vmem>>, %arg3: memref<1x128xf32, #tpu.memory_space<vmem>>, %arg4: memref<8x128x128xbf16, #tpu.memory_space<vmem>>, %arg5: memref<1x128xf32, #tpu.memory_space<vmem>>, %arg6: memref<1024x128xf32, #tpu.memory_space<vmem>>, %arg7: memref<1x128xf32, #tpu.memory_space<vmem>>, %arg8: memref<128x1xf32, #tpu.memory_space<vmem>>, %arg9: memref<1x1xf32, #tpu.memory_space<vmem>>, %arg10: memref<2x1xf32, #tpu.memory_space<vmem>>, %arg11: memref<16x128xf32, #tpu.memory_space<vmem>>, %arg12: memref<2x1024xf32, #tpu.memory_space<vmem>>) attributes {dimension_semantics = [#tpu.dimension_semantics<arbitrary>], iteration_bounds = array<i64: 1>, scalar_prefetch = 0 : i64, scratch_operands = 2 : i64, tpu.core_type = #tpu.core_type<tc>, window_params = [{pipeline_mode = #tpu.pipeline_mode<synchronous>, transform_indices = @transform_0, window_bounds = array<i64: 8, 1024, 32>}, {pipeline_mode = #tpu.pipeline_mode<synchronous>, transform_indices = @transform_1, window_bounds = array<i64: 32, 128>}, {pipeline_mode = #tpu.pipeline_mode<synchronous>, transform_indices = @transform_2, window_bounds = array<i64: 1, 128>}, {pipeline_mode = #tpu.pipeline_mode<synchronous>, transform_indices = @transform_3, window_bounds = array<i64: 8, 128, 128>}, {pipeline_mode = #tpu.pipeline_mode<synchronous>, transform_indices = @transform_4, window_bounds = array<i64: 1, 128>}, {pipeline_mode = #tpu.pipeline_mode<synchronous>, transform_indices = @transform_5, window_bounds = array<i64: 1024, 128>}, {pipeline_mode = #tpu.pipeline_mode<synchronous>, transform_indices = @transform_6, window_bounds = array<i64: 1, 128>}, {pipeline_mode = #tpu.pipeline_mode<synchronous>, transform_indices = @transform_7, window_bounds = array<i64: 128, 1>}, {pipeline_mode = #tpu.pipeline_mode<synchronous>, transform_indices = @transform_8, window_bounds = array<i64: 1, 1>}, {pipeline_mode = #tpu.pipeline_mode<synchronous>, transform_indices = @transform_9, window_bounds = array<i64: 2, 1>}]} {
    %c0 = arith.constant 0 : index
    %c0_0 = arith.constant 0 : index
    %0 = vector.load %arg2[%c0, %c0_0] : memref<32x128xbf16, #tpu.memory_space<vmem>>, vector<32x128xbf16>
    %c0_1 = arith.constant 0 : index
    %c0_2 = arith.constant 0 : index
    %1 = vector.load %arg3[%c0_1, %c0_2] : memref<1x128xf32, #tpu.memory_space<vmem>>, vector<1x128xf32>
    %cst = arith.constant 0.000000e+00 : f32
    %2 = vector.broadcast %cst : f32 to vector<128x128xf32>
    %c0_3 = arith.constant 0 : index
    %c0_4 = arith.constant 0 : index
    %c0_5 = arith.constant 0 : index
    %3 = vector.load %arg1[%c0_3, %c0_4, %c0_5] : memref<8x1024x32xbf16, #tpu.memory_space<vmem>>, vector<1x1024x32xbf16>
    %4 = vector.shape_cast %3 : vector<1x1024x32xbf16> to vector<1024x32xbf16>
    %cst_6 = arith.constant dense<0.000000e+00> : vector<1024x128xf32>
    %5 = tpu.matmul %4, %0, %cst_6 {dimension_numbers = #tpu.dot_dimension_numbers<[1], [0], [0], [1], [0, 0, 1, 1], [], []>} : vector<1024x32xbf16>, vector<32x128xbf16>, vector<1024x128xf32> -> vector<1024x128xf32>
    %6 = vector.extract_strided_slice %5 {offsets = [0, 0], sizes = [128, 128], strides = [1, 1]} : vector<1024x128xf32> to vector<128x128xf32>
    %7 = vector.extract_strided_slice %5 {offsets = [128, 0], sizes = [128, 128], strides = [1, 1]} : vector<1024x128xf32> to vector<128x128xf32>
    %8 = arith.maximumf %6, %7 : vector<128x128xf32>
    %9 = vector.extract_strided_slice %5 {offsets = [256, 0], sizes = [128, 128], strides = [1, 1]} : vector<1024x128xf32> to vector<128x128xf32>
    %10 = arith.maximumf %8, %9 : vector<128x128xf32>
    %11 = vector.extract_strided_slice %5 {offsets = [384, 0], sizes = [128, 128], strides = [1, 1]} : vector<1024x128xf32> to vector<128x128xf32>
    %12 = arith.maximumf %10, %11 : vector<128x128xf32>
    %13 = vector.extract_strided_slice %5 {offsets = [512, 0], sizes = [128, 128], strides = [1, 1]} : vector<1024x128xf32> to vector<128x128xf32>
    %14 = arith.maximumf %12, %13 : vector<128x128xf32>
    %15 = vector.extract_strided_slice %5 {offsets = [640, 0], sizes = [128, 128], strides = [1, 1]} : vector<1024x128xf32> to vector<128x128xf32>
    %16 = arith.maximumf %14, %15 : vector<128x128xf32>
    %17 = vector.extract_strided_slice %5 {offsets = [768, 0], sizes = [128, 128], strides = [1, 1]} : vector<1024x128xf32> to vector<128x128xf32>
    %18 = arith.maximumf %16, %17 : vector<128x128xf32>
    %19 = vector.extract_strided_slice %5 {offsets = [896, 0], sizes = [128, 128], strides = [1, 1]} : vector<1024x128xf32> to vector<128x128xf32>
    %20 = arith.maximumf %18, %19 : vector<128x128xf32>
    %21 = vector.broadcast %1 : vector<1x128xf32> to vector<128x128xf32>
    %22 = arith.addf %20, %21 : vector<128x128xf32>
    %cst_7 = arith.constant 0.000000e+00 : f32
    %23 = vector.broadcast %cst_7 : f32 to vector<128x128xf32>
    %24 = arith.maximumf %22, %23 : vector<128x128xf32>
    %25 = arith.truncf %24 : vector<128x128xf32> to vector<128x128xbf16>
    %c0_8 = arith.constant 0 : index
    %c0_9 = arith.constant 0 : index
    %c0_10 = arith.constant 0 : index
    %26 = vector.load %arg4[%c0_8, %c0_9, %c0_10] : memref<8x128x128xbf16, #tpu.memory_space<vmem>>, vector<1x128x128xbf16>
    %27 = vector.shape_cast %26 : vector<1x128x128xbf16> to vector<128x128xbf16>
    %cst_11 = arith.constant dense<0.000000e+00> : vector<128x128xf32>
    %28 = tpu.matmul %25, %27, %cst_11 {dimension_numbers = #tpu.dot_dimension_numbers<[1], [0], [0], [1], [0, 0, 1, 1], [], []>} : vector<128x128xbf16>, vector<128x128xbf16>, vector<128x128xf32> -> vector<128x128xf32>
    %29 = arith.addf %2, %28 : vector<128x128xf32>
    %c1 = arith.constant 1 : index
    %c0_12 = arith.constant 0 : index
    %c0_13 = arith.constant 0 : index
    %30 = vector.load %arg1[%c1, %c0_12, %c0_13] : memref<8x1024x32xbf16, #tpu.memory_space<vmem>>, vector<1x1024x32xbf16>
    %31 = vector.shape_cast %30 : vector<1x1024x32xbf16> to vector<1024x32xbf16>
    %cst_14 = arith.constant dense<0.000000e+00> : vector<1024x128xf32>
    %32 = tpu.matmul %31, %0, %cst_14 {dimension_numbers = #tpu.dot_dimension_numbers<[1], [0], [0], [1], [0, 0, 1, 1], [], []>} : vector<1024x32xbf16>, vector<32x128xbf16>, vector<1024x128xf32> -> vector<1024x128xf32>
    %33 = vector.extract_strided_slice %32 {offsets = [0, 0], sizes = [128, 128], strides = [1, 1]} : vector<1024x128xf32> to vector<128x128xf32>
    %34 = vector.extract_strided_slice %32 {offsets = [128, 0], sizes = [128, 128], strides = [1, 1]} : vector<1024x128xf32> to vector<128x128xf32>
    %35 = arith.maximumf %33, %34 : vector<128x128xf32>
    %36 = vector.extract_strided_slice %32 {offsets = [256, 0], sizes = [128, 128], strides = [1, 1]} : vector<1024x128xf32> to vector<128x128xf32>
    %37 = arith.maximumf %35, %36 : vector<128x128xf32>
    %38 = vector.extract_strided_slice %32 {offsets = [384, 0], sizes = [128, 128], strides = [1, 1]} : vector<1024x128xf32> to vector<128x128xf32>
    %39 = arith.maximumf %37, %38 : vector<128x128xf32>
    %40 = vector.extract_strided_slice %32 {offsets = [512, 0], sizes = [128, 128], strides = [1, 1]} : vector<1024x128xf32> to vector<128x128xf32>
    %41 = arith.maximumf %39, %40 : vector<128x128xf32>
    %42 = vector.extract_strided_slice %32 {offsets = [640, 0], sizes = [128, 128], strides = [1, 1]} : vector<1024x128xf32> to vector<128x128xf32>
    %43 = arith.maximumf %41, %42 : vector<128x128xf32>
    %44 = vector.extract_strided_slice %32 {offsets = [768, 0], sizes = [128, 128], strides = [1, 1]} : vector<1024x128xf32> to vector<128x128xf32>
    %45 = arith.maximumf %43, %44 : vector<128x128xf32>
    %46 = vector.extract_strided_slice %32 {offsets = [896, 0], sizes = [128, 128], strides = [1, 1]} : vector<1024x128xf32> to vector<128x128xf32>
    %47 = arith.maximumf %45, %46 : vector<128x128xf32>
    %48 = vector.broadcast %1 : vector<1x128xf32> to vector<128x128xf32>
    %49 = arith.addf %47, %48 : vector<128x128xf32>
    %cst_15 = arith.constant 0.000000e+00 : f32
    %50 = vector.broadcast %cst_15 : f32 to vector<128x128xf32>
    %51 = arith.maximumf %49, %50 : vector<128x128xf32>
    %52 = arith.truncf %51 : vector<128x128xf32> to vector<128x128xbf16>
    %c1_16 = arith.constant 1 : index
    %c0_17 = arith.constant 0 : index
    %c0_18 = arith.constant 0 : index
    %53 = vector.load %arg4[%c1_16, %c0_17, %c0_18] : memref<8x128x128xbf16, #tpu.memory_space<vmem>>, vector<1x128x128xbf16>
    %54 = vector.shape_cast %53 : vector<1x128x128xbf16> to vector<128x128xbf16>
    %cst_19 = arith.constant dense<0.000000e+00> : vector<128x128xf32>
    %55 = tpu.matmul %52, %54, %cst_19 {dimension_numbers = #tpu.dot_dimension_numbers<[1], [0], [0], [1], [0, 0, 1, 1], [], []>} : vector<128x128xbf16>, vector<128x128xbf16>, vector<128x128xf32> -> vector<128x128xf32>
    %56 = arith.addf %29, %55 : vector<128x128xf32>
    %c2 = arith.constant 2 : index
    %c0_20 = arith.constant 0 : index
    %c0_21 = arith.constant 0 : index
    %57 = vector.load %arg1[%c2, %c0_20, %c0_21] : memref<8x1024x32xbf16, #tpu.memory_space<vmem>>, vector<1x1024x32xbf16>
    %58 = vector.shape_cast %57 : vector<1x1024x32xbf16> to vector<1024x32xbf16>
    %cst_22 = arith.constant dense<0.000000e+00> : vector<1024x128xf32>
    %59 = tpu.matmul %58, %0, %cst_22 {dimension_numbers = #tpu.dot_dimension_numbers<[1], [0], [0], [1], [0, 0, 1, 1], [], []>} : vector<1024x32xbf16>, vector<32x128xbf16>, vector<1024x128xf32> -> vector<1024x128xf32>
    %60 = vector.extract_strided_slice %59 {offsets = [0, 0], sizes = [128, 128], strides = [1, 1]} : vector<1024x128xf32> to vector<128x128xf32>
    %61 = vector.extract_strided_slice %59 {offsets = [128, 0], sizes = [128, 128], strides = [1, 1]} : vector<1024x128xf32> to vector<128x128xf32>
    %62 = arith.maximumf %60, %61 : vector<128x128xf32>
    %63 = vector.extract_strided_slice %59 {offsets = [256, 0], sizes = [128, 128], strides = [1, 1]} : vector<1024x128xf32> to vector<128x128xf32>
    %64 = arith.maximumf %62, %63 : vector<128x128xf32>
    %65 = vector.extract_strided_slice %59 {offsets = [384, 0], sizes = [128, 128], strides = [1, 1]} : vector<1024x128xf32> to vector<128x128xf32>
    %66 = arith.maximumf %64, %65 : vector<128x128xf32>
    %67 = vector.extract_strided_slice %59 {offsets = [512, 0], sizes = [128, 128], strides = [1, 1]} : vector<1024x128xf32> to vector<128x128xf32>
    %68 = arith.maximumf %66, %67 : vector<128x128xf32>
    %69 = vector.extract_strided_slice %59 {offsets = [640, 0], sizes = [128, 128], strides = [1, 1]} : vector<1024x128xf32> to vector<128x128xf32>
    %70 = arith.maximumf %68, %69 : vector<128x128xf32>
    %71 = vector.extract_strided_slice %59 {offsets = [768, 0], sizes = [128, 128], strides = [1, 1]} : vector<1024x128xf32> to vector<128x128xf32>
    %72 = arith.maximumf %70, %71 : vector<128x128xf32>
    %73 = vector.extract_strided_slice %59 {offsets = [896, 0], sizes = [128, 128], strides = [1, 1]} : vector<1024x128xf32> to vector<128x128xf32>
    %74 = arith.maximumf %72, %73 : vector<128x128xf32>
    %75 = vector.broadcast %1 : vector<1x128xf32> to vector<128x128xf32>
    %76 = arith.addf %74, %75 : vector<128x128xf32>
    %cst_23 = arith.constant 0.000000e+00 : f32
    %77 = vector.broadcast %cst_23 : f32 to vector<128x128xf32>
    %78 = arith.maximumf %76, %77 : vector<128x128xf32>
    %79 = arith.truncf %78 : vector<128x128xf32> to vector<128x128xbf16>
    %c2_24 = arith.constant 2 : index
    %c0_25 = arith.constant 0 : index
    %c0_26 = arith.constant 0 : index
    %80 = vector.load %arg4[%c2_24, %c0_25, %c0_26] : memref<8x128x128xbf16, #tpu.memory_space<vmem>>, vector<1x128x128xbf16>
    %81 = vector.shape_cast %80 : vector<1x128x128xbf16> to vector<128x128xbf16>
    %cst_27 = arith.constant dense<0.000000e+00> : vector<128x128xf32>
    %82 = tpu.matmul %79, %81, %cst_27 {dimension_numbers = #tpu.dot_dimension_numbers<[1], [0], [0], [1], [0, 0, 1, 1], [], []>} : vector<128x128xbf16>, vector<128x128xbf16>, vector<128x128xf32> -> vector<128x128xf32>
    %83 = arith.addf %56, %82 : vector<128x128xf32>
    %c3 = arith.constant 3 : index
    %c0_28 = arith.constant 0 : index
    %c0_29 = arith.constant 0 : index
    %84 = vector.load %arg1[%c3, %c0_28, %c0_29] : memref<8x1024x32xbf16, #tpu.memory_space<vmem>>, vector<1x1024x32xbf16>
    %85 = vector.shape_cast %84 : vector<1x1024x32xbf16> to vector<1024x32xbf16>
    %cst_30 = arith.constant dense<0.000000e+00> : vector<1024x128xf32>
    %86 = tpu.matmul %85, %0, %cst_30 {dimension_numbers = #tpu.dot_dimension_numbers<[1], [0], [0], [1], [0, 0, 1, 1], [], []>} : vector<1024x32xbf16>, vector<32x128xbf16>, vector<1024x128xf32> -> vector<1024x128xf32>
    %87 = vector.extract_strided_slice %86 {offsets = [0, 0], sizes = [128, 128], strides = [1, 1]} : vector<1024x128xf32> to vector<128x128xf32>
    %88 = vector.extract_strided_slice %86 {offsets = [128, 0], sizes = [128, 128], strides = [1, 1]} : vector<1024x128xf32> to vector<128x128xf32>
    %89 = arith.maximumf %87, %88 : vector<128x128xf32>
    %90 = vector.extract_strided_slice %86 {offsets = [256, 0], sizes = [128, 128], strides = [1, 1]} : vector<1024x128xf32> to vector<128x128xf32>
    %91 = arith.maximumf %89, %90 : vector<128x128xf32>
    %92 = vector.extract_strided_slice %86 {offsets = [384, 0], sizes = [128, 128], strides = [1, 1]} : vector<1024x128xf32> to vector<128x128xf32>
    %93 = arith.maximumf %91, %92 : vector<128x128xf32>
    %94 = vector.extract_strided_slice %86 {offsets = [512, 0], sizes = [128, 128], strides = [1, 1]} : vector<1024x128xf32> to vector<128x128xf32>
    %95 = arith.maximumf %93, %94 : vector<128x128xf32>
    %96 = vector.extract_strided_slice %86 {offsets = [640, 0], sizes = [128, 128], strides = [1, 1]} : vector<1024x128xf32> to vector<128x128xf32>
    %97 = arith.maximumf %95, %96 : vector<128x128xf32>
    %98 = vector.extract_strided_slice %86 {offsets = [768, 0], sizes = [128, 128], strides = [1, 1]} : vector<1024x128xf32> to vector<128x128xf32>
    %99 = arith.maximumf %97, %98 : vector<128x128xf32>
    %100 = vector.extract_strided_slice %86 {offsets = [896, 0], sizes = [128, 128], strides = [1, 1]} : vector<1024x128xf32> to vector<128x128xf32>
    %101 = arith.maximumf %99, %100 : vector<128x128xf32>
    %102 = vector.broadcast %1 : vector<1x128xf32> to vector<128x128xf32>
    %103 = arith.addf %101, %102 : vector<128x128xf32>
    %cst_31 = arith.constant 0.000000e+00 : f32
    %104 = vector.broadcast %cst_31 : f32 to vector<128x128xf32>
    %105 = arith.maximumf %103, %104 : vector<128x128xf32>
    %106 = arith.truncf %105 : vector<128x128xf32> to vector<128x128xbf16>
    %c3_32 = arith.constant 3 : index
    %c0_33 = arith.constant 0 : index
    %c0_34 = arith.constant 0 : index
    %107 = vector.load %arg4[%c3_32, %c0_33, %c0_34] : memref<8x128x128xbf16, #tpu.memory_space<vmem>>, vector<1x128x128xbf16>
    %108 = vector.shape_cast %107 : vector<1x128x128xbf16> to vector<128x128xbf16>
    %cst_35 = arith.constant dense<0.000000e+00> : vector<128x128xf32>
    %109 = tpu.matmul %106, %108, %cst_35 {dimension_numbers = #tpu.dot_dimension_numbers<[1], [0], [0], [1], [0, 0, 1, 1], [], []>} : vector<128x128xbf16>, vector<128x128xbf16>, vector<128x128xf32> -> vector<128x128xf32>
    %110 = arith.addf %83, %109 : vector<128x128xf32>
    %c4 = arith.constant 4 : index
    %c0_36 = arith.constant 0 : index
    %c0_37 = arith.constant 0 : index
    %111 = vector.load %arg1[%c4, %c0_36, %c0_37] : memref<8x1024x32xbf16, #tpu.memory_space<vmem>>, vector<1x1024x32xbf16>
    %112 = vector.shape_cast %111 : vector<1x1024x32xbf16> to vector<1024x32xbf16>
    %cst_38 = arith.constant dense<0.000000e+00> : vector<1024x128xf32>
    %113 = tpu.matmul %112, %0, %cst_38 {dimension_numbers = #tpu.dot_dimension_numbers<[1], [0], [0], [1], [0, 0, 1, 1], [], []>} : vector<1024x32xbf16>, vector<32x128xbf16>, vector<1024x128xf32> -> vector<1024x128xf32>
    %114 = vector.extract_strided_slice %113 {offsets = [0, 0], sizes = [128, 128], strides = [1, 1]} : vector<1024x128xf32> to vector<128x128xf32>
    %115 = vector.extract_strided_slice %113 {offsets = [128, 0], sizes = [128, 128], strides = [1, 1]} : vector<1024x128xf32> to vector<128x128xf32>
    %116 = arith.maximumf %114, %115 : vector<128x128xf32>
    %117 = vector.extract_strided_slice %113 {offsets = [256, 0], sizes = [128, 128], strides = [1, 1]} : vector<1024x128xf32> to vector<128x128xf32>
    %118 = arith.maximumf %116, %117 : vector<128x128xf32>
    %119 = vector.extract_strided_slice %113 {offsets = [384, 0], sizes = [128, 128], strides = [1, 1]} : vector<1024x128xf32> to vector<128x128xf32>
    %120 = arith.maximumf %118, %119 : vector<128x128xf32>
    %121 = vector.extract_strided_slice %113 {offsets = [512, 0], sizes = [128, 128], strides = [1, 1]} : vector<1024x128xf32> to vector<128x128xf32>
    %122 = arith.maximumf %120, %121 : vector<128x128xf32>
    %123 = vector.extract_strided_slice %113 {offsets = [640, 0], sizes = [128, 128], strides = [1, 1]} : vector<1024x128xf32> to vector<128x128xf32>
    %124 = arith.maximumf %122, %123 : vector<128x128xf32>
    %125 = vector.extract_strided_slice %113 {offsets = [768, 0], sizes = [128, 128], strides = [1, 1]} : vector<1024x128xf32> to vector<128x128xf32>
    %126 = arith.maximumf %124, %125 : vector<128x128xf32>
    %127 = vector.extract_strided_slice %113 {offsets = [896, 0], sizes = [128, 128], strides = [1, 1]} : vector<1024x128xf32> to vector<128x128xf32>
    %128 = arith.maximumf %126, %127 : vector<128x128xf32>
    %129 = vector.broadcast %1 : vector<1x128xf32> to vector<128x128xf32>
    %130 = arith.addf %128, %129 : vector<128x128xf32>
    %cst_39 = arith.constant 0.000000e+00 : f32
    %131 = vector.broadcast %cst_39 : f32 to vector<128x128xf32>
    %132 = arith.maximumf %130, %131 : vector<128x128xf32>
    %133 = arith.truncf %132 : vector<128x128xf32> to vector<128x128xbf16>
    %c4_40 = arith.constant 4 : index
    %c0_41 = arith.constant 0 : index
    %c0_42 = arith.constant 0 : index
    %134 = vector.load %arg4[%c4_40, %c0_41, %c0_42] : memref<8x128x128xbf16, #tpu.memory_space<vmem>>, vector<1x128x128xbf16>
    %135 = vector.shape_cast %134 : vector<1x128x128xbf16> to vector<128x128xbf16>
    %cst_43 = arith.constant dense<0.000000e+00> : vector<128x128xf32>
    %136 = tpu.matmul %133, %135, %cst_43 {dimension_numbers = #tpu.dot_dimension_numbers<[1], [0], [0], [1], [0, 0, 1, 1], [], []>} : vector<128x128xbf16>, vector<128x128xbf16>, vector<128x128xf32> -> vector<128x128xf32>
    %137 = arith.addf %110, %136 : vector<128x128xf32>
    %c5 = arith.constant 5 : index
    %c0_44 = arith.constant 0 : index
    %c0_45 = arith.constant 0 : index
    %138 = vector.load %arg1[%c5, %c0_44, %c0_45] : memref<8x1024x32xbf16, #tpu.memory_space<vmem>>, vector<1x1024x32xbf16>
    %139 = vector.shape_cast %138 : vector<1x1024x32xbf16> to vector<1024x32xbf16>
    %cst_46 = arith.constant dense<0.000000e+00> : vector<1024x128xf32>
    %140 = tpu.matmul %139, %0, %cst_46 {dimension_numbers = #tpu.dot_dimension_numbers<[1], [0], [0], [1], [0, 0, 1, 1], [], []>} : vector<1024x32xbf16>, vector<32x128xbf16>, vector<1024x128xf32> -> vector<1024x128xf32>
    %141 = vector.extract_strided_slice %140 {offsets = [0, 0], sizes = [128, 128], strides = [1, 1]} : vector<1024x128xf32> to vector<128x128xf32>
    %142 = vector.extract_strided_slice %140 {offsets = [128, 0], sizes = [128, 128], strides = [1, 1]} : vector<1024x128xf32> to vector<128x128xf32>
    %143 = arith.maximumf %141, %142 : vector<128x128xf32>
    %144 = vector.extract_strided_slice %140 {offsets = [256, 0], sizes = [128, 128], strides = [1, 1]} : vector<1024x128xf32> to vector<128x128xf32>
    %145 = arith.maximumf %143, %144 : vector<128x128xf32>
    %146 = vector.extract_strided_slice %140 {offsets = [384, 0], sizes = [128, 128], strides = [1, 1]} : vector<1024x128xf32> to vector<128x128xf32>
    %147 = arith.maximumf %145, %146 : vector<128x128xf32>
    %148 = vector.extract_strided_slice %140 {offsets = [512, 0], sizes = [128, 128], strides = [1, 1]} : vector<1024x128xf32> to vector<128x128xf32>
    %149 = arith.maximumf %147, %148 : vector<128x128xf32>
    %150 = vector.extract_strided_slice %140 {offsets = [640, 0], sizes = [128, 128], strides = [1, 1]} : vector<1024x128xf32> to vector<128x128xf32>
    %151 = arith.maximumf %149, %150 : vector<128x128xf32>
    %152 = vector.extract_strided_slice %140 {offsets = [768, 0], sizes = [128, 128], strides = [1, 1]} : vector<1024x128xf32> to vector<128x128xf32>
    %153 = arith.maximumf %151, %152 : vector<128x128xf32>
    %154 = vector.extract_strided_slice %140 {offsets = [896, 0], sizes = [128, 128], strides = [1, 1]} : vector<1024x128xf32> to vector<128x128xf32>
    %155 = arith.maximumf %153, %154 : vector<128x128xf32>
    %156 = vector.broadcast %1 : vector<1x128xf32> to vector<128x128xf32>
    %157 = arith.addf %155, %156 : vector<128x128xf32>
    %cst_47 = arith.constant 0.000000e+00 : f32
    %158 = vector.broadcast %cst_47 : f32 to vector<128x128xf32>
    %159 = arith.maximumf %157, %158 : vector<128x128xf32>
    %160 = arith.truncf %159 : vector<128x128xf32> to vector<128x128xbf16>
    %c5_48 = arith.constant 5 : index
    %c0_49 = arith.constant 0 : index
    %c0_50 = arith.constant 0 : index
    %161 = vector.load %arg4[%c5_48, %c0_49, %c0_50] : memref<8x128x128xbf16, #tpu.memory_space<vmem>>, vector<1x128x128xbf16>
    %162 = vector.shape_cast %161 : vector<1x128x128xbf16> to vector<128x128xbf16>
    %cst_51 = arith.constant dense<0.000000e+00> : vector<128x128xf32>
    %163 = tpu.matmul %160, %162, %cst_51 {dimension_numbers = #tpu.dot_dimension_numbers<[1], [0], [0], [1], [0, 0, 1, 1], [], []>} : vector<128x128xbf16>, vector<128x128xbf16>, vector<128x128xf32> -> vector<128x128xf32>
    %164 = arith.addf %137, %163 : vector<128x128xf32>
    %c6 = arith.constant 6 : index
    %c0_52 = arith.constant 0 : index
    %c0_53 = arith.constant 0 : index
    %165 = vector.load %arg1[%c6, %c0_52, %c0_53] : memref<8x1024x32xbf16, #tpu.memory_space<vmem>>, vector<1x1024x32xbf16>
    %166 = vector.shape_cast %165 : vector<1x1024x32xbf16> to vector<1024x32xbf16>
    %cst_54 = arith.constant dense<0.000000e+00> : vector<1024x128xf32>
    %167 = tpu.matmul %166, %0, %cst_54 {dimension_numbers = #tpu.dot_dimension_numbers<[1], [0], [0], [1], [0, 0, 1, 1], [], []>} : vector<1024x32xbf16>, vector<32x128xbf16>, vector<1024x128xf32> -> vector<1024x128xf32>
    %168 = vector.extract_strided_slice %167 {offsets = [0, 0], sizes = [128, 128], strides = [1, 1]} : vector<1024x128xf32> to vector<128x128xf32>
    %169 = vector.extract_strided_slice %167 {offsets = [128, 0], sizes = [128, 128], strides = [1, 1]} : vector<1024x128xf32> to vector<128x128xf32>
    %170 = arith.maximumf %168, %169 : vector<128x128xf32>
    %171 = vector.extract_strided_slice %167 {offsets = [256, 0], sizes = [128, 128], strides = [1, 1]} : vector<1024x128xf32> to vector<128x128xf32>
    %172 = arith.maximumf %170, %171 : vector<128x128xf32>
    %173 = vector.extract_strided_slice %167 {offsets = [384, 0], sizes = [128, 128], strides = [1, 1]} : vector<1024x128xf32> to vector<128x128xf32>
    %174 = arith.maximumf %172, %173 : vector<128x128xf32>
    %175 = vector.extract_strided_slice %167 {offsets = [512, 0], sizes = [128, 128], strides = [1, 1]} : vector<1024x128xf32> to vector<128x128xf32>
    %176 = arith.maximumf %174, %175 : vector<128x128xf32>
    %177 = vector.extract_strided_slice %167 {offsets = [640, 0], sizes = [128, 128], strides = [1, 1]} : vector<1024x128xf32> to vector<128x128xf32>
    %178 = arith.maximumf %176, %177 : vector<128x128xf32>
    %179 = vector.extract_strided_slice %167 {offsets = [768, 0], sizes = [128, 128], strides = [1, 1]} : vector<1024x128xf32> to vector<128x128xf32>
    %180 = arith.maximumf %178, %179 : vector<128x128xf32>
    %181 = vector.extract_strided_slice %167 {offsets = [896, 0], sizes = [128, 128], strides = [1, 1]} : vector<1024x128xf32> to vector<128x128xf32>
    %182 = arith.maximumf %180, %181 : vector<128x128xf32>
    %183 = vector.broadcast %1 : vector<1x128xf32> to vector<128x128xf32>
    %184 = arith.addf %182, %183 : vector<128x128xf32>
    %cst_55 = arith.constant 0.000000e+00 : f32
    %185 = vector.broadcast %cst_55 : f32 to vector<128x128xf32>
    %186 = arith.maximumf %184, %185 : vector<128x128xf32>
    %187 = arith.truncf %186 : vector<128x128xf32> to vector<128x128xbf16>
    %c6_56 = arith.constant 6 : index
    %c0_57 = arith.constant 0 : index
    %c0_58 = arith.constant 0 : index
    %188 = vector.load %arg4[%c6_56, %c0_57, %c0_58] : memref<8x128x128xbf16, #tpu.memory_space<vmem>>, vector<1x128x128xbf16>
    %189 = vector.shape_cast %188 : vector<1x128x128xbf16> to vector<128x128xbf16>
    %cst_59 = arith.constant dense<0.000000e+00> : vector<128x128xf32>
    %190 = tpu.matmul %187, %189, %cst_59 {dimension_numbers = #tpu.dot_dimension_numbers<[1], [0], [0], [1], [0, 0, 1, 1], [], []>} : vector<128x128xbf16>, vector<128x128xbf16>, vector<128x128xf32> -> vector<128x128xf32>
    %191 = arith.addf %164, %190 : vector<128x128xf32>
    %c7 = arith.constant 7 : index
    %c0_60 = arith.constant 0 : index
    %c0_61 = arith.constant 0 : index
    %192 = vector.load %arg1[%c7, %c0_60, %c0_61] : memref<8x1024x32xbf16, #tpu.memory_space<vmem>>, vector<1x1024x32xbf16>
    %193 = vector.shape_cast %192 : vector<1x1024x32xbf16> to vector<1024x32xbf16>
    %cst_62 = arith.constant dense<0.000000e+00> : vector<1024x128xf32>
    %194 = tpu.matmul %193, %0, %cst_62 {dimension_numbers = #tpu.dot_dimension_numbers<[1], [0], [0], [1], [0, 0, 1, 1], [], []>} : vector<1024x32xbf16>, vector<32x128xbf16>, vector<1024x128xf32> -> vector<1024x128xf32>
    %195 = vector.extract_strided_slice %194 {offsets = [0, 0], sizes = [128, 128], strides = [1, 1]} : vector<1024x128xf32> to vector<128x128xf32>
    %196 = vector.extract_strided_slice %194 {offsets = [128, 0], sizes = [128, 128], strides = [1, 1]} : vector<1024x128xf32> to vector<128x128xf32>
    %197 = arith.maximumf %195, %196 : vector<128x128xf32>
    %198 = vector.extract_strided_slice %194 {offsets = [256, 0], sizes = [128, 128], strides = [1, 1]} : vector<1024x128xf32> to vector<128x128xf32>
    %199 = arith.maximumf %197, %198 : vector<128x128xf32>
    %200 = vector.extract_strided_slice %194 {offsets = [384, 0], sizes = [128, 128], strides = [1, 1]} : vector<1024x128xf32> to vector<128x128xf32>
    %201 = arith.maximumf %199, %200 : vector<128x128xf32>
    %202 = vector.extract_strided_slice %194 {offsets = [512, 0], sizes = [128, 128], strides = [1, 1]} : vector<1024x128xf32> to vector<128x128xf32>
    %203 = arith.maximumf %201, %202 : vector<128x128xf32>
    %204 = vector.extract_strided_slice %194 {offsets = [640, 0], sizes = [128, 128], strides = [1, 1]} : vector<1024x128xf32> to vector<128x128xf32>
    %205 = arith.maximumf %203, %204 : vector<128x128xf32>
    %206 = vector.extract_strided_slice %194 {offsets = [768, 0], sizes = [128, 128], strides = [1, 1]} : vector<1024x128xf32> to vector<128x128xf32>
    %207 = arith.maximumf %205, %206 : vector<128x128xf32>
    %208 = vector.extract_strided_slice %194 {offsets = [896, 0], sizes = [128, 128], strides = [1, 1]} : vector<1024x128xf32> to vector<128x128xf32>
    %209 = arith.maximumf %207, %208 : vector<128x128xf32>
    %210 = vector.broadcast %1 : vector<1x128xf32> to vector<128x128xf32>
    %211 = arith.addf %209, %210 : vector<128x128xf32>
    %cst_63 = arith.constant 0.000000e+00 : f32
    %212 = vector.broadcast %cst_63 : f32 to vector<128x128xf32>
    %213 = arith.maximumf %211, %212 : vector<128x128xf32>
    %214 = arith.truncf %213 : vector<128x128xf32> to vector<128x128xbf16>
    %c7_64 = arith.constant 7 : index
    %c0_65 = arith.constant 0 : index
    %c0_66 = arith.constant 0 : index
    %215 = vector.load %arg4[%c7_64, %c0_65, %c0_66] : memref<8x128x128xbf16, #tpu.memory_space<vmem>>, vector<1x128x128xbf16>
    %216 = vector.shape_cast %215 : vector<1x128x128xbf16> to vector<128x128xbf16>
    %cst_67 = arith.constant dense<0.000000e+00> : vector<128x128xf32>
    %217 = tpu.matmul %214, %216, %cst_67 {dimension_numbers = #tpu.dot_dimension_numbers<[1], [0], [0], [1], [0, 0, 1, 1], [], []>} : vector<128x128xbf16>, vector<128x128xbf16>, vector<128x128xf32> -> vector<128x128xf32>
    %218 = arith.addf %191, %217 : vector<128x128xf32>
    %219 = vector.extract_strided_slice %218 {offsets = [0, 0], sizes = [16, 128], strides = [1, 1]} : vector<128x128xf32> to vector<16x128xf32>
    %220 = vector.extract_strided_slice %218 {offsets = [16, 0], sizes = [16, 128], strides = [1, 1]} : vector<128x128xf32> to vector<16x128xf32>
    %221 = arith.maximumf %219, %220 : vector<16x128xf32>
    %222 = vector.extract_strided_slice %218 {offsets = [32, 0], sizes = [16, 128], strides = [1, 1]} : vector<128x128xf32> to vector<16x128xf32>
    %223 = arith.maximumf %221, %222 : vector<16x128xf32>
    %224 = vector.extract_strided_slice %218 {offsets = [48, 0], sizes = [16, 128], strides = [1, 1]} : vector<128x128xf32> to vector<16x128xf32>
    %225 = arith.maximumf %223, %224 : vector<16x128xf32>
    %226 = vector.extract_strided_slice %218 {offsets = [64, 0], sizes = [16, 128], strides = [1, 1]} : vector<128x128xf32> to vector<16x128xf32>
    %227 = arith.maximumf %225, %226 : vector<16x128xf32>
    %228 = vector.extract_strided_slice %218 {offsets = [80, 0], sizes = [16, 128], strides = [1, 1]} : vector<128x128xf32> to vector<16x128xf32>
    %229 = arith.maximumf %227, %228 : vector<16x128xf32>
    %230 = vector.extract_strided_slice %218 {offsets = [96, 0], sizes = [16, 128], strides = [1, 1]} : vector<128x128xf32> to vector<16x128xf32>
    %231 = arith.maximumf %229, %230 : vector<16x128xf32>
    %232 = vector.extract_strided_slice %218 {offsets = [112, 0], sizes = [16, 128], strides = [1, 1]} : vector<128x128xf32> to vector<16x128xf32>
    %233 = arith.maximumf %231, %232 : vector<16x128xf32>
    %c0_68 = arith.constant 0 : index
    %c0_69 = arith.constant 0 : index
    %234 = vector.load %arg5[%c0_68, %c0_69] : memref<1x128xf32, #tpu.memory_space<vmem>>, vector<1x128xf32>
    %235 = vector.broadcast %234 : vector<1x128xf32> to vector<16x128xf32>
    %236 = arith.addf %233, %235 : vector<16x128xf32>
    %cst_70 = arith.constant 0.000000e+00 : f32
    %237 = vector.broadcast %cst_70 : f32 to vector<16x128xf32>
    %238 = arith.maximumf %236, %237 : vector<16x128xf32>
    %c0_71 = arith.constant 0 : index
    %c0_72 = arith.constant 0 : index
    %239 = vector.load %arg11[%c0_71, %c0_72] : memref<16x128xf32, #tpu.memory_space<vmem>>, vector<16x128xf32>
    tpu.vector_store %arg11[%c0_71, %c0_72], %238 {strides = array<i32>} : memref<16x128xf32, #tpu.memory_space<vmem>>, vector<16x128xf32>,
    %c0_73 = arith.constant 0 : index
    %c0_74 = arith.constant 0 : index
    %240 = vector.load %arg11[%c0_73, %c0_74] : memref<16x128xf32, #tpu.memory_space<vmem>>, vector<2x128xf32>
    %c0_75 = arith.constant 0 : index
    %c0_76 = arith.constant 0 : index
    %241 = vector.load %arg12[%c0_75, %c0_76] : memref<2x1024xf32, #tpu.memory_space<vmem>>, vector<2x128xf32>
    tpu.vector_store %arg12[%c0_75, %c0_76], %240 {strides = array<i32>} : memref<2x1024xf32, #tpu.memory_space<vmem>>, vector<2x128xf32>,
    %c2_77 = arith.constant 2 : index
    %c0_78 = arith.constant 0 : index
    %242 = vector.load %arg11[%c2_77, %c0_78] : memref<16x128xf32, #tpu.memory_space<vmem>>, vector<2x128xf32>
    %c0_79 = arith.constant 0 : index
    %c128 = arith.constant 128 : index
    %243 = vector.load %arg12[%c0_79, %c128] : memref<2x1024xf32, #tpu.memory_space<vmem>>, vector<2x128xf32>
    tpu.vector_store %arg12[%c0_79, %c128], %242 {strides = array<i32>} : memref<2x1024xf32, #tpu.memory_space<vmem>>, vector<2x128xf32>,
    %c4_80 = arith.constant 4 : index
    %c0_81 = arith.constant 0 : index
    %244 = vector.load %arg11[%c4_80, %c0_81] : memref<16x128xf32, #tpu.memory_space<vmem>>, vector<2x128xf32>
    %c0_82 = arith.constant 0 : index
    %c256 = arith.constant 256 : index
    %245 = vector.load %arg12[%c0_82, %c256] : memref<2x1024xf32, #tpu.memory_space<vmem>>, vector<2x128xf32>
    tpu.vector_store %arg12[%c0_82, %c256], %244 {strides = array<i32>} : memref<2x1024xf32, #tpu.memory_space<vmem>>, vector<2x128xf32>,
    %c6_83 = arith.constant 6 : index
    %c0_84 = arith.constant 0 : index
    %246 = vector.load %arg11[%c6_83, %c0_84] : memref<16x128xf32, #tpu.memory_space<vmem>>, vector<2x128xf32>
    %c0_85 = arith.constant 0 : index
    %c384 = arith.constant 384 : index
    %247 = vector.load %arg12[%c0_85, %c384] : memref<2x1024xf32, #tpu.memory_space<vmem>>, vector<2x128xf32>
    tpu.vector_store %arg12[%c0_85, %c384], %246 {strides = array<i32>} : memref<2x1024xf32, #tpu.memory_space<vmem>>, vector<2x128xf32>,
    %c8 = arith.constant 8 : index
    %c0_86 = arith.constant 0 : index
    %248 = vector.load %arg11[%c8, %c0_86] : memref<16x128xf32, #tpu.memory_space<vmem>>, vector<2x128xf32>
    %c0_87 = arith.constant 0 : index
    %c512 = arith.constant 512 : index
    %249 = vector.load %arg12[%c0_87, %c512] : memref<2x1024xf32, #tpu.memory_space<vmem>>, vector<2x128xf32>
    tpu.vector_store %arg12[%c0_87, %c512], %248 {strides = array<i32>} : memref<2x1024xf32, #tpu.memory_space<vmem>>, vector<2x128xf32>,
    %c10 = arith.constant 10 : index
    %c0_88 = arith.constant 0 : index
    %250 = vector.load %arg11[%c10, %c0_88] : memref<16x128xf32, #tpu.memory_space<vmem>>, vector<2x128xf32>
    %c0_89 = arith.constant 0 : index
    %c640 = arith.constant 640 : index
    %251 = vector.load %arg12[%c0_89, %c640] : memref<2x1024xf32, #tpu.memory_space<vmem>>, vector<2x128xf32>
    tpu.vector_store %arg12[%c0_89, %c640], %250 {strides = array<i32>} : memref<2x1024xf32, #tpu.memory_space<vmem>>, vector<2x128xf32>,
    %c12 = arith.constant 12 : index
    %c0_90 = arith.constant 0 : index
    %252 = vector.load %arg11[%c12, %c0_90] : memref<16x128xf32, #tpu.memory_space<vmem>>, vector<2x128xf32>
    %c0_91 = arith.constant 0 : index
    %c768 = arith.constant 768 : index
    %253 = vector.load %arg12[%c0_91, %c768] : memref<2x1024xf32, #tpu.memory_space<vmem>>, vector<2x128xf32>
    tpu.vector_store %arg12[%c0_91, %c768], %252 {strides = array<i32>} : memref<2x1024xf32, #tpu.memory_space<vmem>>, vector<2x128xf32>,
    %c14 = arith.constant 14 : index
    %c0_92 = arith.constant 0 : index
    %254 = vector.load %arg11[%c14, %c0_92] : memref<16x128xf32, #tpu.memory_space<vmem>>, vector<2x128xf32>
    %c0_93 = arith.constant 0 : index
    %c896 = arith.constant 896 : index
    %255 = vector.load %arg12[%c0_93, %c896] : memref<2x1024xf32, #tpu.memory_space<vmem>>, vector<2x128xf32>
    tpu.vector_store %arg12[%c0_93, %c896], %254 {strides = array<i32>} : memref<2x1024xf32, #tpu.memory_space<vmem>>, vector<2x128xf32>,
    %c0_94 = arith.constant 0 : index
    %c0_95 = arith.constant 0 : index
    %256 = vector.load %arg12[%c0_94, %c0_95] : memref<2x1024xf32, #tpu.memory_space<vmem>>, vector<2x1024xf32>
    %c0_96 = arith.constant 0 : index
    %c0_97 = arith.constant 0 : index
    %257 = vector.load %arg6[%c0_96, %c0_97] : memref<1024x128xf32, #tpu.memory_space<vmem>>, vector<1024x128xf32>
    %cst_98 = arith.constant dense<0.000000e+00> : vector<2x128xf32>
    %258 = tpu.matmul %256, %257, %cst_98 {dimension_numbers = #tpu.dot_dimension_numbers<[1], [0], [0], [1], [0, 0, 1, 1], [], []>} : vector<2x1024xf32>, vector<1024x128xf32>, vector<2x128xf32> -> vector<2x128xf32>
    %c0_99 = arith.constant 0 : index
    %c0_100 = arith.constant 0 : index
    %259 = vector.load %arg7[%c0_99, %c0_100] : memref<1x128xf32, #tpu.memory_space<vmem>>, vector<1x128xf32>
    %260 = vector.broadcast %259 : vector<1x128xf32> to vector<2x128xf32>
    %261 = arith.addf %258, %260 : vector<2x128xf32>
    %cst_101 = arith.constant 0.000000e+00 : f32
    %262 = vector.broadcast %cst_101 : f32 to vector<2x128xf32>
    %263 = arith.maximumf %261, %262 : vector<2x128xf32>
    %c0_102 = arith.constant 0 : index
    %c0_103 = arith.constant 0 : index
    %264 = vector.load %arg8[%c0_102, %c0_103] : memref<128x1xf32, #tpu.memory_space<vmem>>, vector<128x1xf32>
    %cst_104 = arith.constant dense<0.000000e+00> : vector<2x1xf32>
    %265 = tpu.matmul %263, %264, %cst_104 {dimension_numbers = #tpu.dot_dimension_numbers<[1], [0], [0], [1], [0, 0, 1, 1], [], []>} : vector<2x128xf32>, vector<128x1xf32>, vector<2x1xf32> -> vector<2x1xf32>
    %c0_105 = arith.constant 0 : index
    %c0_106 = arith.constant 0 : index
    %266 = vector.load %arg9[%c0_105, %c0_106] : memref<1x1xf32, #tpu.memory_space<vmem>>, vector<1x1xf32>
    %267 = vector.broadcast %266 : vector<1x1xf32> to vector<2x1xf32>
    %268 = arith.addf %265, %267 : vector<2x1xf32>
    %c0_107 = arith.constant 0 : index
    %c0_108 = arith.constant 0 : index
    %269 = vector.load %arg10[%c0_107, %c0_108] : memref<2x1xf32, #tpu.memory_space<vmem>>, vector<2x1xf32>
    tpu.vector_store %arg10[%c0_107, %c0_108], %268 {strides = array<i32>} : memref<2x1xf32, #tpu.memory_space<vmem>>, vector<2x1xf32>,
    return
  }
  func.func @transform_0(%arg0: i32) -> (i32, i32, i32) {
    %c0_i32 = arith.constant 0 : i32
    %c0_i32_0 = arith.constant 0 : i32
    %c0_i32_1 = arith.constant 0 : i32
    %c0_i32_2 = arith.constant 0 : i32
    return %c0_i32, %c0_i32_0, %c0_i32_1 : i32, i32, i32
  }
  func.func @transform_1(%arg0: i32) -> (i32, i32) {
    %c0_i32 = arith.constant 0 : i32
    %c0_i32_0 = arith.constant 0 : i32
    %c0_i32_1 = arith.constant 0 : i32
    return %c0_i32, %c0_i32_0 : i32, i32
  }
  func.func @transform_2(%arg0: i32) -> (i32, i32) {
    %c0_i32 = arith.constant 0 : i32
    %c0_i32_0 = arith.constant 0 : i32
    %c0_i32_1 = arith.constant 0 : i32
    return %c0_i32, %c0_i32_0 : i32, i32
  }
  func.func @transform_3(%arg0: i32) -> (i32, i32, i32) {
    %c0_i32 = arith.constant 0 : i32
    %c0_i32_0 = arith.constant 0 : i32
    %c0_i32_1 = arith.constant 0 : i32
    %c0_i32_2 = arith.constant 0 : i32
    return %c0_i32, %c0_i32_0, %c0_i32_1 : i32, i32, i32
  }
  func.func @transform_4(%arg0: i32) -> (i32, i32) {
    %c0_i32 = arith.constant 0 : i32
    %c0_i32_0 = arith.constant 0 : i32
    %c0_i32_1 = arith.constant 0 : i32
    return %c0_i32, %c0_i32_0 : i32, i32
  }
  func.func @transform_5(%arg0: i32) -> (i32, i32) {
    %c0_i32 = arith.constant 0 : i32
    %c0_i32_0 = arith.constant 0 : i32
    %c0_i32_1 = arith.constant 0 : i32
    return %c0_i32, %c0_i32_0 : i32, i32
  }
  func.func @transform_6(%arg0: i32) -> (i32, i32) {
    %c0_i32 = arith.constant 0 : i32
    %c0_i32_0 = arith.constant 0 : i32
    %c0_i32_1 = arith.constant 0 : i32
    return %c0_i32, %c0_i32_0 : i32, i32
  }
  func.func @transform_7(%arg0: i32) -> (i32, i32) {
    %c0_i32 = arith.constant 0 : i32
    %c0_i32_0 = arith.constant 0 : i32
    %c0_i32_1 = arith.constant 0 : i32
    return %c0_i32, %c0_i32_0 : i32, i32
  }
  func.func @transform_8(%arg0: i32) -> (i32, i32) {
    %c0_i32 = arith.constant 0 : i32
    %c0_i32_0 = arith.constant 0 : i32
    %c0_i32_1 = arith.constant 0 : i32
    return %c0_i32, %c0_i32_0 : i32, i32
  }
  func.func @transform_9(%arg0: i32) -> (i32, i32) {
    %c0_i32 = arith.constant 0 : i32
    %c0_i32_0 = arith.constant 0 : i32
    %c0_i32_1 = arith.constant 0 : i32
    return %c0_i32, %c0_i32_0 : i32, i32
  }
}

</mosaic_0001>

<bundles_post_ra>
// kernel: tumor3dnet_forward.1
= control target key start
LH: loop header
LB: loop body
LE: loop exit
PB: predicated region body
PF: predicated region fallthrough
CT: control target
= control target key end

     0   :  { %s20075_s0 = inlined_call_operand.hbm [shape: bf16[8,1024,32], index: 0, kind: input, shape index: {}]   ;;  %s20076_s1 = inlined_call_operand.hbm [shape: bf16[32,128], index: 1, kind: input, shape index: {}]   ;;  %s20077_s2 = inlined_call_operand.hbm [shape: f32[1,128], index: 2, kind: input, shape index: {}]   ;;  %s20078_s3 = inlined_call_operand.hbm [shape: bf16[8,128,128], index: 3, kind: input, shape index: {}]   ;;  %s20079_s4 = inlined_call_operand.hbm [shape: f32[1,128], index: 4, kind: input, shape index: {}]   ;;  %s20080_s5 = inlined_call_operand.hbm [shape: f32[1024,128], index: 5, kind: input, shape index: {}]   ;;  %s20081_s6 = inlined_call_operand.hbm [shape: f32[1,128], index: 6, kind: input, shape index: {}]   ;;  %s20082_s7 = inlined_call_operand.vmem [shape: f32[128,1], index: 7, kind: input, shape index: {}]   ;;  %s20083_s8 = inlined_call_operand.<no memory space> [shape: f32[1,1], index: 8, kind: input, shape index: {}]   ;;  %s20084_s9 = inlined_call_operand.vmem [shape: f32[2,1], index: 9, kind: output, shape index: {}]  }
   0x1   :  { %v14_v0 = vstv %s20083_s8 }
   0x2   :  { %15 = vst [vmem:[#allocation4] sm:$0x1] %v14_v0 }
   0x3   :  { %16 = vsyncpa [#allocation6], 0 }
   0x4   :  { %17 = vsyncpa [#allocation8], 0 }
   0x5   :  { %18 = vsyncpa [#allocation11], 0 }
   0x6   :  { %19 = vsyncpa [#allocation14], 0  ;;  %s17143_s11 = smov [#allocation7]   ;;  %s17144_s13 = smov [#allocation10]  }
   0x7   :  { %s37_s12 = sshll.u32 %s17143_s11, 4  ;;  %s59_s14 = sshll.u32 %s17144_s13, 4  ;;  %s38_s12 = int_to_ptr.vmem [resolvable:$true] %s37_s12  ;;  %s17211_s14 = int_to_ptr.vmem [resolvable:$true] %s59_s14 }
   0x8   :  { %s16981_s17 = scalar_lea.hbm %s20076_s1, 256 }
   0x9   :  { %p16982_p0 = scmp.ne.s32.totalorder %s20076_s1, %s16981_s17  ;;  %p16985_p1 = scmp.lt.u32.totalorder %s16981_s17, %s20076_s1 }
   0xb   :  { %p16987_p2 = pnand %p16985_p1, %p16982_p0 }
   0xd   :  { %16990 = shalt.err (!%p16987_p2)
}
   0xe   :  { %s16991_s21 = scalar_lea.vmem %s38_s12, 256  ;;  %p16996_p4 = scmp.lt.s32.totalorder %s38_s12, %s38_s12 }
   0xf   :  { %p16992_p3 = scmp.ne.s32.totalorder %s38_s12, %s16991_s21  ;;  %p16997_p5 = scmp.lt.s32.totalorder %s16991_s21, %s16991_s21 }
  0x11   :  { %p16998_p6 = por %p16997_p5, %p16996_p4 }
  0x13   :  { %p16999_p7 = pnand %p16998_p6, %p16992_p3 }
  0x15   :  { %17002 = shalt.err (!%p16999_p7)
}
  0x16   :  { %s17145_s22 = smov 64   ;;  %s17146_s23 = smov 4  }
  0x17   :  { %43 = dma.hbm_to_vmem [thread:$0]  %s20076_s1, 256, %s38_s12, [#allocation8], %s17145_s22, %s17145_s22, %s17146_s23  }
  0x18   :  { %s17003_s28 = scalar_lea.hbm %s20078_s3, 8192 }
  0x19   :  { %p17004_p8 = scmp.ne.s32.totalorder %s20078_s3, %s17003_s28  ;;  %p17007_p9 = scmp.lt.u32.totalorder %s17003_s28, %s20078_s3 }
  0x1b   :  { %p17009_p10 = pnand %p17007_p9, %p17004_p8 }
  0x1d   :  { %17012 = shalt.err (!%p17009_p10)
}
  0x1e   :  { %s17013_s13 = scalar_lea.vmem %s17211_s14, 8192  ;;  %p17018_p12 = scmp.lt.s32.totalorder %s17211_s14, %s17211_s14 }
  0x1f   :  { %p17014_p11 = scmp.ne.s32.totalorder %s17211_s14, %s17013_s13  ;;  %p17019_p13 = scmp.lt.s32.totalorder %s17013_s13, %s17013_s13 }
  0x21   :  { %p17020_p0 = por %p17019_p13, %p17018_p12 }
  0x23   :  { %p17021_p1 = pnand %p17020_p0, %p17014_p11 }
  0x25   :  { %17024 = shalt.err (!%p17021_p1)
}
  0x26   :  { %65 = dma.hbm_to_vmem [thread:$0]  %s20078_s3, 8192, %s17211_s14, [#allocation11], %s17145_s22, %s17145_s22, %s17146_s23  }
  0x27   :  { %s17147_s15 = smov [#allocation13]   ;;  %s17025_s19 = scalar_lea.hbm %s20080_s5, 16384 }
  0x28   :  { %s81_s16 = sshll.u32 %s17147_s15, 4  ;;  %p17026_p2 = scmp.ne.s32.totalorder %s20080_s5, %s17025_s19  ;;  %s82_s16 = int_to_ptr.vmem [resolvable:$true] %s81_s16 }
  0x29   :  { %p17029_p3 = scmp.lt.u32.totalorder %s17025_s19, %s20080_s5 }
  0x2b   :  { %p17031_p4 = pnand %p17029_p3, %p17026_p2 }
  0x2d   :  { %17034 = shalt.err (!%p17031_p4)
}
  0x2e   :  { %s17035_s25 = scalar_lea.vmem %s82_s16, 16384  ;;  %p17040_p6 = scmp.lt.s32.totalorder %s82_s16, %s82_s16 }
  0x2f   :  { %p17036_p5 = scmp.ne.s32.totalorder %s82_s16, %s17035_s25  ;;  %p17041_p7 = scmp.lt.s32.totalorder %s17035_s25, %s17035_s25 }
  0x31   :  { %p17042_p8 = por %p17041_p7, %p17040_p6 }
  0x33   :  { %p17043_p9 = pnand %p17042_p8, %p17036_p5 }
  0x35   :  { %17046 = shalt.err (!%p17043_p9)
}
  0x36   :  { %s17148_s3 = smov 128   ;;  %s17149_s14 = smov 8  }
  0x37   :  { %87 = dma.hbm_to_vmem [thread:$0]  %s20080_s5, 16384, %s82_s16, [#allocation14], %s17148_s3, %s17148_s3, %s17149_s14  }
  0x38   :  { %s17150_s28 = smov [#allocation5]   ;;  %s17151_s30 = smov [#allocation9]  }
  0x39   :  { %s25_s29 = sshll.u32 %s17150_s28, 4  ;;  %s50_s10 = sshll.u32 %s17151_s30, 4  ;;  %s26_s29 = int_to_ptr.vmem [resolvable:$true] %s25_s29  ;;  %s51_s10 = int_to_ptr.vmem [resolvable:$true] %s50_s10 }
  0x3a   :  { %s17047_s1 = scalar_lea.hbm %s20075_s0, 65536 }
  0x3b   :  { %p17048_p10 = scmp.ne.s32.totalorder %s20075_s0, %s17047_s1  ;;  %p17051_p11 = scmp.lt.u32.totalorder %s17047_s1, %s20075_s0 }
  0x3d   :  { %p17053_p12 = pnand %p17051_p11, %p17048_p10 }
  0x3f   :  { %17056 = shalt.err (!%p17053_p12)
}
  0x40   :  { %s17057_s5 = scalar_lea.vmem %s26_s29, 65536  ;;  %p17062_p0 = scmp.lt.s32.totalorder %s26_s29, %s26_s29 }
  0x41   :  { %p17058_p13 = scmp.ne.s32.totalorder %s26_s29, %s17057_s5  ;;  %p17063_p1 = scmp.lt.s32.totalorder %s17057_s5, %s17057_s5 }
  0x43   :  { %p17064_p2 = por %p17063_p1, %p17062_p0 }
  0x45   :  { %p17065_p3 = pnand %p17064_p2, %p17058_p13 }
  0x47   :  { %17068 = shalt.err (!%p17065_p3)
}
  0x48   :  { %31 = dma.hbm_to_vmem [thread:$0]  %s20075_s0, 65536, %s26_s29, [#allocation6], %s17145_s22, %s17145_s22, %s17146_s23  }
  0x49   :  { %s17069_s21 = scalar_lea.hbm %s20077_s2, 16 }
  0x4a   :  { %p17070_p4 = scmp.ne.s32.totalorder %s20077_s2, %s17069_s21  ;;  %p17073_p5 = scmp.lt.u32.totalorder %s17069_s21, %s20077_s2 }
  0x4c   :  { %p17075_p6 = pnand %p17073_p5, %p17070_p4 }
  0x4e   :  { %17078 = shalt.err (!%p17075_p6)
}
  0x4f   :  { %s17079_s26 = scalar_lea.vmem %s51_s10, 16  ;;  %s17083_s27 = scalar_lea.vmem %s51_s10, 32 }
  0x50   :  { %p17080_p7 = scmp.ne.s32.totalorder %s51_s10, %s17079_s26  ;;  %p17084_p8 = scmp.lt.s32.totalorder %s51_s10, %s51_s10 }
  0x51   :  { %p17085_p9 = scmp.lt.s32.totalorder %s17083_s27, %s17079_s26 }
  0x53   :  { %p17086_p10 = por %p17085_p9, %p17084_p8 }
  0x55   :  { %p17087_p11 = pnand %p17086_p10, %p17080_p7 }
  0x57   :  { %17090 = shalt.err (!%p17087_p11)
}
  0x58   :  { %53 = dma.hbm_to_vmem [thread:$0]  %s20077_s2, 16, %s51_s10, [#allocation8]  }
  0x59   :  { %s17152_s23 = smov [#allocation12]   ;;  %s17153_s29 = smov [#allocation15]  }
  0x5a   :  { %s72_s28 = sshll.u32 %s17152_s23, 4  ;;  %s94_s30 = sshll.u32 %s17153_s29, 4  ;;  %s73_s28 = int_to_ptr.vmem [resolvable:$true] %s72_s28  ;;  %s95_s30 = int_to_ptr.vmem [resolvable:$true] %s94_s30 }
  0x5b   :  { %s17091_s1 = scalar_lea.hbm %s20079_s4, 16 }
  0x5c   :  { %p17092_p12 = scmp.ne.s32.totalorder %s20079_s4, %s17091_s1  ;;  %p17095_p13 = scmp.lt.u32.totalorder %s17091_s1, %s20079_s4 }
  0x5e   :  { %p17097_p0 = pnand %p17095_p13, %p17092_p12 }
  0x60   :  { %17100 = shalt.err (!%p17097_p0)
}
  0x61   :  { %s17101_s2 = scalar_lea.vmem %s73_s28, 16  ;;  %s17105_s10 = scalar_lea.vmem %s73_s28, 32 }
  0x62   :  { %p17102_p1 = scmp.ne.s32.totalorder %s73_s28, %s17101_s2  ;;  %p17106_p2 = scmp.lt.s32.totalorder %s73_s28, %s73_s28 }
  0x63   :  { %p17107_p3 = scmp.lt.s32.totalorder %s17105_s10, %s17101_s2 }
  0x65   :  { %p17108_p4 = por %p17107_p3, %p17106_p2 }
  0x67   :  { %p17109_p5 = pnand %p17108_p4, %p17102_p1 }
  0x69   :  { %17112 = shalt.err (!%p17109_p5)
}
  0x6a   :  { %75 = dma.hbm_to_vmem [thread:$0]  %s20079_s4, 16, %s73_s28, [#allocation11]  }
  0x6b   :  { %s17113_s20 = scalar_lea.hbm %s20081_s6, 16 }
  0x6c   :  { %p17114_p6 = scmp.ne.s32.totalorder %s20081_s6, %s17113_s20  ;;  %p17117_p7 = scmp.lt.u32.totalorder %s17113_s20, %s20081_s6 }
  0x6e   :  { %p17119_p8 = pnand %p17117_p7, %p17114_p6 }
  0x70   :  { %17122 = shalt.err (!%p17119_p8)
}
  0x71   :  { %s17123_s14 = scalar_lea.vmem %s95_s30, 16  ;;  %s17127_s26 = scalar_lea.vmem %s95_s30, 32 }
  0x72   :  { %p17124_p9 = scmp.ne.s32.totalorder %s95_s30, %s17123_s14  ;;  %p17128_p10 = scmp.lt.s32.totalorder %s95_s30, %s95_s30 }
  0x73   :  { %p17129_p11 = scmp.lt.s32.totalorder %s17127_s26, %s17123_s14 }
  0x75   :  { %p17130_p12 = por %p17129_p11, %p17128_p10 }
  0x77   :  { %p17131_p13 = pnand %p17130_p12, %p17124_p9 }
  0x79   :  { %17134 = shalt.err (!%p17131_p13)
}
  0x7a   :  { %97 = dma.hbm_to_vmem [thread:$0]  %s20081_s6, 16, %s95_s30, [#allocation14]  }
  0x7b   :  { %17135 = dma.done.wait [#allocation6], 65536  }
  0x7c   :  { %17136 = vsyncadd [#allocation6], 4294901760 }
  0x7d   :  { %17137 = dma.done.wait [#allocation8], 272  }
  0x7e   :  { %17138 = vsyncadd [#allocation8], 4294967024 }
  0x7f   :  { %17139 = dma.done.wait [#allocation11], 8208  }
  0x80   :  { %17140 = vsyncadd [#allocation11], 4294959088 }
  0x81   :  { %17141 = dma.done.wait [#allocation14], 16400  }
  0x82   :  { %17142 = vsyncadd [#allocation14], 4294950896  ;;  %v17311_v1 = vld [vmem:[#allocation7] sm:$0xff]   ;;  %v17313_v2 = vld [vmem:[#allocation7 + $0x8] sm:$0xff]   ;;  %vm589_vm0 = vcmask 261120   ;;  %vm17156_vm1 = vmmov 0  }
  0x83   :  { %14757 = vmatprep.subr.bf16.mxu0 %v17311_v1  ;;  %16256 = vmatprep.subr.bf16.mxu1 %v17311_v1  ;;  %v16389_v3 = vld [vmem:[#allocation5] sm:$0xff]   ;;  %v16390_v4 = vld [vmem:[#allocation5 + $0x190] sm:$0xff]   ;;  %v16391_v5 = vld [vmem:[#allocation5 + $0x8] sm:$0xff]   ;;  %vm12840_vm2 = vcmask 1024  }
  0x84   :  { %14758 = vmatpush3.bf16.msra.mxu0 %v17311_v1  ;;  %16258 = vmatpush3.bf16.msra.mxu1 %v17311_v1  ;;  %v16392_v6 = vld [vmem:[#allocation5 + $0x198] sm:$0xff]   ;;  %v16393_v7 = vld [vmem:[#allocation5 + $0x10] sm:$0xff]   ;;  %v16394_v8 = vld [vmem:[#allocation5 + $0x1a0] sm:$0xff]  }
  0x85   :  { %14759 = vmatprep.subr.bf16.mxu0 %v17313_v2  ;;  %16257 = vmatprep.subr.bf16.mxu1 %v17313_v2  ;;  %v16395_v9 = vld [vmem:[#allocation5 + $0x18] sm:$0xff]   ;;  %v16396_v10 = vld [vmem:[#allocation5 + $0x1a8] sm:$0xff]   ;;  %v16397_v11 = vld [vmem:[#allocation5 + $0x20] sm:$0xff]  }
  0x86   :  { %14761 = vmatprep.mubr.msk.bf16.mxu0 %vm589_vm0, %v16389_v3  ;;  %14861 = vmatprep.mubr.msk.bf16.mxu1 %vm589_vm0, %v16390_v4  ;;  %v16398_v12 = vld [vmem:[#allocation5 + $0x1b0] sm:$0xff]   ;;  %v16399_v13 = vld [vmem:[#allocation5 + $0x28] sm:$0xff]   ;;  %v16400_v14 = vld [vmem:[#allocation5 + $0x1b8] sm:$0xff]  }
  0x87   :  { %v16401_v15 = vld [vmem:[#allocation5 + $0x30] sm:$0xff]   ;;  %v16402_v16 = vld [vmem:[#allocation5 + $0x1c0] sm:$0xff]   ;;  %v16403_v17 = vld [vmem:[#allocation5 + $0x38] sm:$0xff]  }
  0x88   :  { %14760 = vmatpush3.bf16.msra.mxu0 %v17313_v2  ;;  %16259 = vmatpush3.bf16.msra.mxu1 %v17313_v2  ;;  %v16404_v18 = vld [vmem:[#allocation5 + $0x1c8] sm:$0xff]   ;;  %v16405_v19 = vld [vmem:[#allocation5 + $0x40] sm:$0xff]   ;;  %v16406_v20 = vld [vmem:[#allocation5 + $0x1d0] sm:$0xff]  }
  0x89   :  { %14889 = vmatprep.subr.bf16.mxu1 %v17311_v1  ;;  %v16407_v21 = vld [vmem:[#allocation5 + $0x48] sm:$0xff]   ;;  %v16408_v22 = vld [vmem:[#allocation5 + $0x1d8] sm:$0xff]   ;;  %v16409_v23 = vld [vmem:[#allocation5 + $0x50] sm:$0xff]  }
  0x8a   :  { %v16410_v24 = vld [vmem:[#allocation5 + $0x1e0] sm:$0xff]   ;;  %v16411_v25 = vld [vmem:[#allocation5 + $0x58] sm:$0xff]   ;;  %v16412_v26 = vld [vmem:[#allocation5 + $0x1e8] sm:$0xff]  }
  0x8b   :  { %14762 = vmatmul.mubr.msk.bf16.vlgmr.msra.gmra.mrb[0].mxu0 %vm589_vm0, %v16391_v5  ;;  %14862 = vmatmul.mubr.msk.bf16.vlgmr.msra.gmra.mrb[0].mxu1 %vm589_vm0, %v16392_v6  ;;  %v16413_v27 = vld [vmem:[#allocation5 + $0x60] sm:$0xff]   ;;  %v16414_v28 = vld [vmem:[#allocation5 + $0x1f0] sm:$0xff]   ;;  %v16415_v29 = vld [vmem:[#allocation5 + $0x68] sm:$0xff]  }
  0x8c   :  { %14890 = vmatpush3.bf16.msra.mxu1 %v17311_v1  ;;  %14765 = vmatprep.mubr.msk.bf16.mxu0 %vm589_vm0, %v16393_v7  ;;  %v16416_v30 = vld [vmem:[#allocation5 + $0x1f8] sm:$0xff]   ;;  %v16417_v31 = vld [vmem:[#allocation5 + $0x70] sm:$0xff]   ;;  %v16418_v32 = vld [vmem:[#allocation5 + $0x200] sm:$0xff]  }
  0x8d   :  { %14865 = vmatprep.mubr.msk.bf16.mxu1 %vm589_vm0, %v16394_v8  ;;  %14891 = vmatprep.subr.bf16.mxu1 %v17313_v2  ;;  %v16419_v33 = vld [vmem:[#allocation5 + $0x78] sm:$0xff]   ;;  %v16420_v34 = vld [vmem:[#allocation5 + $0x208] sm:$0xff]   ;;  %v16421_v35 = vld [vmem:[#allocation5 + $0x80] sm:$0xff]  }
  0x8e   :  { %v16422_v36 = vld [vmem:[#allocation5 + $0x210] sm:$0xff]   ;;  %v16423_v37 = vld [vmem:[#allocation5 + $0x88] sm:$0xff]   ;;  %v16424_v38 = vld [vmem:[#allocation5 + $0x218] sm:$0xff]  }
  0x8f   :  { %v16425_v39 = vld [vmem:[#allocation5 + $0x90] sm:$0xff]   ;;  %v16426_v40 = vld [vmem:[#allocation5 + $0x220] sm:$0xff]   ;;  %v16427_v41 = vld [vmem:[#allocation5 + $0x98] sm:$0xff]  }
  0x90   :  { %14892 = vmatpush3.bf16.msra.mxu1 %v17313_v2  ;;  %v16428_v42 = vld [vmem:[#allocation5 + $0x228] sm:$0xff]   ;;  %v16429_v43 = vld [vmem:[#allocation5 + $0xa0] sm:$0xff]   ;;  %v16430_v44 = vld [vmem:[#allocation5 + $0x230] sm:$0xff]  }
  0x91   :  { %15085 = vmatprep.subr.bf16.mxu1 %v17311_v1  ;;  %v16431_v45 = vld [vmem:[#allocation5 + $0xa8] sm:$0xff]   ;;  %v16432_v46 = vld [vmem:[#allocation5 + $0x238] sm:$0xff]   ;;  %v16433_v47 = vld [vmem:[#allocation5 + $0xb0] sm:$0xff]  }
  0x92   :  { %v16434_v48 = vld [vmem:[#allocation5 + $0x240] sm:$0xff]   ;;  %v16435_v49 = vld [vmem:[#allocation5 + $0xb8] sm:$0xff]   ;;  %v16436_v50 = vld [vmem:[#allocation5 + $0x248] sm:$0xff]  }
  0x93   :  { %14766 = vmatmul.mubr.msk.bf16.gmra.mrb[4].mxu0 %vm589_vm0, %v16395_v9  ;;  %14866 = vmatmul.mubr.msk.bf16.gmra.mrb[4].mxu1 %vm589_vm0, %v16396_v10  ;;  %v16437_v51 = vld [vmem:[#allocation5 + $0xc0] sm:$0xff]   ;;  %v16438_v52 = vld [vmem:[#allocation5 + $0x250] sm:$0xff]   ;;  %v16439_v53 = vld [vmem:[#allocation5 + $0xc8] sm:$0xff]  }
  0x94   :  { %14769 = vmatprep.mubr.msk.bf16.mxu0 %vm589_vm0, %v16397_v11  ;;  %14869 = vmatprep.mubr.msk.bf16.mxu1 %vm589_vm0, %v16398_v12  ;;  %v16440_v54 = vld [vmem:[#allocation5 + $0x258] sm:$0xff]   ;;  %v16441_v55 = vld [vmem:[#allocation5 + $0xd0] sm:$0xff]   ;;  %v16442_v56 = vld [vmem:[#allocation5 + $0x260] sm:$0xff]  }
  0x95   :  { %v16443_v57 = vld [vmem:[#allocation5 + $0xd8] sm:$0xff]   ;;  %v16444_v58 = vld [vmem:[#allocation5 + $0x268] sm:$0xff]   ;;  %v16445_v59 = vld [vmem:[#allocation5 + $0xe0] sm:$0xff]  }
  0x96   :  { %v16446_v60 = vld [vmem:[#allocation5 + $0x270] sm:$0xff]   ;;  %v16447_v61 = vld [vmem:[#allocation5 + $0xe8] sm:$0xff]   ;;  %v16448_v62 = vld [vmem:[#allocation5 + $0x278] sm:$0xff]  }
  0x97   :  { %v16449_v63 = vld [vmem:[#allocation5 + $0xf0] sm:$0xff]   ;;  %v16450_v0 = vld [vmem:[#allocation5 + $0x280] sm:$0xff]   ;;  %v16455_v5 = vld [vmem:[#allocation5 + $0x108] sm:$0xff]  }
  0x98   :  { %v16453_v3 = vld [vmem:[#allocation5 + $0x100] sm:$0xff]   ;;  %v16454_v4 = vld [vmem:[#allocation5 + $0x290] sm:$0xff]   ;;  %v16456_v6 = vld [vmem:[#allocation5 + $0x298] sm:$0xff]  }
  0x99   :  { %v16457_v7 = vld [vmem:[#allocation5 + $0x110] sm:$0xff]   ;;  %v16458_v8 = vld [vmem:[#allocation5 + $0x2a0] sm:$0xff]   ;;  %v16459_v9 = vld [vmem:[#allocation5 + $0x118] sm:$0xff]  }
  0x9a   :  { %v16460_v10 = vld [vmem:[#allocation5 + $0x2a8] sm:$0xff]   ;;  %v16461_v11 = vld [vmem:[#allocation5 + $0x120] sm:$0xff]   ;;  %v16462_v12 = vld [vmem:[#allocation5 + $0x2b0] sm:$0xff]  }
  0x9b   :  { %14770 = vmatmul.mubr.msk.bf16.gmra.mrb[8].mxu0 %vm589_vm0, %v16399_v13  ;;  %14870 = vmatmul.mubr.msk.bf16.gmra.mrb[8].mxu1 %vm589_vm0, %v16400_v14  ;;  %v16463_v13 = vld [vmem:[#allocation5 + $0x128] sm:$0xff]   ;;  %v16464_v14 = vld [vmem:[#allocation5 + $0x2b8] sm:$0xff]  }
  0x9c   :  { %14773 = vmatprep.mubr.msk.bf16.mxu0 %vm589_vm0, %v16401_v15  ;;  %14873 = vmatprep.mubr.msk.bf16.mxu1 %vm589_vm0, %v16402_v16  ;;  %v16465_v15 = vld [vmem:[#allocation5 + $0x130] sm:$0xff]   ;;  %v16466_v16 = vld [vmem:[#allocation5 + $0x2c0] sm:$0xff]  }
  0xa3   :  { %14774 = vmatmul.mubr.msk.bf16.gmra.mrb[12].mxu0 %vm589_vm0, %v16403_v17  ;;  %14874 = vmatmul.mubr.msk.bf16.gmra.mrb[12].mxu1 %vm589_vm0, %v16404_v18  ;;  %v16467_v17 = vld [vmem:[#allocation5 + $0x138] sm:$0xff]   ;;  %v16468_v18 = vld [vmem:[#allocation5 + $0x2c8] sm:$0xff]  }
  0xa4   :  { %14777 = vmatprep.mubr.msk.bf16.mxu0 %vm589_vm0, %v16405_v19  ;;  %14877 = vmatprep.mubr.msk.bf16.mxu1 %vm589_vm0, %v16406_v20  ;;  %v16469_v19 = vld [vmem:[#allocation5 + $0x140] sm:$0xff]   ;;  %v16470_v20 = vld [vmem:[#allocation5 + $0x2d0] sm:$0xff]  }
  0xab   :  { %14778 = vmatmul.mubr.msk.bf16.gmra.mrb[16].mxu0 %vm589_vm0, %v16407_v21  ;;  %14878 = vmatmul.mubr.msk.bf16.gmra.mrb[16].mxu1 %vm589_vm0, %v16408_v22  ;;  %v16471_v21 = vld [vmem:[#allocation5 + $0x148] sm:$0xff]   ;;  %v16472_v22 = vld [vmem:[#allocation5 + $0x2d8] sm:$0xff]  }
  0xac   :  { %14781 = vmatprep.mubr.msk.bf16.mxu0 %vm589_vm0, %v16409_v23  ;;  %14881 = vmatprep.mubr.msk.bf16.mxu1 %vm589_vm0, %v16410_v24  ;;  %v16473_v23 = vld [vmem:[#allocation5 + $0x150] sm:$0xff]   ;;  %v16474_v24 = vld [vmem:[#allocation5 + $0x2e0] sm:$0xff]  }
  0xb3   :  { %14782 = vmatmul.mubr.msk.bf16.gmra.mrb[20].mxu0 %vm589_vm0, %v16411_v25  ;;  %14882 = vmatmul.mubr.msk.bf16.gmra.mrb[20].mxu1 %vm589_vm0, %v16412_v26  ;;  %v16475_v25 = vld [vmem:[#allocation5 + $0x158] sm:$0xff]   ;;  %v16476_v26 = vld [vmem:[#allocation5 + $0x2e8] sm:$0xff]  }
  0xb4   :  { %14785 = vmatprep.mubr.msk.bf16.mxu0 %vm589_vm0, %v16413_v27  ;;  %14885 = vmatprep.mubr.msk.bf16.mxu1 %vm589_vm0, %v16414_v28  ;;  %v16477_v27 = vld [vmem:[#allocation5 + $0x160] sm:$0xff]   ;;  %v16478_v28 = vld [vmem:[#allocation5 + $0x2f0] sm:$0xff]  }
  0xbb   :  { %14786 = vmatmul.mubr.msk.bf16.gmra.mrb[24].mxu0 %vm589_vm0, %v16415_v29  ;;  %14886 = vmatmul.mubr.msk.bf16.gmra.mrb[24].mxu1 %vm589_vm0, %v16416_v30  ;;  %v16479_v29 = vld [vmem:[#allocation5 + $0x168] sm:$0xff]   ;;  %v16480_v30 = vld [vmem:[#allocation5 + $0x2f8] sm:$0xff]  }
  0xbc   :  { %14789 = vmatprep.mubr.msk.bf16.mxu0 %vm589_vm0, %v16417_v31  ;;  %14893 = vmatprep.mubr.msk.bf16.mxu1 %vm589_vm0, %v16418_v32  ;;  %v16481_v31 = vld [vmem:[#allocation5 + $0x170] sm:$0xff]   ;;  %v16482_v32 = vld [vmem:[#allocation5 + $0x300] sm:$0xff]  }
  0xc3   :  { %14790 = vmatmul.mubr.msk.bf16.gmra.mrb[28].mxu0 %vm589_vm0, %v16419_v33  ;;  %14894 = vmatmul.mubr.msk.bf16.vlgmr.msra.gmra.mrb[28].mxu1 %vm589_vm0, %v16420_v34  ;;  %v16483_v33 = vld [vmem:[#allocation5 + $0x178] sm:$0xff]   ;;  %v16484_v34 = vld [vmem:[#allocation5 + $0x308] sm:$0xff]  }
  0xc4   :  { %15086 = vmatpush3.bf16.msra.mxu1 %v17311_v1  ;;  %14793 = vmatprep.mubr.msk.bf16.mxu0 %vm589_vm0, %v16421_v35  ;;  %v16485_v35 = vld [vmem:[#allocation5 + $0x180] sm:$0xff]  }
  0xc5   :  { %14897 = vmatprep.mubr.msk.bf16.mxu1 %vm589_vm0, %v16422_v36  ;;  %15087 = vmatprep.subr.bf16.mxu1 %v17313_v2  ;;  %v16486_v36 = vld [vmem:[#allocation5 + $0x310] sm:$0xff]  }
  0xc8   :  { %15088 = vmatpush3.bf16.msra.mxu1 %v17313_v2  ;;  %v16452_v2 = vld [vmem:[#allocation5 + $0x288] sm:$0xff]  }
  0xc9   :  { %15413 = vmatprep.subr.bf16.mxu1 %v17311_v1  ;;  %v16451_v1 = vld [vmem:[#allocation5 + $0xf8] sm:$0xff]  }
  0xcb   :  { %14794 = vmatmul.mubr.msk.bf16.gmra.mrb[32].mxu0 %vm589_vm0, %v16423_v37  ;;  %14898 = vmatmul.mubr.msk.bf16.gmra.mrb[32].mxu1 %vm589_vm0, %v16424_v38  ;;  %v16487_v37 = vld [vmem:[#allocation5 + $0x188] sm:$0xff]   ;;  %v16488_v38 = vld [vmem:[#allocation5 + $0x318] sm:$0xff]  }
  0xcc   :  { %14797 = vmatprep.mubr.msk.bf16.mxu0 %vm589_vm0, %v16425_v39  ;;  %14901 = vmatprep.mubr.msk.bf16.mxu1 %vm589_vm0, %v16426_v40  ;;  %v16489_v39 = vld [vmem:[#allocation5 + $0x320] sm:$0xff]   ;;  %v16490_v40 = vld [vmem:[#allocation5 + $0x328] sm:$0xff]  }
  0xd3   :  { %14798 = vmatmul.mubr.msk.bf16.gmra.mrb[36].mxu0 %vm589_vm0, %v16427_v41  ;;  %14902 = vmatmul.mubr.msk.bf16.gmra.mrb[36].mxu1 %vm589_vm0, %v16428_v42  ;;  %v16491_v41 = vld [vmem:[#allocation5 + $0x330] sm:$0xff]   ;;  %v16492_v42 = vld [vmem:[#allocation5 + $0x338] sm:$0xff]  }
  0xd4   :  { %14801 = vmatprep.mubr.msk.bf16.mxu0 %vm589_vm0, %v16429_v43  ;;  %14905 = vmatprep.mubr.msk.bf16.mxu1 %vm589_vm0, %v16430_v44  ;;  %v16493_v43 = vld [vmem:[#allocation5 + $0x340] sm:$0xff]   ;;  %v16494_v44 = vld [vmem:[#allocation5 + $0x348] sm:$0xff]  }
  0xdb   :  { %14802 = vmatmul.mubr.msk.bf16.gmra.mrb[40].mxu0 %vm589_vm0, %v16431_v45  ;;  %14906 = vmatmul.mubr.msk.bf16.gmra.mrb[40].mxu1 %vm589_vm0, %v16432_v46 }
  0xdc   :  { %14805 = vmatprep.mubr.msk.bf16.mxu0 %vm589_vm0, %v16433_v47  ;;  %14909 = vmatprep.mubr.msk.bf16.mxu1 %vm589_vm0, %v16434_v48 }
  0xe3   :  { %14806 = vmatmul.mubr.msk.bf16.gmra.mrb[44].mxu0 %vm589_vm0, %v16435_v49  ;;  %14910 = vmatmul.mubr.msk.bf16.gmra.mrb[44].mxu1 %vm589_vm0, %v16436_v50  ;;  %v16495_v50 = vld [vmem:[#allocation5 + $0x350] sm:$0xff]  }
  0xe4   :  { %14809 = vmatprep.mubr.msk.bf16.mxu0 %vm589_vm0, %v16437_v51  ;;  %14913 = vmatprep.mubr.msk.bf16.mxu1 %vm589_vm0, %v16438_v52 }
  0xeb   :  { %14810 = vmatmul.mubr.msk.bf16.gmra.mrb[48].mxu0 %vm589_vm0, %v16439_v53  ;;  %14914 = vmatmul.mubr.msk.bf16.gmra.mrb[48].mxu1 %vm589_vm0, %v16440_v54  ;;  %v16496_v54 = vld [vmem:[#allocation5 + $0x358] sm:$0xff]  }
  0xec   :  { %14813 = vmatprep.mubr.msk.bf16.mxu0 %vm589_vm0, %v16441_v55  ;;  %14917 = vmatprep.mubr.msk.bf16.mxu1 %vm589_vm0, %v16442_v56 }
  0xf3   :  { %14814 = vmatmul.mubr.msk.bf16.gmra.mrb[52].mxu0 %vm589_vm0, %v16443_v57  ;;  %14918 = vmatmul.mubr.msk.bf16.gmra.mrb[52].mxu1 %vm589_vm0, %v16444_v58 }
  0xf4   :  { %14817 = vmatprep.mubr.msk.bf16.mxu0 %vm589_vm0, %v16445_v59  ;;  %14921 = vmatprep.mubr.msk.bf16.mxu1 %vm589_vm0, %v16446_v60  ;;  %v16497_v60 = vld [vmem:[#allocation5 + $0x360] sm:$0xff]  }
  0xfb   :  { %14818 = vmatmul.mubr.msk.bf16.gmra.mrb[56].mxu0 %vm589_vm0, %v16447_v61  ;;  %14922 = vmatmul.mubr.msk.bf16.gmra.mrb[56].mxu1 %vm589_vm0, %v16448_v62 }
  0xfc   :  { %14821 = vmatprep.mubr.msk.bf16.mxu0 %vm589_vm0, %v16449_v63  ;;  %14925 = vmatprep.mubr.msk.bf16.mxu1 %vm589_vm0, %v16450_v0  ;;  %v16498_v0 = vld [vmem:[#allocation5 + $0x368] sm:$0xff]  }
 0x103   :  { %14822 = vmatmul.mubr.msk.bf16.gmra.mrb[60].mxu0 %vm589_vm0, %v16451_v1  ;;  %14926 = vmatmul.mubr.msk.bf16.gmra.mrb[60].mxu1 %vm589_vm0, %v16452_v2 }
 0x104   :  { %14825 = vmatprep.mubr.msk.bf16.mxu0 %vm589_vm0, %v16453_v3  ;;  %14929 = vmatprep.mubr.msk.bf16.mxu1 %vm589_vm0, %v16454_v4 }
 0x10b   :  { %14826 = vmatmul.mubr.msk.bf16.gmra.mrb[64].mxu0 %vm589_vm0, %v16455_v5  ;;  %14930 = vmatmul.mubr.msk.bf16.gmra.mrb[64].mxu1 %vm589_vm0, %v16456_v6  ;;  %v16499_v6 = vld [vmem:[#allocation5 + $0x370] sm:$0xff]  }
 0x10c   :  { %14829 = vmatprep.mubr.msk.bf16.mxu0 %vm589_vm0, %v16457_v7  ;;  %14933 = vmatprep.mubr.msk.bf16.mxu1 %vm589_vm0, %v16458_v8 }
 0x113   :  { %14830 = vmatmul.mubr.msk.bf16.gmra.mrb[68].mxu0 %vm589_vm0, %v16459_v9  ;;  %14934 = vmatmul.mubr.msk.bf16.gmra.mrb[68].mxu1 %vm589_vm0, %v16460_v10  ;;  %v16500_v10 = vld [vmem:[#allocation5 + $0x378] sm:$0xff]  }
 0x114   :  { %14833 = vmatprep.mubr.msk.bf16.mxu0 %vm589_vm0, %v16461_v11  ;;  %14937 = vmatprep.mubr.msk.bf16.mxu1 %vm589_vm0, %v16462_v12 }
 0x11b   :  { %14834 = vmatmul.mubr.msk.bf16.gmra.mrb[72].mxu0 %vm589_vm0, %v16463_v13  ;;  %14938 = vmatmul.mubr.msk.bf16.gmra.mrb[72].mxu1 %vm589_vm0, %v16464_v14 }
 0x11c   :  { %14837 = vmatprep.mubr.msk.bf16.mxu0 %vm589_vm0, %v16465_v15  ;;  %14941 = vmatprep.mubr.msk.bf16.mxu1 %vm589_vm0, %v16466_v16  ;;  %v16501_v16 = vld [vmem:[#allocation5 + $0x380] sm:$0xff]  }
 0x123   :  { %14838 = vmatmul.mubr.msk.bf16.gmra.mrb[76].mxu0 %vm589_vm0, %v16467_v17  ;;  %14942 = vmatmul.mubr.msk.bf16.gmra.mrb[76].mxu1 %vm589_vm0, %v16468_v18 }
 0x124   :  { %14841 = vmatprep.mubr.msk.bf16.mxu0 %vm589_vm0, %v16469_v19  ;;  %14945 = vmatprep.mubr.msk.bf16.mxu1 %vm589_vm0, %v16470_v20  ;;  %v16502_v20 = vld [vmem:[#allocation5 + $0x388] sm:$0xff]  }
 0x12b   :  { %14842 = vmatmul.mubr.msk.bf16.gmra.mrb[80].mxu0 %vm589_vm0, %v16471_v21  ;;  %14946 = vmatmul.mubr.msk.bf16.gmra.mrb[80].mxu1 %vm589_vm0, %v16472_v22 }
 0x12c   :  { %14845 = vmatprep.mubr.msk.bf16.mxu0 %vm589_vm0, %v16473_v23  ;;  %14949 = vmatprep.mubr.msk.bf16.mxu1 %vm589_vm0, %v16474_v24 }
 0x133   :  { %14846 = vmatmul.mubr.msk.bf16.gmra.mrb[84].mxu0 %vm589_vm0, %v16475_v25  ;;  %14950 = vmatmul.mubr.msk.bf16.gmra.mrb[84].mxu1 %vm589_vm0, %v16476_v26 }
 0x134   :  { %14849 = vmatprep.mubr.msk.bf16.mxu0 %vm589_vm0, %v16477_v27  ;;  %14953 = vmatprep.mubr.msk.bf16.mxu1 %vm589_vm0, %v16478_v28  ;;  %v16503_v27 = vld [vmem:[#allocation5 + $0x390] sm:$0xff]  }
 0x13b   :  { %14850 = vmatmul.mubr.msk.bf16.gmra.mrb[88].mxu0 %vm589_vm0, %v16479_v29  ;;  %14954 = vmatmul.mubr.msk.bf16.gmra.mrb[88].mxu1 %vm589_vm0, %v16480_v30 }
 0x13c   :  { %14853 = vmatprep.mubr.msk.bf16.mxu0 %vm589_vm0, %v16481_v31  ;;  %14957 = vmatprep.mubr.msk.bf16.mxu1 %vm589_vm0, %v16482_v32  ;;  %v16508_v31 = vld [vmem:[#allocation5 + $0x3b8] sm:$0xff]  }
 0x143   :  { %14854 = vmatmul.mubr.msk.bf16.gmra.mrb[92].mxu0 %vm589_vm0, %v16483_v33  ;;  %14958 = vmatmul.mubr.msk.bf16.gmra.mrb[92].mxu1 %vm589_vm0, %v16484_v34  ;;  %v16504_v34 = vld [vmem:[#allocation5 + $0x398] sm:$0xff]  }
 0x144   :  { %14857 = vmatprep.mubr.msk.bf16.mxu0 %vm589_vm0, %v16485_v35  ;;  %14961 = vmatprep.mubr.msk.bf16.mxu1 %vm589_vm0, %v16486_v36 }
 0x14b   :  { %14858 = vmatmul.mubr.msk.bf16.gmra.mrb[96].mxu0 %vm589_vm0, %v16487_v37  ;;  %14962 = vmatmul.mubr.msk.bf16.gmra.mrb[96].mxu1 %vm589_vm0, %v16488_v38 }
 0x14c   :  { %14965 = vmatprep.mubr.msk.bf16.mxu1 %vm589_vm0, %v16489_v39 }
 0x153   :  { %14966 = vmatmul.mubr.msk.bf16.gmra.mrb[100].mxu1 %vm589_vm0, %v16490_v40 }
 0x154   :  { %14969 = vmatprep.mubr.msk.bf16.mxu1 %vm589_vm0, %v16491_v41  ;;  %v16505_v41 = vld [vmem:[#allocation5 + $0x3a0] sm:$0xff]  }
 0x15b   :  { %14970 = vmatmul.mubr.msk.bf16.gmra.mrb[104].mxu1 %vm589_vm0, %v16492_v42  ;;  %v16507_v42 = vld [vmem:[#allocation5 + $0x3b0] sm:$0xff]  }
 0x15c   :  { %14973 = vmatprep.mubr.msk.bf16.mxu1 %vm589_vm0, %v16493_v43 }
 0x15e   :  { %v17437_v45 = vpop.f32.mrb[0].mxu1  ;;  %v17439_v46 = vpop.f32.mrb[0].mxu0 }
 0x15f   :  { %20101 = vst [vmem:[#allocation20_spill] sm:$0xff] %v17437_v45  ;;  %v17441_v47 = vpop.f32.mrb[1].mxu1  ;;  %v17443_v48 = vpop.f32.mrb[1].mxu0 }
 0x160   :  { %20102 = vst [vmem:[#allocation21_spill] sm:$0xff] %v17441_v47  ;;  %v17445_v49 = vpop.f32.mrb[2].mxu1  ;;  %v17447_v51 = vpop.f32.mrb[2].mxu0  ;;  %v16524_v47 = vld [vmem:[#allocation5 + $0x438] sm:$0xff]  }
 0x161   :  { %20103 = vst [vmem:[#allocation22_spill] sm:$0xff] %v17445_v49  ;;  %v17449_v52 = vpop.f32.mrb[3].mxu1  ;;  %v17451_v53 = vpop.f32.mrb[3].mxu0 }
 0x162   :  { %20104 = vst [vmem:[#allocation23_spill] sm:$0xff] %v17449_v52 }
 0x163   :  { %14974 = vmatmul.mubr.msk.bf16.gmra.mrb[108].mxu1 %vm589_vm0, %v16494_v44 }
 0x164   :  { %14977 = vmatprep.mubr.msk.bf16.mxu1 %vm589_vm0, %v16495_v50 }
 0x166   :  { %v17455_v55 = vpop.f32.mrb[4].mxu1  ;;  %v17457_v56 = vpop.f32.mrb[4].mxu0 }
 0x167   :  { %20105 = vst [vmem:[#allocation24_spill] sm:$0xff] %v17455_v55  ;;  %v17459_v57 = vpop.f32.mrb[5].mxu1  ;;  %v17461_v58 = vpop.f32.mrb[5].mxu0  ;;  %v16521_v55 = vld [vmem:[#allocation5 + $0x420] sm:$0xff]  }
 0x168   :  { %20106 = vst [vmem:[#allocation25_spill] sm:$0xff] %v17459_v57  ;;  %v17463_v59 = vpop.f32.mrb[6].mxu1  ;;  %v17465_v61 = vpop.f32.mrb[6].mxu0 }
 0x169   :  { %20107 = vst [vmem:[#allocation26_spill] sm:$0xff] %v17463_v59  ;;  %v17467_v62 = vpop.f32.mrb[7].mxu1  ;;  %v17469_v63 = vpop.f32.mrb[7].mxu0 }
 0x16a   :  { %20108 = vst [vmem:[#allocation27_spill] sm:$0xff] %v17467_v62 }
 0x16b   :  { %14978 = vmatmul.mubr.msk.bf16.gmra.mrb[112].mxu1 %vm589_vm0, %v16496_v54 }
 0x16c   :  { %14981 = vmatprep.mubr.msk.bf16.mxu1 %vm589_vm0, %v16497_v60 }
 0x16e   :  { %v17473_v1 = vpop.f32.mrb[8].mxu1  ;;  %v17475_v2 = vpop.f32.mrb[8].mxu0 }
 0x16f   :  { %20109 = vst [vmem:[#allocation28_spill] sm:$0xff] %v17473_v1  ;;  %v17477_v3 = vpop.f32.mrb[9].mxu1  ;;  %v17479_v4 = vpop.f32.mrb[9].mxu0  ;;  %v16511_v1 = vld [vmem:[#allocation5 + $0x3d0] sm:$0xff]  }
 0x170   :  { %20110 = vst [vmem:[#allocation29_spill] sm:$0xff] %v17477_v3  ;;  %v17481_v5 = vpop.f32.mrb[10].mxu1  ;;  %v17483_v7 = vpop.f32.mrb[10].mxu0 }
 0x171   :  { %20111 = vst [vmem:[#allocation30_spill] sm:$0xff] %v17481_v5  ;;  %v17485_v8 = vpop.f32.mrb[11].mxu1  ;;  %v17487_v9 = vpop.f32.mrb[11].mxu0 }
 0x172   :  { %20112 = vst [vmem:[#allocation31_spill] sm:$0xff] %v17485_v8 }
 0x173   :  { %14982 = vmatmul.mubr.msk.bf16.gmra.mrb[116].mxu1 %vm589_vm0, %v16498_v0  ;;  %v16506_v0 = vld [vmem:[#allocation5 + $0x3a8] sm:$0xff]  }
 0x174   :  { %14985 = vmatprep.mubr.msk.bf16.mxu1 %vm589_vm0, %v16499_v6 }
 0x176   :  { %v17491_v11 = vpop.f32.mrb[12].mxu1  ;;  %v17493_v12 = vpop.f32.mrb[12].mxu0 }
 0x177   :  { %20113 = vst [vmem:[#allocation32_spill] sm:$0xff] %v17491_v11  ;;  %v17495_v13 = vpop.f32.mrb[13].mxu1  ;;  %v17497_v14 = vpop.f32.mrb[13].mxu0 }
 0x178   :  { %20114 = vst [vmem:[#allocation33_spill] sm:$0xff] %v17495_v13  ;;  %v17499_v15 = vpop.f32.mrb[14].mxu1  ;;  %v17501_v17 = vpop.f32.mrb[14].mxu0  ;;  %v16509_v13 = vld [vmem:[#allocation5 + $0x3c0] sm:$0xff]  }
 0x179   :  { %20115 = vst [vmem:[#allocation34_spill] sm:$0xff] %v17499_v15  ;;  %v17503_v18 = vpop.f32.mrb[15].mxu1  ;;  %v17505_v19 = vpop.f32.mrb[15].mxu0 }
 0x17a   :  { %20116 = vst [vmem:[#allocation35_spill] sm:$0xff] %v17503_v18 }
 0x17b   :  { %14986 = vmatmul.mubr.msk.bf16.gmra.mrb[120].mxu1 %vm589_vm0, %v16500_v10 }
 0x17c   :  { %14989 = vmatprep.mubr.msk.bf16.mxu1 %vm589_vm0, %v16501_v16 }
 0x17e   :  { %v17509_v21 = vpop.f32.mrb[16].mxu1  ;;  %v17511_v22 = vpop.f32.mrb[16].mxu0 }
 0x17f   :  { %20117 = vst [vmem:[#allocation36_spill] sm:$0xff] %v17509_v21  ;;  %v17513_v23 = vpop.f32.mrb[17].mxu1  ;;  %v17517_v25 = vpop.f32.mrb[17].mxu0  ;;  %v20129_v5 = vmax.f32 %v17439_v46, %v17511_v22 }
 0x180   :  { %20118 = vst [vmem:[#allocation37_spill] sm:$0xff] %v17513_v23  ;;  %v17519_v26 = vpop.f32.mrb[18].mxu1  ;;  %v17523_v29 = vpop.f32.mrb[18].mxu0 }
 0x181   :  { %20119 = vst [vmem:[#allocation38_spill] sm:$0xff] %v17519_v26  ;;  %v17525_v30 = vpop.f32.mrb[19].mxu1  ;;  %v17529_v32 = vpop.f32.mrb[19].mxu0 }
 0x182   :  { %20120 = vst [vmem:[#allocation39_spill] sm:$0xff] %v17525_v30 }
 0x183   :  { %14990 = vmatmul.mubr.msk.bf16.gmra.mrb[124].mxu1 %vm589_vm0, %v16502_v20 }
 0x184   :  { %14993 = vmatprep.mubr.msk.bf16.mxu1 %vm589_vm0, %v16503_v27 }
 0x186   :  { %v17535_v35 = vpop.f32.mrb[20].mxu1  ;;  %v17537_v36 = vpop.f32.mrb[20].mxu0 }
 0x187   :  { %20121 = vst [vmem:[#allocation40_spill] sm:$0xff] %v17535_v35  ;;  %v17539_v37 = vpop.f32.mrb[21].mxu1  ;;  %v17543_v39 = vpop.f32.mrb[21].mxu0 }
 0x188   :  { %20122 = vst [vmem:[#allocation41_spill] sm:$0xff] %v17539_v37  ;;  %v17545_v40 = vpop.f32.mrb[22].mxu1  ;;  %v17549_v43 = vpop.f32.mrb[22].mxu0  ;;  %v16968_v37 = vld [vmem:[#allocation7 + $0x8] sm:$0xff]  }
 0x189   :  { %20123 = vst [vmem:[#allocation42_spill] sm:$0xff] %v17545_v40  ;;  %v17551_v44 = vpop.f32.mrb[23].mxu1  ;;  %v17555_v54 = vpop.f32.mrb[23].mxu0  ;;  %v20131_v40 = vmax.f32 %v17447_v51, %v17523_v29  ;;  %v20133_v51 = vmax.f32 %v17457_v56, %v17537_v36 }
 0x18a   :  { %20124 = vst [vmem:[#allocation43_spill] sm:$0xff] %v17551_v44  ;;  %v20136_v36 = vmax.f32 %v17469_v63, %v17555_v54  ;;  %v16515_v63 = vld [vmem:[#allocation5 + $0x3f0] sm:$0xff]  }
 0x18b   :  { %14994 = vmatmul.mubr.msk.bf16.gmra.mrb[128].mxu1 %vm589_vm0, %v16504_v34 }
 0x18c   :  { %14997 = vmatprep.mubr.msk.bf16.mxu1 %vm589_vm0, %v16505_v41 }
 0x18e   :  { %v17561_v6 = vpop.f32.mrb[24].mxu1  ;;  %v17563_v10 = vpop.f32.mrb[24].mxu0 }
 0x18f   :  { %20125 = vst [vmem:[#allocation44_spill] sm:$0xff] %v17561_v6  ;;  %v17565_v16 = vpop.f32.mrb[25].mxu1  ;;  %v17569_v27 = vpop.f32.mrb[25].mxu0 }
 0x190   :  { %20126 = vst [vmem:[#allocation45_spill] sm:$0xff] %v17565_v16  ;;  %v17571_v50 = vpop.f32.mrb[26].mxu1  ;;  %v17575_v60 = vpop.f32.mrb[26].mxu0  ;;  %v20138_v54 = vmax.f32 %v17479_v4, %v17569_v27  ;;  %v16516_v4 = vld [vmem:[#allocation5 + $0x3f8] sm:$0xff]  }
 0x191   :  { %20127 = vst [vmem:[#allocation46_spill] sm:$0xff] %v17571_v50  ;;  %v17577_v41 = vpop.f32.mrb[27].mxu1  ;;  %v17581_v33 = vpop.f32.mrb[27].mxu0  ;;  %v16510_v50 = vld [vmem:[#allocation5 + $0x3c8] sm:$0xff]  }
 0x192   :  { %20128 = vst [vmem:[#allocation47_spill] sm:$0xff] %v17577_v41 }
 0x193   :  { %14998 = vmatmul.mubr.msk.bf16.gmra.mrb[132].mxu1 %vm589_vm0, %v16506_v0 }
 0x194   :  { %15001 = vmatprep.mubr.msk.bf16.mxu1 %vm589_vm0, %v16507_v42 }
 0x196   :  { %v17587_v28 = vpop.f32.mrb[28].mxu1  ;;  %v17589_v34 = vpop.f32.mrb[28].mxu0 }
 0x197   :  { %v17591_v24 = vpop.f32.mrb[29].mxu1  ;;  %v17595_v38 = vpop.f32.mrb[29].mxu0 }
 0x198   :  { %v17597_v15 = vpop.f32.mrb[30].mxu1  ;;  %v17601_v20 = vpop.f32.mrb[30].mxu0 }
 0x199   :  { %v17603_v42 = vpop.f32.mrb[31].mxu1  ;;  %v17607_v41 = vpop.f32.mrb[31].mxu0 }
 0x19b   :  { %15002 = vmatmul.mubr.msk.bf16.gmra.mrb[136].mxu1 %vm589_vm0, %v16508_v31  ;;  %v20130_v31 = vmax.f32 %v17443_v48, %v17517_v25  ;;  %v16512_v48 = vld [vmem:[#allocation5 + $0x3d8] sm:$0xff]  }
 0x19c   :  { %15005 = vmatprep.mubr.msk.bf16.mxu1 %vm589_vm0, %v16509_v13 }
 0x19e   :  { %v17613_v8 = vpop.f32.mrb[32].mxu1  ;;  %v14795_v0 = vpop.f32.mrb[32].mxu0 }
 0x19f   :  { %v17615_v16 = vpop.f32.mrb[33].mxu1  ;;  %v17620_v6 = vmax.f32 %v20129_v5, %v14795_v0  ;;  %v944_v11 = vpop.f32.mrb[33].mxu0  ;;  %v20132_v5 = vmax.f32 %v17451_v53, %v17529_v32  ;;  %v16513_v53 = vld [vmem:[#allocation5 + $0x3e0] sm:$0xff]   ;;  %v20134_v32 = vmax.f32 %v17461_v58, %v17543_v39  ;;  %v16514_v58 = vld [vmem:[#allocation5 + $0x3e8] sm:$0xff]  }
 0x1a0   :  { %v17622_v3 = vpop.f32.mrb[34].mxu1  ;;  %v17627_v18 = vmax.f32 %v20130_v31, %v944_v11  ;;  %v14796_v13 = vpop.f32.mrb[34].mxu0 }
 0x1a1   :  { %v17629_v44 = vpop.f32.mrb[35].mxu1  ;;  %v17634_v62 = vmax.f32 %v20131_v40, %v14796_v13  ;;  %v947_v46 = vpop.f32.mrb[35].mxu0 }
 0x1a2   :  { %v17639_v22 = vmax.f32 %v20132_v5, %v947_v46  ;;  %v20135_v46 = vmax.f32 %v17465_v61, %v17549_v43  ;;  %v20137_v61 = vmax.f32 %v17475_v2, %v17563_v10  ;;  %v20141_v10 = vmax.f32 %v17487_v9, %v17581_v33 }
 0x1a3   :  { %15006 = vmatmul.mubr.msk.bf16.gmra.mrb[140].mxu1 %vm589_vm0, %v16510_v50 }
 0x1a4   :  { %15009 = vmatprep.mubr.msk.bf16.mxu1 %vm589_vm0, %v16511_v1 }
 0x1a6   :  { %v17643_v11 = vpop.f32.mrb[36].mxu1  ;;  %v14799_v25 = vpop.f32.mrb[36].mxu0 }
 0x1a7   :  { %v17645_v0 = vpop.f32.mrb[37].mxu1  ;;  %v17650_v29 = vmax.f32 %v20133_v51, %v14799_v25  ;;  %v960_v40 = vpop.f32.mrb[37].mxu0 }
 0x1a8   :  { %v17652_v31 = vpop.f32.mrb[38].mxu1  ;;  %v17657_v50 = vmax.f32 %v20134_v32, %v960_v40  ;;  %v14800_v1 = vpop.f32.mrb[38].mxu0 }
 0x1a9   :  { %v17659_v13 = vpop.f32.mrb[39].mxu1  ;;  %v17664_v5 = vmax.f32 %v20135_v46, %v14800_v1  ;;  %v963_v56 = vpop.f32.mrb[39].mxu0 }
 0x1aa   :  { %v17669_v25 = vmax.f32 %v20136_v36, %v963_v56  ;;  %v20140_v56 = vmax.f32 %v17483_v7, %v17575_v60  ;;  %v20143_v60 = vmax.f32 %v17493_v12, %v17589_v34  ;;  %v20145_v12 = vmax.f32 %v17501_v17, %v17601_v20 }
 0x1ab   :  { %15010 = vmatmul.mubr.msk.bf16.gmra.mrb[144].mxu1 %vm589_vm0, %v16512_v48 }
 0x1ac   :  { %15013 = vmatprep.mubr.msk.bf16.mxu1 %vm589_vm0, %v16513_v53 }
 0x1ae   :  { %v17673_v39 = vpop.f32.mrb[40].mxu1  ;;  %v14803_v51 = vpop.f32.mrb[40].mxu0 }
 0x1af   :  { %v17675_v40 = vpop.f32.mrb[41].mxu1  ;;  %v17680_v43 = vmax.f32 %v20137_v61, %v14803_v51  ;;  %v976_v32 = vpop.f32.mrb[41].mxu0 }
 0x1b0   :  { %v17682_v1 = vpop.f32.mrb[42].mxu1  ;;  %v17687_v48 = vmax.f32 %v20138_v54, %v976_v32  ;;  %v14804_v53 = vpop.f32.mrb[42].mxu0 }
 0x1b1   :  { %v17689_v46 = vpop.f32.mrb[43].mxu1  ;;  %v17694_v36 = vmax.f32 %v20140_v56, %v14804_v53  ;;  %v979_v2 = vpop.f32.mrb[43].mxu0  ;;  %v20144_v53 = vmax.f32 %v17497_v14, %v17595_v38  ;;  %v20146_v14 = vmax.f32 %v17505_v19, %v17607_v41 }
 0x1b2   :  { %20139 = vst [vmem:[#allocation48_spill] sm:$0xff] %v17689_v46  ;;  %v17699_v51 = vmax.f32 %v20141_v10, %v979_v2 }
 0x1b3   :  { %15014 = vmatmul.mubr.msk.bf16.gmra.mrb[148].mxu1 %vm589_vm0, %v16514_v58 }
 0x1b4   :  { %20142 = vst [vmem:[#allocation49_spill] sm:$0xff] %v17699_v51  ;;  %15017 = vmatprep.mubr.msk.bf16.mxu1 %vm589_vm0, %v16515_v63  ;;  %v16517_v63 = vld [vmem:[#allocation5 + $0x400] sm:$0xff]  }
 0x1b6   :  { %v17703_v27 = vpop.f32.mrb[44].mxu1  ;;  %v14807_v61 = vpop.f32.mrb[44].mxu0 }
 0x1b7   :  { %v17707_v7 = vpop.f32.mrb[45].mxu1  ;;  %v17712_v54 = vmax.f32 %v20143_v60, %v14807_v61  ;;  %v992_v9 = vpop.f32.mrb[45].mxu0 }
 0x1b8   :  { %v17716_v58 = vpop.f32.mrb[46].mxu1  ;;  %v17721_v56 = vmax.f32 %v20144_v53, %v992_v9  ;;  %v14808_v2 = vpop.f32.mrb[46].mxu0  ;;  %v16518_v9 = vld [vmem:[#allocation5 + $0x408] sm:$0xff]  }
 0x1b9   :  { %v17725_v32 = vpop.f32.mrb[47].mxu1  ;;  %v17730_v34 = vmax.f32 %v20145_v12, %v14808_v2  ;;  %v995_v61 = vpop.f32.mrb[47].mxu0  ;;  %v16967_v12 = vld [vmem:[#allocation7] sm:$0xff]  }
 0x1ba   :  { %v17737_v38 = vmax.f32 %v20146_v14, %v995_v61  ;;  %v16520_v14 = vld [vmem:[#allocation5 + $0x418] sm:$0xff]  }
 0x1bb   :  { %15018 = vmatmul.mubr.msk.bf16.gmra.mrb[152].mxu1 %vm589_vm0, %v16516_v4 }
 0x1bc   :  { %15089 = vmatprep.mubr.msk.bf16.mxu1 %vm589_vm0, %v16517_v63  ;;  %v16519_v63 = vld [vmem:[#allocation5 + $0x410] sm:$0xff]  }
 0x1be   :  { %v17741_v53 = vpop.f32.mrb[48].mxu1  ;;  %v17743_v10 = vpop.f32.mrb[48].mxu0 }
 0x1bf   :  { %v17747_v20 = vpop.f32.mrb[49].mxu1  ;;  %v17751_v19 = vpop.f32.mrb[49].mxu0 }
 0x1c0   :  { %v17755_v4 = vpop.f32.mrb[50].mxu1  ;;  %v17759_v61 = vpop.f32.mrb[50].mxu0  ;;  %v20162_v51 = vmax.f32 %v17627_v18, %v17751_v19 }
 0x1c1   :  { %v17763_v17 = vpop.f32.mrb[51].mxu1  ;;  %v17767_v60 = vpop.f32.mrb[51].mxu0 }
 0x1c3   :  { %15090 = vmatmul.mubr.msk.bf16.vlgmr.msra.gmra.mrb[156].mxu1 %vm589_vm0, %v16518_v9 }
 0x1c4   :  { %15093 = vmatprep.mubr.msk.bf16.mxu1 %vm589_vm0, %v16519_v63  ;;  %15414 = vmatpush3.bf16.msra.mxu1 %v16967_v12 }
 0x1c5   :  { %15415 = vmatprep.subr.bf16.mxu1 %v16968_v37 }
 0x1c6   :  { %v17775_v59 = vpop.f32.mrb[52].mxu1  ;;  %v17777_v2 = vpop.f32.mrb[52].mxu0 }
 0x1c7   :  { %v17781_v41 = vpop.f32.mrb[53].mxu1  ;;  %v17785_v9 = vpop.f32.mrb[53].mxu0 }
 0x1c8   :  { %v17789_v57 = vpop.f32.mrb[54].mxu1  ;;  %v17793_v26 = vpop.f32.mrb[54].mxu0  ;;  %15416 = vmatpush3.bf16.msra.mxu1 %v16968_v37  ;;  %v16522_v37 = vld [vmem:[#allocation5 + $0x428] sm:$0xff]  }
 0x1c9   :  { %v17797_v52 = vpop.f32.mrb[55].mxu1  ;;  %v17801_v23 = vpop.f32.mrb[55].mxu0  ;;  %15741 = vmatprep.subr.bf16.mxu1 %v16967_v12 }
 0x1cb   :  { %15094 = vmatmul.mubr.msk.bf16.gmra.mrb[160].mxu1 %vm589_vm0, %v16520_v14 }
 0x1cc   :  { %15097 = vmatprep.mubr.msk.bf16.mxu1 %vm589_vm0, %v16521_v55  ;;  %v16523_v55 = vld [vmem:[#allocation5 + $0x430] sm:$0xff]  }
 0x1ce   :  { %v17809_v35 = vpop.f32.mrb[56].mxu1  ;;  %v17811_v49 = vpop.f32.mrb[56].mxu0 }
 0x1cf   :  { %20147 = vst [vmem:[#allocation50_spill] sm:$0xff] %v17809_v35  ;;  %20148 = vst [vmem:[#allocation51_spill] sm:$0xff] %v17811_v49  ;;  %v17815_v21 = vpop.f32.mrb[57].mxu1  ;;  %v17819_v63 = vpop.f32.mrb[57].mxu0 }
 0x1d0   :  { %20149 = vst [vmem:[#allocation52_spill] sm:$0xff] %v17815_v21  ;;  %20150 = vst [vmem:[#allocation53_spill] sm:$0xff] %v17819_v63  ;;  %v17823_v30 = vpop.f32.mrb[58].mxu1  ;;  %v17827_v45 = vpop.f32.mrb[58].mxu0 }
 0x1d1   :  { %20151 = vst [vmem:[#allocation54_spill] sm:$0xff] %v17823_v30  ;;  %20152 = vst [vmem:[#allocation55_spill] sm:$0xff] %v17827_v45  ;;  %v17831_v35 = vpop.f32.mrb[59].mxu1  ;;  %v17835_v49 = vpop.f32.mrb[59].mxu0  ;;  %v20155_v30 = vmax.f32 %v17587_v28, %v17703_v27  ;;  %v20157_v28 = vmax.f32 %v17597_v15, %v17716_v58  ;;  %v16526_v15 = vld [vmem:[#allocation5 + $0x448] sm:$0xff]  }
 0x1d2   :  { %20153 = vst [vmem:[#allocation56_spill] sm:$0xff] %v17831_v35  ;;  %20154 = vst [vmem:[#allocation57_spill] sm:$0xff] %v17835_v49  ;;  %v16525_v49 = vld [vmem:[#allocation5 + $0x440] sm:$0xff]  }
 0x1d3   :  { %15098 = vmatmul.mubr.msk.bf16.gmra.mrb[164].mxu1 %vm589_vm0, %v16522_v37  ;;  %v20156_v37 = vmax.f32 %v17591_v24, %v17707_v7  ;;  %v16527_v7 = vld [vmem:[#allocation5 + $0x450] sm:$0xff]  }
 0x1d4   :  { %15101 = vmatprep.mubr.msk.bf16.mxu1 %vm589_vm0, %v16523_v55 }
 0x1d6   :  { %v14927_v63 = vpop.f32.mrb[60].mxu1  ;;  %v17843_v33 = vpop.f32.mrb[60].mxu0 }
 0x1d7   :  { %v17848_v12 = vmax.f32 %v20155_v30, %v14927_v63  ;;  %v2304_v45 = vpop.f32.mrb[61].mxu1  ;;  %v17852_v35 = vpop.f32.mrb[61].mxu0 }
 0x1d8   :  { %v17857_v21 = vmax.f32 %v20156_v37, %v2304_v45  ;;  %v14928_v55 = vpop.f32.mrb[62].mxu1  ;;  %v17861_v46 = vpop.f32.mrb[62].mxu0  ;;  %v20158_v45 = vmax.f32 %v17603_v42, %v17725_v32  ;;  %v20160_v42 = vmax.f32 %v17620_v6, %v17743_v10 }
 0x1d9   :  { %v17866_v30 = vmax.f32 %v20157_v28, %v14928_v55  ;;  %v2307_v27 = vpop.f32.mrb[63].mxu1  ;;  %v17870_v14 = vpop.f32.mrb[63].mxu0  ;;  %v20159_v55 = vmax.f32 %v17613_v8, %v17741_v53 }
 0x1da   :  { %v17875_v24 = vmax.f32 %v20158_v45, %v2307_v27 }
 0x1db   :  { %15102 = vmatmul.mubr.msk.bf16.gmra.mrb[168].mxu1 %vm589_vm0, %v16524_v47  ;;  %v20161_v47 = vmax.f32 %v17615_v16, %v17747_v20 }
 0x1dc   :  { %15105 = vmatprep.mubr.msk.bf16.mxu1 %vm589_vm0, %v16525_v49 }
 0x1de   :  { %v14931_v58 = vpop.f32.mrb[64].mxu1  ;;  %v14827_v37 = vpop.f32.mrb[64].mxu0 }
 0x1df   :  { %v17884_v28 = vmax.f32 %v20159_v55, %v14931_v58  ;;  %v2320_v63 = vpop.f32.mrb[65].mxu1  ;;  %v17889_v32 = vmax.f32 %v20160_v42, %v14827_v37  ;;  %v1072_v27 = vpop.f32.mrb[65].mxu0  ;;  %v20163_v58 = vmax.f32 %v17622_v3, %v17755_v4  ;;  %v20164_v37 = vmax.f32 %v17634_v62, %v17759_v61  ;;  %v16528_v62 = vld [vmem:[#allocation5 + $0x458] sm:$0xff]  }
 0x1e0   :  { %v17894_v45 = vmax.f32 %v20161_v47, %v2320_v63  ;;  %v14932_v49 = vpop.f32.mrb[66].mxu1  ;;  %v17899_v8 = vmax.f32 %v20162_v51, %v1072_v27  ;;  %v14828_v53 = vpop.f32.mrb[66].mxu0  ;;  %v16558_v63 = vld [vmem:[#allocation10 + $0x40] sm:$0xff]   ;;  %v20165_v55 = vmax.f32 %v17629_v44, %v17763_v17  ;;  %v20166_v51 = vmax.f32 %v17639_v22, %v17767_v60  ;;  %v16560_v3 = vld [vmem:[#allocation10 + $0x48] sm:$0xff]  }
 0x1e1   :  { %v17904_v6 = vmax.f32 %v20163_v58, %v14932_v49  ;;  %v2323_v10 = vpop.f32.mrb[67].mxu1  ;;  %v17909_v16 = vmax.f32 %v20164_v37, %v14828_v53  ;;  %v1075_v20 = vpop.f32.mrb[67].mxu0  ;;  %15021 = vmatprep.subr.bf16.mxu0 %v16558_v63  ;;  %v20167_v44 = vmax.f32 %v17643_v11, %v17775_v59  ;;  %v20168_v22 = vmax.f32 %v17650_v29, %v17777_v2  ;;  %v16529_v49 = vld [vmem:[#allocation5 + $0x460] sm:$0xff]  }
 0x1e2   :  { %v17914_v18 = vmax.f32 %v20165_v55, %v2323_v10  ;;  %v17919_v19 = vmax.f32 %v20166_v51, %v1075_v20  ;;  %15022 = vmatpush3.bf16.msra.mxu0 %v16558_v63  ;;  %v20170_v59 = vmax.f32 %v17657_v50, %v17785_v9  ;;  %v20171_v29 = vmax.f32 %v17652_v31, %v17789_v57  ;;  %v16562_v37 = vld [vmem:[#allocation10 + $0x50] sm:$0xff]  }
 0x1e3   :  { %15106 = vmatmul.mubr.msk.bf16.gmra.mrb[172].mxu1 %vm589_vm0, %v16526_v15  ;;  %15023 = vmatprep.subr.bf16.mxu0 %v16560_v3  ;;  %v20174_v50 = vmax.f32 %v17659_v13, %v17797_v52  ;;  %v20175_v20 = vmax.f32 %v17669_v25, %v17801_v23  ;;  %v16530_v57 = vld [vmem:[#allocation5 + $0x468] sm:$0xff]  }
 0x1e4   :  { %15109 = vmatprep.mubr.msk.bf16.mxu1 %vm589_vm0, %v16527_v7  ;;  %v20169_v7 = vmax.f32 %v17645_v0, %v17781_v41  ;;  %v20173_v0 = vmax.f32 %v17664_v5, %v17793_v26  ;;  %v16564_v26 = vld [vmem:[#allocation10 + $0x58] sm:$0xff]  }
 0x1e5   :  { %v20176_v55 = vld [vmem:[#allocation50_spill] sm:$0xff]  ;;  %v20178_v23 = vld [vmem:[#allocation51_spill] sm:$0xff] }
 0x1e6   :  { %v14935_v4 = vpop.f32.mrb[68].mxu1  ;;  %v14831_v61 = vpop.f32.mrb[68].mxu0  ;;  %15024 = vmatpush3.bf16.msra.mxu0 %v16560_v3  ;;  %v20177_v52 = vmax.f32 %v17673_v39, %v20176_v55  ;;  %v20179_v25 = vmax.f32 %v17680_v43, %v20178_v23  ;;  %v20185_v43 = vld [vmem:[#allocation54_spill] sm:$0xff] }
 0x1e7   :  { %v17926_v17 = vmax.f32 %v20167_v44, %v14935_v4  ;;  %v2336_v42 = vpop.f32.mrb[69].mxu1  ;;  %v17931_v60 = vmax.f32 %v20168_v22, %v14831_v61  ;;  %v1088_v15 = vpop.f32.mrb[69].mxu0  ;;  %15025 = vmatprep.subr.bf16.mxu0 %v16562_v37  ;;  %v20180_v4 = vld [vmem:[#allocation52_spill] sm:$0xff] }
 0x1e8   :  { %v17936_v27 = vmax.f32 %v20169_v7, %v2336_v42  ;;  %v14936_v47 = vpop.f32.mrb[70].mxu1  ;;  %v17941_v11 = vmax.f32 %v20170_v59, %v1088_v15  ;;  %v14832_v53 = vpop.f32.mrb[70].mxu0  ;;  %v20181_v61 = vmax.f32 %v17675_v40, %v20180_v4  ;;  %v16531_v22 = vld [vmem:[#allocation5 + $0x470] sm:$0xff]   ;;  %v20183_v15 = vld [vmem:[#allocation53_spill] sm:$0xff] }
 0x1e9   :  { %v17946_v2 = vmax.f32 %v20171_v29, %v14936_v47  ;;  %v2339_v58 = vpop.f32.mrb[71].mxu1  ;;  %v17951_v41 = vmax.f32 %v20173_v0, %v14832_v53  ;;  %v1091_v10 = vpop.f32.mrb[71].mxu0  ;;  %v20184_v39 = vmax.f32 %v17687_v48, %v20183_v15  ;;  %v20187_v29 = vld [vmem:[#allocation55_spill] sm:$0xff] }
 0x1ea   :  { %v17956_v9 = vmax.f32 %v20174_v50, %v2339_v58  ;;  %v17961_v63 = vmax.f32 %v20175_v20, %v1091_v10  ;;  %15026 = vmatpush3.bf16.msra.mxu0 %v16562_v37  ;;  %v20188_v40 = vmax.f32 %v17694_v36, %v20187_v29  ;;  %v16566_v10 = vld [vmem:[#allocation10 + $0x60] sm:$0xff]   ;;  %v16568_v36 = vld [vmem:[#allocation10 + $0x68] sm:$0xff]   ;;  %v16570_v29 = vld [vmem:[#allocation10 + $0x70] sm:$0xff]  }
 0x1eb   :  { %20172 = vst [vmem:[#allocation58_spill] sm:$0xff] %v17946_v2  ;;  %15110 = vmatmul.mubr.msk.bf16.gmra.mrb[176].mxu1 %vm589_vm0, %v16528_v62  ;;  %15027 = vmatprep.subr.bf16.mxu0 %v16564_v26  ;;  %v20189_v37 = vld [vmem:[#allocation48_spill] sm:$0xff] }
 0x1ec   :  { %15113 = vmatprep.mubr.msk.bf16.mxu1 %vm589_vm0, %v16529_v49  ;;  %v20186_v49 = vmax.f32 %v17682_v1, %v20185_v43  ;;  %v20190_v50 = vld [vmem:[#allocation56_spill] sm:$0xff]  ;;  %v20197_v43 = vmax.f32 %v17730_v34, %v17861_v46  ;;  %v16572_v46 = vld [vmem:[#allocation10 + $0x78] sm:$0xff]  }
 0x1ed   :  { %v20191_v48 = vmax.f32 %v20189_v37, %v20190_v50  ;;  %v16532_v1 = vld [vmem:[#allocation5 + $0x478] sm:$0xff]  }
 0x1ee   :  { %v14939_v31 = vpop.f32.mrb[72].mxu1  ;;  %v14835_v5 = vpop.f32.mrb[72].mxu0  ;;  %15028 = vmatpush3.bf16.msra.mxu0 %v16564_v26  ;;  %v20193_v26 = vld [vmem:[#allocation57_spill] sm:$0xff] }
 0x1ef   :  { %v17968_v13 = vmax.f32 %v20177_v52, %v14939_v31  ;;  %v2352_v51 = vpop.f32.mrb[73].mxu1  ;;  %v17973_v3 = vmax.f32 %v20179_v25, %v14835_v5  ;;  %v1104_v62 = vpop.f32.mrb[73].mxu0  ;;  %v20192_v31 = vld [vmem:[#allocation49_spill] sm:$0xff]  ;;  %15029 = vmatprep.subr.bf16.mxu0 %v16566_v10 }
 0x1f0   :  { %v17978_v44 = vmax.f32 %v20181_v61, %v2352_v51  ;;  %v14940_v42 = vpop.f32.mrb[74].mxu1  ;;  %v17983_v7 = vmax.f32 %v20184_v39, %v1104_v62  ;;  %v14836_v47 = vpop.f32.mrb[74].mxu0  ;;  %v20194_v5 = vmax.f32 %v20192_v31, %v20193_v26  ;;  %v20195_v62 = vmax.f32 %v17712_v54, %v17843_v33  ;;  %v20202_v54 = vld [vmem:[#allocation36_spill] sm:$0xff] }
 0x1f1   :  { %v17988_v59 = vmax.f32 %v20186_v49, %v14940_v42  ;;  %v2355_v53 = vpop.f32.mrb[75].mxu1  ;;  %v17993_v58 = vmax.f32 %v20188_v40, %v14836_v47  ;;  %v1107_v0 = vpop.f32.mrb[75].mxu0  ;;  %v16533_v47 = vld [vmem:[#allocation5 + $0x480] sm:$0xff]  }
 0x1f2   :  { %20182 = vst [vmem:[#allocation50_spill] sm:$0xff] %v17978_v44  ;;  %v17998_v20 = vmax.f32 %v20191_v48, %v2355_v53  ;;  %v18003_v55 = vmax.f32 %v20194_v5, %v1107_v0  ;;  %15030 = vmatpush3.bf16.msra.mxu0 %v16566_v10  ;;  %v16534_v0 = vld [vmem:[#allocation5 + $0x488] sm:$0xff]   ;;  %v20200_v48 = vld [vmem:[#allocation20_spill] sm:$0xff] }
 0x1f3   :  { %15114 = vmatmul.mubr.msk.bf16.gmra.mrb[180].mxu1 %vm589_vm0, %v16530_v57  ;;  %15031 = vmatprep.subr.bf16.mxu0 %v16568_v36 }
 0x1f4   :  { %15117 = vmatprep.mubr.msk.bf16.mxu1 %vm589_vm0, %v16531_v22  ;;  %v20196_v22 = vmax.f32 %v17721_v56, %v17852_v35  ;;  %v20198_v56 = vmax.f32 %v17737_v38, %v17870_v14  ;;  %v18097_v38 = vld [vmem:[#allocation9] ss:$0 sm:$0xff] }
 0x1f6   :  { %v18007_v52 = vpop.f32.mrb[76].mxu1  ;;  %v14839_v51 = vpop.f32.mrb[76].mxu0  ;;  %15032 = vmatpush3.bf16.msra.mxu0 %v16568_v36 }
 0x1f7   :  { %v18011_v25 = vpop.f32.mrb[77].mxu1  ;;  %v18016_v4 = vmax.f32 %v20195_v62, %v14839_v51  ;;  %v1120_v57 = vpop.f32.mrb[77].mxu0  ;;  %15033 = vmatprep.subr.bf16.mxu0 %v16570_v29 }
 0x1f8   :  { %v18020_v42 = vpop.f32.mrb[78].mxu1  ;;  %v18025_v15 = vmax.f32 %v20196_v22, %v1120_v57  ;;  %v14840_v39 = vpop.f32.mrb[78].mxu0  ;;  %v16574_v22 = vld [vmem:[#allocation10] sm:$0xff]  }
 0x1f9   :  { %v18029_v33 = vpop.f32.mrb[79].mxu1  ;;  %v18034_v49 = vmax.f32 %v20197_v43, %v14840_v39  ;;  %v1123_v53 = vpop.f32.mrb[79].mxu0  ;;  %v16536_v43 = vld [vmem:[#allocation5 + $0x498] sm:$0xff]  }
 0x1fa   :  { %v18041_v40 = vmax.f32 %v20198_v56, %v1123_v53  ;;  %15034 = vmatpush3.bf16.msra.mxu0 %v16570_v29 }
 0x1fb   :  { %15118 = vmatmul.mubr.msk.bf16.gmra.mrb[184].mxu1 %vm589_vm0, %v16532_v1  ;;  %15035 = vmatprep.subr.bf16.mxu0 %v16572_v46  ;;  %v16535_v1 = vld [vmem:[#allocation5 + $0x490] sm:$0xff]  }
 0x1fc   :  { %15121 = vmatprep.mubr.msk.bf16.mxu1 %vm589_vm0, %v16533_v47 }
 0x1fe   :  { %v18045_v34 = vpop.f32.mrb[80].mxu1  ;;  %v18047_v10 = vpop.f32.mrb[80].mxu0  ;;  %15036 = vmatpush3.bf16.msra.mxu0 %v16572_v46 }
 0x1ff   :  { %v18051_v50 = vpop.f32.mrb[81].mxu1  ;;  %v18055_v14 = vpop.f32.mrb[81].mxu0  ;;  %15053 = vmatprep.subr.bf16.mxu0 %v16574_v22 }
 0x200   :  { %v18059_v31 = vpop.f32.mrb[82].mxu1  ;;  %v18063_v5 = vpop.f32.mrb[82].mxu0 }
 0x201   :  { %v18067_v51 = vpop.f32.mrb[83].mxu1  ;;  %v18071_v57 = vpop.f32.mrb[83].mxu0 }
 0x203   :  { %15122 = vmatmul.mubr.msk.bf16.gmra.mrb[188].mxu1 %vm589_vm0, %v16534_v0 }
 0x204   :  { %15125 = vmatprep.mubr.msk.bf16.mxu1 %vm589_vm0, %v16535_v1  ;;  %v16537_v1 = vld [vmem:[#allocation5 + $0x4a0] sm:$0xff]  }
 0x206   :  { %v14847_v53 = vpop.f32.mrb[84].mxu0  ;;  %v18079_v29 = vpop.f32.mrb[84].mxu1 }
 0x207   :  { %v1397_v56 = vmax.f32 %v17931_v60, %v14847_v53  ;;  %v1152_v36 = vpop.f32.mrb[85].mxu0  ;;  %v18084_v62 = vpop.f32.mrb[85].mxu1  ;;  %v20205_v60 = vld [vmem:[#allocation23_spill] sm:$0xff] }
 0x208   :  { %v1395_v39 = vmax.f32 %v17941_v11, %v1152_v36  ;;  %v14848_v22 = vpop.f32.mrb[86].mxu0  ;;  %v18089_v47 = vpop.f32.mrb[86].mxu1  ;;  %v20201_v11 = vld [vmem:[#allocation21_spill] sm:$0xff] }
 0x209   :  { %20199 = vst [vmem:[#allocation51_spill] sm:$0xff] %v18089_v47  ;;  %v1413_v26 = vmax.f32 %v1397_v56, %v20200_v48  ;;  %v1398_v37 = vmax.f32 %v17951_v41, %v14848_v22  ;;  %v1155_v53 = vpop.f32.mrb[87].mxu0  ;;  %v18095_v46 = vpop.f32.mrb[87].mxu1  ;;  %v20203_v48 = vld [vmem:[#allocation22_spill] sm:$0xff]  ;;  %v20204_v41 = vld [vmem:[#allocation37_spill] sm:$0xff] }
 0x20a   :  { %v1411_v36 = vmax.f32 %v1395_v39, %v20201_v11  ;;  %v1396_v0 = vmax.f32 %v17961_v63, %v1155_v53  ;;  %v20206_v47 = vld [vmem:[#allocation38_spill] sm:$0xff]  ;;  %v20207_v63 = vld [vmem:[#allocation39_spill] sm:$0xff] }
 0x20b   :  { %v1429_v61 = vmax.f32 %v1413_v26, %v20202_v54  ;;  %v1414_v56 = vmax.f32 %v1398_v37, %v20203_v48  ;;  %15126 = vmatmul.mubr.msk.bf16.gmra.mrb[192].mxu1 %vm589_vm0, %v16536_v43 }
 0x20c   :  { %v1427_v22 = vmax.f32 %v1411_v36, %v20204_v41  ;;  %v1412_v23 = vmax.f32 %v1396_v0, %v20205_v60  ;;  %15129 = vmatprep.mubr.msk.bf16.mxu1 %vm589_vm0, %v16537_v1  ;;  %v16538_v1 = vld [vmem:[#allocation5 + $0x4a8] sm:$0xff]  }
 0x20d   :  { %v1430_v2 = vmax.f32 %v1414_v56, %v20206_v47  ;;  %v1451_v39 = vadd.f32 %v18097_v38, %v1429_v61  ;;  %v16539_v56 = vld [vmem:[#allocation5 + $0x4b0] sm:$0xff]  }
 0x20e   :  { %v1428_v53 = vmax.f32 %v1412_v23, %v20207_v63  ;;  %v14851_v11 = vpop.f32.mrb[88].mxu0  ;;  %v18112_v35 = vpop.f32.mrb[88].mxu1  ;;  %v1449_v54 = vadd.f32 %v18097_v38, %v1427_v22  ;;  %v20211_v22 = vld [vmem:[#allocation24_spill] sm:$0xff] }
 0x20f   :  { %20208 = vst [vmem:[#allocation52_spill] sm:$0xff] %v18112_v35  ;;  %v1401_v37 = vmax.f32 %v17973_v3, %v14851_v11  ;;  %v1168_v43 = vpop.f32.mrb[89].mxu0  ;;  %v18118_v0 = vpop.f32.mrb[89].mxu1  ;;  %v1452_v47 = vadd.f32 %v18097_v38, %v1430_v2  ;;  %v1467_v60 = vmax.f32 %v1451_v39, 0.0 }
 0x210   :  { %20209 = vst [vmem:[#allocation53_spill] sm:$0xff] %v18118_v0  ;;  %v1399_v61 = vmax.f32 %v17983_v7, %v1168_v43  ;;  %v14852_v36 = vpop.f32.mrb[90].mxu0  ;;  %v18124_v48 = vpop.f32.mrb[90].mxu1  ;;  %v1450_v3 = vadd.f32 %v18097_v38, %v1428_v53  ;;  %v1465_v41 = vmax.f32 %v1449_v54, 0.0  ;;  %v20212_v43 = vld [vmem:[#allocation25_spill] sm:$0xff]  ;;  %v20213_v54 = vld [vmem:[#allocation40_spill] sm:$0xff] }
 0x211   :  { %20210 = vst [vmem:[#allocation54_spill] sm:$0xff] %v18124_v48  ;;  %v1417_v63 = vmax.f32 %v1401_v37, %v20211_v22  ;;  %v1402_v11 = vmax.f32 %v17993_v58, %v14852_v36  ;;  %v1171_v39 = vpop.f32.mrb[91].mxu0  ;;  %v18131_v26 = vpop.f32.mrb[91].mxu1  ;;  %v1468_v7 = vmax.f32 %v1452_v47, 0.0  ;;  %v20214_v37 = vld [vmem:[#allocation26_spill] sm:$0xff]  ;;  %v20215_v36 = vld [vmem:[#allocation41_spill] sm:$0xff] }
 0x212   :  { %v1415_v23 = vmax.f32 %v1399_v61, %v20212_v43  ;;  %v1400_v0 = vmax.f32 %v18003_v55, %v1171_v39  ;;  %v2732_v44 = vmax.f32 %v17998_v20, %v18131_v26  ;;  %v1466_v53 = vmax.f32 %v1450_v3, 0.0  ;;  %v20216_v48 = vld [vmem:[#allocation27_spill] sm:$0xff]  ;;  %v20217_v55 = vld [vmem:[#allocation42_spill] sm:$0xff] }
 0x213   :  { %v1433_v35 = vmax.f32 %v1417_v63, %v20213_v54  ;;  %v1418_v22 = vmax.f32 %v1402_v11, %v20214_v37  ;;  %15130 = vmatmul.mubr.msk.bf16.gmra.mrb[196].mxu1 %vm589_vm0, %v16538_v1  ;;  %v18140_v58 = vpack.c.bf16 %v1468_v7, %v1467_v60  ;;  %v20218_v43 = vld [vmem:[#allocation43_spill] sm:$0xff]  ;;  %v20220_v37 = vmax.f32 %v17857_v21, %v18011_v25  ;;  %v20223_v25 = vld [vmem:[#allocation29_spill] sm:$0xff] }
 0x214   :  { %v1431_v2 = vmax.f32 %v1415_v23, %v20215_v36  ;;  %v1416_v47 = vmax.f32 %v1400_v0, %v20216_v48  ;;  %15133 = vmatprep.mubr.msk.bf16.mxu1 %vm589_vm0, %v16539_v56  ;;  %v18145_v61 = vpack.c.bf16 %v1466_v53, %v1465_v41  ;;  %v20219_v23 = vmax.f32 %v17848_v12, %v18007_v52  ;;  %v16540_v41 = vld [vmem:[#allocation5 + $0x4b8] sm:$0xff]   ;;  %v16541_v36 = vld [vmem:[#allocation5 + $0x4c0] sm:$0xff]  }
 0x215   :  { %v1434_v39 = vmax.f32 %v1418_v22, %v20217_v55  ;;  %v1455_v3 = vadd.f32 %v18097_v38, %v1433_v35 }
 0x216   :  { %v1432_v63 = vmax.f32 %v1416_v47, %v20218_v43  ;;  %v14855_v54 = vpop.f32.mrb[92].mxu0  ;;  %v14959_v11 = vpop.f32.mrb[92].mxu1  ;;  %v1453_v1 = vadd.f32 %v18097_v38, %v1431_v2  ;;  %v20221_v47 = vld [vmem:[#allocation28_spill] sm:$0xff] }
 0x217   :  { %v1405_v60 = vmax.f32 %v18016_v4, %v14855_v54  ;;  %v18155_v0 = vmax.f32 %v20219_v23, %v14959_v11  ;;  %v1184_v48 = vpop.f32.mrb[93].mxu0  ;;  %v2432_v56 = vpop.f32.mrb[93].mxu1  ;;  %v1456_v7 = vadd.f32 %v18097_v38, %v1434_v39  ;;  %v1471_v53 = vmax.f32 %v1455_v3, 0.0 }
 0x218   :  { %v1403_v35 = vmax.f32 %v18025_v15, %v1184_v48  ;;  %v18162_v22 = vmax.f32 %v20220_v37, %v2432_v56  ;;  %v14856_v2 = vpop.f32.mrb[94].mxu0  ;;  %v14960_v4 = vpop.f32.mrb[94].mxu1  ;;  %v1454_v12 = vadd.f32 %v18097_v38, %v1432_v63  ;;  %v1469_v52 = vmax.f32 %v1453_v1, 0.0  ;;  %v20225_v48 = vld [vmem:[#allocation44_spill] sm:$0xff]  ;;  %v20226_v56 = vld [vmem:[#allocation30_spill] sm:$0xff] }
 0x219   :  { %v1421_v55 = vmax.f32 %v1405_v60, %v20221_v47  ;;  %v1406_v43 = vmax.f32 %v18034_v49, %v14856_v2  ;;  %v20222_v39 = vmax.f32 %v17866_v30, %v18020_v42  ;;  %v1187_v15 = vpop.f32.mrb[95].mxu0  ;;  %v2435_v54 = vpop.f32.mrb[95].mxu1  ;;  %v1472_v21 = vmax.f32 %v1456_v7, 0.0  ;;  %v20227_v42 = vld [vmem:[#allocation45_spill] sm:$0xff]  ;;  %v20228_v2 = vld [vmem:[#allocation31_spill] sm:$0xff] }
 0x21a   :  { %v1419_v11 = vmax.f32 %v1403_v35, %v20223_v25  ;;  %v1404_v23 = vmax.f32 %v18041_v40, %v1187_v15  ;;  %v20224_v63 = vmax.f32 %v17875_v24, %v18029_v33  ;;  %v1470_v60 = vmax.f32 %v1454_v12, 0.0  ;;  %v20229_v24 = vld [vmem:[#allocation46_spill] sm:$0xff]  ;;  %v20230_v12 = vld [vmem:[#allocation47_spill] sm:$0xff] }
 0x21b   :  { %v18170_v3 = vmax.f32 %v20222_v39, %v14960_v4  ;;  %v1437_v49 = vmax.f32 %v1421_v55, %v20225_v48  ;;  %v1422_v37 = vmax.f32 %v1406_v43, %v20226_v56  ;;  %15134 = vmatmul.mubr.msk.bf16.gmra.mrb[200].mxu1 %vm589_vm0, %v16540_v41  ;;  %v18182_v30 = vpack.c.bf16 %v1472_v21, %v1471_v53  ;;  %v16542_v21 = vld [vmem:[#allocation5 + $0x4c8] sm:$0xff]   ;;  %v20235_v56 = vld [vmem:[#allocation32_spill] sm:$0xff] }
 0x21c   :  { %v18177_v1 = vmax.f32 %v20224_v63, %v2435_v54  ;;  %v1435_v7 = vmax.f32 %v1419_v11, %v20227_v42  ;;  %v1420_v35 = vmax.f32 %v1404_v23, %v20228_v2  ;;  %15137 = vmatprep.mubr.msk.bf16.mxu1 %vm589_vm0, %v16541_v36  ;;  %v18187_v40 = vpack.c.bf16 %v1470_v60, %v1469_v52 }
 0x21d   :  { %v1438_v33 = vmax.f32 %v1422_v37, %v20229_v24  ;;  %v1459_v4 = vadd.f32 %v18097_v38, %v1437_v49  ;;  %v20231_v53 = vmax.f32 %v17889_v32, %v18047_v10  ;;  %v20232_v15 = vmax.f32 %v17884_v28, %v18045_v34  ;;  %v16543_v28 = vld [vmem:[#allocation5 + $0x4d0] sm:$0xff]  }
 0x21e   :  { %v1436_v47 = vmax.f32 %v1420_v35, %v20230_v12  ;;  %v14859_v55 = vpop.f32.mrb[96].mxu0  ;;  %v14963_v43 = vpop.f32.mrb[96].mxu1  ;;  %v1457_v41 = vadd.f32 %v18097_v38, %v1435_v7  ;;  %v20233_v23 = vmax.f32 %v17899_v8, %v18055_v14  ;;  %v20234_v60 = vmax.f32 %v17894_v45, %v18051_v50  ;;  %v20238_v35 = vld [vmem:[#allocation33_spill] sm:$0xff] }
 0x21f   :  { %v1409_v39 = vmax.f32 %v20231_v53, %v14859_v55  ;;  %v18199_v36 = vmax.f32 %v20232_v15, %v14963_v43  ;;  %v1200_v52 = vpop.f32.mrb[97].mxu0  ;;  %v2448_v54 = vpop.f32.mrb[97].mxu1  ;;  %v1460_v25 = vadd.f32 %v18097_v38, %v1438_v33  ;;  %v1475_v11 = vmax.f32 %v1459_v4, 0.0  ;;  %v20242_v43 = vld [vmem:[#allocation35_spill] sm:$0xff] }
 0x220   :  { %v1407_v63 = vmax.f32 %v20233_v23, %v1200_v52  ;;  %v18208_v32 = vmax.f32 %v20234_v60, %v2448_v54  ;;  %v14860_v10 = vpop.f32.mrb[98].mxu0  ;;  %v14964_v48 = vpop.f32.mrb[98].mxu1  ;;  %v1458_v34 = vadd.f32 %v18097_v38, %v1436_v47  ;;  %v1473_v49 = vmax.f32 %v1457_v41, 0.0  ;;  %v16545_v60 = vld [vmem:[#allocation5 + $0x4e0] sm:$0xff]  }
 0x221   :  { %v1425_v37 = vmax.f32 %v1409_v39, %v20235_v56  ;;  %v20236_v42 = vmax.f32 %v17909_v16, %v18063_v5  ;;  %v20237_v8 = vmax.f32 %v17904_v6, %v18059_v31  ;;  %v1203_v45 = vpop.f32.mrb[99].mxu0  ;;  %v2451_v50 = vpop.f32.mrb[99].mxu1  ;;  %v1476_v2 = vmax.f32 %v1460_v25, 0.0  ;;  %v20241_v6 = vld [vmem:[#allocation34_spill] sm:$0xff] }
 0x222   :  { %v1423_v24 = vmax.f32 %v1407_v63, %v20238_v35  ;;  %v20239_v33 = vmax.f32 %v17919_v19, %v18071_v57  ;;  %v20240_v12 = vmax.f32 %v17914_v18, %v18067_v51  ;;  %v1474_v16 = vmax.f32 %v1458_v34, 0.0  ;;  %v16544_v51 = vld [vmem:[#allocation5 + $0x4d8] sm:$0xff]   ;;  %v20245_v34 = vld [vmem:[#allocation58_spill] sm:$0xff] }
 0x223   :  { %v1410_v7 = vmax.f32 %v20236_v42, %v14860_v10  ;;  %v18218_v14 = vmax.f32 %v20237_v8, %v14964_v48  ;;  %v1447_v5 = vadd.f32 %v18097_v38, %v1425_v37  ;;  %15138 = vmatmul.mubr.msk.bf16.gmra.mrb[204].mxu1 %vm589_vm0, %v16542_v21  ;;  %v18232_v55 = vpack.c.bf16 %v1476_v2, %v1475_v11  ;;  %v20249_v42 = vld [vmem:[#allocation52_spill] sm:$0xff]  ;;  %v20251_v2 = vld [vmem:[#allocation50_spill] sm:$0xff]  ;;  %v20252_v35 = vld [vmem:[#allocation53_spill] sm:$0xff] }
 0x224   :  { %v1408_v4 = vmax.f32 %v20239_v33, %v1203_v45  ;;  %v18227_v47 = vmax.f32 %v20240_v12, %v2451_v50  ;;  %15141 = vmatprep.mubr.msk.bf16.mxu1 %vm589_vm0, %v16543_v28  ;;  %v1445_v19 = vadd.f32 %v18097_v38, %v1423_v24  ;;  %v18237_v57 = vpack.c.bf16 %v1474_v16, %v1473_v49  ;;  %v16546_v50 = vld [vmem:[#allocation5 + $0x4e8] sm:$0xff]   ;;  %v16547_v33 = vld [vmem:[#allocation5 + $0x4f0] sm:$0xff]  }
 0x225   :  { %v1426_v31 = vmax.f32 %v1410_v7, %v20241_v6  ;;  %v1463_v53 = vmax.f32 %v1447_v5, 0.0  ;;  %v20243_v54 = vmax.f32 %v17926_v17, %v18079_v29  ;;  %v20244_v11 = vmax.f32 %v17936_v27, %v18084_v62 }
 0x226   :  { %v1424_v41 = vmax.f32 %v1408_v4, %v20242_v43  ;;  %v14967_v39 = vpop.f32.mrb[100].mxu1  ;;  %v1461_v10 = vmax.f32 %v1445_v19, 0.0  ;;  %v20248_v29 = vmax.f32 %v17956_v9, %v18095_v46  ;;  %v20250_v7 = vmax.f32 %v17968_v13, %v20249_v42  ;;  %v20254_v4 = vld [vmem:[#allocation54_spill] sm:$0xff] }
 0x227   :  { %v1448_v18 = vadd.f32 %v18097_v38, %v1426_v31  ;;  %v18244_v21 = vmax.f32 %v20243_v54, %v14967_v39  ;;  %v2464_v25 = vpop.f32.mrb[101].mxu1  ;;  %v20253_v24 = vmax.f32 %v20251_v2, %v20252_v35  ;;  %v20255_v12 = vmax.f32 %v17988_v59, %v20254_v4  ;;  %v16557_v35 = vld [vmem:[#allocation5 + $0x540] sm:$0xff]  }
 0x228   :  { %v1446_v15 = vadd.f32 %v18097_v38, %v1424_v41  ;;  %v18249_v23 = vmax.f32 %v20244_v11, %v2464_v25  ;;  %v14968_v63 = vpop.f32.mrb[102].mxu1  ;;  %v20246_v38 = vld [vmem:[#allocation51_spill] sm:$0xff]  ;;  %v16548_v41 = vld [vmem:[#allocation5 + $0x4f8] sm:$0xff]  }
 0x229   :  { %v1464_v52 = vmax.f32 %v1448_v18, 0.0  ;;  %v20247_v49 = vmax.f32 %v20245_v34, %v20246_v38  ;;  %v2467_v17 = vpop.f32.mrb[103].mxu1  ;;  %v16549_v18 = vld [vmem:[#allocation5 + $0x500] sm:$0xff]  }
 0x22a   :  { %v1462_v48 = vmax.f32 %v1446_v15, 0.0  ;;  %v18261_v37 = vmax.f32 %v20248_v29, %v2467_v17 }
 0x22b   :  { %v18251_v28 = vpack.c.bf16 %v1464_v52, %v1463_v53  ;;  %v18256_v56 = vmax.f32 %v20247_v49, %v14968_v63  ;;  %15142 = vmatmul.mubr.msk.bf16.gmra.mrb[208].mxu1 %vm589_vm0, %v16544_v51 }
 0x22c   :  { %v18263_v27 = vpack.c.bf16 %v1462_v48, %v1461_v10  ;;  %15145 = vmatprep.mubr.msk.bf16.mxu1 %vm589_vm0, %v16545_v60 }
 0x22e   :  { %v14971_v62 = vpop.f32.mrb[104].mxu1 }
 0x22f   :  { %v18270_v8 = vmax.f32 %v20250_v7, %v14971_v62  ;;  %v2480_v45 = vpop.f32.mrb[105].mxu1 }
 0x230   :  { %v18275_v9 = vmax.f32 %v20253_v24, %v2480_v45  ;;  %v14972_v46 = vpop.f32.mrb[106].mxu1 }
 0x231   :  { %v18280_v16 = vmax.f32 %v20255_v12, %v14972_v46  ;;  %v2483_v5 = vpop.f32.mrb[107].mxu1 }
 0x232   :  { %v18285_v13 = vmax.f32 %v2732_v44, %v2483_v5 }
 0x233   :  { %15146 = vmatmul.mubr.msk.bf16.gmra.mrb[212].mxu1 %vm589_vm0, %v16546_v50  ;;  %v16556_v50 = vld [vmem:[#allocation5 + $0x538] sm:$0xff]  }
 0x234   :  { %15149 = vmatprep.mubr.msk.bf16.mxu1 %vm589_vm0, %v16547_v33 }
 0x236   :  { %v14975_v6 = vpop.f32.mrb[108].mxu1 }
 0x237   :  { %v2753_v31 = vmax.f32 %v18155_v0, %v14975_v6  ;;  %v2496_v43 = vpop.f32.mrb[109].mxu1  ;;  %v16550_v0 = vld [vmem:[#allocation5 + $0x508] sm:$0xff]   ;;  %v16561_v6 = vld [vmem:[#allocation5 + $0x550] sm:$0xff]  }
 0x238   :  { %v2751_v19 = vmax.f32 %v18162_v22, %v2496_v43  ;;  %v14976_v59 = vpop.f32.mrb[110].mxu1  ;;  %v16551_v22 = vld [vmem:[#allocation5 + $0x510] sm:$0xff]  }
 0x239   :  { %v2754_v51 = vmax.f32 %v18170_v3, %v14976_v59  ;;  %v2499_v53 = vpop.f32.mrb[111].mxu1 }
 0x23a   :  { %v2752_v20 = vmax.f32 %v18177_v1, %v2499_v53 }
 0x23b   :  { %15150 = vmatmul.mubr.msk.bf16.gmra.mrb[216].mxu1 %vm589_vm0, %v16548_v41 }
 0x23c   :  { %15153 = vmatprep.mubr.msk.bf16.mxu1 %vm589_vm0, %v16549_v18 }
 0x23e   :  { %v14979_v44 = vpop.f32.mrb[112].mxu1 }
 0x23f   :  { %v2757_v26 = vmax.f32 %v18199_v36, %v14979_v44  ;;  %v2512_v39 = vpop.f32.mrb[113].mxu1  ;;  %v16552_v36 = vld [vmem:[#allocation5 + $0x518] sm:$0xff]   ;;  %v16565_v44 = vld [vmem:[#allocation5 + $0x560] sm:$0xff]  }
 0x240   :  { %v2755_v15 = vmax.f32 %v18208_v32, %v2512_v39  ;;  %v14980_v52 = vpop.f32.mrb[114].mxu1  ;;  %v16553_v32 = vld [vmem:[#allocation5 + $0x520] sm:$0xff]  }
 0x241   :  { %v2758_v54 = vmax.f32 %v18218_v14, %v14980_v52  ;;  %v2515_v25 = vpop.f32.mrb[115].mxu1 }
 0x242   :  { %v2756_v3 = vmax.f32 %v18227_v47, %v2515_v25 }
 0x243   :  { %15154 = vmatmul.mubr.msk.bf16.gmra.mrb[220].mxu1 %vm589_vm0, %v16550_v0 }
 0x244   :  { %15157 = vmatprep.mubr.msk.bf16.mxu1 %vm589_vm0, %v16551_v22 }
 0x246   :  { %v14983_v1 = vpop.f32.mrb[116].mxu1 }
 0x247   :  { %v2761_v11 = vmax.f32 %v18244_v21, %v14983_v1  ;;  %v2528_v63 = vpop.f32.mrb[117].mxu1  ;;  %v16554_v21 = vld [vmem:[#allocation5 + $0x528] sm:$0xff]   ;;  %v16569_v1 = vld [vmem:[#allocation5 + $0x570] sm:$0xff]  }
 0x248   :  { %v2759_v60 = vmax.f32 %v18249_v23, %v2528_v63  ;;  %v14984_v10 = vpop.f32.mrb[118].mxu1  ;;  %v16555_v23 = vld [vmem:[#allocation5 + $0x530] sm:$0xff]  }
 0x249   :  { %v2762_v48 = vmax.f32 %v18256_v56, %v14984_v10  ;;  %v2531_v34 = vpop.f32.mrb[119].mxu1 }
 0x24a   :  { %v2760_v14 = vmax.f32 %v18261_v37, %v2531_v34 }
 0x24b   :  { %15158 = vmatmul.mubr.msk.bf16.gmra.mrb[224].mxu1 %vm589_vm0, %v16552_v36 }
 0x24c   :  { %15161 = vmatprep.mubr.msk.bf16.mxu1 %vm589_vm0, %v16553_v32 }
 0x24e   :  { %v14987_v47 = vpop.f32.mrb[120].mxu1 }
 0x24f   :  { %v2765_v38 = vmax.f32 %v18270_v8, %v14987_v47  ;;  %v2544_v49 = vpop.f32.mrb[121].mxu1  ;;  %v16573_v47 = vld [vmem:[#allocation5 + $0x580] sm:$0xff]  }
 0x250   :  { %v2763_v17 = vmax.f32 %v18275_v9, %v2544_v49  ;;  %v14988_v29 = vpop.f32.mrb[122].mxu1 }
 0x251   :  { %v2766_v62 = vmax.f32 %v18280_v16, %v14988_v29  ;;  %v2547_v42 = vpop.f32.mrb[123].mxu1  ;;  %v16559_v16 = vld [vmem:[#allocation5 + $0x548] sm:$0xff]  }
 0x252   :  { %v2764_v56 = vmax.f32 %v18285_v13, %v2547_v42 }
 0x253   :  { %15162 = vmatmul.mubr.msk.bf16.gmra.mrb[228].mxu1 %vm589_vm0, %v16554_v21 }
 0x254   :  { %15165 = vmatprep.mubr.msk.bf16.mxu1 %vm589_vm0, %v16555_v23 }
 0x256   :  { %v14991_v37 = vpop.f32.mrb[124].mxu1 }
 0x257   :  { %v2769_v7 = vmax.f32 %v2753_v31, %v14991_v37  ;;  %v2560_v45 = vpop.f32.mrb[125].mxu1 }
 0x258   :  { %v2767_v8 = vmax.f32 %v2751_v19, %v2560_v45  ;;  %v14992_v2 = vpop.f32.mrb[126].mxu1 }
 0x259   :  { %v2770_v24 = vmax.f32 %v2754_v51, %v14992_v2  ;;  %v2563_v9 = vpop.f32.mrb[127].mxu1  ;;  %v16563_v51 = vld [vmem:[#allocation5 + $0x558] sm:$0xff]  }
 0x25a   :  { %v2768_v46 = vmax.f32 %v2752_v20, %v2563_v9 }
 0x25b   :  { %15166 = vmatmul.mubr.msk.bf16.gmra.mrb[232].mxu1 %vm589_vm0, %v16556_v50 }
 0x25c   :  { %15169 = vmatprep.mubr.msk.bf16.mxu1 %vm589_vm0, %v16557_v35 }
 0x25e   :  { %v14995_v33 = vpop.f32.mrb[128].mxu1 }
 0x25f   :  { %v18315_v4 = vmax.f32 %v2757_v26, %v14995_v33  ;;  %v2576_v12 = vpop.f32.mrb[129].mxu1 }
 0x260   :  { %v18317_v5 = vmax.f32 %v2755_v15, %v2576_v12  ;;  %v14996_v13 = vpop.f32.mrb[130].mxu1  ;;  %v16577_v12 = vld [vmem:[#allocation5 + $0x590] sm:$0xff]  }
 0x261   :  { %v18319_v31 = vmax.f32 %v2758_v54, %v14996_v13  ;;  %v2579_v43 = vpop.f32.mrb[131].mxu1  ;;  %v16567_v54 = vld [vmem:[#allocation5 + $0x568] sm:$0xff]  }
 0x262   :  { %v18321_v41 = vmax.f32 %v2756_v3, %v2579_v43  ;;  %v16576_v43 = vld [vmem:[#allocation10 + $0x8] sm:$0xff]  }
 0x263   :  { %15170 = vmatmul.mubr.msk.bf16.gmra.mrb[236].mxu1 %vm589_vm0, %v16559_v16 }
 0x264   :  { %15173 = vmatprep.mubr.msk.bf16.mxu1 %vm589_vm0, %v16561_v6 }
 0x266   :  { %v14999_v19 = vpop.f32.mrb[132].mxu1 }
 0x267   :  { %v18325_v59 = vmax.f32 %v2761_v11, %v14999_v19  ;;  %v2592_v18 = vpop.f32.mrb[133].mxu1 }
 0x268   :  { %v18327_v53 = vmax.f32 %v2759_v60, %v2592_v18  ;;  %v15000_v20 = vpop.f32.mrb[134].mxu1 }
 0x269   :  { %v18329_v26 = vmax.f32 %v2762_v48, %v15000_v20  ;;  %v2595_v39 = vpop.f32.mrb[135].mxu1  ;;  %v16571_v48 = vld [vmem:[#allocation5 + $0x578] sm:$0xff]  }
 0x26a   :  { %v18331_v0 = vmax.f32 %v2760_v14, %v2595_v39 }
 0x26b   :  { %15174 = vmatmul.mubr.msk.bf16.gmra.mrb[240].mxu1 %vm589_vm0, %v16563_v51  ;;  %v16970_v51 = vld [vmem:[#allocation10] sm:$0xff]  }
 0x26c   :  { %15177 = vmatprep.mubr.msk.bf16.mxu1 %vm589_vm0, %v16565_v44  ;;  %v16578_v44 = vld [vmem:[#allocation10 + $0x10] sm:$0xff]  }
 0x26e   :  { %v15003_v15 = vpop.f32.mrb[136].mxu1 }
 0x26f   :  { %v18335_v52 = vmax.f32 %v2765_v38, %v15003_v15  ;;  %v2608_v22 = vpop.f32.mrb[137].mxu1  ;;  %v18345_v38 = vld [vmem:[#allocation9] ss:$0 sm:$0xff] }
 0x270   :  { %v18337_v25 = vmax.f32 %v2763_v17, %v2608_v22  ;;  %v15004_v3 = vpop.f32.mrb[138].mxu1 }
 0x271   :  { %v18339_v11 = vmax.f32 %v2766_v62, %v15004_v3  ;;  %v2611_v63 = vpop.f32.mrb[139].mxu1 }
 0x272   :  { %v18341_v36 = vmax.f32 %v2764_v56, %v2611_v63 }
 0x273   :  { %15178 = vmatmul.mubr.msk.bf16.gmra.mrb[244].mxu1 %vm589_vm0, %v16567_v54 }
 0x274   :  { %15181 = vmatprep.mubr.msk.bf16.mxu1 %vm589_vm0, %v16569_v1  ;;  %v16579_v1 = vld [vmem:[#allocation5 + $0x598] sm:$0xff]  }
 0x276   :  { %v15007_v60 = vpop.f32.mrb[140].mxu1 }
 0x277   :  { %v2785_v10 = vmax.f32 %v2769_v7, %v15007_v60  ;;  %v2624_v32 = vpop.f32.mrb[141].mxu1 }
 0x278   :  { %v2783_v34 = vmax.f32 %v2767_v8, %v2624_v32  ;;  %v15008_v14 = vpop.f32.mrb[142].mxu1  ;;  %v16581_v32 = vld [vmem:[#allocation5 + $0x5a0] sm:$0xff]  }
 0x279   :  { %v2801_v49 = vadd.f32 %v18345_v38, %v2785_v10  ;;  %v2786_v21 = vmax.f32 %v2770_v24, %v15008_v14  ;;  %v2627_v17 = vpop.f32.mrb[143].mxu1  ;;  %v16575_v24 = vld [vmem:[#allocation5 + $0x588] sm:$0xff]  }
 0x27a   :  { %v2799_v29 = vadd.f32 %v18345_v38, %v2783_v34  ;;  %v2784_v23 = vmax.f32 %v2768_v46, %v2627_v17 }
 0x27b   :  { %v2802_v62 = vadd.f32 %v18345_v38, %v2786_v21  ;;  %15182 = vmatmul.mubr.msk.bf16.gmra.mrb[248].mxu1 %vm589_vm0, %v16571_v48  ;;  %v2817_v56 = vmax.f32 %v2801_v49, 0.0 }
 0x27c   :  { %v2800_v42 = vadd.f32 %v18345_v38, %v2784_v23  ;;  %15185 = vmatprep.mubr.msk.bf16.mxu1 %vm589_vm0, %v16573_v47  ;;  %v2815_v45 = vmax.f32 %v2799_v29, 0.0  ;;  %v16580_v47 = vld [vmem:[#allocation10 + $0x18] sm:$0xff]   ;;  %v16582_v29 = vld [vmem:[#allocation10 + $0x20] sm:$0xff]  }
 0x27d   :  { %v2818_v37 = vmax.f32 %v2802_v62, 0.0 }
 0x27e   :  { %v15011_v7 = vpop.f32.mrb[144].mxu1  ;;  %v2816_v50 = vmax.f32 %v2800_v42, 0.0 }
 0x27f   :  { %v2832_v8 = vpack.c.bf16 %v2818_v37, %v2817_v56  ;;  %v2789_v2 = vmax.f32 %v18315_v4, %v15011_v7  ;;  %v2640_v35 = vpop.f32.mrb[145].mxu1  ;;  %v16583_v7 = vld [vmem:[#allocation5 + $0x5a8] sm:$0xff]  }
 0x280   :  { %v2787_v9 = vmax.f32 %v18317_v5, %v2640_v35  ;;  %v15012_v46 = vpop.f32.mrb[146].mxu1  ;;  %v2831_v33 = vpack.c.bf16 %v2816_v50, %v2815_v45 }
 0x281   :  { %v2805_v16 = vadd.f32 %v18345_v38, %v2789_v2  ;;  %v2790_v13 = vmax.f32 %v18319_v31, %v15012_v46  ;;  %v2643_v6 = vpop.f32.mrb[147].mxu1  ;;  %v16585_v2 = vld [vmem:[#allocation5 + $0x5b0] sm:$0xff]   ;;  %v16584_v46 = vld [vmem:[#allocation10 + $0x28] sm:$0xff]  }
 0x282   :  { %v2803_v19 = vadd.f32 %v18345_v38, %v2787_v9  ;;  %v2788_v18 = vmax.f32 %v18321_v41, %v2643_v6  ;;  %15037 = vmatprep.mubr.bf16.mxu0 %v2831_v33 }
 0x283   :  { %v2806_v4 = vadd.f32 %v18345_v38, %v2790_v13  ;;  %15038 = vmatmul.mubr.bf16.vlgmr.msra.gmra.mrb[100].mxu0 %v2832_v8  ;;  %15186 = vmatmul.mubr.msk.bf16.gmra.mrb[252].mxu1 %vm589_vm0, %v16575_v24  ;;  %v2821_v31 = vmax.f32 %v2805_v16, 0.0  ;;  %v16586_v13 = vld [vmem:[#allocation10 + $0x30] sm:$0xff]  }
 0x284   :  { %v2804_v5 = vadd.f32 %v18345_v38, %v2788_v18  ;;  %15054 = vmatpush3.bf16.msra.mxu0 %v16970_v51  ;;  %15189 = vmatprep.mubr.msk.bf16.mxu1 %vm589_vm0, %v16577_v12  ;;  %v2819_v15 = vmax.f32 %v2803_v19, 0.0 }
 0x285   :  { %15055 = vmatprep.subr.bf16.mxu0 %v16576_v43  ;;  %v2822_v20 = vmax.f32 %v2806_v4, 0.0  ;;  %v16587_v4 = vld [vmem:[#allocation5 + $0x5b8] sm:$0xff]  }
 0x286   :  { %v15015_v39 = vpop.f32.mrb[148].mxu1  ;;  %v2820_v22 = vmax.f32 %v2804_v5, 0.0 }
 0x287   :  { %v2793_v41 = vmax.f32 %v18325_v59, %v15015_v39  ;;  %v2656_v54 = vpop.f32.mrb[149].mxu1  ;;  %v2834_v3 = vpack.c.bf16 %v2822_v20, %v2821_v31  ;;  %v16588_v20 = vld [vmem:[#allocation10 + $0x38] sm:$0xff]  }
 0x288   :  { %v2791_v63 = vmax.f32 %v18327_v53, %v2656_v54  ;;  %v15016_v60 = vpop.f32.mrb[150].mxu1  ;;  %15056 = vmatpush3.bf16.msra.mxu0 %v16576_v43  ;;  %v2833_v10 = vpack.c.bf16 %v2820_v22, %v2819_v15  ;;  %v16590_v22 = vld [vmem:[#allocation5 + $0x5c8] sm:$0xff]   ;;  %v16591_v54 = vld [vmem:[#allocation5 + $0x5d0] sm:$0xff]  }
 0x289   :  { %v2809_v48 = vadd.f32 %v18345_v38, %v2793_v41  ;;  %v2794_v34 = vmax.f32 %v18329_v26, %v15016_v60  ;;  %v2659_v14 = vpop.f32.mrb[151].mxu1  ;;  %15057 = vmatprep.subr.bf16.mxu0 %v16578_v44 }
 0x28a   :  { %v2807_v49 = vadd.f32 %v18345_v38, %v2791_v63  ;;  %v2792_v59 = vmax.f32 %v18331_v0, %v2659_v14  ;;  %15041 = vmatprep.mubr.bf16.mxu0 %v2833_v10  ;;  %v16592_v63 = vld [vmem:[#allocation5 + $0x5d8] sm:$0xff]   ;;  %v16593_v10 = vld [vmem:[#allocation5 + $0x5e0] sm:$0xff]   ;;  %v16595_v14 = vld [vmem:[#allocation5 + $0x5f0] sm:$0xff]  }
 0x28b   :  { %v2810_v21 = vadd.f32 %v18345_v38, %v2794_v34  ;;  %15042 = vmatmul.mubr.bf16.gmra.mrb[104].mxu0 %v2834_v3  ;;  %15190 = vmatmul.mubr.msk.bf16.gmra.mrb[0].mxu1 %vm589_vm0, %v16579_v1  ;;  %v2825_v26 = vmax.f32 %v2809_v48, 0.0  ;;  %v16594_v48 = vld [vmem:[#allocation5 + $0x5e8] sm:$0xff]  }
 0x28c   :  { %v2808_v53 = vadd.f32 %v18345_v38, %v2792_v59  ;;  %15058 = vmatpush3.bf16.msra.mxu0 %v16578_v44  ;;  %15193 = vmatprep.mubr.msk.bf16.mxu1 %vm589_vm0, %v16581_v32  ;;  %v2823_v62 = vmax.f32 %v2807_v49, 0.0  ;;  %v16589_v44 = vld [vmem:[#allocation5 + $0x5c0] sm:$0xff]   ;;  %v16596_v59 = vld [vmem:[#allocation5 + $0x5f8] sm:$0xff]  }
 0x28d   :  { %15059 = vmatprep.subr.bf16.mxu0 %v16580_v47  ;;  %v2826_v17 = vmax.f32 %v2810_v21, 0.0 }
 0x28e   :  { %v15019_v23 = vpop.f32.mrb[152].mxu1  ;;  %v2824_v42 = vmax.f32 %v2808_v53, 0.0 }
 0x28f   :  { %v2797_v0 = vmax.f32 %v18335_v52, %v15019_v23  ;;  %v2672_v56 = vpop.f32.mrb[153].mxu1  ;;  %v2836_v37 = vpack.c.bf16 %v2826_v17, %v2825_v26  ;;  %v16597_v26 = vld [vmem:[#allocation5 + $0x800] sm:$0xff]  }
 0x290   :  { %v2795_v45 = vmax.f32 %v18337_v25, %v2672_v56  ;;  %v15020_v50 = vpop.f32.mrb[154].mxu1  ;;  %15060 = vmatpush3.bf16.msra.mxu0 %v16580_v47  ;;  %v2835_v8 = vpack.c.bf16 %v2824_v42, %v2823_v62  ;;  %v16598_v42 = vld [vmem:[#allocation5 + $0x808] sm:$0xff]  }
 0x291   :  { %v2813_v35 = vadd.f32 %v18345_v38, %v2797_v0  ;;  %v2798_v24 = vmax.f32 %v18339_v11, %v15020_v50  ;;  %v2675_v9 = vpop.f32.mrb[155].mxu1  ;;  %15061 = vmatprep.subr.bf16.mxu0 %v16582_v29 }
 0x292   :  { %v2811_v33 = vadd.f32 %v18345_v38, %v2795_v45  ;;  %v2796_v52 = vmax.f32 %v18341_v36, %v2675_v9  ;;  %15045 = vmatprep.mubr.bf16.mxu0 %v2835_v8  ;;  %v18446_v8 = vld [vmem:[#allocation7 + $0x8] sm:$0xff]   ;;  %v16600_v9 = vld [vmem:[#allocation5 + $0x818] sm:$0xff]  }
 0x293   :  { %v2814_v12 = vadd.f32 %v18345_v38, %v2798_v24  ;;  %15046 = vmatmul.mubr.bf16.gmra.mrb[108].mxu0 %v2836_v37  ;;  %15194 = vmatmul.mubr.msk.bf16.gmra.mrb[4].mxu1 %vm589_vm0, %v16583_v7  ;;  %v2829_v11 = vmax.f32 %v2813_v35, 0.0  ;;  %v16599_v37 = vld [vmem:[#allocation5 + $0x810] sm:$0xff]  }
 0x294   :  { %v2812_v25 = vadd.f32 %v18345_v38, %v2796_v52  ;;  %15062 = vmatpush3.bf16.msra.mxu0 %v16582_v29  ;;  %15197 = vmatprep.mubr.msk.bf16.mxu1 %vm589_vm0, %v16585_v2  ;;  %v2827_v43 = vmax.f32 %v2811_v33, 0.0  ;;  %v16601_v52 = vld [vmem:[#allocation5 + $0x820] sm:$0xff]  }
 0x295   :  { %15063 = vmatprep.subr.bf16.mxu0 %v16584_v46  ;;  %v2830_v16 = vmax.f32 %v2814_v12, 0.0 }
 0x296   :  { %v18383_v6 = vpop.f32.mrb[156].mxu1  ;;  %v2828_v19 = vmax.f32 %v2812_v25, 0.0 }
 0x297   :  { %v18385_v36 = vpop.f32.mrb[157].mxu1  ;;  %v2838_v18 = vpack.c.bf16 %v2830_v16, %v2829_v11 }
 0x298   :  { %15064 = vmatpush3.bf16.msra.mxu0 %v16584_v46  ;;  %v18387_v5 = vpop.f32.mrb[158].mxu1  ;;  %v2837_v51 = vpack.c.bf16 %v2828_v19, %v2827_v43  ;;  %v16602_v43 = vld [vmem:[#allocation5 + $0x828] sm:$0xff]  }
 0x299   :  { %v18389_v31 = vpop.f32.mrb[159].mxu1  ;;  %15065 = vmatprep.subr.bf16.mxu0 %v16586_v13 }
 0x29a   :  { %15049 = vmatprep.mubr.bf16.mxu0 %v2837_v51 }
 0x29b   :  { %15050 = vmatmul.mubr.bf16.gmra.mrb[112].mxu0 %v2838_v18  ;;  %15198 = vmatmul.mubr.msk.bf16.gmra.mrb[8].mxu1 %vm589_vm0, %v16587_v4  ;;  %v16603_v18 = vld [vmem:[#allocation5 + $0x830] sm:$0xff]  }
 0x29c   :  { %15066 = vmatpush3.bf16.msra.mxu0 %v16586_v13  ;;  %15069 = vmatprep.mubr.bf16.mxu0 %v18263_v27 }
 0x29d   :  { %15067 = vmatprep.subr.bf16.mxu0 %v16588_v20  ;;  %15201 = vmatprep.mubr.msk.bf16.mxu1 %vm589_vm0, %v16589_v44 }
 0x29e   :  { %v18394_v39 = vpop.f32.mrb[160].mxu1 }
 0x29f   :  { %v18396_v15 = vpop.f32.mrb[161].mxu1 }
 0x2a0   :  { %15068 = vmatpush3.bf16.msra.mxu0 %v16588_v20  ;;  %v18398_v41 = vpop.f32.mrb[162].mxu1 }
 0x2a1   :  { %v18400_v3 = vpop.f32.mrb[163].mxu1 }
 0x2a3   :  { %15070 = vmatmul.mubr.bf16.vlgmr.msra.gmra.mrb[100].mxu0 %v18251_v28  ;;  %15202 = vmatmul.mubr.msk.bf16.gmra.mrb[12].mxu1 %vm589_vm0, %v16590_v22 }
 0x2a4   :  { %15073 = vmatprep.mubr.bf16.mxu0 %v18145_v61  ;;  %15205 = vmatprep.mubr.msk.bf16.mxu1 %vm589_vm0, %v16591_v54 }
 0x2a6   :  { %v18406_v27 = vpop.f32.mrb[164].mxu1 }
 0x2a7   :  { %v18408_v1 = vpop.f32.mrb[165].mxu1 }
 0x2a8   :  { %v18410_v60 = vpop.f32.mrb[166].mxu1 }
 0x2a9   :  { %v18412_v32 = vpop.f32.mrb[167].mxu1 }
 0x2ab   :  { %15074 = vmatmul.mubr.bf16.gmra.mrb[104].mxu0 %v18140_v58  ;;  %15206 = vmatmul.mubr.msk.bf16.gmra.mrb[16].mxu1 %vm589_vm0, %v16592_v63 }
 0x2ac   :  { %15077 = vmatprep.mubr.bf16.mxu0 %v18187_v40  ;;  %15209 = vmatprep.mubr.msk.bf16.mxu1 %vm589_vm0, %v16593_v10  ;;  %v16606_v10 = vld [vmem:[#allocation5 + $0x848] sm:$0xff]  }
 0x2ae   :  { %v18418_v61 = vpop.f32.mrb[168].mxu1 }
 0x2af   :  { %v18420_v28 = vpop.f32.mrb[169].mxu1 }
 0x2b0   :  { %v18422_v34 = vpop.f32.mrb[170].mxu1 }
 0x2b1   :  { %v18424_v47 = vpop.f32.mrb[171].mxu1 }
 0x2b3   :  { %15078 = vmatmul.mubr.bf16.gmra.mrb[108].mxu0 %v18182_v30  ;;  %15210 = vmatmul.mubr.msk.bf16.gmra.mrb[20].mxu1 %vm589_vm0, %v16594_v48 }
 0x2b4   :  { %15081 = vmatprep.mubr.bf16.mxu0 %v18237_v57  ;;  %15213 = vmatprep.mubr.msk.bf16.mxu1 %vm589_vm0, %v16595_v14  ;;  %v16627_v14 = vld [vmem:[#allocation10 + $0x80] sm:$0xff]  }
 0x2b5   :  { %15217 = vmatprep.subr.bf16.mxu0 %v16627_v14 }
 0x2b6   :  { %v15107_v58 = vpop.f32.mrb[172].mxu1  ;;  %15218 = vmatpush3.bf16.msra.mxu0 %v16627_v14 }
 0x2b7   :  { %v4334_v40 = vmax.f32 %v18383_v6, %v15107_v58  ;;  %v3885_v49 = vpop.f32.mrb[173].mxu1  ;;  %v16630_v58 = vld [vmem:[#allocation10 + $0x88] sm:$0xff]  }
 0x2b8   :  { %v4332_v21 = vmax.f32 %v18385_v36, %v3885_v49  ;;  %v15108_v53 = vpop.f32.mrb[174].mxu1  ;;  %15219 = vmatprep.subr.bf16.mxu0 %v16630_v58 }
 0x2b9   :  { %v4335_v17 = vmax.f32 %v18387_v5, %v15108_v53  ;;  %v3888_v29 = vpop.f32.mrb[175].mxu1 }
 0x2ba   :  { %v4333_v30 = vmax.f32 %v18389_v31, %v3888_v29  ;;  %15220 = vmatpush3.bf16.msra.mxu0 %v16630_v58 }
 0x2bb   :  { %15082 = vmatmul.mubr.bf16.gmra.mrb[112].mxu0 %v18232_v55  ;;  %15214 = vmatmul.mubr.msk.bf16.gmra.mrb[24].mxu1 %vm589_vm0, %v16596_v59  ;;  %v18443_v55 = vld [vmem:[#allocation7] sm:$0xff]  }
 0x2bc   :  { %15417 = vmatprep.mubr.msk.bf16.mxu1 %vm589_vm0, %v16597_v26 }
 0x2be   :  { %v15111_v57 = vpop.f32.mrb[176].mxu1 }
 0x2bf   :  { %v4338_v23 = vmax.f32 %v18394_v39, %v15111_v57  ;;  %v3901_v62 = vpop.f32.mrb[177].mxu1  ;;  %v16604_v39 = vld [vmem:[#allocation5 + $0x838] sm:$0xff]   ;;  %v16631_v57 = vld [vmem:[#allocation10 + $0x90] sm:$0xff]  }
 0x2c0   :  { %v4336_v0 = vmax.f32 %v18396_v15, %v3901_v62  ;;  %v15112_v56 = vpop.f32.mrb[178].mxu1  ;;  %15221 = vmatprep.subr.bf16.mxu0 %v16631_v57  ;;  %v16634_v62 = vld [vmem:[#allocation10 + $0x98] sm:$0xff]  }
 0x2c1   :  { %v4339_v7 = vmax.f32 %v18398_v41, %v15112_v56  ;;  %v3904_v45 = vpop.f32.mrb[179].mxu1  ;;  %v16605_v41 = vld [vmem:[#allocation5 + $0x840] sm:$0xff]   ;;  %15222 = vmatpush3.bf16.msra.mxu0 %v16631_v57 }
 0x2c2   :  { %v4337_v50 = vmax.f32 %v18400_v3, %v3904_v45  ;;  %15223 = vmatprep.subr.bf16.mxu0 %v16634_v62 }
 0x2c3   :  { %15418 = vmatmul.mubr.msk.bf16.vlgmr.msra.gmra.mrb[28].mxu1 %vm589_vm0, %v16598_v42 }
 0x2c4   :  { %15421 = vmatprep.mubr.msk.bf16.mxu1 %vm589_vm0, %v16599_v37  ;;  %15742 = vmatpush3.bf16.msra.mxu1 %v18443_v55  ;;  %v16610_v37 = vld [vmem:[#allocation5 + $0x868] sm:$0xff]  }
 0x2c5   :  { %15743 = vmatprep.subr.bf16.mxu1 %v18446_v8  ;;  %15224 = vmatpush3.bf16.msra.mxu0 %v16634_v62  ;;  %v16621_v62 = vld [vmem:[#allocation5 + $0x8c0] sm:$0xff]  }
 0x2c6   :  { %v15115_v2 = vpop.f32.mrb[180].mxu1 }
 0x2c7   :  { %v4342_v35 = vmax.f32 %v18406_v27, %v15115_v2  ;;  %v3917_v24 = vpop.f32.mrb[181].mxu1 }
 0x2c8   :  { %v4340_v46 = vmax.f32 %v18408_v1, %v3917_v24  ;;  %v15116_v33 = vpop.f32.mrb[182].mxu1  ;;  %15744 = vmatpush3.bf16.msra.mxu1 %v18446_v8  ;;  %v16635_v24 = vld [vmem:[#allocation10 + $0xa0] sm:$0xff]  }
 0x2c9   :  { %v4343_v12 = vmax.f32 %v18410_v60, %v15116_v33  ;;  %v3920_v25 = vpop.f32.mrb[183].mxu1  ;;  %15225 = vmatprep.subr.bf16.mxu0 %v16635_v24 }
 0x2ca   :  { %v4341_v11 = vmax.f32 %v18412_v32, %v3920_v25  ;;  %15226 = vmatpush3.bf16.msra.mxu0 %v16635_v24  ;;  %v16612_v25 = vld [vmem:[#allocation5 + $0x878] sm:$0xff]   ;;  %v16623_v24 = vld [vmem:[#allocation5 + $0x8d0] sm:$0xff]  }
 0x2cb   :  { %15422 = vmatmul.mubr.msk.bf16.gmra.mrb[32].mxu1 %vm589_vm0, %v16600_v9 }
 0x2cc   :  { %15425 = vmatprep.mubr.msk.bf16.mxu1 %vm589_vm0, %v16601_v52 }
 0x2ce   :  { %v15119_v16 = vpop.f32.mrb[184].mxu1 }
 0x2cf   :  { %v4346_v13 = vmax.f32 %v18418_v61, %v15119_v16  ;;  %v3933_v6 = vpop.f32.mrb[185].mxu1 }
 0x2d0   :  { %v4344_v19 = vmax.f32 %v18420_v28, %v3933_v6  ;;  %v18458_v36 = vpop.f32.mrb[186].mxu1  ;;  %v16607_v28 = vld [vmem:[#allocation5 + $0x850] sm:$0xff]  }
 0x2d1   :  { %v4347_v4 = vmax.f32 %v18422_v34, %v18458_v36  ;;  %v18462_v5 = vpop.f32.mrb[187].mxu1 }
 0x2d2   :  { %v4345_v51 = vmax.f32 %v18424_v47, %v18462_v5 }
 0x2d3   :  { %15426 = vmatmul.mubr.msk.bf16.gmra.mrb[36].mxu1 %vm589_vm0, %v16602_v43 }
 0x2d4   :  { %15429 = vmatprep.mubr.msk.bf16.mxu1 %vm589_vm0, %v16603_v18  ;;  %v16642_v18 = vld [vmem:[#allocation10 + $0xb8] sm:$0xff]  }
 0x2d6   :  { %v15123_v31 = vpop.f32.mrb[188].mxu1 }
 0x2d7   :  { %v18468_v20 = vmax.f32 %v4334_v40, %v15123_v31  ;;  %v3949_v44 = vpop.f32.mrb[189].mxu1  ;;  %v16614_v31 = vld [vmem:[#allocation5 + $0x888] sm:$0xff]  }
 0x2d8   :  { %v18470_v15 = vmax.f32 %v4332_v21, %v3949_v44  ;;  %v15124_v22 = vpop.f32.mrb[190].mxu1  ;;  %v16608_v21 = vld [vmem:[#allocation5 + $0x858] sm:$0xff]  }
 0x2d9   :  { %v18472_v54 = vmax.f32 %v4335_v17, %v15124_v22  ;;  %v3952_v3 = vpop.f32.mrb[191].mxu1  ;;  %v16609_v17 = vld [vmem:[#allocation5 + $0x860] sm:$0xff]  }
 0x2da   :  { %v18474_v27 = vmax.f32 %v4333_v30, %v3952_v3 }
 0x2db   :  { %15430 = vmatmul.mubr.msk.bf16.gmra.mrb[40].mxu1 %vm589_vm0, %v16604_v39  ;;  %v16615_v39 = vld [vmem:[#allocation5 + $0x890] sm:$0xff]  }
 0x2dc   :  { %15433 = vmatprep.mubr.msk.bf16.mxu1 %vm589_vm0, %v16605_v41 }
 0x2de   :  { %v15127_v1 = vpop.f32.mrb[192].mxu1 }
 0x2df   :  { %v18478_v63 = vmax.f32 %v4338_v23, %v15127_v1  ;;  %v3965_v60 = vpop.f32.mrb[193].mxu1  ;;  %v16616_v1 = vld [vmem:[#allocation5 + $0x898] sm:$0xff]  }
 0x2e0   :  { %v18480_v32 = vmax.f32 %v4336_v0, %v3965_v60  ;;  %v15128_v61 = vpop.f32.mrb[194].mxu1 }
 0x2e1   :  { %v18482_v48 = vmax.f32 %v4339_v7, %v15128_v61  ;;  %v3968_v34 = vpop.f32.mrb[195].mxu1 }
 0x2e2   :  { %v18484_v47 = vmax.f32 %v4337_v50, %v3968_v34  ;;  %v16611_v50 = vld [vmem:[#allocation5 + $0x870] sm:$0xff]  }
 0x2e3   :  { %15434 = vmatmul.mubr.msk.bf16.gmra.mrb[44].mxu1 %vm589_vm0, %v16606_v10  ;;  %v16617_v10 = vld [vmem:[#allocation5 + $0x8a0] sm:$0xff]  }
 0x2e4   :  { %15437 = vmatprep.mubr.msk.bf16.mxu1 %vm589_vm0, %v16607_v28 }
 0x2e6   :  { %v15131_v40 = vpop.f32.mrb[196].mxu1 }
 0x2e7   :  { %v18488_v49 = vmax.f32 %v4342_v35, %v15131_v40  ;;  %v3981_v59 = vpop.f32.mrb[197].mxu1 }
 0x2e8   :  { %v18490_v53 = vmax.f32 %v4340_v46, %v3981_v59  ;;  %v15132_v26 = vpop.f32.mrb[198].mxu1  ;;  %v16638_v46 = vld [vmem:[#allocation10 + $0xa8] sm:$0xff]  }
 0x2e9   :  { %v18492_v29 = vmax.f32 %v4343_v12, %v15132_v26  ;;  %v3984_v30 = vpop.f32.mrb[199].mxu1  ;;  %15227 = vmatprep.subr.bf16.mxu0 %v16638_v46 }
 0x2ea   :  { %v18494_v23 = vmax.f32 %v4341_v11, %v3984_v30  ;;  %15228 = vmatpush3.bf16.msra.mxu0 %v16638_v46  ;;  %v16620_v30 = vld [vmem:[#allocation5 + $0x8b8] sm:$0xff]  }
 0x2eb   :  { %15438 = vmatmul.mubr.msk.bf16.gmra.mrb[48].mxu1 %vm589_vm0, %v16608_v21 }
 0x2ec   :  { %15441 = vmatprep.mubr.msk.bf16.mxu1 %vm589_vm0, %v16609_v17 }
 0x2ee   :  { %v15135_v42 = vpop.f32.mrb[200].mxu1 }
 0x2ef   :  { %v18498_v0 = vmax.f32 %v4346_v13, %v15135_v42  ;;  %v3997_v56 = vpop.f32.mrb[201].mxu1  ;;  %v16613_v13 = vld [vmem:[#allocation5 + $0x880] sm:$0xff]  }
 0x2f0   :  { %v18500_v7 = vmax.f32 %v4344_v19, %v3997_v56  ;;  %v15136_v45 = vpop.f32.mrb[202].mxu1  ;;  %v16639_v19 = vld [vmem:[#allocation10 + $0xb0] sm:$0xff]  }
 0x2f1   :  { %v18502_v2 = vmax.f32 %v4347_v4, %v15136_v45  ;;  %v4000_v35 = vpop.f32.mrb[203].mxu1  ;;  %15229 = vmatprep.subr.bf16.mxu0 %v16639_v19 }
 0x2f2   :  { %v18504_v9 = vmax.f32 %v4345_v51, %v4000_v35  ;;  %15230 = vmatpush3.bf16.msra.mxu0 %v16639_v19 }
 0x2f3   :  { %15442 = vmatmul.mubr.msk.bf16.gmra.mrb[52].mxu1 %vm589_vm0, %v16610_v37  ;;  %15231 = vmatprep.subr.bf16.mxu0 %v16642_v18 }
 0x2f4   :  { %15445 = vmatprep.mubr.msk.bf16.mxu1 %vm589_vm0, %v16611_v50  ;;  %v16622_v50 = vld [vmem:[#allocation5 + $0x8c8] sm:$0xff]  }
 0x2f6   :  { %v15139_v33 = vpop.f32.mrb[204].mxu1  ;;  %15232 = vmatpush3.bf16.msra.mxu0 %v16642_v18 }
 0x2f7   :  { %v4366_v52 = vmax.f32 %v18468_v20, %v15139_v33  ;;  %v4013_v12 = vpop.f32.mrb[205].mxu1  ;;  %15249 = vmatprep.subr.bf16.mxu0 %v18443_v55 }
 0x2f8   :  { %v4364_v11 = vmax.f32 %v18470_v15, %v4013_v12  ;;  %v15140_v16 = vpop.f32.mrb[206].mxu1 }
 0x2f9   :  { %v4367_v6 = vmax.f32 %v18472_v54, %v15140_v16  ;;  %v4016_v43 = vpop.f32.mrb[207].mxu1 }
 0x2fa   :  { %v4365_v36 = vmax.f32 %v18474_v27, %v4016_v43 }
 0x2fb   :  { %15446 = vmatmul.mubr.msk.bf16.gmra.mrb[56].mxu1 %vm589_vm0, %v16612_v25 }
 0x2fc   :  { %15449 = vmatprep.mubr.msk.bf16.mxu1 %vm589_vm0, %v16613_v13 }
 0x2fe   :  { %v15143_v4 = vpop.f32.mrb[208].mxu1 }
 0x2ff   :  { %v4370_v5 = vmax.f32 %v18478_v63, %v15143_v4  ;;  %v4029_v51 = vpop.f32.mrb[209].mxu1 }
 0x300   :  { %v4368_v20 = vmax.f32 %v18480_v32, %v4029_v51  ;;  %v15144_v44 = vpop.f32.mrb[210].mxu1  ;;  %v16626_v51 = vld [vmem:[#allocation5 + $0x8e8] sm:$0xff]  }
 0x301   :  { %v4371_v15 = vmax.f32 %v18482_v48, %v15144_v44  ;;  %v4032_v22 = vpop.f32.mrb[211].mxu1  ;;  %v16628_v44 = vld [vmem:[#allocation5 + $0x8f0] sm:$0xff]  }
 0x302   :  { %v4369_v41 = vmax.f32 %v18484_v47, %v4032_v22  ;;  %v16618_v47 = vld [vmem:[#allocation5 + $0x8a8] sm:$0xff]  }
 0x303   :  { %15450 = vmatmul.mubr.msk.bf16.gmra.mrb[60].mxu1 %vm589_vm0, %v16614_v31 }
 0x304   :  { %15453 = vmatprep.mubr.msk.bf16.mxu1 %vm589_vm0, %v16615_v39 }
 0x306   :  { %v15147_v54 = vpop.f32.mrb[212].mxu1 }
 0x307   :  { %v4374_v3 = vmax.f32 %v18488_v49, %v15147_v54  ;;  %v4045_v27 = vpop.f32.mrb[213].mxu1  ;;  %v16619_v49 = vld [vmem:[#allocation5 + $0x8b0] sm:$0xff]  }
 0x308   :  { %v4372_v63 = vmax.f32 %v18490_v53, %v4045_v27  ;;  %v15148_v60 = vpop.f32.mrb[214].mxu1  ;;  %v16629_v27 = vld [vmem:[#allocation5 + $0x8f8] sm:$0xff]  }
 0x309   :  { %v4375_v32 = vmax.f32 %v18492_v29, %v15148_v60  ;;  %v4048_v61 = vpop.f32.mrb[215].mxu1  ;;  %v16632_v60 = vld [vmem:[#allocation5 + $0x900] sm:$0xff]  }
 0x30a   :  { %v4373_v28 = vmax.f32 %v18494_v23, %v4048_v61 }
 0x30b   :  { %15454 = vmatmul.mubr.msk.bf16.gmra.mrb[64].mxu1 %vm589_vm0, %v16616_v1 }
 0x30c   :  { %15457 = vmatprep.mubr.msk.bf16.mxu1 %vm589_vm0, %v16617_v10 }
 0x30e   :  { %v15151_v48 = vpop.f32.mrb[216].mxu1 }
 0x30f   :  { %v4378_v34 = vmax.f32 %v18498_v0, %v15151_v48  ;;  %v4061_v14 = vpop.f32.mrb[217].mxu1 }
 0x310   :  { %v4376_v58 = vmax.f32 %v18500_v7, %v4061_v14  ;;  %v15152_v40 = vpop.f32.mrb[218].mxu1  ;;  %v16633_v14 = vld [vmem:[#allocation5 + $0x908] sm:$0xff]  }
 0x311   :  { %v4379_v59 = vmax.f32 %v18502_v2, %v15152_v40  ;;  %v4064_v21 = vpop.f32.mrb[219].mxu1  ;;  %v16636_v40 = vld [vmem:[#allocation5 + $0x910] sm:$0xff]  }
 0x312   :  { %v4377_v53 = vmax.f32 %v18504_v9, %v4064_v21 }
 0x313   :  { %15458 = vmatmul.mubr.msk.bf16.gmra.mrb[68].mxu1 %vm589_vm0, %v16618_v47 }
 0x314   :  { %15461 = vmatprep.mubr.msk.bf16.mxu1 %vm589_vm0, %v16619_v49 }
 0x316   :  { %v15155_v26 = vpop.f32.mrb[220].mxu1 }
 0x317   :  { %v18533_v17 = vmax.f32 %v4366_v52, %v15155_v26  ;;  %v4077_v29 = vpop.f32.mrb[221].mxu1 }
 0x318   :  { %v18535_v57 = vmax.f32 %v4364_v11, %v4077_v29  ;;  %v15156_v23 = vpop.f32.mrb[222].mxu1  ;;  %v16624_v11 = vld [vmem:[#allocation5 + $0x8d8] sm:$0xff]  }
 0x319   :  { %v18537_v42 = vmax.f32 %v4367_v6, %v15156_v23  ;;  %v4080_v0 = vpop.f32.mrb[223].mxu1  ;;  %v16625_v6 = vld [vmem:[#allocation5 + $0x8e0] sm:$0xff]   ;;  %v16637_v29 = vld [vmem:[#allocation5 + $0x918] sm:$0xff]  }
 0x31a   :  { %v18539_v56 = vmax.f32 %v4365_v36, %v4080_v0  ;;  %v16640_v23 = vld [vmem:[#allocation5 + $0x920] sm:$0xff]  }
 0x31b   :  { %15462 = vmatmul.mubr.msk.bf16.gmra.mrb[72].mxu1 %vm589_vm0, %v16620_v30 }
 0x31c   :  { %15465 = vmatprep.mubr.msk.bf16.mxu1 %vm589_vm0, %v16621_v62 }
 0x31e   :  { %v15159_v37 = vpop.f32.mrb[224].mxu1 }
 0x31f   :  { %v18543_v7 = vmax.f32 %v4370_v5, %v15159_v37  ;;  %v4093_v45 = vpop.f32.mrb[225].mxu1 }
 0x320   :  { %v18545_v2 = vmax.f32 %v4368_v20, %v4093_v45  ;;  %v15160_v35 = vpop.f32.mrb[226].mxu1  ;;  %v16641_v45 = vld [vmem:[#allocation5 + $0x928] sm:$0xff]  }
 0x321   :  { %v18547_v9 = vmax.f32 %v4371_v15, %v15160_v35  ;;  %v4096_v46 = vpop.f32.mrb[227].mxu1  ;;  %v16643_v35 = vld [vmem:[#allocation5 + $0x930] sm:$0xff]  }
 0x322   :  { %v18549_v33 = vmax.f32 %v4369_v41, %v4096_v46 }
 0x323   :  { %15466 = vmatmul.mubr.msk.bf16.gmra.mrb[76].mxu1 %vm589_vm0, %v16622_v50 }
 0x324   :  { %15469 = vmatprep.mubr.msk.bf16.mxu1 %vm589_vm0, %v16623_v24 }
 0x326   :  { %v15163_v52 = vpop.f32.mrb[228].mxu1 }
 0x327   :  { %v18553_v12 = vmax.f32 %v4374_v3, %v15163_v52  ;;  %v4109_v25 = vpop.f32.mrb[229].mxu1 }
 0x328   :  { %v18555_v16 = vmax.f32 %v4372_v63, %v4109_v25  ;;  %v15164_v13 = vpop.f32.mrb[230].mxu1  ;;  %v16644_v25 = vld [vmem:[#allocation5 + $0x938] sm:$0xff]  }
 0x329   :  { %v18557_v43 = vmax.f32 %v4375_v32, %v15164_v13  ;;  %v4112_v19 = vpop.f32.mrb[231].mxu1  ;;  %v16645_v13 = vld [vmem:[#allocation5 + $0x940] sm:$0xff]  }
 0x32a   :  { %v18559_v36 = vmax.f32 %v4373_v28, %v4112_v19 }
 0x32b   :  { %15470 = vmatmul.mubr.msk.bf16.gmra.mrb[80].mxu1 %vm589_vm0, %v16624_v11 }
 0x32c   :  { %15473 = vmatprep.mubr.msk.bf16.mxu1 %vm589_vm0, %v16625_v6 }
 0x32e   :  { %v15167_v18 = vpop.f32.mrb[232].mxu1 }
 0x32f   :  { %v18563_v4 = vmax.f32 %v4378_v34, %v15167_v18  ;;  %v4125_v5 = vpop.f32.mrb[233].mxu1 }
 0x330   :  { %v18565_v31 = vmax.f32 %v4376_v58, %v4125_v5  ;;  %v15168_v20 = vpop.f32.mrb[234].mxu1  ;;  %v16646_v5 = vld [vmem:[#allocation5 + $0x948] sm:$0xff]  }
 0x331   :  { %v18567_v39 = vmax.f32 %v4379_v59, %v15168_v20  ;;  %v4128_v15 = vpop.f32.mrb[235].mxu1  ;;  %v16647_v20 = vld [vmem:[#allocation5 + $0x950] sm:$0xff]  }
 0x332   :  { %v18569_v22 = vmax.f32 %v4377_v53, %v4128_v15 }
 0x333   :  { %15474 = vmatmul.mubr.msk.bf16.gmra.mrb[84].mxu1 %vm589_vm0, %v16626_v51 }
 0x334   :  { %15477 = vmatprep.mubr.msk.bf16.mxu1 %vm589_vm0, %v16628_v44 }
 0x336   :  { %v15171_v41 = vpop.f32.mrb[236].mxu1 }
 0x337   :  { %v4398_v54 = vmax.f32 %v18533_v17, %v15171_v41  ;;  %v4141_v3 = vpop.f32.mrb[237].mxu1 }
 0x338   :  { %v4396_v1 = vmax.f32 %v18535_v57, %v4141_v3  ;;  %v15172_v63 = vpop.f32.mrb[238].mxu1  ;;  %v16648_v3 = vld [vmem:[#allocation5 + $0x958] sm:$0xff]  }
 0x339   :  { %v4399_v10 = vmax.f32 %v18537_v42, %v15172_v63  ;;  %v4144_v32 = vpop.f32.mrb[239].mxu1  ;;  %v16649_v63 = vld [vmem:[#allocation5 + $0x960] sm:$0xff]  }
 0x33a   :  { %v4397_v61 = vmax.f32 %v18539_v56, %v4144_v32 }
 0x33b   :  { %15478 = vmatmul.mubr.msk.bf16.gmra.mrb[88].mxu1 %vm589_vm0, %v16629_v27 }
 0x33c   :  { %15481 = vmatprep.mubr.msk.bf16.mxu1 %vm589_vm0, %v16632_v60 }
 0x33e   :  { %v15175_v28 = vpop.f32.mrb[240].mxu1 }
 0x33f   :  { %v4402_v48 = vmax.f32 %v18543_v7, %v15175_v28  ;;  %v4157_v34 = vpop.f32.mrb[241].mxu1 }
 0x340   :  { %v4400_v47 = vmax.f32 %v18545_v2, %v4157_v34  ;;  %v15176_v58 = vpop.f32.mrb[242].mxu1  ;;  %v16650_v34 = vld [vmem:[#allocation5 + $0x968] sm:$0xff]  }
 0x341   :  { %v4403_v49 = vmax.f32 %v18547_v9, %v15176_v58  ;;  %v4160_v59 = vpop.f32.mrb[243].mxu1  ;;  %v16653_v58 = vld [vmem:[#allocation5 + $0x970] sm:$0xff]  }
 0x342   :  { %v4401_v21 = vmax.f32 %v18549_v33, %v4160_v59 }
 0x343   :  { %15482 = vmatmul.mubr.msk.bf16.gmra.mrb[92].mxu1 %vm589_vm0, %v16633_v14 }
 0x344   :  { %15485 = vmatprep.mubr.msk.bf16.mxu1 %vm589_vm0, %v16636_v40 }
 0x346   :  { %v15179_v53 = vpop.f32.mrb[244].mxu1 }
 0x347   :  { %v4406_v26 = vmax.f32 %v18553_v12, %v15179_v53  ;;  %v4173_v17 = vpop.f32.mrb[245].mxu1 }
 0x348   :  { %v4404_v30 = vmax.f32 %v18555_v16, %v4173_v17  ;;  %v15180_v57 = vpop.f32.mrb[246].mxu1  ;;  %v16654_v17 = vld [vmem:[#allocation5 + $0x978] sm:$0xff]  }
 0x349   :  { %v4407_v62 = vmax.f32 %v18557_v43, %v15180_v57  ;;  %v4176_v42 = vpop.f32.mrb[247].mxu1  ;;  %v16657_v57 = vld [vmem:[#allocation5 + $0x980] sm:$0xff]  }
 0x34a   :  { %v4405_v0 = vmax.f32 %v18559_v36, %v4176_v42 }
 0x34b   :  { %15486 = vmatmul.mubr.msk.bf16.gmra.mrb[96].mxu1 %vm589_vm0, %v16637_v29 }
 0x34c   :  { %15489 = vmatprep.mubr.msk.bf16.mxu1 %vm589_vm0, %v16640_v23 }
 0x34e   :  { %v15183_v56 = vpop.f32.mrb[248].mxu1 }
 0x34f   :  { %v4410_v37 = vmax.f32 %v18563_v4, %v15183_v56  ;;  %v4189_v7 = vpop.f32.mrb[249].mxu1 }
 0x350   :  { %v4408_v50 = vmax.f32 %v18565_v31, %v4189_v7  ;;  %v15184_v2 = vpop.f32.mrb[250].mxu1 }
 0x351   :  { %v4411_v24 = vmax.f32 %v18567_v39, %v15184_v2  ;;  %v4192_v9 = vpop.f32.mrb[251].mxu1 }
 0x352   :  { %v4409_v46 = vmax.f32 %v18569_v22, %v4192_v9 }
 0x353   :  { %15490 = vmatmul.mubr.msk.bf16.gmra.mrb[100].mxu1 %vm589_vm0, %v16641_v45 }
 0x354   :  { %15493 = vmatprep.mubr.msk.bf16.mxu1 %vm589_vm0, %v16643_v35 }
 0x356   :  { %v15187_v33 = vpop.f32.mrb[252].mxu1 }
 0x357   :  { %v4414_v52 = vmax.f32 %v4398_v54, %v15187_v33  ;;  %v4205_v12 = vpop.f32.mrb[253].mxu1 }
 0x358   :  { %v4412_v11 = vmax.f32 %v4396_v1, %v4205_v12  ;;  %v15188_v16 = vpop.f32.mrb[254].mxu1 }
 0x359   :  { %v4415_v6 = vmax.f32 %v4399_v10, %v15188_v16  ;;  %v4208_v43 = vpop.f32.mrb[255].mxu1  ;;  %v16661_v16 = vld [vmem:[#allocation5 + $0x990] sm:$0xff]  }
 0x35a   :  { %v4413_v19 = vmax.f32 %v4397_v61, %v4208_v43 }
 0x35b   :  { %15494 = vmatmul.mubr.msk.bf16.gmra.mrb[104].mxu1 %vm589_vm0, %v16644_v25 }
 0x35c   :  { %15497 = vmatprep.mubr.msk.bf16.mxu1 %vm589_vm0, %v16645_v13 }
 0x35e   :  { %v15191_v36 = vpop.f32.mrb[0].mxu1 }
 0x35f   :  { %v18599_v18 = vmax.f32 %v4402_v48, %v15191_v36  ;;  %v4221_v4 = vpop.f32.mrb[1].mxu1 }
 0x360   :  { %v18601_v51 = vmax.f32 %v4400_v47, %v4221_v4  ;;  %v15192_v31 = vpop.f32.mrb[2].mxu1 }
 0x361   :  { %v18603_v44 = vmax.f32 %v4403_v49, %v15192_v31  ;;  %v4224_v39 = vpop.f32.mrb[3].mxu1 }
 0x362   :  { %v18605_v15 = vmax.f32 %v4401_v21, %v4224_v39 }
 0x363   :  { %15498 = vmatmul.mubr.msk.bf16.gmra.mrb[108].mxu1 %vm589_vm0, %v16646_v5 }
 0x364   :  { %15501 = vmatprep.mubr.msk.bf16.mxu1 %vm589_vm0, %v16647_v20 }
 0x366   :  { %v15195_v22 = vpop.f32.mrb[4].mxu1 }
 0x367   :  { %v18609_v41 = vmax.f32 %v4406_v26, %v15195_v22  ;;  %v4237_v54 = vpop.f32.mrb[5].mxu1 }
 0x368   :  { %v18611_v27 = vmax.f32 %v4404_v30, %v4237_v54  ;;  %v15196_v1 = vpop.f32.mrb[6].mxu1  ;;  %v16662_v54 = vld [vmem:[#allocation5 + $0x998] sm:$0xff]  }
 0x369   :  { %v18613_v60 = vmax.f32 %v4407_v62, %v15196_v1  ;;  %v4240_v10 = vpop.f32.mrb[7].mxu1 }
 0x36a   :  { %v18615_v32 = vmax.f32 %v4405_v0, %v4240_v10 }
 0x36b   :  { %15502 = vmatmul.mubr.msk.bf16.gmra.mrb[112].mxu1 %vm589_vm0, %v16648_v3 }
 0x36c   :  { %15505 = vmatprep.mubr.msk.bf16.mxu1 %vm589_vm0, %v16649_v63  ;;  %v18650_v63 = vld [vmem:[#allocation9] ss:$0 sm:$0xff] }
 0x36e   :  { %v15199_v61 = vpop.f32.mrb[8].mxu1 }
 0x36f   :  { %v18619_v28 = vmax.f32 %v4410_v37, %v15199_v61  ;;  %v4253_v48 = vpop.f32.mrb[9].mxu1 }
 0x370   :  { %v18621_v14 = vmax.f32 %v4408_v50, %v4253_v48  ;;  %v15200_v47 = vpop.f32.mrb[10].mxu1 }
 0x371   :  { %v18623_v40 = vmax.f32 %v4411_v24, %v15200_v47  ;;  %v4256_v49 = vpop.f32.mrb[11].mxu1 }
 0x372   :  { %v18625_v59 = vmax.f32 %v4409_v46, %v4256_v49 }
 0x373   :  { %15506 = vmatmul.mubr.msk.bf16.gmra.mrb[116].mxu1 %vm589_vm0, %v16650_v34 }
 0x374   :  { %15509 = vmatprep.mubr.msk.bf16.mxu1 %vm589_vm0, %v16653_v58 }
 0x376   :  { %v15203_v21 = vpop.f32.mrb[12].mxu1 }
 0x377   :  { %v4430_v53 = vmax.f32 %v4414_v52, %v15203_v21  ;;  %v4269_v26 = vpop.f32.mrb[13].mxu1  ;;  %v16658_v52 = vld [vmem:[#allocation5 + $0x988] sm:$0xff]  }
 0x378   :  { %v4428_v29 = vmax.f32 %v4412_v11, %v4269_v26  ;;  %v15204_v30 = vpop.f32.mrb[14].mxu1 }
 0x379   :  { %v4446_v23 = vadd.f32 %v18345_v38, %v4430_v53  ;;  %v4431_v62 = vmax.f32 %v4415_v6, %v15204_v30  ;;  %v4272_v42 = vpop.f32.mrb[15].mxu1 }
 0x37a   :  { %v4444_v0 = vadd.f32 %v18345_v38, %v4428_v29  ;;  %v4429_v56 = vmax.f32 %v4413_v19, %v4272_v42 }
 0x37b   :  { %v4447_v37 = vadd.f32 %v18345_v38, %v4431_v62  ;;  %15510 = vmatmul.mubr.msk.bf16.gmra.mrb[120].mxu1 %vm589_vm0, %v16654_v17  ;;  %v4462_v45 = vmax.f32 %v4446_v23, 0.0  ;;  %v16669_v23 = vld [vmem:[#allocation5 + $0x9b0] sm:$0xff]  }
 0x37c   :  { %v4445_v7 = vadd.f32 %v18345_v38, %v4429_v56  ;;  %15513 = vmatprep.mubr.msk.bf16.mxu1 %vm589_vm0, %v16657_v57  ;;  %v4460_v35 = vmax.f32 %v4444_v0, 0.0 }
 0x37d   :  { %v4463_v50 = vmax.f32 %v4447_v37, 0.0 }
 0x37e   :  { %v15207_v2 = vpop.f32.mrb[16].mxu1  ;;  %v4461_v24 = vmax.f32 %v4445_v7, 0.0 }
 0x37f   :  { %v4477_v9 = vpack.c.bf16 %v4463_v50, %v4462_v45  ;;  %v4434_v46 = vmax.f32 %v18599_v18, %v15207_v2  ;;  %v4285_v33 = vpop.f32.mrb[17].mxu1 }
 0x380   :  { %v4432_v12 = vmax.f32 %v18601_v51, %v4285_v33  ;;  %v15208_v25 = vpop.f32.mrb[18].mxu1  ;;  %v4476_v11 = vpack.c.bf16 %v4461_v24, %v4460_v35  ;;  %v16670_v35 = vld [vmem:[#allocation5 + $0x9b8] sm:$0xff]   ;;  %v16674_v33 = vld [vmem:[#allocation5 + $0x9c8] sm:$0xff]  }
 0x381   :  { %v4450_v13 = vadd.f32 %v18345_v38, %v4434_v46  ;;  %v4435_v6 = vmax.f32 %v18603_v44, %v15208_v25  ;;  %v4288_v43 = vpop.f32.mrb[19].mxu1  ;;  %v16673_v46 = vld [vmem:[#allocation5 + $0x9c0] sm:$0xff]   ;;  %v16656_v25 = vld [vmem:[#allocation5 + $0x618] sm:$0xff]  }
 0x382   :  { %v4448_v19 = vadd.f32 %v18345_v38, %v4432_v12  ;;  %v4433_v36 = vmax.f32 %v18605_v15, %v4288_v43  ;;  %15233 = vmatprep.mubr.bf16.mxu0 %v4476_v11  ;;  %v16677_v12 = vld [vmem:[#allocation5 + $0x9d0] sm:$0xff]   ;;  %v16678_v11 = vld [vmem:[#allocation5 + $0x9d8] sm:$0xff]  }
 0x383   :  { %v4451_v4 = vadd.f32 %v18345_v38, %v4435_v6  ;;  %15234 = vmatmul.mubr.bf16.vlgmr.msra.gmra.mrb[100].mxu0 %v4477_v9  ;;  %15514 = vmatmul.mubr.msk.bf16.gmra.mrb[124].mxu1 %vm589_vm0, %v16658_v52  ;;  %v4466_v5 = vmax.f32 %v4450_v13, 0.0  ;;  %v16651_v9 = vld [vmem:[#allocation5 + $0x600] sm:$0xff]   ;;  %v16655_v52 = vld [vmem:[#allocation5 + $0x610] sm:$0xff]  }
 0x384   :  { %v4449_v18 = vadd.f32 %v18345_v38, %v4433_v36  ;;  %15250 = vmatpush3.bf16.msra.mxu0 %v18443_v55  ;;  %15517 = vmatprep.mubr.msk.bf16.mxu1 %vm589_vm0, %v16661_v16  ;;  %v4464_v20 = vmax.f32 %v4448_v19, 0.0  ;;  %v16665_v55 = vld [vmem:[#allocation5 + $0x9a0] sm:$0xff]   ;;  %v16660_v36 = vld [vmem:[#allocation5 + $0x628] sm:$0xff]  }
 0x385   :  { %v4467_v51 = vmax.f32 %v4451_v4, 0.0  ;;  %15251 = vmatprep.subr.bf16.mxu0 %v18446_v8  ;;  %v16659_v16 = vld [vmem:[#allocation5 + $0x620] sm:$0xff]   ;;  %v16682_v4 = vld [vmem:[#allocation5 + $0x9e8] sm:$0xff]  }
 0x386   :  { %v15211_v31 = vpop.f32.mrb[20].mxu1  ;;  %v4465_v44 = vmax.f32 %v4449_v18, 0.0  ;;  %v16681_v13 = vld [vmem:[#allocation5 + $0x9e0] sm:$0xff]   ;;  %v16663_v18 = vld [vmem:[#allocation5 + $0x630] sm:$0xff]  }
 0x387   :  { %v4438_v39 = vmax.f32 %v18609_v41, %v15211_v31  ;;  %v4301_v15 = vpop.f32.mrb[21].mxu1  ;;  %v4479_v22 = vpack.c.bf16 %v4467_v51, %v4466_v5  ;;  %v16685_v5 = vld [vmem:[#allocation5 + $0x9f0] sm:$0xff]  }
 0x388   :  { %v4436_v3 = vmax.f32 %v18611_v27, %v4301_v15  ;;  %v15212_v1 = vpop.f32.mrb[22].mxu1  ;;  %v4478_v38 = vpack.c.bf16 %v4465_v44, %v4464_v20  ;;  %15252 = vmatpush3.bf16.msra.mxu0 %v18446_v8  ;;  %v16664_v15 = vld [vmem:[#allocation5 + $0x638] sm:$0xff]  }
 0x389   :  { %v4454_v10 = vadd.f32 %v18650_v63, %v4438_v39  ;;  %v4439_v61 = vmax.f32 %v18613_v60, %v15212_v1  ;;  %v4304_v48 = vpop.f32.mrb[23].mxu1 }
 0x38a   :  { %v4452_v34 = vadd.f32 %v18650_v63, %v4436_v3  ;;  %v4437_v41 = vmax.f32 %v18615_v32, %v4304_v48  ;;  %15237 = vmatprep.mubr.bf16.mxu0 %v4478_v38  ;;  %v16666_v32 = vld [vmem:[#allocation5 + $0x9a8] sm:$0xff]   ;;  %v16667_v3 = vld [vmem:[#allocation5 + $0x640] sm:$0xff]  }
 0x38b   :  { %v4455_v47 = vadd.f32 %v18650_v63, %v4439_v61  ;;  %15238 = vmatmul.mubr.bf16.gmra.mrb[104].mxu0 %v4479_v22  ;;  %15518 = vmatmul.mubr.msk.bf16.gmra.mrb[128].mxu1 %vm589_vm0, %v16662_v54  ;;  %v4470_v27 = vmax.f32 %v4454_v10, 0.0  ;;  %v16686_v22 = vld [vmem:[#allocation5 + $0x9f8] sm:$0xff]  }
 0x38c   :  { %v4453_v8 = vadd.f32 %v18650_v63, %v4437_v41  ;;  %15521 = vmatprep.mubr.msk.bf16.mxu1 %vm589_vm0, %v16665_v55  ;;  %v4468_v21 = vmax.f32 %v4452_v34, 0.0  ;;  %v16668_v41 = vld [vmem:[#allocation5 + $0x648] sm:$0xff]  }
 0x38d   :  { %v4471_v58 = vmax.f32 %v4455_v47, 0.0 }
 0x38e   :  { %v15215_v49 = vpop.f32.mrb[24].mxu1  ;;  %v4469_v60 = vmax.f32 %v4453_v8, 0.0  ;;  %v16671_v8 = vld [vmem:[#allocation5 + $0x650] sm:$0xff]  }
 0x38f   :  { %v4442_v53 = vmax.f32 %v18619_v28, %v15215_v49  ;;  %v4317_v26 = vpop.f32.mrb[25].mxu1  ;;  %v4481_v17 = vpack.c.bf16 %v4471_v58, %v4470_v27 }
 0x390   :  { %v4440_v29 = vmax.f32 %v18621_v14, %v4317_v26  ;;  %v15216_v30 = vpop.f32.mrb[26].mxu1  ;;  %v4480_v57 = vpack.c.bf16 %v4469_v60, %v4468_v21 }
 0x391   :  { %v4458_v62 = vadd.f32 %v18650_v63, %v4442_v53  ;;  %v4443_v42 = vmax.f32 %v18623_v40, %v15216_v30  ;;  %v4320_v0 = vpop.f32.mrb[27].mxu1 }
 0x392   :  { %v4456_v56 = vadd.f32 %v18650_v63, %v4440_v29  ;;  %v4441_v37 = vmax.f32 %v18625_v59, %v4320_v0  ;;  %15241 = vmatprep.mubr.bf16.mxu0 %v4480_v57  ;;  %v16652_v59 = vld [vmem:[#allocation5 + $0x608] sm:$0xff]  }
 0x393   :  { %v4459_v28 = vadd.f32 %v18650_v63, %v4443_v42  ;;  %15242 = vmatmul.mubr.bf16.gmra.mrb[108].mxu0 %v4481_v17  ;;  %15522 = vmatmul.mubr.msk.bf16.gmra.mrb[132].mxu1 %vm589_vm0, %v16666_v32  ;;  %v4474_v7 = vmax.f32 %v4458_v62, 0.0  ;;  %v16672_v42 = vld [vmem:[#allocation5 + $0x658] sm:$0xff]  }
 0x394   :  { %v4457_v14 = vadd.f32 %v18650_v63, %v4441_v37  ;;  %15525 = vmatprep.mubr.msk.bf16.mxu1 %vm589_vm0, %v16669_v23  ;;  %v4472_v50 = vmax.f32 %v4456_v56, 0.0  ;;  %v16675_v37 = vld [vmem:[#allocation5 + $0x660] sm:$0xff]  }
 0x395   :  { %v4475_v45 = vmax.f32 %v4459_v28, 0.0 }
 0x396   :  { %v4473_v2 = vmax.f32 %v4457_v14, 0.0  ;;  %v18679_v6 = vpop.f32.mrb[28].mxu1 }
 0x397   :  { %v4483_v40 = vpack.c.bf16 %v4475_v45, %v4474_v7  ;;  %v18683_v43 = vpop.f32.mrb[29].mxu1 }
 0x398   :  { %v4482_v24 = vpack.c.bf16 %v4473_v2, %v4472_v50  ;;  %v18685_v19 = vpop.f32.mrb[30].mxu1 }
 0x399   :  { %v18687_v51 = vpop.f32.mrb[31].mxu1 }
 0x39a   :  { %15245 = vmatprep.mubr.bf16.mxu0 %v4482_v24  ;;  %v16676_v24 = vld [vmem:[#allocation5 + $0x668] sm:$0xff]  }
 0x39b   :  { %15246 = vmatmul.mubr.bf16.gmra.mrb[112].mxu0 %v4483_v40  ;;  %15526 = vmatmul.mubr.msk.bf16.gmra.mrb[136].mxu1 %vm589_vm0, %v16670_v35 }
 0x39c   :  { %15253 = vmatprep.mubr.msk.bf16.mxu0 %vm589_vm0, %v16651_v9  ;;  %15529 = vmatprep.mubr.msk.bf16.mxu1 %vm589_vm0, %v16673_v46 }
 0x39e   :  { %v18691_v31 = vpop.f32.mrb[32].mxu1 }
 0x39f   :  { %v18695_v20 = vpop.f32.mrb[33].mxu1 }
 0x3a0   :  { %v18697_v44 = vpop.f32.mrb[34].mxu1 }
 0x3a1   :  { %v18699_v39 = vpop.f32.mrb[35].mxu1 }
 0x3a3   :  { %15254 = vmatmul.mubr.msk.bf16.vlgmr.msra.gmra.mrb[116].mxu0 %vm589_vm0, %v16652_v59  ;;  %15530 = vmatmul.mubr.msk.bf16.gmra.mrb[140].mxu1 %vm589_vm0, %v16674_v33  ;;  %v16679_v59 = vld [vmem:[#allocation5 + $0x670] sm:$0xff]  }
 0x3a4   :  { %15257 = vmatprep.mubr.msk.bf16.mxu0 %vm589_vm0, %v16655_v52  ;;  %15533 = vmatprep.mubr.msk.bf16.mxu1 %vm589_vm0, %v16677_v12 }
 0x3a6   :  { %v18701_v54 = vpop.f32.mrb[36].mxu1 }
 0x3a7   :  { %v18703_v1 = vpop.f32.mrb[37].mxu1 }
 0x3a8   :  { %v18705_v38 = vpop.f32.mrb[38].mxu1 }
 0x3a9   :  { %v18707_v55 = vpop.f32.mrb[39].mxu1 }
 0x3ab   :  { %15258 = vmatmul.mubr.msk.bf16.gmra.mrb[120].mxu0 %vm589_vm0, %v16656_v25  ;;  %15534 = vmatmul.mubr.msk.bf16.gmra.mrb[144].mxu1 %vm589_vm0, %v16678_v11 }
 0x3ac   :  { %15261 = vmatprep.mubr.msk.bf16.mxu0 %vm589_vm0, %v16659_v16  ;;  %15537 = vmatprep.mubr.msk.bf16.mxu1 %vm589_vm0, %v16681_v13  ;;  %v16680_v13 = vld [vmem:[#allocation5 + $0x678] sm:$0xff]  }
 0x3ae   :  { %v18711_v10 = vpop.f32.mrb[40].mxu1 }
 0x3af   :  { %v18714_v61 = vpop.f32.mrb[41].mxu1 }
 0x3b0   :  { %v18716_v48 = vpop.f32.mrb[42].mxu1 }
 0x3b1   :  { %v18718_v34 = vpop.f32.mrb[43].mxu1 }
 0x3b3   :  { %15262 = vmatmul.mubr.msk.bf16.gmra.mrb[124].mxu0 %vm589_vm0, %v16660_v36  ;;  %15538 = vmatmul.mubr.msk.bf16.gmra.mrb[148].mxu1 %vm589_vm0, %v16682_v4 }
 0x3b4   :  { %15265 = vmatprep.mubr.msk.bf16.mxu0 %vm589_vm0, %v16663_v18  ;;  %15541 = vmatprep.mubr.msk.bf16.mxu1 %vm589_vm0, %v16685_v5 }
 0x3b6   :  { %v15435_v47 = vpop.f32.mrb[44].mxu1 }
 0x3b7   :  { %v7366_v27 = vmax.f32 %v18679_v6, %v15435_v47  ;;  %v6917_v58 = vpop.f32.mrb[45].mxu1 }
 0x3b8   :  { %v7364_v49 = vmax.f32 %v18683_v43, %v6917_v58  ;;  %v15436_v21 = vpop.f32.mrb[46].mxu1 }
 0x3b9   :  { %v7367_v60 = vmax.f32 %v18685_v19, %v15436_v21  ;;  %v6920_v53 = vpop.f32.mrb[47].mxu1  ;;  %v16683_v19 = vld [vmem:[#allocation5 + $0x680] sm:$0xff]  }
 0x3ba   :  { %v7365_v26 = vmax.f32 %v18687_v51, %v6920_v53 }
 0x3bb   :  { %15266 = vmatmul.mubr.msk.bf16.gmra.mrb[128].mxu0 %vm589_vm0, %v16664_v15  ;;  %15542 = vmatmul.mubr.msk.bf16.gmra.mrb[152].mxu1 %vm589_vm0, %v16686_v22  ;;  %v16687_v15 = vld [vmem:[#allocation5 + $0x690] sm:$0xff]  }
 0x3bc   :  { %15269 = vmatprep.mubr.msk.bf16.mxu0 %vm589_vm0, %v16667_v3 }
 0x3be   :  { %v15439_v17 = vpop.f32.mrb[48].mxu1 }
 0x3bf   :  { %v7370_v32 = vmax.f32 %v18691_v31, %v15439_v17  ;;  %v6933_v29 = vpop.f32.mrb[49].mxu1  ;;  %v16691_v17 = vld [vmem:[#allocation5 + $0x6b0] sm:$0xff]  }
 0x3c0   :  { %v7368_v30 = vmax.f32 %v18695_v20, %v6933_v29  ;;  %v15440_v57 = vpop.f32.mrb[50].mxu1  ;;  %v16684_v20 = vld [vmem:[#allocation5 + $0x688] sm:$0xff]  }
 0x3c1   :  { %v7371_v23 = vmax.f32 %v18697_v44, %v15440_v57  ;;  %v6936_v62 = vpop.f32.mrb[51].mxu1 }
 0x3c2   :  { %v7369_v0 = vmax.f32 %v18699_v39, %v6936_v62 }
 0x3c3   :  { %15270 = vmatmul.mubr.msk.bf16.gmra.mrb[132].mxu0 %vm589_vm0, %v16668_v41  ;;  %v16689_v41 = vld [vmem:[#allocation5 + $0x6a0] sm:$0xff]  }
 0x3c4   :  { %15273 = vmatprep.mubr.msk.bf16.mxu0 %vm589_vm0, %v16671_v8 }
 0x3c6   :  { %v15443_v56 = vpop.f32.mrb[52].mxu1 }
 0x3c7   :  { %v7374_v28 = vmax.f32 %v18701_v54, %v15443_v56  ;;  %v6949_v14 = vpop.f32.mrb[53].mxu1 }
 0x3c8   :  { %v7372_v7 = vmax.f32 %v18703_v1, %v6949_v14  ;;  %v15444_v45 = vpop.f32.mrb[54].mxu1 }
 0x3c9   :  { %v7375_v50 = vmax.f32 %v18705_v38, %v15444_v45  ;;  %v6952_v2 = vpop.f32.mrb[55].mxu1 }
 0x3ca   :  { %v7373_v40 = vmax.f32 %v18707_v55, %v6952_v2  ;;  %v16719_v55 = vld [vmem:[#allocation10 + $0xc0] sm:$0xff]  }
 0x3cb   :  { %15274 = vmatmul.mubr.msk.bf16.gmra.mrb[136].mxu0 %vm589_vm0, %v16672_v42  ;;  %15381 = vmatprep.subr.bf16.mxu0 %v16719_v55  ;;  %v16692_v42 = vld [vmem:[#allocation5 + $0x6b8] sm:$0xff]  }
 0x3cc   :  { %15277 = vmatprep.mubr.msk.bf16.mxu0 %vm589_vm0, %v16675_v37  ;;  %15382 = vmatpush3.bf16.msra.mxu0 %v16719_v55  ;;  %v16693_v37 = vld [vmem:[#allocation5 + $0x6c0] sm:$0xff]   ;;  %v16700_v55 = vld [vmem:[#allocation5 + $0x6f8] sm:$0xff]  }
 0x3ce   :  { %v15447_v35 = vpop.f32.mrb[56].mxu1 }
 0x3cf   :  { %v7378_v9 = vmax.f32 %v18711_v10, %v15447_v35  ;;  %v6965_v46 = vpop.f32.mrb[57].mxu1 }
 0x3d0   :  { %v7376_v33 = vmax.f32 %v18714_v61, %v6965_v46  ;;  %v15448_v52 = vpop.f32.mrb[58].mxu1  ;;  %v16688_v61 = vld [vmem:[#allocation5 + $0x698] sm:$0xff]  }
 0x3d1   :  { %v7379_v12 = vmax.f32 %v18716_v48, %v15448_v52  ;;  %v6968_v25 = vpop.f32.mrb[59].mxu1 }
 0x3d2   :  { %v7377_v11 = vmax.f32 %v18718_v34, %v6968_v25  ;;  %v16728_v25 = vld [vmem:[#allocation10 + $0xc8] sm:$0xff]  }
 0x3d3   :  { %15278 = vmatmul.mubr.msk.bf16.gmra.mrb[140].mxu0 %vm589_vm0, %v16676_v24  ;;  %15383 = vmatprep.subr.bf16.mxu0 %v16728_v25 }
 0x3d4   :  { %15281 = vmatprep.mubr.msk.bf16.mxu0 %vm589_vm0, %v16679_v59  ;;  %15384 = vmatpush3.bf16.msra.mxu0 %v16728_v25  ;;  %v16708_v25 = vld [vmem:[#allocation5 + $0x738] sm:$0xff]  }
 0x3d6   :  { %v15451_v16 = vpop.f32.mrb[60].mxu1 }
 0x3d7   :  { %v18742_v6 = vmax.f32 %v7366_v27, %v15451_v16  ;;  %v6981_v43 = vpop.f32.mrb[61].mxu1  ;;  %v16696_v16 = vld [vmem:[#allocation5 + $0x6d8] sm:$0xff]  }
 0x3d8   :  { %v18744_v36 = vmax.f32 %v7364_v49, %v6981_v43  ;;  %v15452_v4 = vpop.f32.mrb[62].mxu1  ;;  %v16697_v43 = vld [vmem:[#allocation5 + $0x6e0] sm:$0xff]  }
 0x3d9   :  { %v18746_v18 = vmax.f32 %v7367_v60, %v15452_v4  ;;  %v6984_v5 = vpop.f32.mrb[63].mxu1  ;;  %v16690_v60 = vld [vmem:[#allocation5 + $0x6a8] sm:$0xff]  }
 0x3da   :  { %v18748_v51 = vmax.f32 %v7365_v26, %v6984_v5 }
 0x3db   :  { %15282 = vmatmul.mubr.msk.bf16.gmra.mrb[144].mxu0 %vm589_vm0, %v16680_v13 }
 0x3dc   :  { %15285 = vmatprep.mubr.msk.bf16.mxu0 %vm589_vm0, %v16683_v19 }
 0x3de   :  { %v15455_v31 = vpop.f32.mrb[64].mxu1 }
 0x3df   :  { %v18752_v44 = vmax.f32 %v7370_v32, %v15455_v31  ;;  %v6997_v39 = vpop.f32.mrb[65].mxu1  ;;  %v16698_v31 = vld [vmem:[#allocation5 + $0x6e8] sm:$0xff]  }
 0x3e0   :  { %v18754_v22 = vmax.f32 %v7368_v30, %v6997_v39  ;;  %v15456_v54 = vpop.f32.mrb[66].mxu1  ;;  %v16699_v39 = vld [vmem:[#allocation5 + $0x6f0] sm:$0xff]  }
 0x3e1   :  { %v18756_v3 = vmax.f32 %v7371_v23, %v15456_v54  ;;  %v7000_v1 = vpop.f32.mrb[67].mxu1 }
 0x3e2   :  { %v18758_v38 = vmax.f32 %v7369_v0, %v7000_v1 }
 0x3e3   :  { %15286 = vmatmul.mubr.msk.bf16.gmra.mrb[148].mxu0 %vm589_vm0, %v16684_v20 }
 0x3e4   :  { %15289 = vmatprep.mubr.msk.bf16.mxu0 %vm589_vm0, %v16687_v15 }
 0x3e6   :  { %v15459_v10 = vpop.f32.mrb[68].mxu1 }
 0x3e7   :  { %v18762_v48 = vmax.f32 %v7374_v28, %v15459_v10  ;;  %v7013_v34 = vpop.f32.mrb[69].mxu1 }
 0x3e8   :  { %v18764_v47 = vmax.f32 %v7372_v7, %v7013_v34  ;;  %v15460_v8 = vpop.f32.mrb[70].mxu1 }
 0x3e9   :  { %v18766_v27 = vmax.f32 %v7375_v50, %v15460_v8  ;;  %v7016_v58 = vpop.f32.mrb[71].mxu1 }
 0x3ea   :  { %v18768_v49 = vmax.f32 %v7373_v40, %v7016_v58  ;;  %v16694_v40 = vld [vmem:[#allocation5 + $0x6c8] sm:$0xff]  }
 0x3eb   :  { %15290 = vmatmul.mubr.msk.bf16.gmra.mrb[152].mxu0 %vm589_vm0, %v16688_v61 }
 0x3ec   :  { %15293 = vmatprep.mubr.msk.bf16.mxu0 %vm589_vm0, %v16689_v41 }
 0x3ee   :  { %v15463_v21 = vpop.f32.mrb[72].mxu1 }
 0x3ef   :  { %v18772_v53 = vmax.f32 %v7378_v9, %v15463_v21  ;;  %v7029_v26 = vpop.f32.mrb[73].mxu1  ;;  %v16695_v9 = vld [vmem:[#allocation5 + $0x6d0] sm:$0xff]  }
 0x3f0   :  { %v18774_v32 = vmax.f32 %v7376_v33, %v7029_v26  ;;  %v15464_v29 = vpop.f32.mrb[74].mxu1 }
 0x3f1   :  { %v18776_v30 = vmax.f32 %v7379_v12, %v15464_v29  ;;  %v7032_v57 = vpop.f32.mrb[75].mxu1 }
 0x3f2   :  { %v18778_v23 = vmax.f32 %v7377_v11, %v7032_v57  ;;  %v16735_v57 = vld [vmem:[#allocation10 + $0xd0] sm:$0xff]  }
 0x3f3   :  { %15294 = vmatmul.mubr.msk.bf16.gmra.mrb[156].mxu0 %vm589_vm0, %v16690_v60  ;;  %15385 = vmatprep.subr.bf16.mxu0 %v16735_v57 }
 0x3f4   :  { %15297 = vmatprep.mubr.msk.bf16.mxu0 %vm589_vm0, %v16691_v17  ;;  %15386 = vmatpush3.bf16.msra.mxu0 %v16735_v57  ;;  %v16716_v57 = vld [vmem:[#allocation5 + $0x778] sm:$0xff]  }
 0x3f6   :  { %v15467_v62 = vpop.f32.mrb[76].mxu1 }
 0x3f7   :  { %v7398_v0 = vmax.f32 %v18742_v6, %v15467_v62  ;;  %v7045_v56 = vpop.f32.mrb[77].mxu1  ;;  %v16704_v62 = vld [vmem:[#allocation5 + $0x718] sm:$0xff]  }
 0x3f8   :  { %v7396_v28 = vmax.f32 %v18744_v36, %v7045_v56  ;;  %v15468_v14 = vpop.f32.mrb[78].mxu1  ;;  %v16705_v56 = vld [vmem:[#allocation5 + $0x720] sm:$0xff]  }
 0x3f9   :  { %v7399_v7 = vmax.f32 %v18746_v18, %v15468_v14  ;;  %v7048_v45 = vpop.f32.mrb[79].mxu1 }
 0x3fa   :  { %v7397_v50 = vmax.f32 %v18748_v51, %v7048_v45 }
 0x3fb   :  { %15298 = vmatmul.mubr.msk.bf16.gmra.mrb[160].mxu0 %vm589_vm0, %v16692_v42 }
 0x3fc   :  { %15301 = vmatprep.mubr.msk.bf16.mxu0 %vm589_vm0, %v16693_v37 }
 0x3fe   :  { %v15471_v2 = vpop.f32.mrb[80].mxu1 }
 0x3ff   :  { %v7402_v35 = vmax.f32 %v18752_v44, %v15471_v2  ;;  %v7061_v24 = vpop.f32.mrb[81].mxu1  ;;  %v16706_v2 = vld [vmem:[#allocation5 + $0x728] sm:$0xff]  }
 0x400   :  { %v7400_v46 = vmax.f32 %v18754_v22, %v7061_v24  ;;  %v15472_v59 = vpop.f32.mrb[82].mxu1  ;;  %v16707_v24 = vld [vmem:[#allocation5 + $0x730] sm:$0xff]  }
 0x401   :  { %v7403_v33 = vmax.f32 %v18756_v3, %v15472_v59  ;;  %v7064_v52 = vpop.f32.mrb[83].mxu1 }
 0x402   :  { %v7401_v12 = vmax.f32 %v18758_v38, %v7064_v52 }
 0x403   :  { %15302 = vmatmul.mubr.msk.bf16.gmra.mrb[164].mxu0 %vm589_vm0, %v16694_v40 }
 0x404   :  { %15305 = vmatprep.mubr.msk.bf16.mxu0 %vm589_vm0, %v16695_v9 }
 0x406   :  { %v15475_v11 = vpop.f32.mrb[84].mxu1 }
 0x407   :  { %v7406_v13 = vmax.f32 %v18762_v48, %v15475_v11  ;;  %v7077_v6 = vpop.f32.mrb[85].mxu1  ;;  %v16701_v48 = vld [vmem:[#allocation5 + $0x700] sm:$0xff]  }
 0x408   :  { %v7404_v19 = vmax.f32 %v18764_v47, %v7077_v6  ;;  %v15476_v36 = vpop.f32.mrb[86].mxu1 }
 0x409   :  { %v7407_v4 = vmax.f32 %v18766_v27, %v15476_v36  ;;  %v7080_v18 = vpop.f32.mrb[87].mxu1 }
 0x40a   :  { %v7405_v5 = vmax.f32 %v18768_v49, %v7080_v18  ;;  %v16702_v49 = vld [vmem:[#allocation5 + $0x708] sm:$0xff]  }
 0x40b   :  { %15306 = vmatmul.mubr.msk.bf16.gmra.mrb[168].mxu0 %vm589_vm0, %v16696_v16 }
 0x40c   :  { %15309 = vmatprep.mubr.msk.bf16.mxu0 %vm589_vm0, %v16697_v43 }
 0x40e   :  { %v15479_v51 = vpop.f32.mrb[88].mxu1 }
 0x40f   :  { %v7410_v20 = vmax.f32 %v18772_v53, %v15479_v51  ;;  %v7093_v44 = vpop.f32.mrb[89].mxu1  ;;  %v16703_v53 = vld [vmem:[#allocation5 + $0x710] sm:$0xff]  }
 0x410   :  { %v7408_v15 = vmax.f32 %v18774_v32, %v7093_v44  ;;  %v15480_v22 = vpop.f32.mrb[90].mxu1 }
 0x411   :  { %v7411_v54 = vmax.f32 %v18776_v30, %v15480_v22  ;;  %v7096_v3 = vpop.f32.mrb[91].mxu1 }
 0x412   :  { %v7409_v1 = vmax.f32 %v18778_v23, %v7096_v3  ;;  %v16736_v3 = vld [vmem:[#allocation10 + $0xd8] sm:$0xff]  }
 0x413   :  { %15310 = vmatmul.mubr.msk.bf16.gmra.mrb[172].mxu0 %vm589_vm0, %v16698_v31  ;;  %15387 = vmatprep.subr.bf16.mxu0 %v16736_v3 }
 0x414   :  { %15313 = vmatprep.mubr.msk.bf16.mxu0 %vm589_vm0, %v16699_v39  ;;  %15388 = vmatpush3.bf16.msra.mxu0 %v16736_v3  ;;  %v16740_v3 = vld [vmem:[#allocation5 + $0xc10] sm:$0xff]  }
 0x416   :  { %v15483_v38 = vpop.f32.mrb[92].mxu1 }
 0x417   :  { %v18806_v10 = vmax.f32 %v7398_v0, %v15483_v38  ;;  %v7109_v61 = vpop.f32.mrb[93].mxu1  ;;  %v16712_v38 = vld [vmem:[#allocation5 + $0x758] sm:$0xff]  }
 0x418   :  { %v18808_v34 = vmax.f32 %v7396_v28, %v7109_v61  ;;  %v15484_v41 = vpop.f32.mrb[94].mxu1  ;;  %v16713_v61 = vld [vmem:[#allocation5 + $0x760] sm:$0xff]  }
 0x419   :  { %v18810_v47 = vmax.f32 %v7399_v7, %v15484_v41  ;;  %v7112_v8 = vpop.f32.mrb[95].mxu1 }
 0x41a   :  { %v18812_v27 = vmax.f32 %v7397_v50, %v7112_v8 }
 0x41b   :  { %15314 = vmatmul.mubr.msk.bf16.gmra.mrb[176].mxu0 %vm589_vm0, %v16700_v55 }
 0x41c   :  { %15317 = vmatprep.mubr.msk.bf16.mxu0 %vm589_vm0, %v16701_v48 }
 0x41e   :  { %v15487_v58 = vpop.f32.mrb[96].mxu1 }
 0x41f   :  { %v18816_v21 = vmax.f32 %v7402_v35, %v15487_v58  ;;  %v7125_v60 = vpop.f32.mrb[97].mxu1  ;;  %v16714_v58 = vld [vmem:[#allocation5 + $0x768] sm:$0xff]  }
 0x420   :  { %v18818_v26 = vmax.f32 %v7400_v46, %v7125_v60  ;;  %v15488_v17 = vpop.f32.mrb[98].mxu1  ;;  %v16715_v60 = vld [vmem:[#allocation5 + $0x770] sm:$0xff]  }
 0x421   :  { %v18820_v32 = vmax.f32 %v7403_v33, %v15488_v17  ;;  %v7128_v29 = vpop.f32.mrb[99].mxu1 }
 0x422   :  { %v18822_v30 = vmax.f32 %v7401_v12, %v7128_v29 }
 0x423   :  { %15318 = vmatmul.mubr.msk.bf16.gmra.mrb[180].mxu0 %vm589_vm0, %v16702_v49 }
 0x424   :  { %15321 = vmatprep.mubr.msk.bf16.mxu0 %vm589_vm0, %v16703_v53 }
 0x426   :  { %v15491_v23 = vpop.f32.mrb[100].mxu1 }
 0x427   :  { %v18826_v42 = vmax.f32 %v7406_v13, %v15491_v23  ;;  %v7141_v0 = vpop.f32.mrb[101].mxu1  ;;  %v16709_v13 = vld [vmem:[#allocation5 + $0x740] sm:$0xff]  }
 0x428   :  { %v18828_v37 = vmax.f32 %v7404_v19, %v7141_v0  ;;  %v15492_v28 = vpop.f32.mrb[102].mxu1 }
 0x429   :  { %v18830_v14 = vmax.f32 %v7407_v4, %v15492_v28  ;;  %v7144_v7 = vpop.f32.mrb[103].mxu1 }
 0x42a   :  { %v18832_v45 = vmax.f32 %v7405_v5, %v7144_v7  ;;  %v16710_v5 = vld [vmem:[#allocation5 + $0x748] sm:$0xff]  }
 0x42b   :  { %15322 = vmatmul.mubr.msk.bf16.gmra.mrb[184].mxu0 %vm589_vm0, %v16704_v62 }
 0x42c   :  { %15325 = vmatprep.mubr.msk.bf16.mxu0 %vm589_vm0, %v16705_v56 }
 0x42e   :  { %v15495_v50 = vpop.f32.mrb[104].mxu1 }
 0x42f   :  { %v18836_v40 = vmax.f32 %v7410_v20, %v15495_v50  ;;  %v7157_v35 = vpop.f32.mrb[105].mxu1  ;;  %v16711_v20 = vld [vmem:[#allocation5 + $0x750] sm:$0xff]  }
 0x430   :  { %v18838_v9 = vmax.f32 %v7408_v15, %v7157_v35  ;;  %v15496_v46 = vpop.f32.mrb[106].mxu1 }
 0x431   :  { %v18840_v59 = vmax.f32 %v7411_v54, %v15496_v46  ;;  %v7160_v33 = vpop.f32.mrb[107].mxu1 }
 0x432   :  { %v18842_v52 = vmax.f32 %v7409_v1, %v7160_v33  ;;  %v16737_v33 = vld [vmem:[#allocation10 + $0xe0] sm:$0xff]  }
 0x433   :  { %15326 = vmatmul.mubr.msk.bf16.gmra.mrb[188].mxu0 %vm589_vm0, %v16706_v2  ;;  %15389 = vmatprep.subr.bf16.mxu0 %v16737_v33 }
 0x434   :  { %15329 = vmatprep.mubr.msk.bf16.mxu0 %vm589_vm0, %v16707_v24  ;;  %15390 = vmatpush3.bf16.msra.mxu0 %v16737_v33 }
 0x436   :  { %v15499_v12 = vpop.f32.mrb[108].mxu1 }
 0x437   :  { %v7430_v11 = vmax.f32 %v18806_v10, %v15499_v12  ;;  %v7173_v16 = vpop.f32.mrb[109].mxu1  ;;  %v16721_v12 = vld [vmem:[#allocation5 + $0x798] sm:$0xff]  }
 0x438   :  { %v7428_v6 = vmax.f32 %v18808_v34, %v7173_v16  ;;  %v15500_v43 = vpop.f32.mrb[110].mxu1  ;;  %v16722_v16 = vld [vmem:[#allocation5 + $0x7a0] sm:$0xff]  }
 0x439   :  { %v7431_v19 = vmax.f32 %v18810_v47, %v15500_v43  ;;  %v7176_v36 = vpop.f32.mrb[111].mxu1 }
 0x43a   :  { %v7429_v4 = vmax.f32 %v18812_v27, %v7176_v36  ;;  %v16738_v36 = vld [vmem:[#allocation5 + $0xc00] sm:$0xff]  }
 0x43b   :  { %15330 = vmatmul.mubr.msk.bf16.gmra.mrb[192].mxu0 %vm589_vm0, %v16708_v25  ;;  %15745 = vmatprep.mubr.msk.bf16.mxu1 %vm589_vm0, %v16738_v36 }
 0x43c   :  { %15333 = vmatprep.mubr.msk.bf16.mxu0 %vm589_vm0, %v16709_v13 }
 0x43e   :  { %v15503_v18 = vpop.f32.mrb[112].mxu1 }
 0x43f   :  { %v7434_v51 = vmax.f32 %v18816_v21, %v15503_v18  ;;  %v7189_v31 = vpop.f32.mrb[113].mxu1  ;;  %v16739_v18 = vld [vmem:[#allocation5 + $0xc08] sm:$0xff]  }
 0x440   :  { %v7432_v44 = vmax.f32 %v18818_v26, %v7189_v31  ;;  %v15504_v39 = vpop.f32.mrb[114].mxu1  ;;  %15746 = vmatmul.mubr.msk.bf16.vlgmr.msra.gmra.mrb[156].mxu1 %vm589_vm0, %v16739_v18  ;;  %v16744_v18 = vld [vmem:[#allocation10 + $0xe8] sm:$0xff]  }
 0x441   :  { %v7435_v15 = vmax.f32 %v18820_v32, %v15504_v39  ;;  %v7192_v22 = vpop.f32.mrb[115].mxu1  ;;  %15749 = vmatprep.mubr.msk.bf16.mxu1 %vm589_vm0, %v16740_v3  ;;  %15391 = vmatprep.subr.bf16.mxu0 %v16744_v18 }
 0x442   :  { %v7433_v54 = vmax.f32 %v18822_v30, %v7192_v22  ;;  %15392 = vmatpush3.bf16.msra.mxu0 %v16744_v18 }
 0x443   :  { %15334 = vmatmul.mubr.msk.bf16.gmra.mrb[196].mxu0 %vm589_vm0, %v16710_v5 }
 0x444   :  { %15337 = vmatprep.mubr.msk.bf16.mxu0 %vm589_vm0, %v16711_v20 }
 0x446   :  { %v15507_v1 = vpop.f32.mrb[116].mxu1 }
 0x447   :  { %v7438_v55 = vmax.f32 %v18826_v42, %v15507_v1  ;;  %v7205_v10 = vpop.f32.mrb[117].mxu1  ;;  %v16717_v42 = vld [vmem:[#allocation5 + $0x780] sm:$0xff]  }
 0x448   :  { %v7436_v48 = vmax.f32 %v18828_v37, %v7205_v10  ;;  %v15508_v34 = vpop.f32.mrb[118].mxu1 }
 0x449   :  { %v7439_v41 = vmax.f32 %v18830_v14, %v15508_v34  ;;  %v7208_v47 = vpop.f32.mrb[119].mxu1 }
 0x44a   :  { %v7437_v8 = vmax.f32 %v18832_v45, %v7208_v47  ;;  %v16718_v45 = vld [vmem:[#allocation5 + $0x788] sm:$0xff]  }
 0x44b   :  { %15338 = vmatmul.mubr.msk.bf16.gmra.mrb[200].mxu0 %vm589_vm0, %v16712_v38  ;;  %v16741_v38 = vld [vmem:[#allocation5 + $0xc18] sm:$0xff]  }
 0x44c   :  { %15341 = vmatprep.mubr.msk.bf16.mxu0 %vm589_vm0, %v16713_v61  ;;  %15750 = vmatmul.mubr.msk.bf16.gmra.mrb[160].mxu1 %vm589_vm0, %v16741_v38  ;;  %v16730_v38 = vld [vmem:[#allocation5 + $0x7d8] sm:$0xff]  }
 0x44e   :  { %v15511_v27 = vpop.f32.mrb[120].mxu1 }
 0x44f   :  { %v7442_v49 = vmax.f32 %v18836_v40, %v15511_v27  ;;  %v7221_v21 = vpop.f32.mrb[121].mxu1  ;;  %v16720_v40 = vld [vmem:[#allocation5 + $0x790] sm:$0xff]  }
 0x450   :  { %v7440_v53 = vmax.f32 %v18838_v9, %v7221_v21  ;;  %v15512_v26 = vpop.f32.mrb[122].mxu1 }
 0x451   :  { %v7443_v17 = vmax.f32 %v18840_v59, %v15512_v26  ;;  %v7224_v32 = vpop.f32.mrb[123].mxu1  ;;  %v16742_v26 = vld [vmem:[#allocation5 + $0xc20] sm:$0xff]  }
 0x452   :  { %v7441_v29 = vmax.f32 %v18842_v52, %v7224_v32  ;;  %15753 = vmatprep.mubr.msk.bf16.mxu1 %vm589_vm0, %v16742_v26 }
 0x453   :  { %15342 = vmatmul.mubr.msk.bf16.gmra.mrb[204].mxu0 %vm589_vm0, %v16714_v58 }
 0x454   :  { %15345 = vmatprep.mubr.msk.bf16.mxu0 %vm589_vm0, %v16715_v60 }
 0x456   :  { %v15515_v30 = vpop.f32.mrb[124].mxu1 }
 0x457   :  { %v18870_v23 = vmax.f32 %v7430_v11, %v15515_v30  ;;  %v7237_v62 = vpop.f32.mrb[125].mxu1 }
 0x458   :  { %v18872_v0 = vmax.f32 %v7428_v6, %v7237_v62  ;;  %v15516_v56 = vpop.f32.mrb[126].mxu1 }
 0x459   :  { %v18874_v37 = vmax.f32 %v7431_v19, %v15516_v56  ;;  %v7240_v28 = vpop.f32.mrb[127].mxu1 }
 0x45a   :  { %v18876_v14 = vmax.f32 %v7429_v4, %v7240_v28 }
 0x45b   :  { %15346 = vmatmul.mubr.msk.bf16.gmra.mrb[208].mxu0 %vm589_vm0, %v16716_v57 }
 0x45c   :  { %15349 = vmatprep.mubr.msk.bf16.mxu0 %vm589_vm0, %v16717_v42 }
 0x45e   :  { %v15519_v7 = vpop.f32.mrb[128].mxu1 }
 0x45f   :  { %v18880_v50 = vmax.f32 %v7434_v51, %v15519_v7  ;;  %v7253_v2 = vpop.f32.mrb[129].mxu1  ;;  %v16723_v51 = vld [vmem:[#allocation5 + $0x7a8] sm:$0xff]  }
 0x460   :  { %v18882_v35 = vmax.f32 %v7432_v44, %v7253_v2  ;;  %v15520_v24 = vpop.f32.mrb[130].mxu1  ;;  %v16724_v44 = vld [vmem:[#allocation5 + $0x7b0] sm:$0xff]  }
 0x461   :  { %v18884_v9 = vmax.f32 %v7435_v15, %v15520_v24  ;;  %v7256_v46 = vpop.f32.mrb[131].mxu1  ;;  %v16729_v24 = vld [vmem:[#allocation5 + $0x7d0] sm:$0xff]  }
 0x462   :  { %v18886_v59 = vmax.f32 %v7433_v54, %v7256_v46 }
 0x463   :  { %15350 = vmatmul.mubr.msk.bf16.gmra.mrb[212].mxu0 %vm589_vm0, %v16718_v45 }
 0x464   :  { %15353 = vmatprep.mubr.msk.bf16.mxu0 %vm589_vm0, %v16720_v40 }
 0x466   :  { %v15523_v52 = vpop.f32.mrb[132].mxu1 }
 0x467   :  { %v18890_v25 = vmax.f32 %v7438_v55, %v15523_v52  ;;  %v7269_v11 = vpop.f32.mrb[133].mxu1 }
 0x468   :  { %v18892_v13 = vmax.f32 %v7436_v48, %v7269_v11  ;;  %v15524_v6 = vpop.f32.mrb[134].mxu1  ;;  %v16725_v48 = vld [vmem:[#allocation5 + $0x7b8] sm:$0xff]  }
 0x469   :  { %v18894_v43 = vmax.f32 %v7439_v41, %v15524_v6  ;;  %v7272_v19 = vpop.f32.mrb[135].mxu1 }
 0x46a   :  { %v18896_v4 = vmax.f32 %v7437_v8, %v7272_v19  ;;  %v16726_v8 = vld [vmem:[#allocation5 + $0x7c0] sm:$0xff]   ;;  %v16745_v19 = vld [vmem:[#allocation5 + $0xc30] sm:$0xff]  }
 0x46b   :  { %15354 = vmatmul.mubr.msk.bf16.gmra.mrb[216].mxu0 %vm589_vm0, %v16721_v12 }
 0x46c   :  { %15357 = vmatprep.mubr.msk.bf16.mxu0 %vm589_vm0, %v16722_v16 }
 0x46e   :  { %v15527_v5 = vpop.f32.mrb[136].mxu1 }
 0x46f   :  { %v18902_v31 = vmax.f32 %v7442_v49, %v15527_v5  ;;  %v7285_v20 = vpop.f32.mrb[137].mxu1  ;;  %v16746_v5 = vld [vmem:[#allocation5 + $0xc38] sm:$0xff]  }
 0x470   :  { %v18904_v39 = vmax.f32 %v7440_v53, %v7285_v20  ;;  %v15528_v15 = vpop.f32.mrb[138].mxu1 }
 0x471   :  { %v18906_v22 = vmax.f32 %v7443_v17, %v15528_v15  ;;  %v7288_v54 = vpop.f32.mrb[139].mxu1 }
 0x472   :  { %v18908_v1 = vmax.f32 %v7441_v29, %v7288_v54  ;;  %v16743_v29 = vld [vmem:[#allocation5 + $0xc28] sm:$0xff]  }
 0x473   :  { %15358 = vmatmul.mubr.msk.bf16.gmra.mrb[220].mxu0 %vm589_vm0, %v16723_v51  ;;  %15754 = vmatmul.mubr.msk.bf16.gmra.mrb[164].mxu1 %vm589_vm0, %v16743_v29 }
 0x474   :  { %15361 = vmatprep.mubr.msk.bf16.mxu0 %vm589_vm0, %v16724_v44  ;;  %15757 = vmatprep.mubr.msk.bf16.mxu1 %vm589_vm0, %v16745_v19 }
 0x476   :  { %v18914_v55 = vpop.f32.mrb[116].mxu0  ;;  %v15531_v10 = vpop.f32.mrb[140].mxu1 }
 0x477   :  { %v18916_v61 = vpop.f32.mrb[117].mxu0  ;;  %v7462_v34 = vmax.f32 %v18870_v23, %v15531_v10  ;;  %v7301_v41 = vpop.f32.mrb[141].mxu1 }
 0x478   :  { %v18919_v47 = vpop.f32.mrb[118].mxu0  ;;  %v7460_v27 = vmax.f32 %v18872_v0, %v7301_v41  ;;  %v15532_v58 = vpop.f32.mrb[142].mxu1 }
 0x479   :  { %v18922_v49 = vpop.f32.mrb[119].mxu0  ;;  %v7478_v21 = vadd.f32 %v18650_v63, %v7462_v34  ;;  %v7463_v60 = vmax.f32 %v18874_v37, %v15532_v58  ;;  %v7304_v53 = vpop.f32.mrb[143].mxu1 }
 0x47a   :  { %v7476_v17 = vadd.f32 %v18650_v63, %v7460_v27  ;;  %v7461_v32 = vmax.f32 %v18876_v14, %v7304_v53  ;;  %v16727_v14 = vld [vmem:[#allocation5 + $0x7c8] sm:$0xff]  }
 0x47b   :  { %15362 = vmatmul.mubr.msk.bf16.gmra.mrb[224].mxu0 %vm589_vm0, %v16725_v48  ;;  %v7494_v30 = vmax.f32 %v7478_v21, 0.0  ;;  %v7479_v57 = vadd.f32 %v18650_v63, %v7463_v60  ;;  %15758 = vmatmul.mubr.msk.bf16.gmra.mrb[168].mxu1 %vm589_vm0, %v16746_v5  ;;  %v16749_v5 = vld [vmem:[#allocation5 + $0xc50] sm:$0xff]  }
 0x47c   :  { %15365 = vmatprep.mubr.msk.bf16.mxu0 %vm589_vm0, %v16726_v8  ;;  %v7492_v23 = vmax.f32 %v7476_v17, 0.0  ;;  %v7477_v62 = vadd.f32 %v18650_v63, %v7461_v32  ;;  %v16731_v8 = vld [vmem:[#allocation5 + $0x7e0] sm:$0xff]  }
 0x47d   :  { %v7495_v42 = vmax.f32 %v7479_v57, 0.0  ;;  %v16747_v32 = vld [vmem:[#allocation5 + $0xc40] sm:$0xff]  }
 0x47e   :  { %v18934_v0 = vpop.f32.mrb[120].mxu0  ;;  %v7493_v56 = vmax.f32 %v7477_v62, 0.0  ;;  %v15535_v37 = vpop.f32.mrb[144].mxu1  ;;  %15761 = vmatprep.mubr.msk.bf16.mxu1 %vm589_vm0, %v16747_v32 }
 0x47f   :  { %v18936_v28 = vpop.f32.mrb[121].mxu0  ;;  %v18938_v7 = vpack.c.bf16 %v7495_v42, %v7494_v30  ;;  %v7466_v45 = vmax.f32 %v18880_v50, %v15535_v37  ;;  %v7317_v2 = vpop.f32.mrb[145].mxu1  ;;  %v16748_v30 = vld [vmem:[#allocation5 + $0xc48] sm:$0xff]  }
 0x480   :  { %v18941_v40 = vpop.f32.mrb[122].mxu0  ;;  %v7464_v46 = vmax.f32 %v18882_v35, %v7317_v2  ;;  %v15536_v33 = vpop.f32.mrb[146].mxu1  ;;  %v18944_v52 = vpack.c.bf16 %v7493_v56, %v7492_v23 }
 0x481   :  { %v18946_v12 = vpop.f32.mrb[123].mxu0  ;;  %v7482_v11 = vadd.f32 %v18650_v63, %v7466_v45  ;;  %v7467_v16 = vmax.f32 %v18884_v9, %v15536_v33  ;;  %v7320_v6 = vpop.f32.mrb[147].mxu1  ;;  %v16733_v33 = vld [vmem:[#allocation5 + $0x7f0] sm:$0xff]  }
 0x482   :  { %v7480_v36 = vadd.f32 %v18650_v63, %v7464_v46  ;;  %v7465_v50 = vmax.f32 %v18886_v59, %v7320_v6 }
 0x483   :  { %15366 = vmatmul.mubr.msk.bf16.gmra.mrb[228].mxu0 %vm589_vm0, %v16727_v14  ;;  %v7498_v35 = vmax.f32 %v7482_v11, 0.0  ;;  %v7483_v51 = vadd.f32 %v18650_v63, %v7467_v16  ;;  %15762 = vmatmul.mubr.msk.bf16.gmra.mrb[172].mxu1 %vm589_vm0, %v16748_v30  ;;  %v16732_v14 = vld [vmem:[#allocation5 + $0x7e8] sm:$0xff]  }
 0x484   :  { %15369 = vmatprep.mubr.msk.bf16.mxu0 %vm589_vm0, %v16729_v24  ;;  %v7496_v20 = vmax.f32 %v7480_v36, 0.0  ;;  %v7481_v9 = vadd.f32 %v18650_v63, %v7465_v50  ;;  %15765 = vmatprep.mubr.msk.bf16.mxu1 %vm589_vm0, %v16749_v5 }
 0x485   :  { %v7499_v44 = vmax.f32 %v7483_v51, 0.0  ;;  %v16750_v51 = vld [vmem:[#allocation5 + $0xc58] sm:$0xff]  }
 0x486   :  { %v18958_v59 = vpop.f32.mrb[124].mxu0  ;;  %v7497_v15 = vmax.f32 %v7481_v9, 0.0  ;;  %v15539_v54 = vpop.f32.mrb[148].mxu1 }
 0x487   :  { %v18960_v3 = vpop.f32.mrb[125].mxu0  ;;  %v7470_v10 = vmax.f32 %v18890_v25, %v15539_v54  ;;  %v7333_v48 = vpop.f32.mrb[149].mxu1  ;;  %v18963_v34 = vpack.c.bf16 %v7499_v44, %v7498_v35 }
 0x488   :  { %v18965_v41 = vpop.f32.mrb[126].mxu0  ;;  %v7468_v27 = vmax.f32 %v18892_v13, %v7333_v48  ;;  %v15540_v58 = vpop.f32.mrb[150].mxu1  ;;  %v18968_v21 = vpack.c.bf16 %v7497_v15, %v7496_v20 }
 0x489   :  { %v18970_v60 = vpop.f32.mrb[127].mxu0  ;;  %v7486_v53 = vadd.f32 %v18650_v63, %v7470_v10  ;;  %v7471_v26 = vmax.f32 %v18894_v43, %v15540_v58  ;;  %v7336_v17 = vpop.f32.mrb[151].mxu1  ;;  %v16734_v10 = vld [vmem:[#allocation5 + $0x7f8] sm:$0xff]  }
 0x48a   :  { %v7484_v25 = vadd.f32 %v18650_v63, %v7468_v27  ;;  %v7469_v29 = vmax.f32 %v18896_v4, %v7336_v17  ;;  %v16751_v17 = vld [vmem:[#allocation5 + $0xc60] sm:$0xff]  }
 0x48b   :  { %15370 = vmatmul.mubr.msk.bf16.gmra.mrb[232].mxu0 %vm589_vm0, %v16730_v38  ;;  %v7502_v57 = vmax.f32 %v7486_v53, 0.0  ;;  %v7487_v13 = vadd.f32 %v18650_v63, %v7471_v26  ;;  %15766 = vmatmul.mubr.msk.bf16.gmra.mrb[176].mxu1 %vm589_vm0, %v16750_v51 }
 0x48c   :  { %15373 = vmatprep.mubr.msk.bf16.mxu0 %vm589_vm0, %v16731_v8  ;;  %v7500_v23 = vmax.f32 %v7484_v25, 0.0  ;;  %v7485_v62 = vadd.f32 %v18650_v63, %v7469_v29  ;;  %v16752_v25 = vld [vmem:[#allocation5 + $0xc68] sm:$0xff]   ;;  %15769 = vmatprep.mubr.msk.bf16.mxu1 %vm589_vm0, %v16751_v17 }
 0x48d   :  { %v7503_v43 = vmax.f32 %v7487_v13, 0.0 }
 0x48e   :  { %v18982_v42 = vpop.f32.mrb[128].mxu0  ;;  %v7501_v56 = vmax.f32 %v7485_v62, 0.0  ;;  %v15543_v4 = vpop.f32.mrb[152].mxu1  ;;  %v16753_v62 = vld [vmem:[#allocation10 + $0xf0] sm:$0xff]  }
 0x48f   :  { %v18984_v37 = vpop.f32.mrb[129].mxu0  ;;  %v7474_v45 = vmax.f32 %v18902_v31, %v15543_v4  ;;  %v7349_v2 = vpop.f32.mrb[153].mxu1  ;;  %v18987_v24 = vpack.c.bf16 %v7503_v43, %v7502_v57  ;;  %v16755_v43 = vld [vmem:[#allocation5 + $0xc78] sm:$0xff]   ;;  %15393 = vmatprep.subr.bf16.mxu0 %v16753_v62 }
 0x490   :  { %v18989_v46 = vpop.f32.mrb[130].mxu0  ;;  %v7472_v11 = vmax.f32 %v18904_v39, %v7349_v2  ;;  %v15544_v16 = vpop.f32.mrb[154].mxu1  ;;  %v18992_v6 = vpack.c.bf16 %v7501_v56, %v7500_v23  ;;  %v19001_v39 = vld [vmem:[#allocation9] ss:$0 sm:$0xff]  ;;  %15394 = vmatpush3.bf16.msra.mxu0 %v16753_v62  ;;  %v16756_v2 = vld [vmem:[#allocation5 + $0xc80] sm:$0xff]  }
 0x491   :  { %v18994_v19 = vpop.f32.mrb[131].mxu0  ;;  %v7490_v36 = vadd.f32 %v18650_v63, %v7474_v45  ;;  %v7475_v50 = vmax.f32 %v18906_v22, %v15544_v16  ;;  %v7352_v18 = vpop.f32.mrb[155].mxu1  ;;  %v16754_v23 = vld [vmem:[#allocation5 + $0xc70] sm:$0xff]  }
 0x492   :  { %v7488_v31 = vadd.f32 %v18650_v63, %v7472_v11  ;;  %v7473_v35 = vmax.f32 %v18908_v1, %v7352_v18 }
 0x493   :  { %15374 = vmatmul.mubr.msk.bf16.gmra.mrb[236].mxu0 %vm589_vm0, %v16732_v14  ;;  %v7506_v20 = vmax.f32 %v7490_v36, 0.0  ;;  %v7491_v9 = vadd.f32 %v19001_v39, %v7475_v50  ;;  %15770 = vmatmul.mubr.msk.bf16.gmra.mrb[180].mxu1 %vm589_vm0, %v16752_v25 }
 0x494   :  { %15377 = vmatprep.mubr.msk.bf16.mxu0 %vm589_vm0, %v16733_v33  ;;  %v7504_v44 = vmax.f32 %v7488_v31, 0.0  ;;  %v7489_v22 = vadd.f32 %v19001_v39, %v7473_v35  ;;  %15773 = vmatprep.mubr.msk.bf16.mxu1 %vm589_vm0, %v16754_v23  ;;  %v16757_v33 = vld [vmem:[#allocation5 + $0xc88] sm:$0xff]   ;;  %v16759_v31 = vld [vmem:[#allocation5 + $0xc98] sm:$0xff]  }
 0x495   :  { %v7507_v15 = vmax.f32 %v7491_v9, 0.0 }
 0x496   :  { %v15271_v63 = vpop.f32.mrb[132].mxu0  ;;  %v7505_v1 = vmax.f32 %v7489_v22, 0.0  ;;  %v16761_v22 = vld [vmem:[#allocation5 + $0xca8] sm:$0xff]  }
 0x497   :  { %v5850_v54 = vmax.f32 %v18914_v55, %v15271_v63  ;;  %v5401_v38 = vpop.f32.mrb[133].mxu0  ;;  %v19009_v48 = vpack.c.bf16 %v7507_v15, %v7506_v20 }
 0x498   :  { %v5848_v8 = vmax.f32 %v18916_v61, %v5401_v38  ;;  %v15272_v27 = vpop.f32.mrb[134].mxu0  ;;  %v19012_v58 = vpack.c.bf16 %v7505_v1, %v7504_v44 }
 0x499   :  { %v5851_v53 = vmax.f32 %v18919_v47, %v15272_v27  ;;  %v5404_v26 = vpop.f32.mrb[135].mxu0 }
 0x49a   :  { %v5849_v32 = vmax.f32 %v18922_v49, %v5404_v26  ;;  %v16764_v26 = vld [vmem:[#allocation5 + $0xcb8] sm:$0xff]  }
 0x49b   :  { %15378 = vmatmul.mubr.msk.bf16.gmra.mrb[240].mxu0 %vm589_vm0, %v16734_v10  ;;  %15774 = vmatmul.mubr.msk.bf16.gmra.mrb[184].mxu1 %vm589_vm0, %v16755_v43 }
 0x49c   :  { %15777 = vmatprep.mubr.msk.bf16.mxu1 %vm589_vm0, %v16756_v2 }
 0x49e   :  { %v15275_v55 = vpop.f32.mrb[136].mxu0 }
 0x49f   :  { %v5854_v29 = vmax.f32 %v18934_v0, %v15275_v55  ;;  %v5417_v61 = vpop.f32.mrb[137].mxu0 }
 0x4a0   :  { %v5852_v30 = vmax.f32 %v18936_v28, %v5417_v61  ;;  %v15276_v57 = vpop.f32.mrb[138].mxu0 }
 0x4a1   :  { %v5855_v47 = vmax.f32 %v18941_v40, %v15276_v57  ;;  %v5420_v13 = vpop.f32.mrb[139].mxu0  ;;  %v16765_v57 = vld [vmem:[#allocation5 + $0xcc0] sm:$0xff]  }
 0x4a2   :  { %v5853_v49 = vmax.f32 %v18946_v12, %v5420_v13  ;;  %v16766_v13 = vld [vmem:[#allocation5 + $0xcc8] sm:$0xff]  }
 0x4a3   :  { %15778 = vmatmul.mubr.msk.bf16.gmra.mrb[188].mxu1 %vm589_vm0, %v16757_v33 }
 0x4a6   :  { %v15279_v56 = vpop.f32.mrb[140].mxu0 }
 0x4a7   :  { %v5858_v0 = vmax.f32 %v18958_v59, %v15279_v56  ;;  %v5433_v4 = vpop.f32.mrb[141].mxu0 }
 0x4a8   :  { %v5856_v28 = vmax.f32 %v18960_v3, %v5433_v4  ;;  %v15280_v14 = vpop.f32.mrb[142].mxu0 }
 0x4a9   :  { %v5859_v40 = vmax.f32 %v18965_v41, %v15280_v14  ;;  %v5436_v45 = vpop.f32.mrb[143].mxu0  ;;  %v16758_v41 = vld [vmem:[#allocation5 + $0xc90] sm:$0xff]  }
 0x4aa   :  { %v5857_v12 = vmax.f32 %v18970_v60, %v5436_v45  ;;  %15781 = vmatprep.mubr.msk.bf16.mxu1 %vm589_vm0, %v16758_v41 }
 0x4ab   :  { %15782 = vmatmul.mubr.msk.bf16.gmra.mrb[192].mxu1 %vm589_vm0, %v16759_v31 }
 0x4ae   :  { %v15283_v11 = vpop.f32.mrb[144].mxu0 }
 0x4af   :  { %v5862_v16 = vmax.f32 %v18982_v42, %v15283_v11  ;;  %v5449_v36 = vpop.f32.mrb[145].mxu0 }
 0x4b0   :  { %v5860_v59 = vmax.f32 %v18984_v37, %v5449_v36  ;;  %v15284_v50 = vpop.f32.mrb[146].mxu0 }
 0x4b1   :  { %v5863_v3 = vmax.f32 %v18989_v46, %v15284_v50  ;;  %v5452_v18 = vpop.f32.mrb[147].mxu0  ;;  %v16760_v46 = vld [vmem:[#allocation5 + $0xca0] sm:$0xff]  }
 0x4b2   :  { %v5861_v5 = vmax.f32 %v18994_v19, %v5452_v18  ;;  %15785 = vmatprep.mubr.msk.bf16.mxu1 %vm589_vm0, %v16760_v46 }
 0x4b3   :  { %15786 = vmatmul.mubr.msk.bf16.gmra.mrb[196].mxu1 %vm589_vm0, %v16761_v22 }
 0x4b6   :  { %v15287_v60 = vpop.f32.mrb[148].mxu0 }
 0x4b7   :  { %v19037_v35 = vmax.f32 %v5850_v54, %v15287_v60  ;;  %v5465_v51 = vpop.f32.mrb[149].mxu0 }
 0x4b8   :  { %v19039_v42 = vmax.f32 %v5848_v8, %v5465_v51  ;;  %v15288_v20 = vpop.f32.mrb[150].mxu0  ;;  %v16763_v8 = vld [vmem:[#allocation5 + $0xcb0] sm:$0xff]  }
 0x4b9   :  { %v19041_v37 = vmax.f32 %v5851_v53, %v15288_v20  ;;  %v5468_v9 = vpop.f32.mrb[151].mxu0  ;;  %v16762_v53 = vld [vmem:[#allocation10 + $0xf8] sm:$0xff]   ;;  %15789 = vmatprep.mubr.msk.bf16.mxu1 %vm589_vm0, %v16763_v8 }
 0x4ba   :  { %v19043_v44 = vmax.f32 %v5849_v32, %v5468_v9  ;;  %15395 = vmatprep.subr.bf16.mxu0 %v16762_v53  ;;  %v16772_v20 = vld [vmem:[#allocation5 + $0xcf0] sm:$0xff]   ;;  %v16773_v9 = vld [vmem:[#allocation5 + $0xcf8] sm:$0xff]  }
 0x4bb   :  { %15396 = vmatpush3.bf16.msra.mxu0 %v16762_v53  ;;  %15790 = vmatmul.mubr.msk.bf16.gmra.mrb[200].mxu1 %vm589_vm0, %v16764_v26 }
 0x4bc   :  { %15793 = vmatprep.mubr.msk.bf16.mxu1 %vm589_vm0, %v16765_v57 }
 0x4be   :  { %v15291_v19 = vpop.f32.mrb[152].mxu0 }
 0x4bf   :  { %v19047_v15 = vmax.f32 %v5854_v29, %v15291_v19  ;;  %v5481_v63 = vpop.f32.mrb[153].mxu0 }
 0x4c0   :  { %v19049_v1 = vmax.f32 %v5852_v30, %v5481_v63  ;;  %v15292_v54 = vpop.f32.mrb[154].mxu0 }
 0x4c1   :  { %v19051_v38 = vmax.f32 %v5855_v47, %v15292_v54  ;;  %v5484_v10 = vpop.f32.mrb[155].mxu0  ;;  %v16776_v54 = vld [vmem:[#allocation5 + $0xd00] sm:$0xff]  }
 0x4c2   :  { %v19053_v27 = vmax.f32 %v5853_v49, %v5484_v10  ;;  %v16777_v10 = vld [vmem:[#allocation5 + $0xd08] sm:$0xff]  }
 0x4c3   :  { %15794 = vmatmul.mubr.msk.bf16.gmra.mrb[204].mxu1 %vm589_vm0, %v16766_v13 }
 0x4c6   :  { %v15295_v17 = vpop.f32.mrb[156].mxu0 }
 0x4c7   :  { %v19057_v32 = vmax.f32 %v5858_v0, %v15295_v17  ;;  %v5497_v25 = vpop.f32.mrb[157].mxu0 }
 0x4c8   :  { %v19059_v55 = vmax.f32 %v5856_v28, %v5497_v25  ;;  %v15296_v29 = vpop.f32.mrb[158].mxu0  ;;  %v16767_v28 = vld [vmem:[#allocation5 + $0xcd0] sm:$0xff]  }
 0x4c9   :  { %v19061_v61 = vmax.f32 %v5859_v40, %v15296_v29  ;;  %v5500_v30 = vpop.f32.mrb[159].mxu0  ;;  %v16768_v40 = vld [vmem:[#allocation5 + $0xcd8] sm:$0xff]   ;;  %15797 = vmatprep.mubr.msk.bf16.mxu1 %vm589_vm0, %v16767_v28 }
 0x4ca   :  { %v19063_v47 = vmax.f32 %v5857_v12, %v5500_v30 }
 0x4cb   :  { %15798 = vmatmul.mubr.msk.bf16.gmra.mrb[208].mxu1 %vm589_vm0, %v16768_v40 }
 0x4ce   :  { %v15299_v23 = vpop.f32.mrb[160].mxu0 }
 0x4cf   :  { %v19067_v49 = vmax.f32 %v5862_v16, %v15299_v23  ;;  %v5513_v62 = vpop.f32.mrb[161].mxu0 }
 0x4d0   :  { %v19069_v43 = vmax.f32 %v5860_v59, %v5513_v62  ;;  %v15300_v56 = vpop.f32.mrb[162].mxu0  ;;  %v16769_v59 = vld [vmem:[#allocation5 + $0xce0] sm:$0xff]  }
 0x4d1   :  { %v19071_v0 = vmax.f32 %v5863_v3, %v15300_v56  ;;  %v5516_v4 = vpop.f32.mrb[163].mxu0  ;;  %v16770_v3 = vld [vmem:[#allocation5 + $0xce8] sm:$0xff]   ;;  %15801 = vmatprep.mubr.msk.bf16.mxu1 %vm589_vm0, %v16769_v59 }
 0x4d2   :  { %v19073_v14 = vmax.f32 %v5861_v5, %v5516_v4 }
 0x4d3   :  { %15802 = vmatmul.mubr.msk.bf16.gmra.mrb[212].mxu1 %vm589_vm0, %v16770_v3 }
 0x4d4   :  { %15805 = vmatprep.mubr.msk.bf16.mxu1 %vm589_vm0, %v16772_v20 }
 0x4d6   :  { %v15303_v45 = vpop.f32.mrb[164].mxu0 }
 0x4d7   :  { %v5882_v2 = vmax.f32 %v19037_v35, %v15303_v45  ;;  %v5529_v12 = vpop.f32.mrb[165].mxu0 }
 0x4d8   :  { %v5880_v33 = vmax.f32 %v19039_v42, %v5529_v12  ;;  %v15304_v11 = vpop.f32.mrb[166].mxu0  ;;  %v19086_v42 = vld [vmem:[#allocation10 + $0x100] sm:$0xff]  }
 0x4d9   :  { %v5883_v16 = vmax.f32 %v19041_v37, %v15304_v11  ;;  %v5532_v36 = vpop.f32.mrb[167].mxu0  ;;  %15545 = vmatprep.subr.bf16.mxu0 %v19086_v42 }
 0x4da   :  { %v5881_v50 = vmax.f32 %v19043_v44, %v5532_v36 }
 0x4db   :  { %15806 = vmatmul.mubr.msk.bf16.gmra.mrb[216].mxu1 %vm589_vm0, %v16773_v9 }
 0x4dc   :  { %15809 = vmatprep.mubr.msk.bf16.mxu1 %vm589_vm0, %v16776_v54 }
 0x4de   :  { %v15307_v18 = vpop.f32.mrb[168].mxu0 }
 0x4df   :  { %v5886_v41 = vmax.f32 %v19047_v15, %v15307_v18  ;;  %v5545_v5 = vpop.f32.mrb[169].mxu0 }
 0x4e0   :  { %v5884_v31 = vmax.f32 %v19049_v1, %v5545_v5  ;;  %v15308_v60 = vpop.f32.mrb[170].mxu0 }
 0x4e1   :  { %v5887_v35 = vmax.f32 %v19051_v38, %v15308_v60  ;;  %v5548_v51 = vpop.f32.mrb[171].mxu0 }
 0x4e2   :  { %v5885_v37 = vmax.f32 %v19053_v27, %v5548_v51 }
 0x4e3   :  { %15810 = vmatmul.mubr.msk.bf16.gmra.mrb[220].mxu1 %vm589_vm0, %v16777_v10 }
 0x4e6   :  { %v15311_v46 = vpop.f32.mrb[172].mxu0 }
 0x4e7   :  { %v5890_v44 = vmax.f32 %v19057_v32, %v15311_v46  ;;  %v5561_v22 = vpop.f32.mrb[173].mxu0 }
 0x4e8   :  { %v5888_v19 = vmax.f32 %v19059_v55, %v5561_v22  ;;  %v15312_v15 = vpop.f32.mrb[174].mxu0  ;;  %v16780_v55 = vld [vmem:[#allocation5 + $0xd10] sm:$0xff]  }
 0x4e9   :  { %v5891_v63 = vmax.f32 %v19061_v61, %v15312_v15  ;;  %v5564_v1 = vpop.f32.mrb[175].mxu0  ;;  %v16781_v61 = vld [vmem:[#allocation5 + $0xd18] sm:$0xff]   ;;  %15813 = vmatprep.mubr.msk.bf16.mxu1 %vm589_vm0, %v16780_v55 }
 0x4ea   :  { %v5889_v38 = vmax.f32 %v19063_v47, %v5564_v1 }
 0x4eb   :  { %15814 = vmatmul.mubr.msk.bf16.gmra.mrb[224].mxu1 %vm589_vm0, %v16781_v61 }
 0x4ee   :  { %v15315_v8 = vpop.f32.mrb[176].mxu0 }
 0x4ef   :  { %v5894_v27 = vmax.f32 %v19067_v49, %v15315_v8  ;;  %v5577_v53 = vpop.f32.mrb[177].mxu0 }
 0x4f0   :  { %v5892_v26 = vmax.f32 %v19069_v43, %v5577_v53  ;;  %v15316_v17 = vpop.f32.mrb[178].mxu0  ;;  %v16784_v43 = vld [vmem:[#allocation5 + $0xd20] sm:$0xff]  }
 0x4f1   :  { %v5895_v32 = vmax.f32 %v19071_v0, %v15316_v17  ;;  %v5580_v25 = vpop.f32.mrb[179].mxu0  ;;  %v16785_v0 = vld [vmem:[#allocation5 + $0xd28] sm:$0xff]   ;;  %15817 = vmatprep.mubr.msk.bf16.mxu1 %vm589_vm0, %v16784_v43 }
 0x4f2   :  { %v5893_v29 = vmax.f32 %v19073_v14, %v5580_v25 }
 0x4f3   :  { %15818 = vmatmul.mubr.msk.bf16.gmra.mrb[228].mxu1 %vm589_vm0, %v16785_v0 }
 0x4f6   :  { %v15319_v30 = vpop.f32.mrb[180].mxu0 }
 0x4f7   :  { %v19104_v57 = vmax.f32 %v5882_v2, %v15319_v30  ;;  %v5593_v47 = vpop.f32.mrb[181].mxu0 }
 0x4f8   :  { %v19106_v13 = vmax.f32 %v5880_v33, %v5593_v47  ;;  %v15320_v23 = vpop.f32.mrb[182].mxu0  ;;  %v16787_v33 = vld [vmem:[#allocation5 + $0xd30] sm:$0xff]  }
 0x4f9   :  { %v19108_v49 = vmax.f32 %v5883_v16, %v15320_v23  ;;  %v5596_v62 = vpop.f32.mrb[183].mxu0  ;;  %v16788_v16 = vld [vmem:[#allocation5 + $0xd38] sm:$0xff]   ;;  %15821 = vmatprep.mubr.msk.bf16.mxu1 %vm589_vm0, %v16787_v33 }
 0x4fa   :  { %v19110_v56 = vmax.f32 %v5881_v50, %v5596_v62 }
 0x4fb   :  { %15822 = vmatmul.mubr.msk.bf16.gmra.mrb[232].mxu1 %vm589_vm0, %v16788_v16 }
 0x4fe   :  { %v15323_v4 = vpop.f32.mrb[184].mxu0 }
 0x4ff   :  { %v19114_v28 = vmax.f32 %v5886_v41, %v15323_v4  ;;  %v5609_v14 = vpop.f32.mrb[185].mxu0 }
 0x500   :  { %v19116_v40 = vmax.f32 %v5884_v31, %v5609_v14  ;;  %v15324_v45 = vpop.f32.mrb[186].mxu0  ;;  %v16789_v31 = vld [vmem:[#allocation5 + $0xd40] sm:$0xff]  }
 0x501   :  { %v19118_v2 = vmax.f32 %v5887_v35, %v15324_v45  ;;  %v5612_v12 = vpop.f32.mrb[187].mxu0  ;;  %v16790_v35 = vld [vmem:[#allocation5 + $0xd48] sm:$0xff]   ;;  %15825 = vmatprep.mubr.msk.bf16.mxu1 %vm589_vm0, %v16789_v31 }
 0x502   :  { %v19120_v11 = vmax.f32 %v5885_v37, %v5612_v12 }
 0x503   :  { %15826 = vmatmul.mubr.msk.bf16.gmra.mrb[236].mxu1 %vm589_vm0, %v16790_v35 }
 0x506   :  { %v15327_v36 = vpop.f32.mrb[188].mxu0 }
 0x507   :  { %v19124_v59 = vmax.f32 %v5890_v44, %v15327_v36  ;;  %v5625_v50 = vpop.f32.mrb[189].mxu0 }
 0x508   :  { %v19126_v3 = vmax.f32 %v5888_v19, %v5625_v50  ;;  %v15328_v18 = vpop.f32.mrb[190].mxu0  ;;  %v16791_v19 = vld [vmem:[#allocation5 + $0xd50] sm:$0xff]  }
 0x509   :  { %v19128_v41 = vmax.f32 %v5891_v63, %v15328_v18  ;;  %v5628_v5 = vpop.f32.mrb[191].mxu0  ;;  %v16792_v63 = vld [vmem:[#allocation5 + $0xd58] sm:$0xff]   ;;  %15829 = vmatprep.mubr.msk.bf16.mxu1 %vm589_vm0, %v16791_v19 }
 0x50a   :  { %v19130_v60 = vmax.f32 %v5889_v38, %v5628_v5 }
 0x50b   :  { %15830 = vmatmul.mubr.msk.bf16.gmra.mrb[240].mxu1 %vm589_vm0, %v16792_v63 }
 0x50e   :  { %v15331_v51 = vpop.f32.mrb[192].mxu0 }
 0x50f   :  { %v19134_v20 = vmax.f32 %v5894_v27, %v15331_v51  ;;  %v5641_v37 = vpop.f32.mrb[193].mxu0 }
 0x510   :  { %v19136_v9 = vmax.f32 %v5892_v26, %v5641_v37  ;;  %v15332_v46 = vpop.f32.mrb[194].mxu0  ;;  %v16793_v26 = vld [vmem:[#allocation5 + $0xd60] sm:$0xff]  }
 0x511   :  { %v19138_v44 = vmax.f32 %v5895_v32, %v15332_v46  ;;  %v5644_v22 = vpop.f32.mrb[195].mxu0  ;;  %v16794_v32 = vld [vmem:[#allocation5 + $0xd68] sm:$0xff]   ;;  %15833 = vmatprep.mubr.msk.bf16.mxu1 %vm589_vm0, %v16793_v26 }
 0x512   :  { %v19140_v15 = vmax.f32 %v5893_v29, %v5644_v22  ;;  %v16810_v22 = vld [vmem:[#allocation5 + $0xda8] sm:$0xff]  }
 0x513   :  { %15834 = vmatmul.mubr.msk.bf16.gmra.mrb[244].mxu1 %vm589_vm0, %v16794_v32 }
 0x516   :  { %v15335_v1 = vpop.f32.mrb[196].mxu0 }
 0x517   :  { %v5914_v54 = vmax.f32 %v19104_v57, %v15335_v1  ;;  %v5657_v38 = vpop.f32.mrb[197].mxu0 }
 0x518   :  { %v5912_v10 = vmax.f32 %v19106_v13, %v5657_v38  ;;  %v15336_v8 = vpop.f32.mrb[198].mxu0  ;;  %v16797_v13 = vld [vmem:[#allocation5 + $0xd70] sm:$0xff]  }
 0x519   :  { %v5915_v27 = vmax.f32 %v19108_v49, %v15336_v8  ;;  %v5660_v53 = vpop.f32.mrb[199].mxu0  ;;  %v16798_v49 = vld [vmem:[#allocation5 + $0xd78] sm:$0xff]   ;;  %15837 = vmatprep.mubr.msk.bf16.mxu1 %vm589_vm0, %v16797_v13 }
 0x51a   :  { %v5913_v17 = vmax.f32 %v19110_v56, %v5660_v53 }
 0x51b   :  { %15838 = vmatmul.mubr.msk.bf16.gmra.mrb[248].mxu1 %vm589_vm0, %v16798_v49 }
 0x51e   :  { %v15339_v25 = vpop.f32.mrb[200].mxu0 }
 0x51f   :  { %v5918_v55 = vmax.f32 %v19114_v28, %v15339_v25  ;;  %v5673_v29 = vpop.f32.mrb[201].mxu0 }
 0x520   :  { %v5916_v61 = vmax.f32 %v19116_v40, %v5673_v29  ;;  %v15340_v30 = vpop.f32.mrb[202].mxu0  ;;  %v16801_v40 = vld [vmem:[#allocation5 + $0xd80] sm:$0xff]  }
 0x521   :  { %v5919_v57 = vmax.f32 %v19118_v2, %v15340_v30  ;;  %v5676_v47 = vpop.f32.mrb[203].mxu0  ;;  %v16802_v2 = vld [vmem:[#allocation5 + $0xd88] sm:$0xff]   ;;  %15841 = vmatprep.mubr.msk.bf16.mxu1 %vm589_vm0, %v16801_v40 }
 0x522   :  { %v5917_v23 = vmax.f32 %v19120_v11, %v5676_v47 }
 0x523   :  { %15842 = vmatmul.mubr.msk.bf16.gmra.mrb[252].mxu1 %vm589_vm0, %v16802_v2 }
 0x526   :  { %v15343_v62 = vpop.f32.mrb[204].mxu0 }
 0x527   :  { %v5922_v43 = vmax.f32 %v19124_v59, %v15343_v62  ;;  %v5689_v56 = vpop.f32.mrb[205].mxu0 }
 0x528   :  { %v5920_v0 = vmax.f32 %v19126_v3, %v5689_v56  ;;  %v15344_v4 = vpop.f32.mrb[206].mxu0  ;;  %v16805_v3 = vld [vmem:[#allocation5 + $0xd90] sm:$0xff]  }
 0x529   :  { %v5923_v28 = vmax.f32 %v19128_v41, %v15344_v4  ;;  %v5692_v14 = vpop.f32.mrb[207].mxu0  ;;  %v16806_v41 = vld [vmem:[#allocation5 + $0xd98] sm:$0xff]   ;;  %15845 = vmatprep.mubr.msk.bf16.mxu1 %vm589_vm0, %v16805_v3  ;;  %v16826_v3 = vld [vmem:[#allocation5 + $0xde8] sm:$0xff]  }
 0x52a   :  { %v5921_v45 = vmax.f32 %v19130_v60, %v5692_v14 }
 0x52b   :  { %15846 = vmatmul.mubr.msk.bf16.gmra.mrb[0].mxu1 %vm589_vm0, %v16806_v41 }
 0x52e   :  { %v15347_v12 = vpop.f32.mrb[208].mxu0 }
 0x52f   :  { %v5926_v33 = vmax.f32 %v19134_v20, %v15347_v12  ;;  %v5705_v11 = vpop.f32.mrb[209].mxu0 }
 0x530   :  { %v5924_v16 = vmax.f32 %v19136_v9, %v5705_v11  ;;  %v15348_v36 = vpop.f32.mrb[210].mxu0  ;;  %v16809_v9 = vld [vmem:[#allocation5 + $0xda0] sm:$0xff]  }
 0x531   :  { %v5927_v59 = vmax.f32 %v19138_v44, %v15348_v36  ;;  %v5708_v50 = vpop.f32.mrb[211].mxu0  ;;  %15849 = vmatprep.mubr.msk.bf16.mxu1 %vm589_vm0, %v16809_v9  ;;  %v16825_v36 = vld [vmem:[#allocation5 + $0xde0] sm:$0xff]  }
 0x532   :  { %v5925_v18 = vmax.f32 %v19140_v15, %v5708_v50 }
 0x533   :  { %15850 = vmatmul.mubr.msk.bf16.gmra.mrb[4].mxu1 %vm589_vm0, %v16810_v22 }
 0x536   :  { %v15351_v5 = vpop.f32.mrb[212].mxu0 }
 0x537   :  { %v5930_v31 = vmax.f32 %v5914_v54, %v15351_v5  ;;  %v5721_v60 = vpop.f32.mrb[213].mxu0 }
 0x538   :  { %v5928_v35 = vmax.f32 %v5912_v10, %v5721_v60  ;;  %v15352_v51 = vpop.f32.mrb[214].mxu0  ;;  %v16813_v10 = vld [vmem:[#allocation5 + $0xdb0] sm:$0xff]  }
 0x539   :  { %v5931_v20 = vmax.f32 %v5915_v27, %v15352_v51  ;;  %v5724_v37 = vpop.f32.mrb[215].mxu0  ;;  %v16814_v27 = vld [vmem:[#allocation5 + $0xdb8] sm:$0xff]   ;;  %15853 = vmatprep.mubr.msk.bf16.mxu1 %vm589_vm0, %v16813_v10 }
 0x53a   :  { %v5929_v46 = vmax.f32 %v5913_v17, %v5724_v37  ;;  %v16774_v10 = vld [vmem:[#allocation10 + $0x108] sm:$0xff]  }
 0x53b   :  { %15854 = vmatmul.mubr.msk.bf16.gmra.mrb[8].mxu1 %vm589_vm0, %v16814_v27  ;;  %v16829_v27 = vld [vmem:[#allocation5 + $0xdf0] sm:$0xff]  }
 0x53e   :  { %v15355_v44 = vpop.f32.mrb[216].mxu0 }
 0x53f   :  { %v19170_v19 = vmax.f32 %v5918_v55, %v15355_v44  ;;  %v5737_v15 = vpop.f32.mrb[217].mxu0 }
 0x540   :  { %v19172_v63 = vmax.f32 %v5916_v61, %v5737_v15  ;;  %v15356_v1 = vpop.f32.mrb[218].mxu0  ;;  %v16817_v61 = vld [vmem:[#allocation5 + $0xdc0] sm:$0xff]  }
 0x541   :  { %v19174_v54 = vmax.f32 %v5919_v57, %v15356_v1  ;;  %v5740_v38 = vpop.f32.mrb[219].mxu0  ;;  %v16818_v57 = vld [vmem:[#allocation5 + $0xdc8] sm:$0xff]   ;;  %15857 = vmatprep.mubr.msk.bf16.mxu1 %vm589_vm0, %v16817_v61 }
 0x542   :  { %v19176_v8 = vmax.f32 %v5917_v23, %v5740_v38  ;;  %v16775_v61 = vld [vmem:[#allocation10 + $0x110] sm:$0xff]  }
 0x543   :  { %15858 = vmatmul.mubr.msk.bf16.gmra.mrb[12].mxu1 %vm589_vm0, %v16818_v57 }
 0x546   :  { %v15359_v53 = vpop.f32.mrb[220].mxu0 }
 0x547   :  { %v19180_v26 = vmax.f32 %v5922_v43, %v15359_v53  ;;  %v5753_v17 = vpop.f32.mrb[221].mxu0 }
 0x548   :  { %v19182_v32 = vmax.f32 %v5920_v0, %v5753_v17  ;;  %v15360_v25 = vpop.f32.mrb[222].mxu0  ;;  %v16821_v0 = vld [vmem:[#allocation5 + $0xdd0] sm:$0xff]  }
 0x549   :  { %v19184_v55 = vmax.f32 %v5923_v28, %v15360_v25  ;;  %v5756_v29 = vpop.f32.mrb[223].mxu0  ;;  %v16822_v28 = vld [vmem:[#allocation5 + $0xdd8] sm:$0xff]   ;;  %15861 = vmatprep.mubr.msk.bf16.mxu1 %vm589_vm0, %v16821_v0 }
 0x54a   :  { %v19186_v30 = vmax.f32 %v5921_v45, %v5756_v29  ;;  %v16830_v25 = vld [vmem:[#allocation5 + $0xdf8] sm:$0xff]  }
 0x54b   :  { %15862 = vmatmul.mubr.msk.bf16.gmra.mrb[16].mxu1 %vm589_vm0, %v16822_v28 }
 0x54c   :  { %15865 = vmatprep.mubr.msk.bf16.mxu1 %vm589_vm0, %v16825_v36  ;;  %v16779_v36 = vld [vmem:[#allocation10 + $0x120] sm:$0xff]  }
 0x54e   :  { %v15363_v47 = vpop.f32.mrb[224].mxu0 }
 0x54f   :  { %v19190_v13 = vmax.f32 %v5926_v33, %v15363_v47  ;;  %v5769_v23 = vpop.f32.mrb[225].mxu0 }
 0x550   :  { %v19192_v49 = vmax.f32 %v5924_v16, %v5769_v23  ;;  %v15364_v62 = vpop.f32.mrb[226].mxu0 }
 0x551   :  { %v19194_v43 = vmax.f32 %v5927_v59, %v15364_v62  ;;  %v5772_v56 = vpop.f32.mrb[227].mxu0 }
 0x552   :  { %v19196_v4 = vmax.f32 %v5925_v18, %v5772_v56 }
 0x553   :  { %15866 = vmatmul.mubr.msk.bf16.gmra.mrb[20].mxu1 %vm589_vm0, %v16826_v3 }
 0x554   :  { %15869 = vmatprep.mubr.msk.bf16.mxu1 %vm589_vm0, %v16829_v27  ;;  %v16799_v27 = vld [vmem:[#allocation5 + $0xa10] sm:$0xff]  }
 0x556   :  { %v15367_v14 = vpop.f32.mrb[228].mxu0 }
 0x557   :  { %v5946_v40 = vmax.f32 %v5930_v31, %v15367_v14  ;;  %v5785_v45 = vpop.f32.mrb[229].mxu0 }
 0x558   :  { %v5944_v2 = vmax.f32 %v5928_v35, %v5785_v45  ;;  %v15368_v12 = vpop.f32.mrb[230].mxu0 }
 0x559   :  { %v5962_v33 = vadd.f32 %v19001_v39, %v5946_v40  ;;  %v5947_v11 = vmax.f32 %v5931_v20, %v15368_v12  ;;  %v5788_v16 = vpop.f32.mrb[231].mxu0 }
 0x55a   :  { %v5960_v59 = vadd.f32 %v19001_v39, %v5944_v2  ;;  %v5945_v50 = vmax.f32 %v5929_v46, %v5788_v16  ;;  %v16778_v2 = vld [vmem:[#allocation10 + $0x118] sm:$0xff]  }
 0x55b   :  { %v5963_v18 = vadd.f32 %v19001_v39, %v5947_v11  ;;  %v5978_v5 = vmax.f32 %v5962_v33, 0.0  ;;  %15870 = vmatmul.mubr.msk.bf16.gmra.mrb[24].mxu1 %vm589_vm0, %v16830_v25 }
 0x55c   :  { %v5961_v41 = vadd.f32 %v19001_v39, %v5945_v50  ;;  %v5976_v35 = vmax.f32 %v5960_v59, 0.0 }
 0x55d   :  { %v5979_v31 = vmax.f32 %v5963_v18, 0.0 }
 0x55e   :  { %v15371_v60 = vpop.f32.mrb[232].mxu0  ;;  %v5977_v51 = vmax.f32 %v5961_v41, 0.0 }
 0x55f   :  { %v5993_v20 = vpack.c.bf16 %v5979_v31, %v5978_v5  ;;  %v5950_v37 = vmax.f32 %v19170_v19, %v15371_v60  ;;  %v5801_v9 = vpop.f32.mrb[233].mxu0 }
 0x560   :  { %v5948_v46 = vmax.f32 %v19172_v63, %v5801_v9  ;;  %v15372_v22 = vpop.f32.mrb[234].mxu0  ;;  %v5992_v44 = vpack.c.bf16 %v5977_v51, %v5976_v35 }
 0x561   :  { %v5966_v15 = vadd.f32 %v19001_v39, %v5950_v37  ;;  %v5951_v1 = vmax.f32 %v19174_v54, %v15372_v22  ;;  %v5804_v38 = vpop.f32.mrb[235].mxu0 }
 0x562   :  { %v5964_v53 = vadd.f32 %v19001_v39, %v5948_v46  ;;  %v5949_v17 = vmax.f32 %v19176_v8, %v5804_v38  ;;  %15397 = vmatprep.mubr.bf16.mxu0 %v5992_v44  ;;  %v16783_v44 = vld [vmem:[#allocation10 + $0x130] sm:$0xff]  }
 0x563   :  { %v5967_v19 = vadd.f32 %v19001_v39, %v5951_v1  ;;  %15398 = vmatmul.mubr.bf16.vlgmr.msra.gmra.mrb[100].mxu0 %v5993_v20  ;;  %v5982_v54 = vmax.f32 %v5966_v15, 0.0  ;;  %v16782_v20 = vld [vmem:[#allocation10 + $0x128] sm:$0xff]  }
 0x564   :  { %v5965_v63 = vadd.f32 %v19001_v39, %v5949_v17  ;;  %15546 = vmatpush3.bf16.msra.mxu0 %v19086_v42  ;;  %v5980_v47 = vmax.f32 %v5964_v53, 0.0  ;;  %v16803_v53 = vld [vmem:[#allocation5 + $0xa20] sm:$0xff]  }
 0x565   :  { %15547 = vmatprep.subr.bf16.mxu0 %v16774_v10  ;;  %v5983_v29 = vmax.f32 %v5967_v19, 0.0 }
 0x566   :  { %v15375_v57 = vpop.f32.mrb[236].mxu0  ;;  %v5981_v8 = vmax.f32 %v5965_v63, 0.0 }
 0x567   :  { %v5954_v23 = vmax.f32 %v19180_v26, %v15375_v57  ;;  %v5817_v62 = vpop.f32.mrb[237].mxu0  ;;  %v5995_v56 = vpack.c.bf16 %v5983_v29, %v5982_v54  ;;  %v16808_v29 = vld [vmem:[#allocation5 + $0xa38] sm:$0xff]   ;;  %v16811_v57 = vld [vmem:[#allocation5 + $0xa40] sm:$0xff]  }
 0x568   :  { %v5952_v0 = vmax.f32 %v19182_v32, %v5817_v62  ;;  %v15376_v28 = vpop.f32.mrb[238].mxu0  ;;  %15548 = vmatpush3.bf16.msra.mxu0 %v16774_v10  ;;  %v5994_v14 = vpack.c.bf16 %v5981_v8, %v5980_v47  ;;  %v16786_v10 = vld [vmem:[#allocation10 + $0x138] sm:$0xff]  }
 0x569   :  { %v5970_v42 = vadd.f32 %v19001_v39, %v5954_v23  ;;  %v5955_v40 = vmax.f32 %v19184_v55, %v15376_v28  ;;  %v5820_v45 = vpop.f32.mrb[239].mxu0  ;;  %15549 = vmatprep.subr.bf16.mxu0 %v16775_v61 }
 0x56a   :  { %v5968_v12 = vadd.f32 %v19001_v39, %v5952_v0  ;;  %v5953_v33 = vmax.f32 %v19186_v30, %v5820_v45  ;;  %15401 = vmatprep.mubr.bf16.mxu0 %v5994_v14  ;;  %v16812_v14 = vld [vmem:[#allocation5 + $0xa48] sm:$0xff]  }
 0x56b   :  { %v5971_v26 = vadd.f32 %v19001_v39, %v5955_v40  ;;  %15402 = vmatmul.mubr.bf16.gmra.mrb[104].mxu0 %v5995_v56  ;;  %v5986_v11 = vmax.f32 %v5970_v42, 0.0  ;;  %v16815_v40 = vld [vmem:[#allocation5 + $0xa50] sm:$0xff]  }
 0x56c   :  { %v5969_v32 = vadd.f32 %v19001_v39, %v5953_v33  ;;  %15550 = vmatpush3.bf16.msra.mxu0 %v16775_v61  ;;  %v5984_v55 = vmax.f32 %v5968_v12, 0.0 }
 0x56d   :  { %15551 = vmatprep.subr.bf16.mxu0 %v16778_v2  ;;  %v5987_v16 = vmax.f32 %v5971_v26, 0.0 }
 0x56e   :  { %v15379_v59 = vpop.f32.mrb[240].mxu0  ;;  %v5985_v50 = vmax.f32 %v5969_v32, 0.0 }
 0x56f   :  { %v5958_v3 = vmax.f32 %v19190_v13, %v15379_v59  ;;  %v5833_v18 = vpop.f32.mrb[241].mxu0  ;;  %v5997_v41 = vpack.c.bf16 %v5987_v16, %v5986_v11 }
 0x570   :  { %v5956_v30 = vmax.f32 %v19192_v49, %v5833_v18  ;;  %v15380_v5 = vpop.f32.mrb[242].mxu0  ;;  %15552 = vmatpush3.bf16.msra.mxu0 %v16778_v2  ;;  %v5996_v31 = vpack.c.bf16 %v5985_v50, %v5984_v55 }
 0x571   :  { %v5974_v60 = vadd.f32 %v19001_v39, %v5958_v3  ;;  %v5959_v35 = vmax.f32 %v19194_v43, %v15380_v5  ;;  %v5836_v51 = vpop.f32.mrb[243].mxu0  ;;  %15553 = vmatprep.subr.bf16.mxu0 %v16779_v36 }
 0x572   :  { %v5972_v37 = vadd.f32 %v19001_v39, %v5956_v30  ;;  %v5957_v9 = vmax.f32 %v19196_v4, %v5836_v51  ;;  %15405 = vmatprep.mubr.bf16.mxu0 %v5996_v31  ;;  %v16976_v4 = vld [vmem:[#allocation7 + $0x8] sm:$0xff]   ;;  %v16819_v31 = vld [vmem:[#allocation5 + $0xa60] sm:$0xff]  }
 0x573   :  { %v5975_v13 = vadd.f32 %v19001_v39, %v5959_v35  ;;  %15406 = vmatmul.mubr.bf16.gmra.mrb[108].mxu0 %v5997_v41  ;;  %v5990_v46 = vmax.f32 %v5974_v60, 0.0  ;;  %v16816_v41 = vld [vmem:[#allocation5 + $0xa58] sm:$0xff]  }
 0x574   :  { %v5973_v49 = vadd.f32 %v19001_v39, %v5957_v9  ;;  %15554 = vmatpush3.bf16.msra.mxu0 %v16779_v36  ;;  %v5988_v15 = vmax.f32 %v5972_v37, 0.0  ;;  %v16975_v39 = vld [vmem:[#allocation7] sm:$0xff]  }
 0x575   :  { %15555 = vmatprep.subr.bf16.mxu0 %v16782_v20  ;;  %v5991_v22 = vmax.f32 %v5975_v13, 0.0 }
 0x576   :  { %v5989_v43 = vmax.f32 %v5973_v49, 0.0 }
 0x577   :  { %v5999_v1 = vpack.c.bf16 %v5991_v22, %v5990_v46 }
 0x578   :  { %15556 = vmatpush3.bf16.msra.mxu0 %v16782_v20  ;;  %v5998_v38 = vpack.c.bf16 %v5989_v43, %v5988_v15 }
 0x579   :  { %15557 = vmatprep.subr.bf16.mxu0 %v16783_v44 }
 0x57a   :  { %15409 = vmatprep.mubr.bf16.mxu0 %v5998_v38  ;;  %v16820_v38 = vld [vmem:[#allocation5 + $0xa68] sm:$0xff]  }
 0x57b   :  { %15410 = vmatmul.mubr.bf16.gmra.mrb[112].mxu0 %v5999_v1 }
 0x57c   :  { %15558 = vmatpush3.bf16.msra.mxu0 %v16783_v44  ;;  %15561 = vmatprep.mubr.bf16.mxu0 %v18944_v52  ;;  %v16795_v52 = vld [vmem:[#allocation5 + $0xa00] sm:$0xff]  }
 0x57d   :  { %15559 = vmatprep.subr.bf16.mxu0 %v16786_v10 }
 0x580   :  { %15560 = vmatpush3.bf16.msra.mxu0 %v16786_v10 }
 0x581   :  { %15577 = vmatprep.subr.bf16.mxu0 %v16975_v39 }
 0x583   :  { %15562 = vmatmul.mubr.bf16.vlgmr.msra.gmra.mrb[100].mxu0 %v18938_v7  ;;  %v16796_v7 = vld [vmem:[#allocation5 + $0xa08] sm:$0xff]  }
 0x584   :  { %15565 = vmatprep.mubr.bf16.mxu0 %v18968_v21  ;;  %15578 = vmatpush3.bf16.msra.mxu0 %v16975_v39  ;;  %v16800_v21 = vld [vmem:[#allocation5 + $0xa18] sm:$0xff]  }
 0x585   :  { %15579 = vmatprep.subr.bf16.mxu0 %v16976_v4 }
 0x588   :  { %15580 = vmatpush3.bf16.msra.mxu0 %v16976_v4  ;;  %v16823_v4 = vld [vmem:[#allocation5 + $0xa70] sm:$0xff]  }
 0x58b   :  { %15566 = vmatmul.mubr.bf16.gmra.mrb[104].mxu0 %v18963_v34  ;;  %v19245_v34 = vpop.f32.mrb[156].mxu1 }
 0x58c   :  { %15569 = vmatprep.mubr.bf16.mxu0 %v18992_v6 }
 0x593   :  { %15570 = vmatmul.mubr.bf16.gmra.mrb[108].mxu0 %v18987_v24  ;;  %v19248_v24 = vpop.f32.mrb[157].mxu1 }
 0x594   :  { %15573 = vmatprep.mubr.bf16.mxu0 %v19012_v58  ;;  %v19250_v6 = vpop.f32.mrb[158].mxu1  ;;  %v16807_v58 = vld [vmem:[#allocation5 + $0xa30] sm:$0xff]  }
 0x595   :  { %v19252_v17 = vpop.f32.mrb[159].mxu1 }
 0x596   :  { %v19255_v25 = vpop.f32.mrb[160].mxu1 }
 0x597   :  { %v19258_v19 = vpop.f32.mrb[161].mxu1 }
 0x598   :  { %v19260_v63 = vpop.f32.mrb[162].mxu1 }
 0x599   :  { %v19262_v54 = vpop.f32.mrb[163].mxu1 }
 0x59a   :  { %v19264_v61 = vpop.f32.mrb[164].mxu1 }
 0x59b   :  { %15574 = vmatmul.mubr.bf16.gmra.mrb[112].mxu0 %v19009_v48  ;;  %v16804_v48 = vld [vmem:[#allocation5 + $0xa28] sm:$0xff]   ;;  %v19266_v47 = vpop.f32.mrb[165].mxu1 }
 0x59c   :  { %15581 = vmatprep.mubr.msk.bf16.mxu0 %vm589_vm0, %v16795_v52  ;;  %v19268_v8 = vpop.f32.mrb[166].mxu1 }
 0x59d   :  { %v19270_v23 = vpop.f32.mrb[167].mxu1 }
 0x59e   :  { %v19273_v62 = vpop.f32.mrb[168].mxu1 }
 0x59f   :  { %v19276_v56 = vpop.f32.mrb[169].mxu1 }
 0x5a0   :  { %v19278_v0 = vpop.f32.mrb[170].mxu1 }
 0x5a1   :  { %v19280_v28 = vpop.f32.mrb[171].mxu1 }
 0x5a2   :  { %v15763_v42 = vpop.f32.mrb[172].mxu1 }
 0x5a3   :  { %15582 = vmatmul.mubr.msk.bf16.vlgmr.msra.gmra.mrb[244].mxu0 %vm589_vm0, %v16796_v7  ;;  %v10398_v45 = vmax.f32 %v19245_v34, %v15763_v42  ;;  %v9949_v2 = vpop.f32.mrb[173].mxu1 }
 0x5a4   :  { %15585 = vmatprep.mubr.msk.bf16.mxu0 %vm589_vm0, %v16799_v27  ;;  %v10396_v12 = vmax.f32 %v19248_v24, %v9949_v2  ;;  %v15764_v33 = vpop.f32.mrb[174].mxu1 }
 0x5a5   :  { %v10399_v26 = vmax.f32 %v19250_v6, %v15764_v33  ;;  %v9952_v32 = vpop.f32.mrb[175].mxu1 }
 0x5a6   :  { %v10397_v11 = vmax.f32 %v19252_v17, %v9952_v32  ;;  %v15767_v16 = vpop.f32.mrb[176].mxu1 }
 0x5a7   :  { %v10402_v36 = vmax.f32 %v19255_v25, %v15767_v16  ;;  %v9965_v59 = vpop.f32.mrb[177].mxu1  ;;  %v16831_v16 = vld [vmem:[#allocation5 + $0xa90] sm:$0xff]  }
 0x5a8   :  { %v10400_v55 = vmax.f32 %v19258_v19, %v9965_v59  ;;  %v15768_v50 = vpop.f32.mrb[178].mxu1 }
 0x5a9   :  { %v10403_v3 = vmax.f32 %v19260_v63, %v15768_v50  ;;  %v9968_v18 = vpop.f32.mrb[179].mxu1 }
 0x5aa   :  { %v10401_v30 = vmax.f32 %v19262_v54, %v9968_v18  ;;  %v15771_v5 = vpop.f32.mrb[180].mxu1  ;;  %v16824_v54 = vld [vmem:[#allocation5 + $0xa78] sm:$0xff]  }
 0x5ab   :  { %15586 = vmatmul.mubr.msk.bf16.gmra.mrb[248].mxu0 %vm589_vm0, %v16800_v21  ;;  %v10406_v60 = vmax.f32 %v19264_v61, %v15771_v5  ;;  %v9981_v35 = vpop.f32.mrb[181].mxu1 }
 0x5ac   :  { %15589 = vmatprep.mubr.msk.bf16.mxu0 %vm589_vm0, %v16803_v53  ;;  %v10404_v51 = vmax.f32 %v19266_v47, %v9981_v35  ;;  %v15772_v20 = vpop.f32.mrb[182].mxu1 }
 0x5ad   :  { %v10407_v37 = vmax.f32 %v19268_v8, %v15772_v20  ;;  %v9984_v9 = vpop.f32.mrb[183].mxu1 }
 0x5ae   :  { %v10405_v13 = vmax.f32 %v19270_v23, %v9984_v9  ;;  %v15775_v49 = vpop.f32.mrb[184].mxu1  ;;  %v16832_v9 = vld [vmem:[#allocation5 + $0xa98] sm:$0xff]  }
 0x5af   :  { %v10410_v46 = vmax.f32 %v19273_v62, %v15775_v49  ;;  %v9997_v22 = vpop.f32.mrb[185].mxu1 }
 0x5b0   :  { %v10408_v44 = vmax.f32 %v19276_v56, %v9997_v22  ;;  %v15776_v15 = vpop.f32.mrb[186].mxu1 }
 0x5b1   :  { %v10411_v43 = vmax.f32 %v19278_v0, %v15776_v15  ;;  %v10000_v1 = vpop.f32.mrb[187].mxu1 }
 0x5b2   :  { %v10409_v10 = vmax.f32 %v19280_v28, %v10000_v1  ;;  %v15779_v39 = vpop.f32.mrb[188].mxu1 }
 0x5b3   :  { %15590 = vmatmul.mubr.msk.bf16.gmra.mrb[252].mxu0 %vm589_vm0, %v16804_v48  ;;  %v19302_v52 = vmax.f32 %v10398_v45, %v15779_v39  ;;  %v10013_v7 = vpop.f32.mrb[189].mxu1 }
 0x5b4   :  { %15593 = vmatprep.mubr.msk.bf16.mxu0 %vm589_vm0, %v16807_v58  ;;  %v19304_v27 = vmax.f32 %v10396_v12, %v10013_v7  ;;  %v15780_v21 = vpop.f32.mrb[190].mxu1 }
 0x5b5   :  { %v19306_v53 = vmax.f32 %v10399_v26, %v15780_v21  ;;  %v10016_v34 = vpop.f32.mrb[191].mxu1  ;;  %v16828_v26 = vld [vmem:[#allocation5 + $0xa88] sm:$0xff]  }
 0x5b6   :  { %v19309_v24 = vmax.f32 %v10397_v11, %v10016_v34  ;;  %v15783_v6 = vpop.f32.mrb[192].mxu1  ;;  %v16834_v34 = vld [vmem:[#allocation5 + $0xaa8] sm:$0xff]  }
 0x5b7   :  { %v19312_v48 = vmax.f32 %v10402_v36, %v15783_v6  ;;  %v10029_v58 = vpop.f32.mrb[193].mxu1 }
 0x5b8   :  { %v19314_v17 = vmax.f32 %v10400_v55, %v10029_v58  ;;  %v15784_v25 = vpop.f32.mrb[194].mxu1 }
 0x5b9   :  { %v19316_v19 = vmax.f32 %v10403_v3, %v15784_v25  ;;  %v10032_v63 = vpop.f32.mrb[195].mxu1 }
 0x5ba   :  { %v15787_v61 = vpop.f32.mrb[196].mxu1 }
 0x5bb   :  { %15594 = vmatmul.mubr.msk.bf16.gmra.mrb[0].mxu0 %vm589_vm0, %v16808_v29  ;;  %v19318_v29 = vmax.f32 %v10401_v30, %v10032_v63  ;;  %v19320_v47 = vmax.f32 %v10406_v60, %v15787_v61  ;;  %v10045_v8 = vpop.f32.mrb[197].mxu1 }
 0x5bc   :  { %15597 = vmatprep.mubr.msk.bf16.mxu0 %vm589_vm0, %v16811_v57  ;;  %v16827_v57 = vld [vmem:[#allocation5 + $0xa80] sm:$0xff]   ;;  %v19322_v23 = vmax.f32 %v10404_v51, %v10045_v8  ;;  %v15788_v62 = vpop.f32.mrb[198].mxu1 }
 0x5bd   :  { %v19324_v56 = vmax.f32 %v10407_v37, %v15788_v62  ;;  %v10048_v0 = vpop.f32.mrb[199].mxu1 }
 0x5be   :  { %v19327_v28 = vmax.f32 %v10405_v13, %v10048_v0  ;;  %v16836_v0 = vld [vmem:[#allocation5 + $0xab8] sm:$0xff]  }
 0x5c3   :  { %15598 = vmatmul.mubr.msk.bf16.gmra.mrb[4].mxu0 %vm589_vm0, %v16812_v14  ;;  %v15791_v14 = vpop.f32.mrb[200].mxu1 }
 0x5c4   :  { %15601 = vmatprep.mubr.msk.bf16.mxu0 %vm589_vm0, %v16815_v40  ;;  %v19330_v42 = vmax.f32 %v10410_v46, %v15791_v14  ;;  %v10061_v40 = vpop.f32.mrb[201].mxu1  ;;  %v16833_v46 = vld [vmem:[#allocation5 + $0xaa0] sm:$0xff]  }
 0x5c5   :  { %v19332_v45 = vmax.f32 %v10408_v44, %v10061_v40  ;;  %v15792_v2 = vpop.f32.mrb[202].mxu1 }
 0x5c6   :  { %v19334_v12 = vmax.f32 %v10411_v43, %v15792_v2  ;;  %v10064_v33 = vpop.f32.mrb[203].mxu1 }
 0x5c7   :  { %v19336_v32 = vmax.f32 %v10409_v10, %v10064_v33  ;;  %v15795_v11 = vpop.f32.mrb[204].mxu1 }
 0x5c8   :  { %v10430_v36 = vmax.f32 %v19302_v52, %v15795_v11  ;;  %v10077_v59 = vpop.f32.mrb[205].mxu1 }
 0x5c9   :  { %v10428_v55 = vmax.f32 %v19304_v27, %v10077_v59  ;;  %v15796_v50 = vpop.f32.mrb[206].mxu1 }
 0x5ca   :  { %v10431_v3 = vmax.f32 %v19306_v53, %v15796_v50  ;;  %v10080_v18 = vpop.f32.mrb[207].mxu1 }
 0x5cb   :  { %15602 = vmatmul.mubr.msk.bf16.gmra.mrb[8].mxu0 %vm589_vm0, %v16816_v41  ;;  %v16863_v41 = vld [vmem:[#allocation10 + $0x140] sm:$0xff]   ;;  %v10429_v30 = vmax.f32 %v19309_v24, %v10080_v18  ;;  %v15799_v5 = vpop.f32.mrb[208].mxu1  ;;  %v16838_v18 = vld [vmem:[#allocation5 + $0xac8] sm:$0xff]  }
 0x5cc   :  { %15605 = vmatprep.mubr.msk.bf16.mxu0 %vm589_vm0, %v16819_v31  ;;  %v10434_v31 = vmax.f32 %v19312_v48, %v15799_v5  ;;  %v10093_v60 = vpop.f32.mrb[209].mxu1  ;;  %15709 = vmatprep.subr.bf16.mxu0 %v16863_v41  ;;  %v16835_v48 = vld [vmem:[#allocation5 + $0xab0] sm:$0xff]  }
 0x5cd   :  { %v10432_v35 = vmax.f32 %v19314_v17, %v10093_v60  ;;  %v15800_v51 = vpop.f32.mrb[210].mxu1  ;;  %15710 = vmatpush3.bf16.msra.mxu0 %v16863_v41  ;;  %v16839_v5 = vld [vmem:[#allocation5 + $0xad0] sm:$0xff]  }
 0x5ce   :  { %v10435_v20 = vmax.f32 %v19316_v19, %v15800_v51  ;;  %v10096_v37 = vpop.f32.mrb[211].mxu1 }
 0x5cf   :  { %v10433_v13 = vmax.f32 %v19318_v29, %v10096_v37  ;;  %v15803_v49 = vpop.f32.mrb[212].mxu1 }
 0x5d0   :  { %v10438_v22 = vmax.f32 %v19320_v47, %v15803_v49  ;;  %v10109_v44 = vpop.f32.mrb[213].mxu1 }
 0x5d1   :  { %v10436_v15 = vmax.f32 %v19322_v23, %v10109_v44  ;;  %v15804_v43 = vpop.f32.mrb[214].mxu1 }
 0x5d2   :  { %v10439_v1 = vmax.f32 %v19324_v56, %v15804_v43 }
 0x5d3   :  { %15606 = vmatmul.mubr.msk.bf16.gmra.mrb[12].mxu0 %vm589_vm0, %v16820_v38  ;;  %v10112_v38 = vpop.f32.mrb[215].mxu1 }
 0x5d4   :  { %15609 = vmatprep.mubr.msk.bf16.mxu0 %vm589_vm0, %v16823_v4  ;;  %v10437_v10 = vmax.f32 %v19327_v28, %v10112_v38  ;;  %v15807_v39 = vpop.f32.mrb[216].mxu1  ;;  %v16840_v38 = vld [vmem:[#allocation5 + $0xad8] sm:$0xff]  }
 0x5d5   :  { %v10442_v4 = vmax.f32 %v19330_v42, %v15807_v39  ;;  %v10125_v52 = vpop.f32.mrb[217].mxu1  ;;  %v16837_v42 = vld [vmem:[#allocation5 + $0xac0] sm:$0xff]  }
 0x5d6   :  { %v10440_v7 = vmax.f32 %v19332_v45, %v10125_v52  ;;  %v15808_v27 = vpop.f32.mrb[218].mxu1 }
 0x5d7   :  { %v10443_v21 = vmax.f32 %v19334_v12, %v15808_v27  ;;  %v10128_v53 = vpop.f32.mrb[219].mxu1 }
 0x5d8   :  { %v10441_v24 = vmax.f32 %v19336_v32, %v10128_v53  ;;  %v15811_v6 = vpop.f32.mrb[220].mxu1 }
 0x5d9   :  { %v19358_v58 = vmax.f32 %v10430_v36, %v15811_v6  ;;  %v10141_v17 = vpop.f32.mrb[221].mxu1 }
 0x5da   :  { %v19360_v25 = vmax.f32 %v10428_v55, %v10141_v17  ;;  %v15812_v19 = vpop.f32.mrb[222].mxu1 }
 0x5db   :  { %15610 = vmatmul.mubr.msk.bf16.gmra.mrb[16].mxu0 %vm589_vm0, %v16824_v54  ;;  %v19362_v63 = vmax.f32 %v10431_v3, %v15812_v19  ;;  %v10144_v54 = vpop.f32.mrb[223].mxu1 }
 0x5dc   :  { %15613 = vmatprep.mubr.msk.bf16.mxu0 %vm589_vm0, %v16827_v57  ;;  %v19365_v29 = vmax.f32 %v10429_v30, %v10144_v54  ;;  %v15815_v61 = vpop.f32.mrb[224].mxu1  ;;  %v16842_v54 = vld [vmem:[#allocation5 + $0xae8] sm:$0xff]  }
 0x5dd   :  { %v19368_v57 = vmax.f32 %v10434_v31, %v15815_v61  ;;  %v10157_v47 = vpop.f32.mrb[225].mxu1 }
 0x5de   :  { %v19370_v8 = vmax.f32 %v10432_v35, %v10157_v47  ;;  %v15816_v23 = vpop.f32.mrb[226].mxu1 }
 0x5df   :  { %v19372_v62 = vmax.f32 %v10435_v20, %v15816_v23  ;;  %v10160_v56 = vpop.f32.mrb[227].mxu1 }
 0x5e0   :  { %v19374_v28 = vmax.f32 %v10433_v13, %v10160_v56  ;;  %v15819_v14 = vpop.f32.mrb[228].mxu1 }
 0x5e1   :  { %v19376_v40 = vmax.f32 %v10438_v22, %v15819_v14  ;;  %v10173_v45 = vpop.f32.mrb[229].mxu1 }
 0x5e2   :  { %v19378_v2 = vmax.f32 %v10436_v15, %v10173_v45  ;;  %v15820_v12 = vpop.f32.mrb[230].mxu1 }
 0x5e3   :  { %15614 = vmatmul.mubr.msk.bf16.gmra.mrb[20].mxu0 %vm589_vm0, %v16828_v26  ;;  %v19380_v33 = vmax.f32 %v10439_v1, %v15820_v12  ;;  %v10176_v26 = vpop.f32.mrb[231].mxu1 }
 0x5e4   :  { %15617 = vmatprep.mubr.msk.bf16.mxu0 %vm589_vm0, %v16831_v16  ;;  %v19383_v32 = vmax.f32 %v10437_v10, %v10176_v26  ;;  %v15823_v11 = vpop.f32.mrb[232].mxu1 }
 0x5e5   :  { %v19386_v16 = vmax.f32 %v10442_v4, %v15823_v11  ;;  %v10189_v36 = vpop.f32.mrb[233].mxu1  ;;  %v16841_v4 = vld [vmem:[#allocation5 + $0xae0] sm:$0xff]  }
 0x5e6   :  { %v19388_v59 = vmax.f32 %v10440_v7, %v10189_v36  ;;  %v15824_v55 = vpop.f32.mrb[234].mxu1  ;;  %v16845_v11 = vld [vmem:[#allocation5 + $0xb00] sm:$0xff]  }
 0x5e7   :  { %v19390_v50 = vmax.f32 %v10443_v21, %v15824_v55  ;;  %v10192_v3 = vpop.f32.mrb[235].mxu1 }
 0x5e8   :  { %v19392_v41 = vmax.f32 %v10441_v24, %v10192_v3  ;;  %v15827_v30 = vpop.f32.mrb[236].mxu1 }
 0x5e9   :  { %v10462_v31 = vmax.f32 %v19358_v58, %v15827_v30  ;;  %v10205_v60 = vpop.f32.mrb[237].mxu1 }
 0x5ea   :  { %v10460_v35 = vmax.f32 %v19360_v25, %v10205_v60  ;;  %v15828_v51 = vpop.f32.mrb[238].mxu1 }
 0x5eb   :  { %15618 = vmatmul.mubr.msk.bf16.gmra.mrb[24].mxu0 %vm589_vm0, %v16832_v9  ;;  %v10463_v20 = vmax.f32 %v19362_v63, %v15828_v51  ;;  %v10208_v37 = vpop.f32.mrb[239].mxu1  ;;  %v16872_v9 = vld [vmem:[#allocation10 + $0x148] sm:$0xff]  }
 0x5ec   :  { %15621 = vmatprep.mubr.msk.bf16.mxu0 %vm589_vm0, %v16833_v46  ;;  %v10461_v13 = vmax.f32 %v19365_v29, %v10208_v37  ;;  %v15831_v49 = vpop.f32.mrb[240].mxu1  ;;  %15711 = vmatprep.subr.bf16.mxu0 %v16872_v9 }
 0x5ed   :  { %v10466_v46 = vmax.f32 %v19368_v57, %v15831_v49  ;;  %v10221_v22 = vpop.f32.mrb[241].mxu1  ;;  %15712 = vmatpush3.bf16.msra.mxu0 %v16872_v9  ;;  %v16843_v57 = vld [vmem:[#allocation5 + $0xaf0] sm:$0xff]  }
 0x5ee   :  { %v10464_v44 = vmax.f32 %v19370_v8, %v10221_v22  ;;  %v15832_v15 = vpop.f32.mrb[242].mxu1  ;;  %v16847_v9 = vld [vmem:[#allocation5 + $0xb10] sm:$0xff]  }
 0x5ef   :  { %v10467_v43 = vmax.f32 %v19372_v62, %v15832_v15  ;;  %v10224_v1 = vpop.f32.mrb[243].mxu1 }
 0x5f0   :  { %v10465_v10 = vmax.f32 %v19374_v28, %v10224_v1  ;;  %v15835_v39 = vpop.f32.mrb[244].mxu1  ;;  %v19439_v1 = vld [vmem:[#allocation9] ss:$0 sm:$0xff] }
 0x5f1   :  { %v10470_v52 = vmax.f32 %v19376_v40, %v15835_v39  ;;  %v10237_v7 = vpop.f32.mrb[245].mxu1 }
 0x5f2   :  { %v10468_v27 = vmax.f32 %v19378_v2, %v10237_v7  ;;  %v15836_v21 = vpop.f32.mrb[246].mxu1 }
 0x5f3   :  { %15622 = vmatmul.mubr.msk.bf16.gmra.mrb[28].mxu0 %vm589_vm0, %v16834_v34  ;;  %v10471_v53 = vmax.f32 %v19380_v33, %v15836_v21  ;;  %v10240_v34 = vpop.f32.mrb[247].mxu1  ;;  %v16844_v33 = vld [vmem:[#allocation5 + $0xaf8] sm:$0xff]  }
 0x5f4   :  { %15625 = vmatprep.mubr.msk.bf16.mxu0 %vm589_vm0, %v16835_v48  ;;  %v10469_v24 = vmax.f32 %v19383_v32, %v10240_v34  ;;  %v15839_v6 = vpop.f32.mrb[248].mxu1  ;;  %v16848_v34 = vld [vmem:[#allocation5 + $0xb18] sm:$0xff]  }
 0x5f5   :  { %v10474_v48 = vmax.f32 %v19386_v16, %v15839_v6  ;;  %v10253_v58 = vpop.f32.mrb[249].mxu1  ;;  %v16849_v6 = vld [vmem:[#allocation5 + $0xb20] sm:$0xff]  }
 0x5f6   :  { %v10472_v17 = vmax.f32 %v19388_v59, %v10253_v58  ;;  %v15840_v25 = vpop.f32.mrb[250].mxu1 }
 0x5f7   :  { %v10475_v19 = vmax.f32 %v19390_v50, %v15840_v25  ;;  %v10256_v63 = vpop.f32.mrb[251].mxu1 }
 0x5f8   :  { %v10473_v29 = vmax.f32 %v19392_v41, %v10256_v63  ;;  %v15843_v61 = vpop.f32.mrb[252].mxu1 }
 0x5f9   :  { %v10478_v47 = vmax.f32 %v10462_v31, %v15843_v61  ;;  %v10269_v8 = vpop.f32.mrb[253].mxu1 }
 0x5fa   :  { %v10476_v23 = vmax.f32 %v10460_v35, %v10269_v8  ;;  %v15844_v62 = vpop.f32.mrb[254].mxu1 }
 0x5fb   :  { %15626 = vmatmul.mubr.msk.bf16.gmra.mrb[32].mxu0 %vm589_vm0, %v16836_v0  ;;  %v10479_v56 = vmax.f32 %v10463_v20, %v15844_v62  ;;  %v10272_v0 = vpop.f32.mrb[255].mxu1  ;;  %v16846_v20 = vld [vmem:[#allocation5 + $0xb08] sm:$0xff]  }
 0x5fc   :  { %15629 = vmatprep.mubr.msk.bf16.mxu0 %vm589_vm0, %v16837_v42  ;;  %v10477_v28 = vmax.f32 %v10461_v13, %v10272_v0 }
 0x5fe   :  { %v15847_v14 = vpop.f32.mrb[0].mxu1 }
 0x5ff   :  { %v10482_v42 = vmax.f32 %v10466_v46, %v15847_v14  ;;  %v10285_v40 = vpop.f32.mrb[1].mxu1  ;;  %v16850_v14 = vld [vmem:[#allocation5 + $0xb28] sm:$0xff]  }
 0x600   :  { %v19416_v45 = vmax.f32 %v10464_v44, %v10285_v40  ;;  %v15848_v2 = vpop.f32.mrb[2].mxu1  ;;  %v16851_v40 = vld [vmem:[#allocation5 + $0xb30] sm:$0xff]  }
 0x601   :  { %v10288_v12 = vpop.f32.mrb[3].mxu1  ;;  %v19418_v26 = vmax.f32 %v10467_v43, %v15848_v2  ;;  %v16879_v43 = vld [vmem:[#allocation10 + $0x150] sm:$0xff]  }
 0x602   :  { %v10481_v16 = vmax.f32 %v10465_v10, %v10288_v12  ;;  %15713 = vmatprep.subr.bf16.mxu0 %v16879_v43 }
 0x603   :  { %15630 = vmatmul.mubr.msk.bf16.gmra.mrb[36].mxu0 %vm589_vm0, %v16838_v18 }
 0x604   :  { %15633 = vmatprep.mubr.msk.bf16.mxu0 %vm589_vm0, %v16839_v5  ;;  %15714 = vmatpush3.bf16.msra.mxu0 %v16879_v43 }
 0x606   :  { %v15851_v32 = vpop.f32.mrb[4].mxu1 }
 0x607   :  { %v10301_v36 = vpop.f32.mrb[5].mxu1  ;;  %v19420_v59 = vmax.f32 %v10470_v52, %v15851_v32 }
 0x608   :  { %v15852_v55 = vpop.f32.mrb[6].mxu1  ;;  %v19422_v50 = vmax.f32 %v10468_v27, %v10301_v36 }
 0x609   :  { %v19424_v3 = vmax.f32 %v10471_v53, %v15852_v55  ;;  %v10304_v18 = vpop.f32.mrb[7].mxu1 }
 0x60a   :  { %v19427_v41 = vmax.f32 %v10469_v24, %v10304_v18 }
 0x60b   :  { %15634 = vmatmul.mubr.msk.bf16.gmra.mrb[40].mxu0 %vm589_vm0, %v16840_v38 }
 0x60c   :  { %15637 = vmatprep.mubr.msk.bf16.mxu0 %vm589_vm0, %v16841_v4 }
 0x60e   :  { %v15855_v30 = vpop.f32.mrb[8].mxu1 }
 0x60f   :  { %v19430_v5 = vmax.f32 %v10474_v48, %v15855_v30  ;;  %v10317_v31 = vpop.f32.mrb[9].mxu1 }
 0x610   :  { %v19432_v60 = vmax.f32 %v10472_v17, %v10317_v31  ;;  %v15856_v35 = vpop.f32.mrb[10].mxu1 }
 0x611   :  { %v10320_v51 = vpop.f32.mrb[11].mxu1  ;;  %v19434_v37 = vmax.f32 %v10475_v19, %v15856_v35 }
 0x612   :  { %v19436_v13 = vmax.f32 %v10473_v29, %v10320_v51 }
 0x613   :  { %15638 = vmatmul.mubr.msk.bf16.gmra.mrb[44].mxu0 %vm589_vm0, %v16842_v54 }
 0x614   :  { %15641 = vmatprep.mubr.msk.bf16.mxu0 %vm589_vm0, %v16843_v57 }
 0x616   :  { %v15859_v49 = vpop.f32.mrb[12].mxu1 }
 0x617   :  { %v10494_v46 = vmax.f32 %v10478_v47, %v15859_v49  ;;  %v10333_v22 = vpop.f32.mrb[13].mxu1  ;;  %v16853_v49 = vld [vmem:[#allocation5 + $0xb40] sm:$0xff]  }
 0x618   :  { %v10492_v44 = vmax.f32 %v10476_v23, %v10333_v22  ;;  %v15860_v15 = vpop.f32.mrb[14].mxu1 }
 0x619   :  { %v10510_v38 = vadd.f32 %v19439_v1, %v10494_v46  ;;  %v10495_v10 = vmax.f32 %v10479_v56, %v15860_v15  ;;  %v10336_v39 = vpop.f32.mrb[15].mxu1 }
 0x61a   :  { %v10508_v4 = vadd.f32 %v19439_v1, %v10492_v44  ;;  %v10493_v52 = vmax.f32 %v10477_v28, %v10336_v39 }
 0x61b   :  { %15642 = vmatmul.mubr.msk.bf16.gmra.mrb[48].mxu0 %vm589_vm0, %v16844_v33  ;;  %v10526_v7 = vmax.f32 %v10510_v38, 0.0  ;;  %v10511_v27 = vadd.f32 %v19439_v1, %v10495_v10 }
 0x61c   :  { %15645 = vmatprep.mubr.msk.bf16.mxu0 %vm589_vm0, %v16845_v11  ;;  %v10524_v21 = vmax.f32 %v10508_v4, 0.0  ;;  %v10509_v53 = vadd.f32 %v19439_v1, %v10493_v52 }
 0x61d   :  { %v10527_v24 = vmax.f32 %v10511_v27, 0.0 }
 0x61e   :  { %v10525_v48 = vmax.f32 %v10509_v53, 0.0  ;;  %v15863_v58 = vpop.f32.mrb[16].mxu1  ;;  %v16854_v53 = vld [vmem:[#allocation5 + $0xb48] sm:$0xff]  }
 0x61f   :  { %v19446_v17 = vpack.c.bf16 %v10527_v24, %v10526_v7  ;;  %v10498_v25 = vmax.f32 %v10482_v42, %v15863_v58  ;;  %v10349_v19 = vpop.f32.mrb[17].mxu1  ;;  %v16855_v24 = vld [vmem:[#allocation5 + $0xb50] sm:$0xff]  }
 0x620   :  { %v10496_v63 = vmax.f32 %v19416_v45, %v10349_v19  ;;  %v15864_v54 = vpop.f32.mrb[18].mxu1  ;;  %v19449_v29 = vpack.c.bf16 %v10525_v48, %v10524_v21  ;;  %v16858_v19 = vld [vmem:[#allocation5 + $0xb68] sm:$0xff]  }
 0x621   :  { %v10514_v61 = vadd.f32 %v19439_v1, %v10498_v25  ;;  %v10499_v57 = vmax.f32 %v19418_v26, %v15864_v54  ;;  %v10352_v47 = vpop.f32.mrb[19].mxu1  ;;  %v16857_v25 = vld [vmem:[#allocation5 + $0xb60] sm:$0xff]   ;;  %v16860_v54 = vld [vmem:[#allocation5 + $0xb78] sm:$0xff]  }
 0x622   :  { %v10512_v8 = vadd.f32 %v19439_v1, %v10496_v63  ;;  %v10497_v23 = vmax.f32 %v10481_v16, %v10352_v47  ;;  %v16859_v63 = vld [vmem:[#allocation5 + $0xb70] sm:$0xff]  }
 0x623   :  { %15646 = vmatmul.mubr.msk.bf16.gmra.mrb[52].mxu0 %vm589_vm0, %v16846_v20  ;;  %v10530_v62 = vmax.f32 %v10514_v61, 0.0  ;;  %v10515_v56 = vadd.f32 %v19439_v1, %v10499_v57  ;;  %v16852_v20 = vld [vmem:[#allocation5 + $0xb38] sm:$0xff]   ;;  %v16861_v61 = vld [vmem:[#allocation5 + $0xb80] sm:$0xff]   ;;  %v16862_v57 = vld [vmem:[#allocation5 + $0xb88] sm:$0xff]  }
 0x624   :  { %15649 = vmatprep.mubr.msk.bf16.mxu0 %vm589_vm0, %v16847_v9  ;;  %v10528_v0 = vmax.f32 %v10512_v8, 0.0  ;;  %v10513_v28 = vadd.f32 %v19439_v1, %v10497_v23  ;;  %v16864_v47 = vld [vmem:[#allocation5 + $0xb90] sm:$0xff]   ;;  %v16865_v23 = vld [vmem:[#allocation5 + $0xb98] sm:$0xff]  }
 0x625   :  { %v10531_v42 = vmax.f32 %v10515_v56, 0.0  ;;  %v16881_v8 = vld [vmem:[#allocation10 + $0x160] sm:$0xff]   ;;  %v16867_v56 = vld [vmem:[#allocation5 + $0xba8] sm:$0xff]  }
 0x626   :  { %v10529_v45 = vmax.f32 %v10513_v28, 0.0  ;;  %v15867_v2 = vpop.f32.mrb[20].mxu1 }
 0x627   :  { %v10502_v12 = vmax.f32 %v19420_v59, %v15867_v2  ;;  %v10365_v33 = vpop.f32.mrb[21].mxu1  ;;  %v19459_v26 = vpack.c.bf16 %v10531_v42, %v10530_v62  ;;  %v16866_v62 = vld [vmem:[#allocation5 + $0xba0] sm:$0xff]   ;;  %v16869_v42 = vld [vmem:[#allocation5 + $0xbb8] sm:$0xff]  }
 0x628   :  { %v10500_v32 = vmax.f32 %v19422_v50, %v10365_v33  ;;  %v15868_v11 = vpop.f32.mrb[22].mxu1  ;;  %v19462_v16 = vpack.c.bf16 %v10529_v45, %v10528_v0  ;;  %v16868_v0 = vld [vmem:[#allocation5 + $0xbb0] sm:$0xff]   ;;  %v16870_v45 = vld [vmem:[#allocation5 + $0xbc0] sm:$0xff]  }
 0x629   :  { %v10518_v36 = vadd.f32 %v19439_v1, %v10502_v12  ;;  %v10503_v55 = vmax.f32 %v19424_v3, %v15868_v11  ;;  %v10368_v18 = vpop.f32.mrb[23].mxu1 }
 0x62a   :  { %v10516_v30 = vadd.f32 %v19439_v1, %v10500_v32  ;;  %v10501_v59 = vmax.f32 %v19427_v41, %v10368_v18  ;;  %v16871_v32 = vld [vmem:[#allocation5 + $0xbc8] sm:$0xff]   ;;  %v16882_v18 = vld [vmem:[#allocation10 + $0x168] sm:$0xff]  }
 0x62b   :  { %15650 = vmatmul.mubr.msk.bf16.gmra.mrb[56].mxu0 %vm589_vm0, %v16848_v34  ;;  %v10534_v31 = vmax.f32 %v10518_v36, 0.0  ;;  %v10519_v35 = vadd.f32 %v19439_v1, %v10503_v55  ;;  %v16873_v36 = vld [vmem:[#allocation5 + $0xbd0] sm:$0xff]  }
 0x62c   :  { %15653 = vmatprep.mubr.msk.bf16.mxu0 %vm589_vm0, %v16849_v6  ;;  %v10532_v50 = vmax.f32 %v10516_v30, 0.0  ;;  %v10517_v51 = vadd.f32 %v19439_v1, %v10501_v59 }
 0x62d   :  { %v10535_v9 = vmax.f32 %v10519_v35, 0.0 }
 0x62e   :  { %v10533_v46 = vmax.f32 %v10517_v51, 0.0  ;;  %v15871_v22 = vpop.f32.mrb[24].mxu1 }
 0x62f   :  { %v10506_v3 = vmax.f32 %v19430_v5, %v15871_v22  ;;  %v10381_v44 = vpop.f32.mrb[25].mxu1  ;;  %v19473_v15 = vpack.c.bf16 %v10535_v9, %v10534_v31  ;;  %v16874_v31 = vld [vmem:[#allocation5 + $0xbd8] sm:$0xff]   ;;  %v16877_v22 = vld [vmem:[#allocation5 + $0xbf0] sm:$0xff]  }
 0x630   :  { %v10504_v43 = vmax.f32 %v19432_v60, %v10381_v44  ;;  %v15872_v38 = vpop.f32.mrb[26].mxu1  ;;  %v19476_v41 = vpack.c.bf16 %v10533_v46, %v10532_v50  ;;  %v16875_v50 = vld [vmem:[#allocation5 + $0xbe0] sm:$0xff]  }
 0x631   :  { %v10522_v10 = vadd.f32 %v19439_v1, %v10506_v3  ;;  %v10507_v39 = vmax.f32 %v19434_v37, %v15872_v38  ;;  %v10384_v4 = vpop.f32.mrb[27].mxu1  ;;  %v16880_v37 = vld [vmem:[#allocation10 + $0x158] sm:$0xff]  }
 0x632   :  { %v10520_v52 = vadd.f32 %v19439_v1, %v10504_v43  ;;  %v10505_v5 = vmax.f32 %v19436_v13, %v10384_v4  ;;  %15715 = vmatprep.subr.bf16.mxu0 %v16880_v37  ;;  %v16856_v13 = vld [vmem:[#allocation5 + $0xb58] sm:$0xff]  }
 0x633   :  { %15654 = vmatmul.mubr.msk.bf16.gmra.mrb[60].mxu0 %vm589_vm0, %v16850_v14  ;;  %v10538_v7 = vmax.f32 %v10522_v10, 0.0  ;;  %v10523_v27 = vadd.f32 %v19439_v1, %v10507_v39  ;;  %v16878_v10 = vld [vmem:[#allocation5 + $0xbf8] sm:$0xff]  }
 0x634   :  { %15657 = vmatprep.mubr.msk.bf16.mxu0 %vm589_vm0, %v16851_v40  ;;  %v10536_v60 = vmax.f32 %v10520_v52, 0.0  ;;  %v10521_v21 = vadd.f32 %v19439_v1, %v10505_v5  ;;  %15716 = vmatpush3.bf16.msra.mxu0 %v16880_v37 }
 0x635   :  { %v10539_v34 = vmax.f32 %v10523_v27, 0.0  ;;  %15717 = vmatprep.subr.bf16.mxu0 %v16881_v8 }
 0x636   :  { %v10537_v6 = vmax.f32 %v10521_v21, 0.0 }
 0x637   :  { %v19486_v48 = vpack.c.bf16 %v10539_v34, %v10538_v7 }
 0x638   :  { %v19488_v58 = vpack.c.bf16 %v10537_v6, %v10536_v60  ;;  %15718 = vmatpush3.bf16.msra.mxu0 %v16881_v8 }
 0x639   :  { %15719 = vmatprep.subr.bf16.mxu0 %v16882_v18 }
 0x63b   :  { %15658 = vmatmul.mubr.msk.bf16.gmra.mrb[64].mxu0 %vm589_vm0, %v16852_v20 }
 0x63c   :  { %15661 = vmatprep.mubr.msk.bf16.mxu0 %vm589_vm0, %v16853_v49  ;;  %15720 = vmatpush3.bf16.msra.mxu0 %v16882_v18  ;;  %v16876_v49 = vld [vmem:[#allocation5 + $0xbe8] sm:$0xff]  }
 0x643   :  { %15662 = vmatmul.mubr.msk.bf16.gmra.mrb[68].mxu0 %vm589_vm0, %v16854_v53 }
 0x644   :  { %15665 = vmatprep.mubr.msk.bf16.mxu0 %vm589_vm0, %v16855_v24 }
 0x64b   :  { %15666 = vmatmul.mubr.msk.bf16.gmra.mrb[72].mxu0 %vm589_vm0, %v16856_v13  ;;  %v16883_v13 = vld [vmem:[#allocation10 + $0x170] sm:$0xff]  }
 0x64c   :  { %15669 = vmatprep.mubr.msk.bf16.mxu0 %vm589_vm0, %v16857_v25  ;;  %15721 = vmatprep.subr.bf16.mxu0 %v16883_v13 }
 0x64d   :  { %15722 = vmatpush3.bf16.msra.mxu0 %v16883_v13 }
 0x653   :  { %15670 = vmatmul.mubr.msk.bf16.gmra.mrb[76].mxu0 %vm589_vm0, %v16858_v19 }
 0x654   :  { %15673 = vmatprep.mubr.msk.bf16.mxu0 %vm589_vm0, %v16859_v63 }
 0x65b   :  { %15674 = vmatmul.mubr.msk.bf16.gmra.mrb[80].mxu0 %vm589_vm0, %v16860_v54 }
 0x65c   :  { %15677 = vmatprep.mubr.msk.bf16.mxu0 %vm589_vm0, %v16861_v61 }
 0x663   :  { %15678 = vmatmul.mubr.msk.bf16.gmra.mrb[84].mxu0 %vm589_vm0, %v16862_v57 }
 0x664   :  { %15681 = vmatprep.mubr.msk.bf16.mxu0 %vm589_vm0, %v16864_v47 }
 0x66b   :  { %15682 = vmatmul.mubr.msk.bf16.gmra.mrb[88].mxu0 %vm589_vm0, %v16865_v23 }
 0x66c   :  { %15685 = vmatprep.mubr.msk.bf16.mxu0 %vm589_vm0, %v16866_v62 }
 0x673   :  { %15686 = vmatmul.mubr.msk.bf16.gmra.mrb[92].mxu0 %vm589_vm0, %v16867_v56 }
 0x674   :  { %15689 = vmatprep.mubr.msk.bf16.mxu0 %vm589_vm0, %v16868_v0 }
 0x676   :  { %v19504_v28 = vpop.f32.mrb[244].mxu0 }
 0x677   :  { %v19506_v14 = vpop.f32.mrb[245].mxu0 }
 0x678   :  { %v19508_v40 = vpop.f32.mrb[246].mxu0 }
 0x679   :  { %v19510_v2 = vpop.f32.mrb[247].mxu0 }
 0x67b   :  { %15690 = vmatmul.mubr.msk.bf16.gmra.mrb[96].mxu0 %vm589_vm0, %v16869_v42 }
 0x67c   :  { %15693 = vmatprep.mubr.msk.bf16.mxu0 %vm589_vm0, %v16870_v45 }
 0x67e   :  { %v19514_v12 = vpop.f32.mrb[248].mxu0 }
 0x67f   :  { %v19516_v33 = vpop.f32.mrb[249].mxu0 }
 0x680   :  { %v19518_v11 = vpop.f32.mrb[250].mxu0 }
 0x681   :  { %v19520_v55 = vpop.f32.mrb[251].mxu0 }
 0x683   :  { %15694 = vmatmul.mubr.msk.bf16.gmra.mrb[116].mxu0 %vm589_vm0, %v16871_v32 }
 0x684   :  { %15697 = vmatprep.mubr.msk.bf16.mxu0 %vm589_vm0, %v16873_v36 }
 0x686   :  { %v19524_v30 = vpop.f32.mrb[252].mxu0 }
 0x687   :  { %v19526_v59 = vpop.f32.mrb[253].mxu0 }
 0x688   :  { %v19528_v35 = vpop.f32.mrb[254].mxu0 }
 0x689   :  { %v19530_v51 = vpop.f32.mrb[255].mxu0 }
 0x68b   :  { %15698 = vmatmul.mubr.msk.bf16.gmra.mrb[120].mxu0 %vm589_vm0, %v16874_v31 }
 0x68c   :  { %15701 = vmatprep.mubr.msk.bf16.mxu0 %vm589_vm0, %v16875_v50 }
 0x68e   :  { %v19534_v20 = vpop.f32.mrb[0].mxu0 }
 0x68f   :  { %v19536_v9 = vpop.f32.mrb[1].mxu0 }
 0x690   :  { %v19538_v46 = vpop.f32.mrb[2].mxu0 }
 0x691   :  { %v19540_v3 = vpop.f32.mrb[3].mxu0 }
 0x693   :  { %15702 = vmatmul.mubr.msk.bf16.gmra.mrb[124].mxu0 %vm589_vm0, %v16876_v49 }
 0x694   :  { %15705 = vmatprep.mubr.msk.bf16.mxu0 %vm589_vm0, %v16877_v22 }
 0x696   :  { %v15599_v44 = vpop.f32.mrb[4].mxu0 }
 0x697   :  { %v8882_v43 = vmax.f32 %v19504_v28, %v15599_v44  ;;  %v8433_v38 = vpop.f32.mrb[5].mxu0 }
 0x698   :  { %v8880_v39 = vmax.f32 %v19506_v14, %v8433_v38  ;;  %v15600_v4 = vpop.f32.mrb[6].mxu0 }
 0x699   :  { %v8883_v52 = vmax.f32 %v19508_v40, %v15600_v4  ;;  %v8436_v5 = vpop.f32.mrb[7].mxu0 }
 0x69a   :  { %v8881_v7 = vmax.f32 %v19510_v2, %v8436_v5 }
 0x69b   :  { %15706 = vmatmul.mubr.msk.bf16.gmra.mrb[128].mxu0 %vm589_vm0, %v16878_v10 }
 0x69e   :  { %v15603_v27 = vpop.f32.mrb[8].mxu0 }
 0x69f   :  { %v8886_v60 = vmax.f32 %v19514_v12, %v15603_v27  ;;  %v8449_v21 = vpop.f32.mrb[9].mxu0 }
 0x6a0   :  { %v8884_v53 = vmax.f32 %v19516_v33, %v8449_v21  ;;  %v15604_v34 = vpop.f32.mrb[10].mxu0 }
 0x6a1   :  { %v8887_v24 = vmax.f32 %v19518_v11, %v15604_v34  ;;  %v8452_v6 = vpop.f32.mrb[11].mxu0 }
 0x6a2   :  { %v8885_v37 = vmax.f32 %v19520_v55, %v8452_v6 }
 0x6a6   :  { %v15607_v25 = vpop.f32.mrb[12].mxu0 }
 0x6a7   :  { %v8890_v19 = vmax.f32 %v19524_v30, %v15607_v25  ;;  %v8465_v63 = vpop.f32.mrb[13].mxu0 }
 0x6a8   :  { %v8888_v54 = vmax.f32 %v19526_v59, %v8465_v63  ;;  %v15608_v61 = vpop.f32.mrb[14].mxu0 }
 0x6a9   :  { %v8891_v57 = vmax.f32 %v19528_v35, %v15608_v61  ;;  %v8468_v47 = vpop.f32.mrb[15].mxu0 }
 0x6aa   :  { %v8889_v8 = vmax.f32 %v19530_v51, %v8468_v47 }
 0x6ae   :  { %v15611_v23 = vpop.f32.mrb[16].mxu0 }
 0x6af   :  { %v8894_v62 = vmax.f32 %v19534_v20, %v15611_v23  ;;  %v8481_v56 = vpop.f32.mrb[17].mxu0 }
 0x6b0   :  { %v8892_v0 = vmax.f32 %v19536_v9, %v8481_v56  ;;  %v15612_v28 = vpop.f32.mrb[18].mxu0  ;;  %v16884_v9 = vld [vmem:[#allocation10 + $0x178] sm:$0xff]  }
 0x6b1   :  { %v8895_v14 = vmax.f32 %v19538_v46, %v15612_v28  ;;  %v8484_v42 = vpop.f32.mrb[19].mxu0  ;;  %15723 = vmatprep.subr.bf16.mxu0 %v16884_v9 }
 0x6b2   :  { %v8893_v40 = vmax.f32 %v19540_v3, %v8484_v42  ;;  %15724 = vmatpush3.bf16.msra.mxu0 %v16884_v9 }
 0x6b6   :  { %v15615_v45 = vpop.f32.mrb[20].mxu0 }
 0x6b7   :  { %v19561_v2 = vmax.f32 %v8882_v43, %v15615_v45  ;;  %v8497_v12 = vpop.f32.mrb[21].mxu0 }
 0x6b8   :  { %v19563_v33 = vmax.f32 %v8880_v39, %v8497_v12  ;;  %v15616_v32 = vpop.f32.mrb[22].mxu0 }
 0x6b9   :  { %v19565_v11 = vmax.f32 %v8883_v52, %v15616_v32  ;;  %v8500_v36 = vpop.f32.mrb[23].mxu0 }
 0x6ba   :  { %v19567_v55 = vmax.f32 %v8881_v7, %v8500_v36 }
 0x6be   :  { %v15619_v18 = vpop.f32.mrb[24].mxu0 }
 0x6bf   :  { %v19569_v30 = vmax.f32 %v8886_v60, %v15619_v18  ;;  %v8513_v59 = vpop.f32.mrb[25].mxu0 }
 0x6c0   :  { %v19571_v31 = vmax.f32 %v8884_v53, %v8513_v59  ;;  %v15620_v35 = vpop.f32.mrb[26].mxu0 }
 0x6c1   :  { %v19573_v50 = vmax.f32 %v8887_v24, %v15620_v35  ;;  %v8516_v51 = vpop.f32.mrb[27].mxu0 }
 0x6c2   :  { %v19575_v20 = vmax.f32 %v8885_v37, %v8516_v51 }
 0x6c6   :  { %v15623_v49 = vpop.f32.mrb[28].mxu0 }
 0x6c7   :  { %v19577_v46 = vmax.f32 %v8890_v19, %v15623_v49  ;;  %v8529_v22 = vpop.f32.mrb[29].mxu0 }
 0x6c8   :  { %v19579_v3 = vmax.f32 %v8888_v54, %v8529_v22  ;;  %v15624_v44 = vpop.f32.mrb[30].mxu0 }
 0x6c9   :  { %v19581_v43 = vmax.f32 %v8891_v57, %v15624_v44  ;;  %v8532_v38 = vpop.f32.mrb[31].mxu0 }
 0x6ca   :  { %v19583_v10 = vmax.f32 %v8889_v8, %v8532_v38 }
 0x6ce   :  { %v15627_v39 = vpop.f32.mrb[32].mxu0 }
 0x6cf   :  { %v19585_v4 = vmax.f32 %v8894_v62, %v15627_v39  ;;  %v8545_v52 = vpop.f32.mrb[33].mxu0  ;;  %v19600_v62 = vld [vmem:[#allocation10 + $0x180] sm:$0xff]  }
 0x6d0   :  { %v19587_v5 = vmax.f32 %v8892_v0, %v8545_v52  ;;  %v15628_v7 = vpop.f32.mrb[34].mxu0  ;;  %15873 = vmatprep.subr.bf16.mxu0 %v19600_v62 }
 0x6d1   :  { %v19589_v27 = vmax.f32 %v8895_v14, %v15628_v7  ;;  %v8548_v60 = vpop.f32.mrb[35].mxu0 }
 0x6d2   :  { %v19591_v21 = vmax.f32 %v8893_v40, %v8548_v60 }
 0x6d6   :  { %v15631_v53 = vpop.f32.mrb[36].mxu0 }
 0x6d7   :  { %v8914_v34 = vmax.f32 %v19561_v2, %v15631_v53  ;;  %v8561_v24 = vpop.f32.mrb[37].mxu0 }
 0x6d8   :  { %v8912_v6 = vmax.f32 %v19563_v33, %v8561_v24  ;;  %v15632_v37 = vpop.f32.mrb[38].mxu0 }
 0x6d9   :  { %v8915_v13 = vmax.f32 %v19565_v11, %v15632_v37  ;;  %v8564_v25 = vpop.f32.mrb[39].mxu0 }
 0x6da   :  { %v8913_v19 = vmax.f32 %v19567_v55, %v8564_v25 }
 0x6de   :  { %v15635_v63 = vpop.f32.mrb[40].mxu0 }
 0x6df   :  { %v8918_v54 = vmax.f32 %v19569_v30, %v15635_v63  ;;  %v8577_v61 = vpop.f32.mrb[41].mxu0 }
 0x6e0   :  { %v8916_v57 = vmax.f32 %v19571_v31, %v8577_v61  ;;  %v15636_v47 = vpop.f32.mrb[42].mxu0 }
 0x6e1   :  { %v8919_v8 = vmax.f32 %v19573_v50, %v15636_v47  ;;  %v8580_v23 = vpop.f32.mrb[43].mxu0 }
 0x6e2   :  { %v8917_v56 = vmax.f32 %v19575_v20, %v8580_v23 }
 0x6e6   :  { %v15639_v0 = vpop.f32.mrb[44].mxu0 }
 0x6e7   :  { %v8922_v28 = vmax.f32 %v19577_v46, %v15639_v0  ;;  %v8593_v14 = vpop.f32.mrb[45].mxu0 }
 0x6e8   :  { %v8920_v42 = vmax.f32 %v19579_v3, %v8593_v14  ;;  %v15640_v40 = vpop.f32.mrb[46].mxu0 }
 0x6e9   :  { %v8923_v45 = vmax.f32 %v19581_v43, %v15640_v40  ;;  %v8596_v2 = vpop.f32.mrb[47].mxu0 }
 0x6ea   :  { %v8921_v12 = vmax.f32 %v19583_v10, %v8596_v2 }
 0x6ee   :  { %v15643_v33 = vpop.f32.mrb[48].mxu0 }
 0x6ef   :  { %v8926_v32 = vmax.f32 %v19585_v4, %v15643_v33  ;;  %v8609_v11 = vpop.f32.mrb[49].mxu0 }
 0x6f0   :  { %v8924_v36 = vmax.f32 %v19587_v5, %v8609_v11  ;;  %v15644_v55 = vpop.f32.mrb[50].mxu0 }
 0x6f1   :  { %v8927_v18 = vmax.f32 %v19589_v27, %v15644_v55  ;;  %v8612_v30 = vpop.f32.mrb[51].mxu0 }
 0x6f2   :  { %v8925_v59 = vmax.f32 %v19591_v21, %v8612_v30 }
 0x6f6   :  { %v15647_v31 = vpop.f32.mrb[52].mxu0 }
 0x6f7   :  { %v19612_v35 = vmax.f32 %v8914_v34, %v15647_v31  ;;  %v8625_v50 = vpop.f32.mrb[53].mxu0 }
 0x6f8   :  { %v19614_v51 = vmax.f32 %v8912_v6, %v8625_v50  ;;  %v15648_v20 = vpop.f32.mrb[54].mxu0 }
 0x6f9   :  { %v19616_v9 = vmax.f32 %v8915_v13, %v15648_v20  ;;  %v8628_v49 = vpop.f32.mrb[55].mxu0 }
 0x6fa   :  { %v19618_v46 = vmax.f32 %v8913_v19, %v8628_v49 }
 0x6fe   :  { %v15651_v22 = vpop.f32.mrb[56].mxu0 }
 0x6ff   :  { %v19620_v3 = vmax.f32 %v8918_v54, %v15651_v22  ;;  %v8641_v44 = vpop.f32.mrb[57].mxu0 }
 0x700   :  { %v19622_v43 = vmax.f32 %v8916_v57, %v8641_v44  ;;  %v15652_v38 = vpop.f32.mrb[58].mxu0 }
 0x701   :  { %v19624_v10 = vmax.f32 %v8919_v8, %v15652_v38  ;;  %v8644_v39 = vpop.f32.mrb[59].mxu0 }
 0x702   :  { %v19626_v4 = vmax.f32 %v8917_v56, %v8644_v39 }
 0x706   :  { %v15655_v52 = vpop.f32.mrb[60].mxu0 }
 0x707   :  { %v19628_v5 = vmax.f32 %v8922_v28, %v15655_v52  ;;  %v8657_v7 = vpop.f32.mrb[61].mxu0 }
 0x708   :  { %v19630_v27 = vmax.f32 %v8920_v42, %v8657_v7  ;;  %v15656_v60 = vpop.f32.mrb[62].mxu0 }
 0x709   :  { %v19632_v21 = vmax.f32 %v8923_v45, %v15656_v60  ;;  %v8660_v53 = vpop.f32.mrb[63].mxu0 }
 0x70a   :  { %v19634_v34 = vmax.f32 %v8921_v12, %v8660_v53 }
 0x70e   :  { %v15659_v24 = vpop.f32.mrb[64].mxu0 }
 0x70f   :  { %v19636_v6 = vmax.f32 %v8926_v32, %v15659_v24  ;;  %v8673_v37 = vpop.f32.mrb[65].mxu0 }
 0x710   :  { %v19638_v13 = vmax.f32 %v8924_v36, %v8673_v37  ;;  %v15660_v25 = vpop.f32.mrb[66].mxu0 }
 0x711   :  { %v19640_v19 = vmax.f32 %v8927_v18, %v15660_v25  ;;  %v8676_v63 = vpop.f32.mrb[67].mxu0 }
 0x712   :  { %v19642_v54 = vmax.f32 %v8925_v59, %v8676_v63 }
 0x716   :  { %v15663_v61 = vpop.f32.mrb[68].mxu0 }
 0x717   :  { %v8946_v57 = vmax.f32 %v19612_v35, %v15663_v61  ;;  %v8689_v47 = vpop.f32.mrb[69].mxu0 }
 0x718   :  { %v8944_v8 = vmax.f32 %v19614_v51, %v8689_v47  ;;  %v15664_v23 = vpop.f32.mrb[70].mxu0 }
 0x719   :  { %v8947_v56 = vmax.f32 %v19616_v9, %v15664_v23  ;;  %v8692_v0 = vpop.f32.mrb[71].mxu0 }
 0x71a   :  { %v8945_v28 = vmax.f32 %v19618_v46, %v8692_v0 }
 0x71e   :  { %v15667_v14 = vpop.f32.mrb[72].mxu0 }
 0x71f   :  { %v8950_v42 = vmax.f32 %v19620_v3, %v15667_v14  ;;  %v8705_v40 = vpop.f32.mrb[73].mxu0 }
 0x720   :  { %v8948_v45 = vmax.f32 %v19622_v43, %v8705_v40  ;;  %v15668_v2 = vpop.f32.mrb[74].mxu0 }
 0x721   :  { %v8951_v12 = vmax.f32 %v19624_v10, %v15668_v2  ;;  %v8708_v33 = vpop.f32.mrb[75].mxu0 }
 0x722   :  { %v8949_v32 = vmax.f32 %v19626_v4, %v8708_v33 }
 0x726   :  { %v15671_v11 = vpop.f32.mrb[76].mxu0 }
 0x727   :  { %v8954_v36 = vmax.f32 %v19628_v5, %v15671_v11  ;;  %v8721_v55 = vpop.f32.mrb[77].mxu0 }
 0x728   :  { %v8952_v18 = vmax.f32 %v19630_v27, %v8721_v55  ;;  %v15672_v30 = vpop.f32.mrb[78].mxu0 }
 0x729   :  { %v8955_v59 = vmax.f32 %v19632_v21, %v15672_v30  ;;  %v8724_v31 = vpop.f32.mrb[79].mxu0 }
 0x72a   :  { %v8953_v35 = vmax.f32 %v19634_v34, %v8724_v31 }
 0x72e   :  { %v15675_v50 = vpop.f32.mrb[80].mxu0 }
 0x72f   :  { %v8958_v51 = vmax.f32 %v19636_v6, %v15675_v50  ;;  %v8737_v20 = vpop.f32.mrb[81].mxu0 }
 0x730   :  { %v8956_v9 = vmax.f32 %v19638_v13, %v8737_v20  ;;  %v15676_v49 = vpop.f32.mrb[82].mxu0 }
 0x731   :  { %v8959_v46 = vmax.f32 %v19640_v19, %v15676_v49  ;;  %v8740_v22 = vpop.f32.mrb[83].mxu0 }
 0x732   :  { %v8957_v3 = vmax.f32 %v19642_v54, %v8740_v22 }
 0x736   :  { %v15679_v44 = vpop.f32.mrb[84].mxu0 }
 0x737   :  { %v8962_v43 = vmax.f32 %v8946_v57, %v15679_v44  ;;  %v8753_v38 = vpop.f32.mrb[85].mxu0 }
 0x738   :  { %v8960_v10 = vmax.f32 %v8944_v8, %v8753_v38  ;;  %v15680_v39 = vpop.f32.mrb[86].mxu0 }
 0x739   :  { %v8963_v4 = vmax.f32 %v8947_v56, %v15680_v39  ;;  %v8756_v52 = vpop.f32.mrb[87].mxu0  ;;  %v16886_v39 = vld [vmem:[#allocation10 + $0x188] sm:$0xff]  }
 0x73a   :  { %v8961_v5 = vmax.f32 %v8945_v28, %v8756_v52 }
 0x73e   :  { %v15683_v7 = vpop.f32.mrb[88].mxu0 }
 0x73f   :  { %v8966_v27 = vmax.f32 %v8950_v42, %v15683_v7  ;;  %v8769_v60 = vpop.f32.mrb[89].mxu0 }
 0x740   :  { %v8964_v21 = vmax.f32 %v8948_v45, %v8769_v60  ;;  %v15684_v53 = vpop.f32.mrb[90].mxu0 }
 0x741   :  { %v8967_v34 = vmax.f32 %v8951_v12, %v15684_v53  ;;  %v8772_v24 = vpop.f32.mrb[91].mxu0 }
 0x742   :  { %v8965_v6 = vmax.f32 %v8949_v32, %v8772_v24 }
 0x746   :  { %v15687_v37 = vpop.f32.mrb[92].mxu0 }
 0x747   :  { %v19660_v13 = vmax.f32 %v8954_v36, %v15687_v37  ;;  %v8785_v25 = vpop.f32.mrb[93].mxu0 }
 0x748   :  { %v19662_v19 = vmax.f32 %v8952_v18, %v8785_v25  ;;  %v15688_v63 = vpop.f32.mrb[94].mxu0 }
 0x749   :  { %v19664_v54 = vmax.f32 %v8955_v59, %v15688_v63  ;;  %v8788_v61 = vpop.f32.mrb[95].mxu0 }
 0x74a   :  { %v19666_v57 = vmax.f32 %v8953_v35, %v8788_v61 }
 0x74e   :  { %v15691_v47 = vpop.f32.mrb[96].mxu0 }
 0x74f   :  { %v19668_v8 = vmax.f32 %v8958_v51, %v15691_v47  ;;  %v8801_v23 = vpop.f32.mrb[97].mxu0 }
 0x750   :  { %v19670_v56 = vmax.f32 %v8956_v9, %v8801_v23  ;;  %v15692_v0 = vpop.f32.mrb[98].mxu0 }
 0x751   :  { %v19672_v28 = vmax.f32 %v8959_v46, %v15692_v0  ;;  %v8804_v14 = vpop.f32.mrb[99].mxu0 }
 0x752   :  { %v19674_v42 = vmax.f32 %v8957_v3, %v8804_v14  ;;  %v16888_v14 = vld [vmem:[#allocation10 + $0x198] sm:$0xff]  }
 0x756   :  { %v15695_v40 = vpop.f32.mrb[116].mxu0 }
 0x757   :  { %v8978_v45 = vmax.f32 %v8962_v43, %v15695_v40  ;;  %v8817_v2 = vpop.f32.mrb[117].mxu0 }
 0x758   :  { %v8976_v12 = vmax.f32 %v8960_v10, %v8817_v2  ;;  %v15696_v33 = vpop.f32.mrb[118].mxu0 }
 0x759   :  { %v8994_v32 = vadd.f32 %v19439_v1, %v8978_v45  ;;  %v8979_v11 = vmax.f32 %v8963_v4, %v15696_v33  ;;  %v8820_v36 = vpop.f32.mrb[119].mxu0  ;;  %v16889_v33 = vld [vmem:[#allocation10 + $0x1a0] sm:$0xff]  }
 0x75a   :  { %v8992_v55 = vadd.f32 %v19439_v1, %v8976_v12  ;;  %v8977_v18 = vmax.f32 %v8961_v5, %v8820_v36 }
 0x75b   :  { %v8995_v30 = vadd.f32 %v19439_v1, %v8979_v11  ;;  %v9010_v31 = vmax.f32 %v8994_v32, 0.0 }
 0x75c   :  { %v8993_v59 = vadd.f32 %v19439_v1, %v8977_v18  ;;  %v9008_v50 = vmax.f32 %v8992_v55, 0.0 }
 0x75d   :  { %v9011_v35 = vmax.f32 %v8995_v30, 0.0 }
 0x75e   :  { %v9009_v51 = vmax.f32 %v8993_v59, 0.0  ;;  %v15699_v20 = vpop.f32.mrb[120].mxu0 }
 0x75f   :  { %v9025_v9 = vpack.c.bf16 %v9011_v35, %v9010_v31  ;;  %v8982_v49 = vmax.f32 %v8966_v27, %v15699_v20  ;;  %v8833_v46 = vpop.f32.mrb[121].mxu0 }
 0x760   :  { %v8980_v22 = vmax.f32 %v8964_v21, %v8833_v46  ;;  %v15700_v3 = vpop.f32.mrb[122].mxu0  ;;  %v9024_v44 = vpack.c.bf16 %v9009_v51, %v9008_v50  ;;  %v16887_v21 = vld [vmem:[#allocation10 + $0x190] sm:$0xff]   ;;  %v16890_v51 = vld [vmem:[#allocation10 + $0x1a8] sm:$0xff]  }
 0x761   :  { %v8998_v43 = vadd.f32 %v19439_v1, %v8982_v49  ;;  %v8983_v38 = vmax.f32 %v8967_v34, %v15700_v3  ;;  %v8836_v10 = vpop.f32.mrb[123].mxu0 }
 0x762   :  { %v8996_v4 = vadd.f32 %v19439_v1, %v8980_v22  ;;  %v8981_v52 = vmax.f32 %v8965_v6, %v8836_v10  ;;  %15725 = vmatprep.mubr.bf16.mxu0 %v9024_v44  ;;  %v16891_v22 = vld [vmem:[#allocation10 + $0x1b0] sm:$0xff]   ;;  %v16895_v10 = vld [vmem:[#allocation5 + $0xe10] sm:$0xff]  }
 0x763   :  { %v8999_v5 = vadd.f32 %v19439_v1, %v8983_v38  ;;  %15726 = vmatmul.mubr.bf16.vlgmr.msra.gmra.mrb[100].mxu0 %v9025_v9  ;;  %v9014_v27 = vmax.f32 %v8998_v43, 0.0  ;;  %v16892_v38 = vld [vmem:[#allocation10 + $0x1b8] sm:$0xff]  }
 0x764   :  { %v8997_v7 = vadd.f32 %v19439_v1, %v8981_v52  ;;  %15874 = vmatpush3.bf16.msra.mxu0 %v19600_v62  ;;  %v9012_v53 = vmax.f32 %v8996_v4, 0.0  ;;  %v16903_v4 = vld [vmem:[#allocation5 + $0xe50] sm:$0xff]   ;;  %v16904_v52 = vld [vmem:[#allocation5 + $0xe58] sm:$0xff]  }
 0x765   :  { %v9015_v60 = vmax.f32 %v8999_v5, 0.0  ;;  %15875 = vmatprep.subr.bf16.mxu0 %v16886_v39  ;;  %v16905_v5 = vld [vmem:[#allocation5 + $0xe60] sm:$0xff]  }
 0x766   :  { %v9013_v24 = vmax.f32 %v8997_v7, 0.0  ;;  %v15703_v34 = vpop.f32.mrb[124].mxu0  ;;  %v16906_v7 = vld [vmem:[#allocation5 + $0xe68] sm:$0xff]  }
 0x767   :  { %v8986_v37 = vmax.f32 %v19660_v13, %v15703_v34  ;;  %v8849_v25 = vpop.f32.mrb[125].mxu0  ;;  %v9027_v63 = vpack.c.bf16 %v9015_v60, %v9014_v27  ;;  %v16907_v27 = vld [vmem:[#allocation5 + $0xe70] sm:$0xff]   ;;  %v16908_v60 = vld [vmem:[#allocation5 + $0xe78] sm:$0xff]  }
 0x768   :  { %v8984_v6 = vmax.f32 %v19662_v19, %v8849_v25  ;;  %v15704_v61 = vpop.f32.mrb[126].mxu0  ;;  %15876 = vmatpush3.bf16.msra.mxu0 %v16886_v39  ;;  %v9026_v47 = vpack.c.bf16 %v9013_v24, %v9012_v53  ;;  %v16897_v39 = vld [vmem:[#allocation5 + $0xe20] sm:$0xff]   ;;  %v16910_v53 = vld [vmem:[#allocation5 + $0xe88] sm:$0xff]   ;;  %v16911_v24 = vld [vmem:[#allocation5 + $0xe90] sm:$0xff]  }
 0x769   :  { %v9002_v23 = vadd.f32 %v19439_v1, %v8986_v37  ;;  %v8987_v62 = vmax.f32 %v19664_v54, %v15704_v61  ;;  %v8852_v0 = vpop.f32.mrb[127].mxu0  ;;  %15877 = vmatprep.subr.bf16.mxu0 %v16887_v21  ;;  %v16943_v34 = vld [vmem:[#allocation10 + $0x1c0] sm:$0xff]   ;;  %v16913_v25 = vld [vmem:[#allocation5 + $0xea0] sm:$0xff]  }
 0x76a   :  { %v9000_v40 = vadd.f32 %v19439_v1, %v8984_v6  ;;  %v8985_v45 = vmax.f32 %v19666_v57, %v8852_v0  ;;  %15729 = vmatprep.mubr.bf16.mxu0 %v9026_v47  ;;  %v16912_v37 = vld [vmem:[#allocation5 + $0xe98] sm:$0xff]   ;;  %v16915_v6 = vld [vmem:[#allocation5 + $0xeb0] sm:$0xff]   ;;  %v16917_v47 = vld [vmem:[#allocation5 + $0xec0] sm:$0xff]  }
 0x76b   :  { %v9003_v13 = vadd.f32 %v19439_v1, %v8987_v62  ;;  %15730 = vmatmul.mubr.bf16.gmra.mrb[104].mxu0 %v9027_v63  ;;  %v9018_v2 = vmax.f32 %v9002_v23, 0.0  ;;  %v16914_v63 = vld [vmem:[#allocation5 + $0xea8] sm:$0xff]   ;;  %v16916_v61 = vld [vmem:[#allocation5 + $0xeb8] sm:$0xff]   ;;  %v16919_v62 = vld [vmem:[#allocation5 + $0xed0] sm:$0xff]  }
 0x76c   :  { %v9001_v19 = vadd.f32 %v19439_v1, %v8985_v45  ;;  %15878 = vmatpush3.bf16.msra.mxu0 %v16887_v21  ;;  %v9016_v32 = vmax.f32 %v9000_v40, 0.0  ;;  %v16909_v21 = vld [vmem:[#allocation5 + $0xe80] sm:$0xff]   ;;  %v16918_v23 = vld [vmem:[#allocation5 + $0xec8] sm:$0xff]  }
 0x76d   :  { %v9019_v12 = vmax.f32 %v9003_v13, 0.0  ;;  %15879 = vmatprep.subr.bf16.mxu0 %v16888_v14  ;;  %v16952_v0 = vld [vmem:[#allocation10 + $0x1c8] sm:$0xff]   ;;  %v16922_v45 = vld [vmem:[#allocation5 + $0xee8] sm:$0xff]   ;;  %v16923_v13 = vld [vmem:[#allocation5 + $0xef0] sm:$0xff]  }
 0x76e   :  { %v9017_v54 = vmax.f32 %v9001_v19, 0.0  ;;  %v15707_v11 = vpop.f32.mrb[128].mxu0  ;;  %v16921_v40 = vld [vmem:[#allocation5 + $0xee0] sm:$0xff]   ;;  %v16924_v19 = vld [vmem:[#allocation5 + $0xef8] sm:$0xff]  }
 0x76f   :  { %v8990_v36 = vmax.f32 %v19668_v8, %v15707_v11  ;;  %v8865_v55 = vpop.f32.mrb[129].mxu0  ;;  %v9029_v18 = vpack.c.bf16 %v9019_v12, %v9018_v2  ;;  %v16925_v2 = vld [vmem:[#allocation5 + $0xf00] sm:$0xff]   ;;  %v16926_v12 = vld [vmem:[#allocation5 + $0xf08] sm:$0xff]  }
 0x770   :  { %v8988_v57 = vmax.f32 %v19670_v56, %v8865_v55  ;;  %v15708_v30 = vpop.f32.mrb[130].mxu0  ;;  %15880 = vmatpush3.bf16.msra.mxu0 %v16888_v14  ;;  %v9028_v59 = vpack.c.bf16 %v9017_v54, %v9016_v32  ;;  %v16920_v14 = vld [vmem:[#allocation5 + $0xed8] sm:$0xff]   ;;  %v16959_v32 = vld [vmem:[#allocation10 + $0x1d0] sm:$0xff]   ;;  %v16931_v55 = vld [vmem:[#allocation5 + $0xf30] sm:$0xff]  }
 0x771   :  { %v9006_v31 = vadd.f32 %v19439_v1, %v8990_v36  ;;  %v8991_v35 = vmax.f32 %v19672_v28, %v15708_v30  ;;  %v8868_v50 = vpop.f32.mrb[131].mxu0  ;;  %15881 = vmatprep.subr.bf16.mxu0 %v16889_v33  ;;  %v16928_v54 = vld [vmem:[#allocation5 + $0xf18] sm:$0xff]   ;;  %v16929_v11 = vld [vmem:[#allocation5 + $0xf20] sm:$0xff]   ;;  %v16930_v36 = vld [vmem:[#allocation5 + $0xf28] sm:$0xff]  }
 0x772   :  { %v9004_v20 = vadd.f32 %v19439_v1, %v8988_v57  ;;  %v8989_v9 = vmax.f32 %v19674_v42, %v8868_v50  ;;  %15733 = vmatprep.mubr.bf16.mxu0 %v9028_v59  ;;  %v16979_v42 = vld [vmem:[#allocation7 + $0x8] sm:$0xff]   ;;  %v16933_v57 = vld [vmem:[#allocation5 + $0xf40] sm:$0xff]   ;;  %v16935_v59 = vld [vmem:[#allocation5 + $0xf50] sm:$0xff]  }
 0x773   :  { %v9007_v8 = vadd.f32 %v19439_v1, %v8991_v35  ;;  %15734 = vmatmul.mubr.bf16.gmra.mrb[108].mxu0 %v9029_v18  ;;  %v9022_v49 = vmax.f32 %v9006_v31, 0.0  ;;  %v16932_v18 = vld [vmem:[#allocation5 + $0xf38] sm:$0xff]   ;;  %v16934_v30 = vld [vmem:[#allocation5 + $0xf48] sm:$0xff]   ;;  %v16937_v50 = vld [vmem:[#allocation5 + $0xf60] sm:$0xff]  }
 0x774   :  { %v9005_v56 = vadd.f32 %v19439_v1, %v8989_v9  ;;  %15882 = vmatpush3.bf16.msra.mxu0 %v16889_v33  ;;  %v9020_v3 = vmax.f32 %v9004_v20, 0.0  ;;  %v16978_v1 = vld [vmem:[#allocation7] sm:$0xff]   ;;  %v16927_v33 = vld [vmem:[#allocation5 + $0xf10] sm:$0xff]   ;;  %v16936_v35 = vld [vmem:[#allocation5 + $0xf58] sm:$0xff]  }
 0x775   :  { %v9023_v46 = vmax.f32 %v9007_v8, 0.0  ;;  %15883 = vmatprep.subr.bf16.mxu0 %v16890_v51  ;;  %v16960_v31 = vld [vmem:[#allocation10 + $0x1d8] sm:$0xff]   ;;  %v16940_v9 = vld [vmem:[#allocation5 + $0xf78] sm:$0xff]   ;;  %v16941_v8 = vld [vmem:[#allocation5 + $0xf80] sm:$0xff]  }
 0x776   :  { %v9021_v28 = vmax.f32 %v9005_v56, 0.0  ;;  %v16939_v20 = vld [vmem:[#allocation5 + $0xf70] sm:$0xff]   ;;  %v16942_v56 = vld [vmem:[#allocation5 + $0xf88] sm:$0xff]  }
 0x777   :  { %v9031_v44 = vpack.c.bf16 %v9023_v46, %v9022_v49  ;;  %v16944_v49 = vld [vmem:[#allocation5 + $0xf90] sm:$0xff]  }
 0x778   :  { %15884 = vmatpush3.bf16.msra.mxu0 %v16890_v51  ;;  %v9030_v43 = vpack.c.bf16 %v9021_v28, %v9020_v3  ;;  %v16938_v51 = vld [vmem:[#allocation5 + $0xf68] sm:$0xff]   ;;  %v16961_v46 = vld [vmem:[#allocation10 + $0x1e0] sm:$0xff]   ;;  %v16946_v3 = vld [vmem:[#allocation5 + $0xfa0] sm:$0xff]  }
 0x779   :  { %15885 = vmatprep.subr.bf16.mxu0 %v16891_v22  ;;  %v16947_v28 = vld [vmem:[#allocation5 + $0xfa8] sm:$0xff]  }
 0x77a   :  { %15737 = vmatprep.mubr.bf16.mxu0 %v9030_v43 }
 0x77b   :  { %15738 = vmatmul.mubr.bf16.gmra.mrb[112].mxu0 %v9031_v44  ;;  %v16948_v44 = vld [vmem:[#allocation5 + $0xfb0] sm:$0xff]  }
 0x77c   :  { %15886 = vmatpush3.bf16.msra.mxu0 %v16891_v22  ;;  %15889 = vmatprep.mubr.bf16.mxu0 %v19449_v29  ;;  %v16893_v29 = vld [vmem:[#allocation5 + $0xe00] sm:$0xff]   ;;  %v16945_v22 = vld [vmem:[#allocation5 + $0xf98] sm:$0xff]  }
 0x77d   :  { %15887 = vmatprep.subr.bf16.mxu0 %v16892_v38 }
 0x780   :  { %15888 = vmatpush3.bf16.msra.mxu0 %v16892_v38 }
 0x781   :  { %15905 = vmatprep.subr.bf16.mxu0 %v16978_v1 }
 0x783   :  { %15890 = vmatmul.mubr.bf16.vlgmr.msra.gmra.mrb[100].mxu0 %v19446_v17  ;;  %v16894_v17 = vld [vmem:[#allocation5 + $0xe08] sm:$0xff]  }
 0x784   :  { %15893 = vmatprep.mubr.bf16.mxu0 %v19462_v16  ;;  %15906 = vmatpush3.bf16.msra.mxu0 %v16978_v1  ;;  %v16896_v16 = vld [vmem:[#allocation5 + $0xe18] sm:$0xff]  }
 0x785   :  { %15907 = vmatprep.subr.bf16.mxu0 %v16979_v42  ;;  %v16949_v1 = vld [vmem:[#allocation5 + $0xfb8] sm:$0xff]  }
 0x788   :  { %15908 = vmatpush3.bf16.msra.mxu0 %v16979_v42 }
 0x789   :  { %16037 = vmatprep.subr.bf16.mxu0 %v16943_v34 }
 0x78b   :  { %15894 = vmatmul.mubr.bf16.gmra.mrb[104].mxu0 %v19459_v26  ;;  %v16898_v26 = vld [vmem:[#allocation5 + $0xe28] sm:$0xff]  }
 0x78c   :  { %15897 = vmatprep.mubr.bf16.mxu0 %v19476_v41  ;;  %v16900_v41 = vld [vmem:[#allocation5 + $0xe38] sm:$0xff]  }
 0x793   :  { %15898 = vmatmul.mubr.bf16.gmra.mrb[108].mxu0 %v19473_v15  ;;  %v16899_v15 = vld [vmem:[#allocation5 + $0xe30] sm:$0xff]  }
 0x794   :  { %15901 = vmatprep.mubr.bf16.mxu0 %v19488_v58  ;;  %v16902_v58 = vld [vmem:[#allocation5 + $0xe48] sm:$0xff]  }
 0x79b   :  { %15902 = vmatmul.mubr.bf16.gmra.mrb[112].mxu0 %v19486_v48  ;;  %v16901_v48 = vld [vmem:[#allocation5 + $0xe40] sm:$0xff]  }
 0x79c   :  { %15909 = vmatprep.mubr.msk.bf16.mxu0 %vm589_vm0, %v16893_v29  ;;  %v16950_v29 = vld [vmem:[#allocation5 + $0xfc0] sm:$0xff]  }
 0x7a3   :  { %15910 = vmatmul.mubr.msk.bf16.vlgmr.msra.gmra.mrb[132].mxu0 %vm589_vm0, %v16894_v17 }
 0x7a4   :  { %15913 = vmatprep.mubr.msk.bf16.mxu0 %vm589_vm0, %v16895_v10  ;;  %16038 = vmatpush3.bf16.msra.mxu0 %v16943_v34  ;;  %v16957_v34 = vld [vmem:[#allocation5 + $0xff0] sm:$0xff]  }
 0x7a5   :  { %16039 = vmatprep.subr.bf16.mxu0 %v16952_v0 }
 0x7a8   :  { %16040 = vmatpush3.bf16.msra.mxu0 %v16952_v0 }
 0x7a9   :  { %16041 = vmatprep.subr.bf16.mxu0 %v16959_v32 }
 0x7ab   :  { %15914 = vmatmul.mubr.msk.bf16.gmra.mrb[136].mxu0 %vm589_vm0, %v16896_v16 }
 0x7ac   :  { %15917 = vmatprep.mubr.msk.bf16.mxu0 %vm589_vm0, %v16897_v39  ;;  %16042 = vmatpush3.bf16.msra.mxu0 %v16959_v32  ;;  %v16951_v39 = vld [vmem:[#allocation5 + $0xfc8] sm:$0xff]  }
 0x7ad   :  { %16043 = vmatprep.subr.bf16.mxu0 %v16960_v31 }
 0x7b0   :  { %16044 = vmatpush3.bf16.msra.mxu0 %v16960_v31 }
 0x7b1   :  { %16045 = vmatprep.subr.bf16.mxu0 %v16961_v46 }
 0x7b3   :  { %15918 = vmatmul.mubr.msk.bf16.gmra.mrb[140].mxu0 %vm589_vm0, %v16898_v26 }
 0x7b4   :  { %15921 = vmatprep.mubr.msk.bf16.mxu0 %vm589_vm0, %v16899_v15  ;;  %16046 = vmatpush3.bf16.msra.mxu0 %v16961_v46  ;;  %v16953_v15 = vld [vmem:[#allocation5 + $0xfd0] sm:$0xff]  }
 0x7bb   :  { %15922 = vmatmul.mubr.msk.bf16.gmra.mrb[144].mxu0 %vm589_vm0, %v16900_v41 }
 0x7bc   :  { %15925 = vmatprep.mubr.msk.bf16.mxu0 %vm589_vm0, %v16901_v48  ;;  %v16962_v48 = vld [vmem:[#allocation10 + $0x1e8] sm:$0xff]  }
 0x7bd   :  { %16047 = vmatprep.subr.bf16.mxu0 %v16962_v48 }
 0x7be   :  { %16048 = vmatpush3.bf16.msra.mxu0 %v16962_v48 }
 0x7c3   :  { %15926 = vmatmul.mubr.msk.bf16.gmra.mrb[148].mxu0 %vm589_vm0, %v16902_v58 }
 0x7c4   :  { %15929 = vmatprep.mubr.msk.bf16.mxu0 %vm589_vm0, %v16903_v4 }
 0x7cb   :  { %15930 = vmatmul.mubr.msk.bf16.gmra.mrb[152].mxu0 %vm589_vm0, %v16904_v52  ;;  %v16954_v52 = vld [vmem:[#allocation5 + $0xfd8] sm:$0xff]  }
 0x7cc   :  { %15933 = vmatprep.mubr.msk.bf16.mxu0 %vm589_vm0, %v16905_v5 }
 0x7d3   :  { %15934 = vmatmul.mubr.msk.bf16.gmra.mrb[156].mxu0 %vm589_vm0, %v16906_v7  ;;  %v16955_v7 = vld [vmem:[#allocation5 + $0xfe0] sm:$0xff]  }
 0x7d4   :  { %15937 = vmatprep.mubr.msk.bf16.mxu0 %vm589_vm0, %v16907_v27 }
 0x7db   :  { %15938 = vmatmul.mubr.msk.bf16.gmra.mrb[160].mxu0 %vm589_vm0, %v16908_v60 }
 0x7dc   :  { %15941 = vmatprep.mubr.msk.bf16.mxu0 %vm589_vm0, %v16909_v21 }
 0x7e3   :  { %15942 = vmatmul.mubr.msk.bf16.gmra.mrb[164].mxu0 %vm589_vm0, %v16910_v53  ;;  %v16956_v53 = vld [vmem:[#allocation5 + $0xfe8] sm:$0xff]  }
 0x7e4   :  { %15945 = vmatprep.mubr.msk.bf16.mxu0 %vm589_vm0, %v16911_v24 }
 0x7eb   :  { %15946 = vmatmul.mubr.msk.bf16.gmra.mrb[168].mxu0 %vm589_vm0, %v16912_v37 }
 0x7ec   :  { %15949 = vmatprep.mubr.msk.bf16.mxu0 %vm589_vm0, %v16913_v25 }
 0x7f3   :  { %15950 = vmatmul.mubr.msk.bf16.gmra.mrb[172].mxu0 %vm589_vm0, %v16914_v63 }
 0x7f4   :  { %15953 = vmatprep.mubr.msk.bf16.mxu0 %vm589_vm0, %v16915_v6 }
 0x7fb   :  { %15954 = vmatmul.mubr.msk.bf16.gmra.mrb[176].mxu0 %vm589_vm0, %v16916_v61  ;;  %v16958_v61 = vld [vmem:[#allocation5 + $0xff8] sm:$0xff]  }
 0x7fc   :  { %15957 = vmatprep.mubr.msk.bf16.mxu0 %vm589_vm0, %v16917_v47 }
 0x803   :  { %15958 = vmatmul.mubr.msk.bf16.gmra.mrb[180].mxu0 %vm589_vm0, %v16918_v23 }
 0x804   :  { %15961 = vmatprep.mubr.msk.bf16.mxu0 %vm589_vm0, %v16919_v62 }
 0x80b   :  { %15962 = vmatmul.mubr.msk.bf16.gmra.mrb[184].mxu0 %vm589_vm0, %v16920_v14 }
 0x80c   :  { %15965 = vmatprep.mubr.msk.bf16.mxu0 %vm589_vm0, %v16921_v40 }
 0x813   :  { %15966 = vmatmul.mubr.msk.bf16.gmra.mrb[188].mxu0 %vm589_vm0, %v16922_v45 }
 0x814   :  { %15969 = vmatprep.mubr.msk.bf16.mxu0 %vm589_vm0, %v16923_v13 }
 0x81b   :  { %15970 = vmatmul.mubr.msk.bf16.gmra.mrb[192].mxu0 %vm589_vm0, %v16924_v19 }
 0x81c   :  { %15973 = vmatprep.mubr.msk.bf16.mxu0 %vm589_vm0, %v16925_v2 }
 0x823   :  { %15974 = vmatmul.mubr.msk.bf16.gmra.mrb[196].mxu0 %vm589_vm0, %v16926_v12 }
 0x824   :  { %15977 = vmatprep.mubr.msk.bf16.mxu0 %vm589_vm0, %v16927_v33 }
 0x82b   :  { %15978 = vmatmul.mubr.msk.bf16.gmra.mrb[200].mxu0 %vm589_vm0, %v16928_v54  ;;  %v16963_v54 = vld [vmem:[#allocation10 + $0x1f0] sm:$0xff]  }
 0x82c   :  { %15981 = vmatprep.mubr.msk.bf16.mxu0 %vm589_vm0, %v16929_v11  ;;  %16049 = vmatprep.subr.bf16.mxu0 %v16963_v54 }
 0x82d   :  { %16050 = vmatpush3.bf16.msra.mxu0 %v16963_v54 }
 0x833   :  { %15982 = vmatmul.mubr.msk.bf16.gmra.mrb[204].mxu0 %vm589_vm0, %v16930_v36 }
 0x834   :  { %15985 = vmatprep.mubr.msk.bf16.mxu0 %vm589_vm0, %v16931_v55 }
 0x83b   :  { %15986 = vmatmul.mubr.msk.bf16.gmra.mrb[208].mxu0 %vm589_vm0, %v16932_v18 }
 0x83c   :  { %15989 = vmatprep.mubr.msk.bf16.mxu0 %vm589_vm0, %v16933_v57 }
 0x843   :  { %15990 = vmatmul.mubr.msk.bf16.gmra.mrb[212].mxu0 %vm589_vm0, %v16934_v30 }
 0x844   :  { %15993 = vmatprep.mubr.msk.bf16.mxu0 %vm589_vm0, %v16935_v59 }
 0x84b   :  { %15994 = vmatmul.mubr.msk.bf16.gmra.mrb[216].mxu0 %vm589_vm0, %v16936_v35 }
 0x84c   :  { %15997 = vmatprep.mubr.msk.bf16.mxu0 %vm589_vm0, %v16937_v50 }
 0x853   :  { %15998 = vmatmul.mubr.msk.bf16.gmra.mrb[220].mxu0 %vm589_vm0, %v16938_v51 }
 0x854   :  { %16001 = vmatprep.mubr.msk.bf16.mxu0 %vm589_vm0, %v16939_v20 }
 0x85b   :  { %16002 = vmatmul.mubr.msk.bf16.gmra.mrb[224].mxu0 %vm589_vm0, %v16940_v9 }
 0x85c   :  { %16005 = vmatprep.mubr.msk.bf16.mxu0 %vm589_vm0, %v16941_v8 }
 0x863   :  { %16006 = vmatmul.mubr.msk.bf16.gmra.mrb[228].mxu0 %vm589_vm0, %v16942_v56 }
 0x864   :  { %16009 = vmatprep.mubr.msk.bf16.mxu0 %vm589_vm0, %v16944_v49 }
 0x86b   :  { %16010 = vmatmul.mubr.msk.bf16.gmra.mrb[232].mxu0 %vm589_vm0, %v16945_v22 }
 0x86c   :  { %16013 = vmatprep.mubr.msk.bf16.mxu0 %vm589_vm0, %v16946_v3 }
 0x873   :  { %16014 = vmatmul.mubr.msk.bf16.gmra.mrb[236].mxu0 %vm589_vm0, %v16947_v28 }
 0x874   :  { %16017 = vmatprep.mubr.msk.bf16.mxu0 %vm589_vm0, %v16948_v44 }
 0x876   :  { %v19764_v43 = vpop.f32.mrb[132].mxu0 }
 0x877   :  { %v19766_v38 = vpop.f32.mrb[133].mxu0 }
 0x878   :  { %v19768_v42 = vpop.f32.mrb[134].mxu0 }
 0x879   :  { %v19770_v17 = vpop.f32.mrb[135].mxu0 }
 0x87b   :  { %16018 = vmatmul.mubr.msk.bf16.gmra.mrb[240].mxu0 %vm589_vm0, %v16949_v1 }
 0x87c   :  { %16021 = vmatprep.mubr.msk.bf16.mxu0 %vm589_vm0, %v16950_v29 }
 0x87e   :  { %v19774_v10 = vpop.f32.mrb[136].mxu0 }
 0x87f   :  { %v19776_v16 = vpop.f32.mrb[137].mxu0 }
 0x880   :  { %v19778_v26 = vpop.f32.mrb[138].mxu0 }
 0x881   :  { %v19780_v41 = vpop.f32.mrb[139].mxu0 }
 0x883   :  { %16022 = vmatmul.mubr.msk.bf16.gmra.mrb[244].mxu0 %vm589_vm0, %v16951_v39 }
 0x884   :  { %16025 = vmatprep.mubr.msk.bf16.mxu0 %vm589_vm0, %v16953_v15 }
 0x886   :  { %v19784_v58 = vpop.f32.mrb[140].mxu0 }
 0x887   :  { %v19786_v4 = vpop.f32.mrb[141].mxu0 }
 0x888   :  { %v19788_v5 = vpop.f32.mrb[142].mxu0 }
 0x889   :  { %v19790_v27 = vpop.f32.mrb[143].mxu0 }
 0x88b   :  { %16026 = vmatmul.mubr.msk.bf16.gmra.mrb[248].mxu0 %vm589_vm0, %v16954_v52 }
 0x88c   :  { %16029 = vmatprep.mubr.msk.bf16.mxu0 %vm589_vm0, %v16955_v7 }
 0x88e   :  { %v19794_v60 = vpop.f32.mrb[144].mxu0 }
 0x88f   :  { %v19796_v21 = vpop.f32.mrb[145].mxu0 }
 0x890   :  { %v19798_v24 = vpop.f32.mrb[146].mxu0 }
 0x891   :  { %v19800_v37 = vpop.f32.mrb[147].mxu0 }
 0x893   :  { %16030 = vmatmul.mubr.msk.bf16.gmra.mrb[252].mxu0 %vm589_vm0, %v16956_v53 }
 0x894   :  { %16033 = vmatprep.mubr.msk.bf16.mxu0 %vm589_vm0, %v16957_v34 }
 0x896   :  { %v15927_v25 = vpop.f32.mrb[148].mxu0 }
 0x897   :  { %v11914_v63 = vmax.f32 %v19764_v43, %v15927_v25  ;;  %v11465_v6 = vpop.f32.mrb[149].mxu0 }
 0x898   :  { %v11912_v47 = vmax.f32 %v19766_v38, %v11465_v6  ;;  %v15928_v23 = vpop.f32.mrb[150].mxu0 }
 0x899   :  { %v11915_v62 = vmax.f32 %v19768_v42, %v15928_v23  ;;  %v11468_v0 = vpop.f32.mrb[151].mxu0 }
 0x89a   :  { %v11913_v14 = vmax.f32 %v19770_v17, %v11468_v0 }
 0x89b   :  { %16034 = vmatmul.mubr.msk.bf16.gmra.mrb[0].mxu0 %vm589_vm0, %v16958_v61 }
 0x89e   :  { %v15931_v40 = vpop.f32.mrb[152].mxu0 }
 0x89f   :  { %v11918_v45 = vmax.f32 %v19774_v10, %v15931_v40  ;;  %v11481_v13 = vpop.f32.mrb[153].mxu0 }
 0x8a0   :  { %v11916_v19 = vmax.f32 %v19776_v16, %v11481_v13  ;;  %v15932_v2 = vpop.f32.mrb[154].mxu0 }
 0x8a1   :  { %v11919_v12 = vmax.f32 %v19778_v26, %v15932_v2  ;;  %v11484_v33 = vpop.f32.mrb[155].mxu0 }
 0x8a2   :  { %v11917_v32 = vmax.f32 %v19780_v41, %v11484_v33  ;;  %v16964_v41 = vld [vmem:[#allocation10 + $0x1f8] sm:$0xff]  }
 0x8a3   :  { %16051 = vmatprep.subr.bf16.mxu0 %v16964_v41 }
 0x8a4   :  { %16052 = vmatpush3.bf16.msra.mxu0 %v16964_v41  ;;  %v12306_v41 = vld [vmem:[#allocation13 + $0x98] sm:$0xff] }
 0x8a6   :  { %v15935_v11 = vpop.f32.mrb[156].mxu0 }
 0x8a7   :  { %v11922_v36 = vmax.f32 %v19784_v58, %v15935_v11  ;;  %v11497_v55 = vpop.f32.mrb[157].mxu0 }
 0x8a8   :  { %v11920_v18 = vmax.f32 %v19786_v4, %v11497_v55  ;;  %v15936_v57 = vpop.f32.mrb[158].mxu0 }
 0x8a9   :  { %v11923_v30 = vmax.f32 %v19788_v5, %v15936_v57  ;;  %v11500_v59 = vpop.f32.mrb[159].mxu0 }
 0x8aa   :  { %v11921_v31 = vmax.f32 %v19790_v27, %v11500_v59 }
 0x8ae   :  { %v15939_v35 = vpop.f32.mrb[160].mxu0 }
 0x8af   :  { %v11926_v50 = vmax.f32 %v19794_v60, %v15939_v35  ;;  %v11513_v51 = vpop.f32.mrb[161].mxu0 }
 0x8b0   :  { %v11924_v20 = vmax.f32 %v19796_v21, %v11513_v51  ;;  %v15940_v9 = vpop.f32.mrb[162].mxu0  ;;  %v12303_v51 = vld [vmem:[#allocation13 + $0x80] sm:$0xff] }
 0x8b1   :  { %v11927_v8 = vmax.f32 %v19798_v24, %v15940_v9  ;;  %v11516_v56 = vpop.f32.mrb[163].mxu0 }
 0x8b2   :  { %v11925_v49 = vmax.f32 %v19800_v37, %v11516_v56 }
 0x8b6   :  { %v15943_v46 = vpop.f32.mrb[164].mxu0 }
 0x8b7   :  { %v19821_v22 = vmax.f32 %v11914_v63, %v15943_v46  ;;  %v11529_v3 = vpop.f32.mrb[165].mxu0 }
 0x8b8   :  { %v19823_v28 = vmax.f32 %v11912_v47, %v11529_v3  ;;  %v15944_v44 = vpop.f32.mrb[166].mxu0 }
 0x8b9   :  { %v19825_v43 = vmax.f32 %v11915_v62, %v15944_v44  ;;  %v11532_v38 = vpop.f32.mrb[167].mxu0  ;;  %v12287_v44 = vld [vmem:[#allocation13] sm:$0xff] }
 0x8ba   :  { %v19827_v1 = vmax.f32 %v11913_v14, %v11532_v38 }
 0x8be   :  { %v15947_v42 = vpop.f32.mrb[168].mxu0 }
 0x8bf   :  { %v19829_v29 = vmax.f32 %v11918_v45, %v15947_v42  ;;  %v11545_v17 = vpop.f32.mrb[169].mxu0 }
 0x8c0   :  { %v19831_v10 = vmax.f32 %v11916_v19, %v11545_v17  ;;  %v15948_v16 = vpop.f32.mrb[170].mxu0 }
 0x8c1   :  { %v19833_v39 = vmax.f32 %v11919_v12, %v15948_v16  ;;  %v11548_v26 = vpop.f32.mrb[171].mxu0 }
 0x8c2   :  { %v19835_v15 = vmax.f32 %v11917_v32, %v11548_v26 }
 0x8c6   :  { %v15951_v48 = vpop.f32.mrb[172].mxu0 }
 0x8c7   :  { %v19837_v58 = vmax.f32 %v11922_v36, %v15951_v48  ;;  %v11561_v4 = vpop.f32.mrb[173].mxu0  ;;  %v12289_v48 = vld [vmem:[#allocation13 + $0x10] sm:$0xff] }
 0x8c8   :  { %v19839_v52 = vmax.f32 %v11920_v18, %v11561_v4  ;;  %v15952_v5 = vpop.f32.mrb[174].mxu0 }
 0x8c9   :  { %v19841_v7 = vmax.f32 %v11923_v30, %v15952_v5  ;;  %v11564_v27 = vpop.f32.mrb[175].mxu0  ;;  %v12290_v5 = vld [vmem:[#allocation13 + $0x18] sm:$0xff] }
 0x8ca   :  { %v19843_v60 = vmax.f32 %v11921_v31, %v11564_v27  ;;  %v12307_v27 = vld [vmem:[#allocation13 + $0xa0] sm:$0xff] }
 0x8ce   :  { %v15955_v21 = vpop.f32.mrb[176].mxu0 }
 0x8cf   :  { %v19845_v53 = vmax.f32 %v11926_v50, %v15955_v21  ;;  %v11577_v24 = vpop.f32.mrb[177].mxu0  ;;  %v12308_v21 = vld [vmem:[#allocation13 + $0xa8] sm:$0xff] }
 0x8d0   :  { %v19847_v34 = vmax.f32 %v11924_v20, %v11577_v24  ;;  %v15956_v37 = vpop.f32.mrb[178].mxu0  ;;  %v12304_v20 = vld [vmem:[#allocation13 + $0x88] sm:$0xff]  ;;  %v16110_v24 = vpack.c.bf16 %v12290_v5, %v12289_v48  ;;  %v12297_v5 = vld [vmem:[#allocation13 + $0x50] sm:$0xff] }
 0x8d1   :  { %v19849_v25 = vmax.f32 %v11927_v8, %v15956_v37  ;;  %v11580_v63 = vpop.f32.mrb[179].mxu0  ;;  %v16104_v56 = vpack.c.bf16 %v12304_v20, %v12303_v51  ;;  %v16112_v37 = vpack.c.bf16 %v12308_v21, %v12307_v27  ;;  %v12298_v27 = vld [vmem:[#allocation13 + $0x58] sm:$0xff] }
 0x8d2   :  { %v19851_v6 = vmax.f32 %v11925_v49, %v11580_v63  ;;  %v12291_v63 = vld [vmem:[#allocation13 + $0x20] sm:$0xff] }
 0x8d3   :  { %16105 = vmatprep.subr.bf16.mxu1 %v16104_v56  ;;  %v12311_v56 = vld [vmem:[#allocation13 + $0xc0] sm:$0xff] }
 0x8d6   :  { %v15959_v61 = vpop.f32.mrb[180].mxu0 }
 0x8d7   :  { %v11946_v47 = vmax.f32 %v19821_v22, %v15959_v61  ;;  %v11593_v23 = vpop.f32.mrb[181].mxu0  ;;  %v12292_v61 = vld [vmem:[#allocation13 + $0x28] sm:$0xff] }
 0x8d8   :  { %v11944_v62 = vmax.f32 %v19823_v28, %v11593_v23  ;;  %v15960_v0 = vpop.f32.mrb[182].mxu0 }
 0x8d9   :  { %v11947_v14 = vmax.f32 %v19825_v43, %v15960_v0  ;;  %v11596_v40 = vpop.f32.mrb[183].mxu0  ;;  %v12288_v43 = vld [vmem:[#allocation13 + $0x8] sm:$0xff] }
 0x8da   :  { %v11945_v45 = vmax.f32 %v19827_v1, %v11596_v40  ;;  %v16106_v38 = vpack.c.bf16 %v12288_v43, %v12287_v44  ;;  %v16114_v40 = vpack.c.bf16 %v12292_v61, %v12291_v63  ;;  %v12312_v44 = vld [vmem:[#allocation13 + $0xc8] sm:$0xff] }
 0x8dc   :  { %16107 = vmatpush3.bf16.msra.mxu1 %v16106_v38  ;;  %v16120_v38 = vpack.c.bf16 %v12312_v44, %v12311_v56 }
 0x8de   :  { %v15963_v13 = vpop.f32.mrb[184].mxu0 }
 0x8df   :  { %v11950_v19 = vmax.f32 %v19829_v29, %v15963_v13  ;;  %v11609_v2 = vpop.f32.mrb[185].mxu0 }
 0x8e0   :  { %v11948_v12 = vmax.f32 %v19831_v10, %v11609_v2  ;;  %v15964_v33 = vpop.f32.mrb[186].mxu0 }
 0x8e1   :  { %v11951_v32 = vmax.f32 %v19833_v39, %v15964_v33  ;;  %v19860_v54 = vpop.f32.mrb[187].mxu0  ;;  %v12293_v33 = vld [vmem:[#allocation13 + $0x30] sm:$0xff] }
 0x8e2   :  { %v11949_v11 = vmax.f32 %v19835_v15, %v19860_v54  ;;  %v12305_v15 = vld [vmem:[#allocation13 + $0x90] sm:$0xff]  ;;  %v12294_v54 = vld [vmem:[#allocation13 + $0x38] sm:$0xff] }
 0x8e3   :  { %v16108_v4 = vpack.c.bf16 %v12306_v41, %v12305_v15 }
 0x8e5   :  { %16109 = vmatprep.subr.bf16.mxu1 %v16108_v4 }
 0x8e6   :  { %v19864_v36 = vpop.f32.mrb[188].mxu0  ;;  %16111 = vmatpush3.bf16.msra.mxu1 %v16110_v24 }
 0x8e7   :  { %v11954_v55 = vmax.f32 %v19837_v58, %v19864_v36  ;;  %v19868_v18 = vpop.f32.mrb[189].mxu0  ;;  %16113 = vmatprep.subr.bf16.mxu1 %v16112_v37  ;;  %v12315_v36 = vld [vmem:[#allocation13 + $0xe0] sm:$0xff]  ;;  %v12300_v37 = vld [vmem:[#allocation13 + $0x68] sm:$0xff] }
 0x8e8   :  { %v11952_v57 = vmax.f32 %v19839_v52, %v19868_v18  ;;  %v19872_v30 = vpop.f32.mrb[190].mxu0  ;;  %v16126_v52 = vpack.c.bf16 %v12298_v27, %v12297_v5 }
 0x8e9   :  { %v11955_v59 = vmax.f32 %v19841_v7, %v19872_v30  ;;  %v19876_v31 = vpop.f32.mrb[191].mxu0 }
 0x8ea   :  { %v11953_v35 = vmax.f32 %v19843_v60, %v19876_v31  ;;  %16115 = vmatpush3.bf16.msra.mxu1 %v16114_v40 }
 0x8ee   :  { %v19880_v50 = vpop.f32.mrb[192].mxu0 }
 0x8ef   :  { %v11958_v9 = vmax.f32 %v19845_v53, %v19880_v50  ;;  %v19884_v8 = vpop.f32.mrb[193].mxu0 }
 0x8f0   :  { %v11956_v49 = vmax.f32 %v19847_v34, %v19884_v8  ;;  %v19888_v46 = vpop.f32.mrb[194].mxu0 }
 0x8f1   :  { %v11959_v22 = vmax.f32 %v19849_v25, %v19888_v46  ;;  %v19892_v3 = vpop.f32.mrb[195].mxu0 }
 0x8f2   :  { %v11957_v28 = vmax.f32 %v19851_v6, %v19892_v3 }
 0x8f6   :  { %v15975_v1 = vpop.f32.mrb[196].mxu0 }
 0x8f7   :  { %v19896_v42 = vmax.f32 %v11946_v47, %v15975_v1  ;;  %v11657_v29 = vpop.f32.mrb[197].mxu0  ;;  %v12309_v47 = vld [vmem:[#allocation13 + $0xb0] sm:$0xff]  ;;  %v12295_v1 = vld [vmem:[#allocation13 + $0x40] sm:$0xff] }
 0x8f8   :  { %v19898_v17 = vmax.f32 %v11944_v62, %v11657_v29  ;;  %v15976_v10 = vpop.f32.mrb[198].mxu0  ;;  %v12310_v62 = vld [vmem:[#allocation13 + $0xb8] sm:$0xff]  ;;  %v12296_v29 = vld [vmem:[#allocation13 + $0x48] sm:$0xff] }
 0x8f9   :  { %v19900_v16 = vmax.f32 %v11947_v14, %v15976_v10  ;;  %v11660_v39 = vpop.f32.mrb[199].mxu0  ;;  %v16116_v2 = vpack.c.bf16 %v12310_v62, %v12309_v47  ;;  %v12314_v10 = vld [vmem:[#allocation13 + $0xd8] sm:$0xff]  ;;  %v16122_v41 = vpack.c.bf16 %v12296_v29, %v12295_v1 }
 0x8fa   :  { %v19902_v26 = vmax.f32 %v11945_v45, %v11660_v39 }
 0x8fb   :  { %16117 = vmatprep.subr.bf16.mxu1 %v16116_v2 }
 0x8fe   :  { %v15979_v23 = vpop.f32.mrb[200].mxu0 }
 0x8ff   :  { %v19904_v0 = vmax.f32 %v11950_v19, %v15979_v23  ;;  %v11673_v14 = vpop.f32.mrb[201].mxu0  ;;  %v16118_v19 = vpack.c.bf16 %v12294_v54, %v12293_v33 }
 0x900   :  { %v19906_v45 = vmax.f32 %v11948_v12, %v11673_v14  ;;  %v15980_v13 = vpop.f32.mrb[202].mxu0  ;;  %v12313_v12 = vld [vmem:[#allocation13 + $0xd0] sm:$0xff] }
 0x901   :  { %v19908_v51 = vmax.f32 %v11951_v32, %v15980_v13  ;;  %v11676_v20 = vpop.f32.mrb[203].mxu0  ;;  %16119 = vmatpush3.bf16.msra.mxu1 %v16118_v19  ;;  %v16124_v4 = vpack.c.bf16 %v12314_v10, %v12313_v12 }
 0x902   :  { %v19910_v43 = vmax.f32 %v11949_v11, %v11676_v20  ;;  %16121 = vmatprep.subr.bf16.mxu1 %v16120_v38 }
 0x905   :  { %16123 = vmatpush3.bf16.msra.mxu1 %v16122_v41 }
 0x906   :  { %v15983_v39 = vpop.f32.mrb[204].mxu0  ;;  %16125 = vmatprep.subr.bf16.mxu1 %v16124_v4 }
 0x907   :  { %v19915_v15 = vmax.f32 %v11954_v55, %v15983_v39  ;;  %v11689_v32 = vpop.f32.mrb[205].mxu0  ;;  %v12316_v55 = vld [vmem:[#allocation13 + $0xe8] sm:$0xff] }
 0x908   :  { %v19920_v11 = vmax.f32 %v11952_v57, %v11689_v32  ;;  %v15984_v48 = vpop.f32.mrb[206].mxu0  ;;  %v16128_v18 = vpack.c.bf16 %v12316_v55, %v12315_v36  ;;  %v12299_v57 = vld [vmem:[#allocation13 + $0x60] sm:$0xff] }
 0x909   :  { %v19925_v21 = vmax.f32 %v11955_v59, %v15984_v48  ;;  %v11692_v58 = vpop.f32.mrb[207].mxu0  ;;  %16127 = vmatpush3.bf16.msra.mxu1 %v16126_v52  ;;  %v16130_v59 = vpack.c.bf16 %v12300_v37, %v12299_v57 }
 0x90a   :  { %v19930_v24 = vmax.f32 %v11953_v35, %v11692_v58  ;;  %16129 = vmatprep.subr.bf16.mxu1 %v16128_v18 }
 0x90d   :  { %16131 = vmatpush3.bf16.msra.mxu1 %v16130_v59 }
 0x90e   :  { %v15987_v63 = vpop.f32.mrb[208].mxu0 }
 0x90f   :  { %v19935_v7 = vmax.f32 %v11958_v9, %v15987_v63  ;;  %v11705_v30 = vpop.f32.mrb[209].mxu0 }
 0x910   :  { %v19940_v60 = vmax.f32 %v11956_v49, %v11705_v30  ;;  %v15988_v31 = vpop.f32.mrb[210].mxu0 }
 0x911   :  { %v19945_v35 = vmax.f32 %v11959_v22, %v15988_v31  ;;  %v11708_v61 = vpop.f32.mrb[211].mxu0 }
 0x912   :  { %v19950_v53 = vmax.f32 %v11957_v28, %v11708_v61 }
 0x916   :  { %v15991_v50 = vpop.f32.mrb[212].mxu0 }
 0x917   :  { %v11978_v9 = vmax.f32 %v19896_v42, %v15991_v50  ;;  %v11721_v34 = vpop.f32.mrb[213].mxu0 }
 0x918   :  { %v11976_v8 = vmax.f32 %v19898_v17, %v11721_v34  ;;  %v15992_v49 = vpop.f32.mrb[214].mxu0 }
 0x919   :  { %v11979_v47 = vmax.f32 %v19900_v16, %v15992_v49  ;;  %v11724_v23 = vpop.f32.mrb[215].mxu0 }
 0x91a   :  { %v11977_v25 = vmax.f32 %v19902_v26, %v11724_v23 }
 0x91e   :  { %v15995_v46 = vpop.f32.mrb[216].mxu0 }
 0x91f   :  { %v11982_v22 = vmax.f32 %v19904_v0, %v15995_v46  ;;  %v11737_v62 = vpop.f32.mrb[217].mxu0 }
 0x920   :  { %v11980_v6 = vmax.f32 %v19906_v45, %v11737_v62  ;;  %v15996_v3 = vpop.f32.mrb[218].mxu0 }
 0x921   :  { %v11983_v28 = vmax.f32 %v19908_v51, %v15996_v3  ;;  %v11740_v14 = vpop.f32.mrb[219].mxu0 }
 0x922   :  { %v11981_v42 = vmax.f32 %v19910_v43, %v11740_v14 }
 0x926   :  { %v15999_v40 = vpop.f32.mrb[220].mxu0 }
 0x927   :  { %v11986_v17 = vmax.f32 %v19915_v15, %v15999_v40  ;;  %v11753_v13 = vpop.f32.mrb[221].mxu0 }
 0x928   :  { %v11984_v16 = vmax.f32 %v19920_v11, %v11753_v13  ;;  %v16000_v2 = vpop.f32.mrb[222].mxu0 }
 0x929   :  { %v11987_v26 = vmax.f32 %v19925_v21, %v16000_v2  ;;  %v11756_v33 = vpop.f32.mrb[223].mxu0 }
 0x92a   :  { %v11985_v0 = vmax.f32 %v19930_v24, %v11756_v33 }
 0x92e   :  { %v16003_v54 = vpop.f32.mrb[224].mxu0 }
 0x92f   :  { %v11990_v45 = vmax.f32 %v19935_v7, %v16003_v54  ;;  %v11769_v20 = vpop.f32.mrb[225].mxu0 }
 0x930   :  { %v11988_v51 = vmax.f32 %v19940_v60, %v11769_v20  ;;  %v16004_v56 = vpop.f32.mrb[226].mxu0 }
 0x931   :  { %v11991_v44 = vmax.f32 %v19945_v35, %v16004_v56  ;;  %v11772_v43 = vpop.f32.mrb[227].mxu0 }
 0x932   :  { %v11989_v19 = vmax.f32 %v19950_v53, %v11772_v43 }
 0x936   :  { %v16007_v38 = vpop.f32.mrb[228].mxu0 }
 0x937   :  { %v11994_v1 = vmax.f32 %v11978_v9, %v16007_v38  ;;  %v11785_v29 = vpop.f32.mrb[229].mxu0 }
 0x938   :  { %v11992_v12 = vmax.f32 %v11976_v8, %v11785_v29  ;;  %v16008_v10 = vpop.f32.mrb[230].mxu0 }
 0x939   :  { %v11995_v39 = vmax.f32 %v11979_v47, %v16008_v10  ;;  %v11788_v15 = vpop.f32.mrb[231].mxu0  ;;  %v19976_v47 = vld [vmem:[#allocation9] ss:$0 sm:$0xff] }
 0x93a   :  { %v11993_v32 = vmax.f32 %v11977_v25, %v11788_v15 }
 0x93e   :  { %v16011_v41 = vpop.f32.mrb[232].mxu0 }
 0x93f   :  { %v11998_v11 = vmax.f32 %v11982_v22, %v16011_v41  ;;  %v11801_v48 = vpop.f32.mrb[233].mxu0 }
 0x940   :  { %v11996_v4 = vmax.f32 %v11980_v6, %v11801_v48  ;;  %v16012_v5 = vpop.f32.mrb[234].mxu0 }
 0x941   :  { %v11999_v27 = vmax.f32 %v11983_v28, %v16012_v5  ;;  %v11804_v21 = vpop.f32.mrb[235].mxu0 }
 0x942   :  { %v11997_v58 = vmax.f32 %v11981_v42, %v11804_v21 }
 0x946   :  { %v16015_v36 = vpop.f32.mrb[236].mxu0 }
 0x947   :  { %v12002_v55 = vmax.f32 %v11986_v17, %v16015_v36  ;;  %v11817_v24 = vpop.f32.mrb[237].mxu0 }
 0x948   :  { %v12000_v52 = vmax.f32 %v11984_v16, %v11817_v24  ;;  %v16016_v18 = vpop.f32.mrb[238].mxu0 }
 0x949   :  { %v12003_v57 = vmax.f32 %v11987_v26, %v16016_v18  ;;  %v11820_v37 = vpop.f32.mrb[239].mxu0 }
 0x94a   :  { %v12001_v63 = vmax.f32 %v11985_v0, %v11820_v37 }
 0x94e   :  { %v16019_v7 = vpop.f32.mrb[240].mxu0 }
 0x94f   :  { %v19968_v30 = vmax.f32 %v11990_v45, %v16019_v7  ;;  %v11833_v59 = vpop.f32.mrb[241].mxu0 }
 0x950   :  { %v19970_v60 = vmax.f32 %v11988_v51, %v11833_v59  ;;  %v16020_v31 = vpop.f32.mrb[242].mxu0 }
 0x951   :  { %v19972_v35 = vmax.f32 %v11991_v44, %v16020_v31  ;;  %v11836_v61 = vpop.f32.mrb[243].mxu0 }
 0x952   :  { %v19974_v53 = vmax.f32 %v11989_v19, %v11836_v61 }
 0x956   :  { %v16023_v50 = vpop.f32.mrb[244].mxu0 }
 0x957   :  { %v12010_v9 = vmax.f32 %v11994_v1, %v16023_v50  ;;  %v11849_v34 = vpop.f32.mrb[245].mxu0 }
 0x958   :  { %v12008_v8 = vmax.f32 %v11992_v12, %v11849_v34  ;;  %v16024_v49 = vpop.f32.mrb[246].mxu0 }
 0x959   :  { %v12026_v23 = vadd.f32 %v19976_v47, %v12010_v9  ;;  %v12011_v25 = vmax.f32 %v11995_v39, %v16024_v49  ;;  %v11852_v46 = vpop.f32.mrb[247].mxu0 }
 0x95a   :  { %v12024_v22 = vadd.f32 %v19976_v47, %v12008_v8  ;;  %v12009_v62 = vmax.f32 %v11993_v32, %v11852_v46 }
 0x95b   :  { %v12027_v6 = vadd.f32 %v19976_v47, %v12011_v25  ;;  %v12042_v28 = vmax.f32 %v12026_v23, 0.0 }
 0x95c   :  { %v12025_v3 = vadd.f32 %v19976_v47, %v12009_v62  ;;  %v12040_v42 = vmax.f32 %v12024_v22, 0.0 }
 0x95d   :  { %v12043_v14 = vmax.f32 %v12027_v6, 0.0 }
 0x95e   :  { %v12041_v40 = vmax.f32 %v12025_v3, 0.0  ;;  %v16027_v17 = vpop.f32.mrb[248].mxu0  ;;  %v12318_v3 = vld [vmem:[#allocation13 + $0xf8] sm:$0xff] }
 0x95f   :  { %v12057_v13 = vpack.c.bf16 %v12043_v14, %v12042_v28  ;;  %v12014_v16 = vmax.f32 %v11998_v11, %v16027_v17  ;;  %v11865_v2 = vpop.f32.mrb[249].mxu0  ;;  %v12301_v14 = vld [vmem:[#allocation13 + $0x70] sm:$0xff]  ;;  %v12336_v17 = vld [vmem:[#allocation13 + $0x188] sm:$0xff] }
 0x960   :  { %v12012_v26 = vmax.f32 %v11996_v4, %v11865_v2  ;;  %v16028_v33 = vpop.f32.mrb[250].mxu0  ;;  %v12056_v0 = vpack.c.bf16 %v12041_v40, %v12040_v42  ;;  %v12335_v40 = vld [vmem:[#allocation13 + $0x180] sm:$0xff] }
 0x961   :  { %v12030_v54 = vadd.f32 %v19976_v47, %v12014_v16  ;;  %v12015_v45 = vmax.f32 %v11999_v27, %v16028_v33  ;;  %v11868_v20 = vpop.f32.mrb[251].mxu0 }
 0x962   :  { %v12028_v51 = vadd.f32 %v19976_v47, %v12012_v26  ;;  %v12013_v56 = vmax.f32 %v11997_v58, %v11868_v20  ;;  %16053 = vmatprep.mubr.bf16.mxu0 %v12056_v0 }
 0x963   :  { %v12031_v44 = vadd.f32 %v19976_v47, %v12015_v45  ;;  %16054 = vmatmul.mubr.bf16.vlgmr.msra.gmra.mrb[100].mxu0 %v12057_v13  ;;  %v12046_v19 = vmax.f32 %v12030_v54, 0.0  ;;  %v16136_v13 = vpack.c.bf16 %v12336_v17, %v12335_v40  ;;  %v12323_v40 = vld [vmem:[#allocation13 + $0x120] sm:$0xff]  ;;  %v12324_v17 = vld [vmem:[#allocation13 + $0x128] sm:$0xff] }
 0x964   :  { %v12029_v43 = vadd.f32 %v19976_v47, %v12013_v56  ;;  %v12044_v1 = vmax.f32 %v12028_v51, 0.0 }
 0x965   :  { %v12047_v38 = vmax.f32 %v12031_v44, 0.0 }
 0x966   :  { %v12045_v29 = vmax.f32 %v12029_v43, 0.0  ;;  %v16031_v12 = vpop.f32.mrb[252].mxu0 }
 0x967   :  { %v12018_v10 = vmax.f32 %v12002_v55, %v16031_v12  ;;  %v11881_v39 = vpop.f32.mrb[253].mxu0  ;;  %v12059_v15 = vpack.c.bf16 %v12047_v38, %v12046_v19 }
 0x968   :  { %v12016_v32 = vmax.f32 %v12000_v52, %v11881_v39  ;;  %v16032_v41 = vpop.f32.mrb[254].mxu0  ;;  %v12058_v11 = vpack.c.bf16 %v12045_v29, %v12044_v1 }
 0x969   :  { %v12034_v48 = vadd.f32 %v19976_v47, %v12018_v10  ;;  %v12019_v4 = vmax.f32 %v12003_v57, %v16032_v41  ;;  %v11884_v5 = vpop.f32.mrb[255].mxu0 }
 0x96a   :  { %v12032_v27 = vadd.f32 %v19976_v47, %v12016_v32  ;;  %v12017_v21 = vmax.f32 %v12001_v63, %v11884_v5  ;;  %16057 = vmatprep.mubr.bf16.mxu0 %v12058_v11  ;;  %v13941_v5 = vld [vmem:[#allocation12] ss:$0 sm:$0xff] }
 0x96b   :  { %v12035_v58 = vadd.f32 %v19976_v47, %v12019_v4  ;;  %16058 = vmatmul.mubr.bf16.gmra.mrb[104].mxu0 %v12059_v15  ;;  %v12050_v24 = vmax.f32 %v12034_v48, 0.0 }
 0x96c   :  { %v12033_v36 = vadd.f32 %v19976_v47, %v12017_v21  ;;  %v12048_v18 = vmax.f32 %v12032_v27, 0.0 }
 0x96d   :  { %v12051_v55 = vmax.f32 %v12035_v58, 0.0 }
 0x96e   :  { %v12049_v37 = vmax.f32 %v12033_v36, 0.0  ;;  %v16035_v52 = vpop.f32.mrb[0].mxu0 }
 0x96f   :  { %v12022_v7 = vmax.f32 %v19968_v30, %v16035_v52  ;;  %v11897_v59 = vpop.f32.mrb[1].mxu0  ;;  %v12061_v31 = vpack.c.bf16 %v12051_v55, %v12050_v24  ;;  %v17154_v52 = vmov 1983009808  }
 0x970   :  { %v12020_v57 = vmax.f32 %v19970_v60, %v11897_v59  ;;  %v16036_v61 = vpop.f32.mrb[2].mxu0  ;;  %v12060_v50 = vpack.c.bf16 %v12049_v37, %v12048_v18  ;;  %v12428_v59 = vlaneseq }
 0x971   :  { %v12038_v63 = vadd.f32 %v19976_v47, %v12022_v7  ;;  %v12023_v9 = vmax.f32 %v19972_v35, %v16036_v61  ;;  %v11900_v34 = vpop.f32.mrb[3].mxu0  ;;  %v12317_v35 = vld [vmem:[#allocation13 + $0xf0] sm:$0xff]  ;;  %v12426_v7 = vunpack.c.l.s4 %v17154_v52  ;;  %v12352_v52 = vld [vmem:[#allocation13 + $0x208] sm:$0xff] }
 0x972   :  { %v12036_v8 = vadd.f32 %v19976_v47, %v12020_v57  ;;  %v12021_v49 = vmax.f32 %v19974_v53, %v11900_v34  ;;  %16061 = vmatprep.mubr.bf16.mxu0 %v12060_v50  ;;  %v16132_v28 = vpack.c.bf16 %v12318_v3, %v12317_v35  ;;  %v12302_v53 = vld [vmem:[#allocation13 + $0x78] sm:$0xff]  ;;  %v12429_v61 = vshrl.u32 %v12428_v59, 7  ;;  %v12319_v34 = vld [vmem:[#allocation13 + $0x100] sm:$0xff]  ;;  %v12369_v59 = vld [vmem:[#allocation13 + $0x290] sm:$0xff] }
 0x973   :  { %v12039_v23 = vadd.f32 %v19976_v47, %v12023_v9  ;;  %16062 = vmatmul.mubr.bf16.gmra.mrb[108].mxu0 %v12061_v31  ;;  %v12054_v25 = vmax.f32 %v12038_v63, 0.0  ;;  %v16134_v42 = vpack.c.bf16 %v12302_v53, %v12301_v14  ;;  %v12427_v57 = vunpack.c.0.s8 %v12426_v7  ;;  %v12322_v35 = vld [vmem:[#allocation13 + $0x118] sm:$0xff]  ;;  %v12340_v14 = vld [vmem:[#allocation13 + $0x1a8] sm:$0xff] }
 0x974   :  { %v12037_v30 = vadd.f32 %v19976_v47, %v12021_v49  ;;  %v12052_v60 = vmax.f32 %v12036_v8, 0.0  ;;  %16133 = vmatprep.subr.bf16.mxu1 %v16132_v28  ;;  %v12320_v8 = vld [vmem:[#allocation13 + $0x108] sm:$0xff]  ;;  %v12339_v28 = vld [vmem:[#allocation13 + $0x1a0] sm:$0xff] }
 0x975   :  { %v12055_v46 = vmax.f32 %v12039_v23, 0.0  ;;  %16135 = vmatpush3.bf16.msra.mxu1 %v16134_v42  ;;  %v19998_v63 = vsub.s32 %v12427_v57, %v12429_v61  ;;  %v16144_v42 = vpack.c.bf16 %v12340_v14, %v12339_v28  ;;  %v12358_v28 = vld [vmem:[#allocation13 + $0x238] sm:$0xff]  ;;  %v12375_v14 = vld [vmem:[#allocation13 + $0x2c0] sm:$0xff] }
 0x976   :  { %v12053_v22 = vmax.f32 %v12037_v30, 0.0  ;;  %16137 = vmatprep.subr.bf16.mxu1 %v16136_v13  ;;  %v12337_v30 = vld [vmem:[#allocation13 + $0x190] sm:$0xff] }
 0x977   :  { %v12063_v62 = vpack.c.bf16 %v12055_v46, %v12054_v25  ;;  %v12338_v25 = vld [vmem:[#allocation13 + $0x198] sm:$0xff]  ;;  %v12341_v13 = vld [vmem:[#allocation13 + $0x1b0] sm:$0xff] }
 0x978   :  { %v12062_v6 = vpack.c.bf16 %v12053_v22, %v12052_v60  ;;  %v16138_v60 = vpack.c.bf16 %v12320_v8, %v12319_v34  ;;  %v12371_v8 = vld [vmem:[#allocation13 + $0x2a0] sm:$0xff] }
 0x97a   :  { %16065 = vmatprep.mubr.bf16.mxu0 %v12062_v6  ;;  %v12321_v6 = vld [vmem:[#allocation13 + $0x110] sm:$0xff] }
 0x97b   :  { %16066 = vmatmul.mubr.bf16.gmra.mrb[112].mxu0 %v12063_v62  ;;  %v16140_v62 = vpack.c.bf16 %v12338_v25, %v12337_v30  ;;  %v16142_v53 = vpack.c.bf16 %v12322_v35, %v12321_v6  ;;  %v12355_v25 = vld [vmem:[#allocation13 + $0x220] sm:$0xff] }
 0xa36   :  { %v16055_v47 = vpop.f32.mrb[100].mxu0 }
 0xa37   :  { %v12163_v16 = vpop.f32.mrb[101].mxu0 }
 0xa38   :  { %v12242_v2 = vmax.f32 %v12163_v16, %v16055_v47  ;;  %v16056_v26 = vpop.f32.mrb[102].mxu0  ;;  %v12342_v47 = vld [vmem:[#allocation13 + $0x1b8] sm:$0xff]  ;;  %v16146_v16 = vpack.c.bf16 %v12324_v17, %v12323_v40  ;;  %v12359_v40 = vld [vmem:[#allocation13 + $0x240] sm:$0xff]  ;;  %v12360_v17 = vld [vmem:[#allocation13 + $0x248] sm:$0xff] }
 0xa39   :  { %v12166_v33 = vpop.f32.mrb[103].mxu0 }
 0xa3a   :  { %v12243_v0 = vmax.f32 %v12166_v33, %v16056_v26  ;;  %v12325_v26 = vld [vmem:[#allocation13 + $0x130] sm:$0xff]  ;;  %v12326_v33 = vld [vmem:[#allocation13 + $0x138] sm:$0xff] }
 0xa3e   :  { %v16059_v54 = vpop.f32.mrb[104].mxu0 }
 0xa3f   :  { %v12179_v45 = vpop.f32.mrb[105].mxu0 }
 0xa40   :  { %v12244_v20 = vmax.f32 %v12242_v2, %v12179_v45  ;;  %v16060_v51 = vpop.f32.mrb[106].mxu0  ;;  %v16148_v2 = vpack.c.bf16 %v12342_v47, %v12341_v13  ;;  %v16150_v45 = vpack.c.bf16 %v12326_v33, %v12325_v26  ;;  %v12377_v13 = vld [vmem:[#allocation13 + $0x2d0] sm:$0xff]  ;;  %v12378_v47 = vld [vmem:[#allocation13 + $0x2d8] sm:$0xff] }
 0xa41   :  { %v12182_v56 = vpop.f32.mrb[107].mxu0  ;;  %v12361_v26 = vld [vmem:[#allocation13 + $0x250] sm:$0xff]  ;;  %v12362_v33 = vld [vmem:[#allocation13 + $0x258] sm:$0xff] }
 0xa42   :  { %v12245_v44 = vmax.f32 %v12243_v0, %v12182_v56  ;;  %v12246_v43 = vmax.f32 %v12244_v20, %v16059_v54  ;;  %v12343_v0 = vld [vmem:[#allocation13 + $0x1c0] sm:$0xff]  ;;  %v12344_v54 = vld [vmem:[#allocation13 + $0x1c8] sm:$0xff] }
 0xa43   :  { %v16152_v20 = vpack.c.bf16 %v12344_v54, %v12343_v0  ;;  %v12328_v56 = vld [vmem:[#allocation13 + $0x148] sm:$0xff]  ;;  %v12379_v0 = vld [vmem:[#allocation13 + $0x2e0] sm:$0xff] }
 0xa44   :  { %v12247_v19 = vmax.f32 %v12245_v44, %v16060_v51  ;;  %v12327_v51 = vld [vmem:[#allocation13 + $0x140] sm:$0xff]  ;;  %v12345_v44 = vld [vmem:[#allocation13 + $0x1d0] sm:$0xff]  ;;  %v12380_v54 = vld [vmem:[#allocation13 + $0x2e8] sm:$0xff] }
 0xa46   :  { %v16063_v38 = vpop.f32.mrb[108].mxu0 }
 0xa47   :  { %v12195_v1 = vpop.f32.mrb[109].mxu0 }
 0xa48   :  { %v12248_v29 = vmax.f32 %v12246_v43, %v12195_v1  ;;  %v16064_v12 = vpop.f32.mrb[110].mxu0  ;;  %v12346_v43 = vld [vmem:[#allocation13 + $0x1d8] sm:$0xff]  ;;  %v12329_v1 = vld [vmem:[#allocation13 + $0x150] sm:$0xff] }
 0xa49   :  { %v12198_v10 = vpop.f32.mrb[111].mxu0 }
 0xa4a   :  { %v12249_v39 = vmax.f32 %v12247_v19, %v12198_v10  ;;  %v12250_v15 = vmax.f32 %v12248_v29, %v16063_v38  ;;  %v16154_v19 = vpack.c.bf16 %v12328_v56, %v12327_v51  ;;  %v16156_v38 = vpack.c.bf16 %v12346_v43, %v12345_v44  ;;  %v12330_v29 = vld [vmem:[#allocation13 + $0x158] sm:$0xff]  ;;  %v12348_v10 = vld [vmem:[#allocation13 + $0x1e8] sm:$0xff]  ;;  %v12363_v51 = vld [vmem:[#allocation13 + $0x260] sm:$0xff] }
 0xa4b   :  { %v12364_v56 = vld [vmem:[#allocation13 + $0x268] sm:$0xff]  ;;  %v12381_v44 = vld [vmem:[#allocation13 + $0x2f0] sm:$0xff]  ;;  %v12382_v43 = vld [vmem:[#allocation13 + $0x2f8] sm:$0xff] }
 0xa4c   :  { %v12251_v32 = vmax.f32 %v12249_v39, %v16064_v12  ;;  %v12347_v12 = vld [vmem:[#allocation13 + $0x1e0] sm:$0xff]  ;;  %v16158_v39 = vpack.c.bf16 %v12330_v29, %v12329_v1  ;;  %v12365_v1 = vld [vmem:[#allocation13 + $0x270] sm:$0xff]  ;;  %v12366_v29 = vld [vmem:[#allocation13 + $0x278] sm:$0xff] }
 0xa4e   :  { %v16067_v41 = vpop.f32.mrb[112].mxu0 }
 0xa4f   :  { %v12211_v11 = vpop.f32.mrb[113].mxu0 }
 0xa50   :  { %v12252_v48 = vmax.f32 %v12250_v15, %v12211_v11  ;;  %v16068_v4 = vpop.f32.mrb[114].mxu0  ;;  %v16160_v15 = vpack.c.bf16 %v12348_v10, %v12347_v12  ;;  %v12349_v11 = vld [vmem:[#allocation13 + $0x1f0] sm:$0xff]  ;;  %v12399_v12 = vld [vmem:[#allocation13 + $0x380] sm:$0xff]  ;;  %v12400_v10 = vld [vmem:[#allocation13 + $0x388] sm:$0xff] }
 0xa51   :  { %v12214_v27 = vpop.f32.mrb[115].mxu0 }
 0xa52   :  { %v12254_v21 = vmax.f32 %v12252_v48, %v16067_v41  ;;  %v12253_v58 = vmax.f32 %v12251_v32, %v12214_v27  ;;  %v12331_v32 = vld [vmem:[#allocation13 + $0x160] sm:$0xff]  ;;  %v12332_v41 = vld [vmem:[#allocation13 + $0x168] sm:$0xff]  ;;  %v12350_v48 = vld [vmem:[#allocation13 + $0x1f8] sm:$0xff] }
 0xa53   :  { %v12333_v27 = vld [vmem:[#allocation13 + $0x170] sm:$0xff] }
 0xa54   :  { %v12263_v36 = vadd.f32 %v13941_v5, %v12254_v21  ;;  %v12255_v24 = vmax.f32 %v12253_v58, %v16068_v4  ;;  %v16162_v4 = vpack.c.bf16 %v12332_v41, %v12331_v32  ;;  %v12334_v21 = vld [vmem:[#allocation13 + $0x178] sm:$0xff]  ;;  %v12367_v58 = vld [vmem:[#allocation13 + $0x280] sm:$0xff]  ;;  %v16200_v32 = vpack.c.bf16 %v12400_v10, %v12399_v12  ;;  %v12755_v10 = vld [vmem:[%s20082_s7 + $0x40] sm:$0xff] }
 0xa55   :  { %v12383_v41 = vld [vmem:[#allocation13 + $0x300] sm:$0xff] }
 0xa56   :  { %v12265_v55 = vmax.f32 %v12263_v36, 0.0  ;;  %v12264_v18 = vadd.f32 %v13941_v5, %v12255_v24  ;;  %v16164_v5 = vpack.c.bf16 %v12350_v48, %v12349_v11  ;;  %v12368_v36 = vld [vmem:[#allocation13 + $0x288] sm:$0xff] }
 0xa57   :  { %v12384_v11 = vld [vmem:[#allocation13 + $0x308] sm:$0xff] }
 0xa58   :  { %12267 = vst [vmem:[#allocation2] sm:$0xff] %v12265_v55  ;;  %v12266_v37 = vmax.f32 %v12264_v18, 0.0  ;;  %v16166_v55 = vpack.c.bf16 %v12334_v21, %v12333_v27  ;;  %v16168_v18 = vpack.c.bf16 %v12368_v36, %v12367_v58  ;;  %v16202_v27 = vpack.c.bf16 %v12384_v11, %v12383_v41  ;;  %v12385_v58 = vld [vmem:[#allocation13 + $0x310] sm:$0xff]  ;;  %v12386_v36 = vld [vmem:[#allocation13 + $0x318] sm:$0xff]  ;;  %v12758_v41 = vld [vmem:[%s20082_s7 + $0x58] sm:$0xff] }
 0xa5a   :  { %12268 = vst [vmem:[#allocation2 + $0x8] sm:$0xff] %v12266_v37  ;;  %v12351_v37 = vld [vmem:[#allocation13 + $0x200] sm:$0xff] }
 0xa5b   :  { %v16170_v57 = vpack.c.bf16 %v12352_v52, %v12351_v37  ;;  %v16206_v37 = vpack.c.bf16 %v12386_v36, %v12385_v58  ;;  %v12387_v52 = vld [vmem:[#allocation13 + $0x320] sm:$0xff]  ;;  %v17157_v36 = vmov 0.0  }
 0xa5f   :  { %v12269_v31 = vld [vmem:[#allocation2] sm:$0xff]  }
 0xa60   :  { %12270 = vst [vmem:[#allocation3] sm:$0xff] %v12269_v31   ;;  %v12370_v31 = vld [vmem:[#allocation13 + $0x298] sm:$0xff] }
 0xa61   :  { %v12277_v50 = vld [vmem:[#allocation2 + $0x8] sm:$0xff]   ;;  %v16172_v61 = vpack.c.bf16 %v12370_v31, %v12369_v59  ;;  %v12388_v59 = vld [vmem:[#allocation13 + $0x328] sm:$0xff] }
 0xa62   :  { %12278 = vst [vmem:[#allocation3 + $0x8] sm:$0xff] %v12277_v50   ;;  %v12353_v50 = vld [vmem:[#allocation13 + $0x210] sm:$0xff] }
 0xa63   :  { %v12405_v31 = vld [vmem:[#allocation13 + $0x3b0] sm:$0xff] }
 0xa67   :  { %v12285_v9 = vld [vmem:[#allocation3] sm:$0xff] }
 0xa68   :  { %v12431_v49 = vrot.slane %v12285_v9, %v19998_v63  ;;  %v12424_v23 = vcombine.high %v12285_v9, %v12285_v9  ;;  %v12354_v9 = vld [vmem:[#allocation13 + $0x218] sm:$0xff] }
 0xa69   :  { %v20006_v24 = vld [vmem:[#allocation3 + $0x8] sm:$0xff] }
 0xa6a   :  { %v12439_v46 = vcombine.high %v12431_v49, %v12431_v49  ;;  %v20002_v22 = vrot.slane %v12424_v23, %v19998_v63  ;;  %v20010_v7 = vrot.slane %v20006_v24, %v19998_v63  ;;  %v16174_v23 = vpack.c.bf16 %v12354_v9, %v12353_v50  ;;  %v12389_v9 = vld [vmem:[#allocation13 + $0x330] sm:$0xff] }
 0xa6c   :  { %12530 = vmatprep.mubr.f32.mxu1 %v12439_v46  ;;  %v12440_v3 = vcombine.high %v20002_v22, %v20002_v22  ;;  %v12456_v34 = vcombine.high %v20010_v7, %v20010_v7  ;;  %v12356_v46 = vld [vmem:[#allocation13 + $0x228] sm:$0xff] }
 0xa6d   :  { %12531 = vmatmul.mubr.f32.vlgmr.msra.gmra.mrb[28].mxu1 %v12431_v49  ;;  %v12372_v49 = vld [vmem:[#allocation13 + $0x2a8] sm:$0xff]  ;;  %v16178_v6 = vpack.c.bf16 %v12356_v46, %v12355_v25  ;;  %v12409_v46 = vld [vmem:[#allocation13 + $0x3d0] sm:$0xff] }
 0xa6e   :  { %16139 = vmatpush3.bf16.msra.mxu1 %v16138_v60  ;;  %12600 = vmatprep.mubr.f32.mxu1 %v12440_v3  ;;  %v16176_v30 = vpack.c.bf16 %v12372_v49, %v12371_v8  ;;  %v12373_v60 = vld [vmem:[#allocation13 + $0x2b0] sm:$0xff]  ;;  %v12407_v8 = vld [vmem:[#allocation13 + $0x3c0] sm:$0xff]  ;;  %v12408_v49 = vld [vmem:[#allocation13 + $0x3c8] sm:$0xff] }
 0xa6f   :  { %16141 = vmatprep.subr.bf16.mxu1 %v16140_v62  ;;  %v12374_v62 = vld [vmem:[#allocation13 + $0x2b8] sm:$0xff]  ;;  %v12357_v3 = vld [vmem:[#allocation13 + $0x230] sm:$0xff]  ;;  %v12392_v25 = vld [vmem:[#allocation13 + $0x348] sm:$0xff] }
 0xa70   :  { %v16180_v35 = vpack.c.bf16 %v12374_v62, %v12373_v60  ;;  %v12410_v60 = vld [vmem:[#allocation13 + $0x3d8] sm:$0xff] }
 0xa72   :  { %16143 = vmatpush3.bf16.msra.mxu1 %v16142_v53  ;;  %v12376_v53 = vld [vmem:[#allocation13 + $0x2c8] sm:$0xff] }
 0xa73   :  { %16145 = vmatprep.subr.bf16.mxu1 %v16144_v42  ;;  %v16182_v42 = vpack.c.bf16 %v12358_v28, %v12357_v3  ;;  %v12394_v3 = vld [vmem:[#allocation13 + $0x358] sm:$0xff]  ;;  %v12411_v28 = vld [vmem:[#allocation13 + $0x3e0] sm:$0xff] }
 0xa76   :  { %16147 = vmatpush3.bf16.msra.mxu1 %v16146_v16  ;;  %v16186_v16 = vpack.c.bf16 %v12360_v17, %v12359_v40  ;;  %v12396_v40 = vld [vmem:[#allocation13 + $0x368] sm:$0xff]  ;;  %v12413_v17 = vld [vmem:[#allocation13 + $0x3f0] sm:$0xff] }
 0xa77   :  { %16149 = vmatprep.subr.bf16.mxu1 %v16148_v2  ;;  %v16188_v2 = vpack.c.bf16 %v12378_v47, %v12377_v13  ;;  %v12414_v13 = vld [vmem:[#allocation13 + $0x3f8] sm:$0xff] }
 0xa7a   :  { %16151 = vmatpush3.bf16.msra.mxu1 %v16150_v45  ;;  %v16190_v45 = vpack.c.bf16 %v12362_v33, %v12361_v26  ;;  %v12398_v26 = vld [vmem:[#allocation13 + $0x378] sm:$0xff] }
 0xa7b   :  { %16153 = vmatprep.subr.bf16.mxu1 %v16152_v20  ;;  %v16192_v20 = vpack.c.bf16 %v12380_v54, %v12379_v0  ;;  %v12747_v0 = vld [vmem:[%s20082_s7] sm:$0xff]  ;;  %v12748_v54 = vld [vmem:[%s20082_s7 + $0x8] sm:$0xff] }
 0xa7e   :  { %16155 = vmatpush3.bf16.msra.mxu1 %v16154_v19  ;;  %v16194_v19 = vpack.c.bf16 %v12364_v56, %v12363_v51  ;;  %v16233_v51 = vpack.c.bf16 %v12748_v54, %v12747_v0  ;;  %v12750_v56 = vld [vmem:[%s20082_s7 + $0x18] sm:$0xff] }
 0xa7f   :  { %16157 = vmatprep.subr.bf16.mxu1 %v16156_v38  ;;  %v16196_v38 = vpack.c.bf16 %v12382_v43, %v12381_v44  ;;  %v12751_v43 = vld [vmem:[%s20082_s7 + $0x20] sm:$0xff] }
 0xa82   :  { %16159 = vmatpush3.bf16.msra.mxu1 %v16158_v39  ;;  %v12441_v39 = vcombine.high %v20006_v24, %v20006_v24 }
 0xa83   :  { %16161 = vmatprep.subr.bf16.mxu1 %v16160_v15  ;;  %v16198_v15 = vpack.c.bf16 %v12366_v29, %v12365_v1  ;;  %v12753_v1 = vld [vmem:[%s20082_s7 + $0x30] sm:$0xff]  ;;  %v12754_v29 = vld [vmem:[%s20082_s7 + $0x38] sm:$0xff] }
 0xa84   :  { %v20018_v48 = vrot.slane %v12441_v39, %v19998_v63  ;;  %v16242_v12 = vpack.c.bf16 %v12754_v29, %v12753_v1  ;;  %v12756_v39 = vld [vmem:[%s20082_s7 + $0x48] sm:$0xff] }
 0xa86   :  { %16163 = vmatpush3.bf16.msra.mxu1 %v16162_v4  ;;  %v12401_v4 = vld [vmem:[#allocation13 + $0x390] sm:$0xff]  ;;  %v12457_v24 = vcombine.high %v20018_v48, %v20018_v48 }
 0xa87   :  { %16165 = vmatprep.subr.bf16.mxu1 %v16164_v5  ;;  %v12402_v5 = vld [vmem:[#allocation13 + $0x398] sm:$0xff] }
 0xa88   :  { %v16204_v21 = vpack.c.bf16 %v12402_v5, %v12401_v4  ;;  %v12760_v4 = vld [vmem:[%s20082_s7 + $0x68] sm:$0xff] }
 0xa8a   :  { %16167 = vmatpush3.bf16.msra.mxu1 %v16166_v55  ;;  %v12403_v55 = vld [vmem:[#allocation13 + $0x3a0] sm:$0xff] }
 0xa8b   :  { %16169 = vmatprep.subr.bf16.mxu1 %v16168_v18  ;;  %v12404_v18 = vld [vmem:[#allocation13 + $0x3a8] sm:$0xff] }
 0xa8c   :  { %v16208_v63 = vpack.c.bf16 %v12404_v18, %v12403_v55 }
 0xa8d   :  { %12601 = vmatmul.mubr.f32.vlgmr.msra.gmra.mrb[30].mxu1 %v20002_v22  ;;  %v16184_v22 = vpack.c.bf16 %v12376_v53, %v12375_v14  ;;  %v12412_v14 = vld [vmem:[#allocation13 + $0x3e8] sm:$0xff] }
 0xa8e   :  { %16171 = vmatpush3.bf16.msra.mxu1 %v16170_v57  ;;  %12670 = vmatprep.mubr.f32.mxu1 %v12456_v34  ;;  %v12406_v57 = vld [vmem:[#allocation13 + $0x3b8] sm:$0xff] }
 0xa8f   :  { %16173 = vmatprep.subr.bf16.mxu1 %v16172_v61  ;;  %v16210_v61 = vpack.c.bf16 %v12388_v59, %v12387_v52  ;;  %v16212_v50 = vpack.c.bf16 %v12406_v57, %v12405_v31  ;;  %v12390_v34 = vld [vmem:[#allocation13 + $0x338] sm:$0xff] }
 0xa92   :  { %16175 = vmatpush3.bf16.msra.mxu1 %v16174_v23  ;;  %v16214_v23 = vpack.c.bf16 %v12390_v34, %v12389_v9 }
 0xa93   :  { %16177 = vmatprep.subr.bf16.mxu1 %v16176_v30  ;;  %v12391_v30 = vld [vmem:[#allocation13 + $0x340] sm:$0xff] }
 0xa94   :  { %v16218_v62 = vpack.c.bf16 %v12392_v25, %v12391_v30  ;;  %v13943_v25 = vld [vmem:[#allocation4] ss:$0 sm:$0xff] }
 0xa96   :  { %16179 = vmatpush3.bf16.msra.mxu1 %v16178_v6  ;;  %v16220_v6 = vpack.c.bf16 %v12410_v60, %v12409_v46 }
 0xa97   :  { %16181 = vmatprep.subr.bf16.mxu1 %v16180_v35  ;;  %v12393_v35 = vld [vmem:[#allocation13 + $0x350] sm:$0xff] }
 0xa98   :  { %v16222_v53 = vpack.c.bf16 %v12394_v3, %v12393_v35 }
 0xa9a   :  { %16183 = vmatpush3.bf16.msra.mxu1 %v16182_v42  ;;  %v16224_v42 = vpack.c.bf16 %v12412_v14, %v12411_v28 }
 0xa9b   :  { %16185 = vmatprep.subr.bf16.mxu1 %v16184_v22  ;;  %v12395_v22 = vld [vmem:[#allocation13 + $0x360] sm:$0xff] }
 0xa9c   :  { %v16226_v47 = vpack.c.bf16 %v12396_v40, %v12395_v22 }
 0xa9e   :  { %16187 = vmatpush3.bf16.msra.mxu1 %v16186_v16  ;;  %v16228_v16 = vpack.c.bf16 %v12414_v13, %v12413_v17 }
 0xa9f   :  { %16189 = vmatprep.subr.bf16.mxu1 %v16188_v2  ;;  %v12397_v2 = vld [vmem:[#allocation13 + $0x370] sm:$0xff] }
 0xaa0   :  { %v16230_v33 = vpack.c.bf16 %v12398_v26, %v12397_v2 }
 0xaa2   :  { %16191 = vmatpush3.bf16.msra.mxu1 %v16190_v45  ;;  %v12749_v45 = vld [vmem:[%s20082_s7 + $0x10] sm:$0xff] }
 0xaa3   :  { %16193 = vmatprep.subr.bf16.mxu1 %v16192_v20  ;;  %v17155_v20 = vmov 0.0|0.0   ;;  %v16236_v44 = vpack.c.bf16 %v12750_v56, %v12749_v45 }
 0xaa6   :  { %16195 = vmatpush3.bf16.msra.mxu1 %v16194_v19  ;;  %v12752_v19 = vld [vmem:[%s20082_s7 + $0x28] sm:$0xff] }
 0xaa7   :  { %16197 = vmatprep.subr.bf16.mxu1 %v16196_v38  ;;  %v16239_v38 = vpack.c.bf16 %v12752_v19, %v12751_v43 }
 0xaaa   :  { %16199 = vmatpush3.bf16.msra.mxu1 %v16198_v15  ;;  %v16245_v15 = vpack.c.bf16 %v12756_v39, %v12755_v10 }
 0xaab   :  { %16201 = vmatprep.subr.bf16.mxu1 %v16200_v32  ;;  %v12757_v32 = vld [vmem:[%s20082_s7 + $0x50] sm:$0xff] }
 0xaac   :  { %v16248_v11 = vpack.c.bf16 %v12758_v41, %v12757_v32 }
 0xaad   :  { %12671 = vmatmul.mubr.f32.vlgmr.msra.gmra.mrb[32].mxu1 %v20010_v7  ;;  %v16216_v7 = vpack.c.bf16 %v12408_v49, %v12407_v8 }
 0xaae   :  { %16203 = vmatpush3.bf16.msra.mxu1 %v16202_v27  ;;  %12740 = vmatprep.mubr.f32.mxu1 %v12457_v24  ;;  %v12761_v27 = vld [vmem:[%s20082_s7 + $0x70] sm:$0xff] }
 0xaaf   :  { %16205 = vmatprep.subr.bf16.mxu1 %v16204_v21  ;;  %v12762_v21 = vld [vmem:[%s20082_s7 + $0x78] sm:$0xff] }
 0xab0   :  { %v16254_v58 = vpack.c.bf16 %v12762_v21, %v12761_v27 }
 0xab2   :  { %16207 = vmatpush3.bf16.msra.mxu1 %v16206_v37  ;;  %v13942_v37 = vld [vmem:[#allocation15] ss:$0 sm:$0xff] }
 0xab3   :  { %16209 = vmatprep.subr.bf16.mxu1 %v16208_v63 }
 0xab6   :  { %16211 = vmatpush3.bf16.msra.mxu1 %v16210_v61 }
 0xab7   :  { %16213 = vmatprep.subr.bf16.mxu1 %v16212_v50 }
 0xaba   :  { %16215 = vmatpush3.bf16.msra.mxu1 %v16214_v23 }
 0xabb   :  { %16217 = vmatprep.subr.bf16.mxu1 %v16216_v7 }
 0xabe   :  { %16219 = vmatpush3.bf16.msra.mxu1 %v16218_v62 }
 0xabf   :  { %16221 = vmatprep.subr.bf16.mxu1 %v16220_v6 }
 0xac2   :  { %16223 = vmatpush3.bf16.msra.mxu1 %v16222_v53 }
 0xac3   :  { %16225 = vmatprep.subr.bf16.mxu1 %v16224_v42 }
 0xac6   :  { %16227 = vmatpush3.bf16.msra.mxu1 %v16226_v47 }
 0xac7   :  { %16229 = vmatprep.subr.bf16.mxu1 %v16228_v16 }
 0xaca   :  { %16231 = vmatpush3.bf16.msra.mxu1 %v16230_v33 }
 0xacb   :  { %16232 = vmatprep.subr.bf16.mxu1 %v17155_v20 }
 0xacd   :  { %12741 = vmatmul.mubr.f32.vlgmr.msra.gmra.mrb[34].mxu1 %v20018_v48  ;;  %v12759_v48 = vld [vmem:[%s20082_s7 + $0x60] sm:$0xff] }
 0xace   :  { %16234 = vmatpush3.bf16.msra.mxu1 %v16233_v51  ;;  %v16251_v5 = vpack.c.bf16 %v12760_v4, %v12759_v48  ;;  %16101 = vmatprep.mubr.msk.f32.mxu1 %vm17156_vm1, %v17157_v36 }
 0xacf   :  { %16235 = vmatprep.subr.bf16.mxu1 %v17155_v20 }
 0xad2   :  { %16237 = vmatpush3.bf16.msra.mxu1 %v16236_v44 }
 0xad3   :  { %16238 = vmatprep.subr.bf16.mxu1 %v17155_v20 }
 0xad6   :  { %16240 = vmatpush3.bf16.msra.mxu1 %v16239_v38 }
 0xad7   :  { %16241 = vmatprep.subr.bf16.mxu1 %v17155_v20 }
 0xada   :  { %16243 = vmatpush3.bf16.msra.mxu1 %v16242_v12 }
 0xadb   :  { %16244 = vmatprep.subr.bf16.mxu1 %v17155_v20 }
 0xade   :  { %16246 = vmatpush3.bf16.msra.mxu1 %v16245_v15 }
 0xadf   :  { %16247 = vmatprep.subr.bf16.mxu1 %v17155_v20 }
 0xae2   :  { %16249 = vmatpush3.bf16.msra.mxu1 %v16248_v11 }
 0xae3   :  { %16250 = vmatprep.subr.bf16.mxu1 %v17155_v20 }
 0xae6   :  { %16252 = vmatpush3.bf16.msra.mxu1 %v16251_v5 }
 0xae7   :  { %16253 = vmatprep.subr.bf16.mxu1 %v17155_v20 }
 0xaea   :  { %16255 = vmatpush3.bf16.msra.mxu1 %v16254_v58 }
 0xb40   :  { %v14632_v24 = vpop.f32.mrb[28].mxu1 }
 0xb41   :  { %v14633_v55 = vpop.f32.mrb[29].mxu1 }
 0xb42   :  { %v14634_v18 = vadd.f32 %v14633_v55, %v14632_v24 }
 0xb44   :  { %v12533_v59 = vadd.f32 %v14634_v18, %v13942_v37 }
 0xb60   :  { %v14667_v63 = vpop.f32.mrb[30].mxu1 }
 0xb61   :  { %v14668_v52 = vpop.f32.mrb[31].mxu1 }
 0xb62   :  { %v14669_v31 = vadd.f32 %v14668_v52, %v14667_v63 }
 0xb64   :  { %v12603_v57 = vadd.f32 %v14669_v31, %v12533_v59 }
 0xb80   :  { %v14702_v61 = vpop.f32.mrb[32].mxu1 }
 0xb81   :  { %v14703_v50 = vpop.f32.mrb[33].mxu1 }
 0xb82   :  { %v14704_v9 = vadd.f32 %v14703_v50, %v14702_v61 }
 0xb84   :  { %v12673_v34 = vadd.f32 %v14704_v9, %v12603_v57 }
 0xba0   :  { %v14737_v8 = vpop.f32.mrb[34].mxu1 }
 0xba1   :  { %v14738_v49 = vpop.f32.mrb[35].mxu1 }
 0xba2   :  { %v14739_v23 = vadd.f32 %v14738_v49, %v14737_v8 }
 0xba4   :  { %v12743_v7 = vadd.f32 %v14739_v23, %v12673_v34 }
 0xba6   :  { %v12746_v30 = vmax.f32 %v12743_v7, 0.0 }
 0xba8   :  { %16102 = vmatmul.mubr.f32.vlgmr.msra.gmra.mrb[36].mxu1 %v12746_v30 }
 0xc7b   :  { %v12836_v46 = vpop.f32.mrb[36].mxu1 }
 0xc7c   :  { %v12837_v60 = vadd.f32 %v13943_v25, %v12836_v46  ;;  %v16103_v62 = vpop.f32.mrb[37].mxu1 }
 0xc7e   :  { %12841 = vst.msk [vmem:[%s20084_s9] sm:$0x3] %vm12840_vm2, %v12837_v60 }
 0xc7f   :  { %12846 = vsyncpa [#allocation6], 1 }
 0xc80   :  { %12847 = vsyncpa [#allocation8], 1 }
 0xc81   :  { %12848 = vsyncpa [#allocation11], 1 }
 0xc82   :  { %12849 = vsyncpa [#allocation14], 1 }

</bundles_post_ra>
